<compile_context>
chip_gen: v6e
topology: v6e:2x2x1
jax: 0.10.0
libtpu: 0.0.40
codegen_flags: <defaults>
</compile_context>

<pallas_src>
import functools

import jax
import jax.numpy as jnp
import numpy as np
from jax.experimental import pallas as pl
from jax.experimental.pallas import tpu as pltpu

LEAKY_SLOPE = 0.01   # nn.LeakyReLU default
BN_EPS = 1e-5        # nn.BatchNorm2d default
PMAX = 2             # unified spatial halo (max padding needed by any stage: conv2 p=2)
LANE = 128


# ---------------------------------------------------------------------------
# Fused Pallas kernel: pad/concat + conv1..conv4 (+bias+LeakyReLU+BN eval), one batch elem
# ---------------------------------------------------------------------------
def _fused_upblock_kernel(up_ref, sk_ref, w1_ref, w2_ref, w3_ref, w4_ref,
                          mask_ref, p_ref, o_ref,
                          x0_ref, e1_ref, e2_ref, e4_ref,
                          *, H, W, WP, Q0, NQ, NPAD, C_UP, COUT):
    # up_ref : (1, C_UP, H*W)  bf16   pixelshuffled input, flattened NCHW
    # sk_ref : (1, C_SK, H*W)  bf16   skip connection, flattened NCHW
    # wN_ref : (ntaps, COUT, Cin) bf16 per-tap transposed weights
    # mask   : (1, NQ) f32            1 on valid (interior) columns of the band
    # p_ref  : (COUT, 12) f32         per-stage [bias, bn_scale, bn_shift]
    # o_ref  : (1, COUT, H*W) f32     unpadded flattened NCHW output
    # x0_ref : (C0, NPAD)  bf16       padded concat(upA, skip) slab (assembled here)
    # e1/e2  : (COUT, NPAD) bf16      padded intermediate feature maps
    # e4_ref : (COUT, NQ)  f32        final band before per-row emission
    mask = mask_ref[...]                                    # (1, NQ)

    # ---- fused concat + halo pad: assemble the bf16 input slab in VMEM ----
    # (replaces the wrapper-side concat/pad HBM round trips; the zero-fill is
    #  VMEM-local and provides halo rows + per-row gap columns every grid step,
    #  so it is also megacore-safe — no program_id==0 guard.)
    x0_ref[...] = jnp.zeros(x0_ref.shape, x0_ref.dtype)
    for r in range(H):                                      # static rows -> unrolled
        q = Q0 + r * WP
        x0_ref[:C_UP, q:q + W] = up_ref[0, :, r * W:(r + 1) * W]
        x0_ref[C_UP:, q:q + W] = sk_ref[0, :, r * W:(r + 1) * W]

    def epilogue(acc, s, apply_mask):
        b = p_ref[:, 3 * s + 0:3 * s + 1]                   # (COUT, 1)
        sc = p_ref[:, 3 * s + 1:3 * s + 2]
        sh = p_ref[:, 3 * s + 2:3 * s + 3]
        acc = acc + b
        acc = jnp.where(acc >= 0, acc, LEAKY_SLOPE * acc)   # LeakyReLU
        acc = acc * sc + sh                                 # BN (eval, folded)
        # mask only where a later dilated conv actually reads the wrap columns
        return acc * mask if apply_mask else acc

    def tap_offsets(k, dil, pad):
        return [(i * dil - pad) * WP + (j * dil - pad)
                for i in range(k) for j in range(k)]

    def conv(src_ref, w_ref, offsets, s, apply_mask):
        acc = jnp.zeros((COUT, NQ), jnp.float32)
        for t, off in enumerate(offsets):                   # static taps -> unrolled
            rhs = src_ref[:, Q0 + off:Q0 + off + NQ]        # bf16, no per-tap cast
            acc = acc + jnp.dot(w_ref[t], rhs,
                                preferred_element_type=jnp.float32)
        return epilogue(acc, s, apply_mask)

    # --- conv1: 3x3, d=1, p=1 over concat(pixelshuffle(x), skip) ---
    r1 = conv(x0_ref, w1_ref, tap_offsets(3, 1, 1), 0, True)
    e1_ref[:, :Q0] = jnp.zeros((COUT, Q0), e1_ref.dtype)                 # halo only
    e1_ref[:, Q0 + NQ:] = jnp.zeros((COUT, NPAD - Q0 - NQ), e1_ref.dtype)
    e1_ref[:, Q0:Q0 + NQ] = r1.astype(e1_ref.dtype)                      # 128-aligned store

    # --- conv2: 3x3, d=2, p=2 over e1 ---
    r2 = conv(e1_ref, w2_ref, tap_offsets(3, 2, 2), 1, True)
    e2_ref[:, :Q0] = jnp.zeros((COUT, Q0), e2_ref.dtype)
    e2_ref[:, Q0 + NQ:] = jnp.zeros((COUT, NPAD - Q0 - NQ), e2_ref.dtype)
    e2_ref[:, Q0:Q0 + NQ] = r2.astype(e2_ref.dtype)

    # --- conv3: 2x2, d=2, p=1 over e2 (no mask: only the 1x1 conv4 reads it,
    #     and only valid columns of the result are ever emitted) ---
    r3 = conv(e2_ref, w3_ref, tap_offsets(2, 2, 1), 2, False)

    # --- conv4: 1x1 over concat(e1,e2,e3) == sum of three matmuls (w4 split) ---
    acc = jnp.dot(w4_ref[0], e1_ref[:, Q0:Q0 + NQ], preferred_element_type=jnp.float32)
    acc = acc + jnp.dot(w4_ref[1], e2_ref[:, Q0:Q0 + NQ], preferred_element_type=jnp.float32)
    acc = acc + jnp.dot(w4_ref[2], r3.astype(jnp.bfloat16), preferred_element_type=jnp.float32)
    e4_ref[...] = epilogue(acc, 3, False)

    # --- emit the unpadded NCHW output directly (no padded output + wrapper crop) ---
    for r in range(H):
        o_ref[0, :, r * W:(r + 1) * W] = e4_ref[:, r * WP:r * WP + W]


def _fused_upblock_call(up_f, sk_f, w1t, w2t, w3t, w4t, mask, pparams, *,
                        H, W, C_UP, COUT, WP, Q0, NQ, NPAD):
    B, _, HW = up_f.shape
    C_SK = sk_f.shape[1]
    C0 = C_UP + C_SK

    kern = functools.partial(_fused_upblock_kernel, H=H, W=W, WP=WP, Q0=Q0,
                             NQ=NQ, NPAD=NPAD, C_UP=C_UP, COUT=COUT)

    flops = 2 * B * NQ * COUT * (9 * C0 + 9 * COUT + 4 * COUT + 3 * COUT)
    bytes_accessed = (up_f.size * 2 + sk_f.size * 2 + B * COUT * HW * 4
                      + 2 * (w1t.size + w2t.size + w3t.size + w4t.size)
                      + 4 * (mask.size + pparams.size))

    return pl.pallas_call(
        kern,
        out_shape=jax.ShapeDtypeStruct((B, COUT, HW), jnp.float32),
        grid=(B,),
        in_specs=[
            pl.BlockSpec((1, C_UP, HW), lambda b: (b, 0, 0)),
            pl.BlockSpec((1, C_SK, HW), lambda b: (b, 0, 0)),
            pl.BlockSpec(w1t.shape, lambda b: (0, 0, 0)),
            pl.BlockSpec(w2t.shape, lambda b: (0, 0, 0)),
            pl.BlockSpec(w3t.shape, lambda b: (0, 0, 0)),
            pl.BlockSpec(w4t.shape, lambda b: (0, 0, 0)),
            pl.BlockSpec((1, NQ), lambda b: (0, 0)),
            pl.BlockSpec((COUT, 12), lambda b: (0, 0)),
        ],
        out_specs=pl.BlockSpec((1, COUT, HW), lambda b: (b, 0, 0)),
        scratch_shapes=[
            pltpu.VMEM((C0, NPAD), jnp.bfloat16),    # assembled padded input slab
            pltpu.VMEM((COUT, NPAD), jnp.bfloat16),  # e1
            pltpu.VMEM((COUT, NPAD), jnp.bfloat16),  # e2
            pltpu.VMEM((COUT, NQ), jnp.float32),     # e4 (final band)
        ],
        compiler_params=pltpu.CompilerParams(
            dimension_semantics=("parallel",),
            # raises v5e's 16 MiB default scoped VMEM; matches the v6e/v7x default.
            vmem_limit_bytes=32 * 1024 * 1024,
        ),
        cost_estimate=pl.CostEstimate(flops=flops, transcendentals=0,
                                      bytes_accessed=bytes_accessed),
    )(up_f, sk_f, w1t, w2t, w3t, w4t, mask, pparams)


# ---------------------------------------------------------------------------
# Parameter / layout plumbing
# ---------------------------------------------------------------------------
def pixelshuffle2x_nchw(x):
    """[B, C, H, W] -> [B, C//4, 2H, 2W] (matches the PyTorch helper exactly)."""
    B, C, H, W = x.shape
    p = 2
    oC = C // (p * p)
    y = x.reshape(B, oC, p, p, H, W)
    y = jnp.transpose(y, (0, 1, 4, 2, 5, 3)).reshape(B, oC, H * p, W * p)
    return y


def bn_fold(gamma, beta, mean, var):
    scale = gamma / jnp.sqrt(var + BN_EPS)
    shift = beta - mean * scale
    return (scale.reshape(1, -1).astype(jnp.float32),
            shift.reshape(1, -1).astype(jnp.float32))


def _taps(w_hwio):
    """HWIO (kh,kw,Cin,Cout) -> per-tap transposed weights (kh*kw, Cout, Cin) bf16."""
    kh, kw, cin, cout = w_hwio.shape
    return jnp.transpose(w_hwio, (0, 1, 3, 2)).reshape(kh * kw, cout, cin).astype(jnp.bfloat16)


def _pack_epilogue_params(params, cout):
    """(Cout, 12) f32: per stage s the columns [3s, 3s+1, 3s+2] = bias, bn_scale, bn_shift."""
    cols = []
    for s in range(1, 5):
        b = params[f"b{s}"].reshape(-1)
        sc, sh = params[f"bn{s}"]
        cols += [b, sc.reshape(-1), sh.reshape(-1)]
    return jnp.stack(cols, axis=1).astype(jnp.float32)


def init_params(key, in_filters, out_filters):
    """Deterministic synthetic params; conv weights stored HWIO."""
    c1_in = in_filters // 4 + 2 * out_filters
    ks = list(jax.random.split(key, 12))

    def conv_w(k, kh, kw, cin, cout):
        return (0.1 * jax.random.normal(k, (kh, kw, cin, cout))).astype(jnp.float32)

    def conv_b(k, cout):
        return (0.1 * jax.random.normal(k, (1, cout))).astype(jnp.float32)

    def bn(k, c):
        k1, k2, k3, k4 = jax.random.split(k, 4)
        gamma = 1.0 + 0.1 * jax.random.normal(k1, (c,))
        beta = 0.1 * jax.random.normal(k2, (c,))
        mean = 0.1 * jax.random.normal(k3, (c,))
        var = 1.0 + 0.1 * jax.random.uniform(k4, (c,))
        return bn_fold(gamma, beta, mean, var)

    return {
        "w1": conv_w(ks[0], 3, 3, c1_in, out_filters), "b1": conv_b(ks[1], out_filters),
        "bn1": bn(ks[2], out_filters),
        "w2": conv_w(ks[3], 3, 3, out_filters, out_filters), "b2": conv_b(ks[4], out_filters),
        "bn2": bn(ks[5], out_filters),
        "w3": conv_w(ks[6], 2, 2, out_filters, out_filters), "b3": conv_b(ks[7], out_filters),
        "bn3": bn(ks[8], out_filters),
        "w4": conv_w(ks[9], 1, 1, 3 * out_filters, out_filters), "b4": conv_b(ks[10], out_filters),
        "bn4": bn(ks[11], out_filters),
    }


# ---------------------------------------------------------------------------
# UpBlockBEV forward (Pallas path) — NCHW in, NCHW out.  No wrapper concat/pad/crop:
# the kernel assembles the padded slab and emits the unpadded output itself.
# ---------------------------------------------------------------------------
def upblock_bev_forward(x_nchw, skip_nchw, params):
    upA = pixelshuffle2x_nchw(x_nchw)
    # Dropout2d: identity in eval mode (deterministic forward).
    if tuple(upA.shape[2:]) != tuple(skip_nchw.shape[2:]):
        # bilinear, align_corners=False  <->  jax.image.resize half-pixel centers
        B, C = skip_nchw.shape[:2]
        skip_nchw = jax.image.resize(skip_nchw, (B, C) + tuple(upA.shape[2:]),
                                     method="bilinear")
    B, C_up, H, W = upA.shape
    C_sk = skip_nchw.shape[1]
    COUT = params["w1"].shape[-1]

    WP = W + 2 * PMAX
    HP = H + 2 * PMAX
    LEAD = (-(PMAX * WP + PMAX)) % LANE        # lead pad so the band start is 128-aligned
    Q0 = LEAD + PMAX * WP + PMAX               # flat index of original (0, 0)
    NQ = (H - 1) * WP + W                      # computed (flattened) band length
    NPAD = LEAD + HP * WP                      # padded slab length (covers all tap reads)

    # bf16 lane-dense flattened inputs; concat + halo pad happen inside the kernel.
    up_f = upA.reshape(B, C_up, H * W).astype(jnp.bfloat16)
    sk_f = skip_nchw.reshape(B, C_sk, H * W).astype(jnp.bfloat16)

    # per-tap transposed bf16 weights; w4 split into 3 (Cout,Cout) blocks (no concat)
    w1t = _taps(params["w1"])
    w2t = _taps(params["w2"])
    w3t = _taps(params["w3"])
    w4m = jnp.transpose(params["w4"][0, 0])                    # (COUT, 3*COUT)
    w4t = jnp.stack([w4m[:, g * COUT:(g + 1) * COUT] for g in range(3)]
                    ).astype(jnp.bfloat16)                     # (3, COUT, COUT)

    pparams = _pack_epilogue_params(params, COUT)              # (COUT, 12)

    # validity mask over the computed flattened band (compile-time constant)
    col = (PMAX + np.arange(NQ)) % WP
    mask = jnp.asarray(((col >= PMAX) & (col < PMAX + W))
                       .astype(np.float32).reshape(1, NQ))

    out_flat = _fused_upblock_call(up_f, sk_f, w1t, w2t, w3t, w4t, mask, pparams,
                                   H=H, W=W, C_UP=C_up, COUT=COUT,
                                   WP=WP, Q0=Q0, NQ=NQ, NPAD=NPAD)
    # pure metadata reshape (row-major split of the last dim) — no copy
    out = out_flat.reshape(B, COUT, H, W)
    # Dropout2d: identity in eval mode.
    return out


# ---------------------------------------------------------------------------
# Pure-JAX reference (for correctness check only)
# ---------------------------------------------------------------------------
def _conv_ref(x_nhwc, w, b, scale, shift, dilation, padding):
    y = jax.lax.conv_general_dilated(
        x_nhwc, w, window_strides=(1, 1),
        padding=((padding, padding), (padding, padding)),
        rhs_dilation=(dilation, dilation),
        dimension_numbers=("NHWC", "HWIO", "NHWC"))
    y = y + b[0]
    y = jnp.where(y >= 0, y, LEAKY_SLOPE * y)
    return y * scale[0] + shift[0]


def upblock_bev_reference(x_nchw, skip_nchw, params):
    upA = pixelshuffle2x_nchw(x_nchw)
    if tuple(upA.shape[2:]) != tuple(skip_nchw.shape[2:]):
        B, C = skip_nchw.shape[:2]
        skip_nchw = jax.image.resize(skip_nchw, (B, C) + tuple(upA.shape[2:]),
                                     method="bilinear")
    upB = jnp.transpose(jnp.concatenate([upA, skip_nchw], axis=1), (0, 2, 3, 1))
    e1 = _conv_ref(upB, params["w1"], params["b1"], *params["bn1"], dilation=1, padding=1)
    e2 = _conv_ref(e1, params["w2"], params["b2"], *params["bn2"], dilation=2, padding=2)
    e3 = _conv_ref(e2, params["w3"], params["b3"], *params["bn3"], dilation=2, padding=1)
    cat = jnp.concatenate([e1, e2, e3], axis=-1)
    e4 = _conv_ref(cat, params["w4"], params["b4"], *params["bn4"], dilation=1, padding=0)
    return jnp.transpose(e4, (0, 3, 1, 2))


if __name__ == "__main__":
    key = jax.random.PRNGKey(0)
    k_x, k_skip, k_p = jax.random.split(key, 3)

    in_filters, out_filters = 16, 8
    B, H, W = 2, 16, 16
    # x: NCHW input to be pixelshuffled; skip already at 2x spatial (no resize path)
    x = jax.random.normal(k_x, (B, in_filters, H, W), jnp.float32)
    skip = jax.random.normal(k_skip, (B, 2 * out_filters, 2 * H, 2 * W), jnp.float32)

    params = init_params(k_p, in_filters, out_filters)

    fwd = jax.jit(upblock_bev_forward)
    out = jax.block_until_ready(fwd(x, skip, params))
    assert out.shape == (B, out_filters, 2 * H, 2 * W), out.shape

    ref = jax.block_until_ready(upblock_bev_reference(x, skip, params))
    # conv inputs/intermediates are bf16-quantized (f32 accumulation) while the
    # reference is pure f32 -> loose tolerance against the f32 reference.
    np.testing.assert_allclose(np.asarray(out), np.asarray(ref), rtol=1e-1, atol=1e-1)

    print("KERNEL_OK")
</pallas_src>

<mosaic_0001>
module attributes {stable_mosaic.version = 11 : i64} {
  func.func @_fused_upblock_kernel(%arg0: i32, %arg1: memref<1x4x1024xbf16, #tpu.memory_space<vmem>>, %arg2: memref<1x16x1024xbf16, #tpu.memory_space<vmem>>, %arg3: memref<9x8x20xbf16, #tpu.memory_space<vmem>>, %arg4: memref<9x8x8xbf16, #tpu.memory_space<vmem>>, %arg5: memref<4x8x8xbf16, #tpu.memory_space<vmem>>, %arg6: memref<3x8x8xbf16, #tpu.memory_space<vmem>>, %arg7: memref<1x1148xf32, #tpu.memory_space<vmem>>, %arg8: memref<8x12xf32, #tpu.memory_space<vmem>>, %arg9: memref<1x8x1024xf32, #tpu.memory_space<vmem>>, %arg10: memref<20x1350xbf16, #tpu.memory_space<vmem>>, %arg11: memref<8x1350xbf16, #tpu.memory_space<vmem>>, %arg12: memref<8x1350xbf16, #tpu.memory_space<vmem>>, %arg13: memref<8x1148xf32, #tpu.memory_space<vmem>>) attributes {dimension_semantics = [#tpu.dimension_semantics<parallel>], iteration_bounds = array<i64: 2>, scalar_prefetch = 0 : i64, scratch_operands = 4 : i64, tpu.core_type = #tpu.core_type<tc>, window_params = [{transform_indices = @transform_0, window_bounds = array<i64: 1, 4, 1024>}, {transform_indices = @transform_1, window_bounds = array<i64: 1, 16, 1024>}, {pipeline_mode = #tpu.pipeline_mode<synchronous>, transform_indices = @transform_2, window_bounds = array<i64: 9, 8, 20>}, {pipeline_mode = #tpu.pipeline_mode<synchronous>, transform_indices = @transform_3, window_bounds = array<i64: 9, 8, 8>}, {pipeline_mode = #tpu.pipeline_mode<synchronous>, transform_indices = @transform_4, window_bounds = array<i64: 4, 8, 8>}, {pipeline_mode = #tpu.pipeline_mode<synchronous>, transform_indices = @transform_5, window_bounds = array<i64: 3, 8, 8>}, {pipeline_mode = #tpu.pipeline_mode<synchronous>, transform_indices = @transform_6, window_bounds = array<i64: 1, 1148>}, {pipeline_mode = #tpu.pipeline_mode<synchronous>, transform_indices = @transform_7, window_bounds = array<i64: 8, 12>}, {transform_indices = @transform_8, window_bounds = array<i64: 1, 8, 1024>}]} {
    %c0 = arith.constant 0 : index
    %c0_0 = arith.constant 0 : index
    %0 = vector.load %arg7[%c0, %c0_0] : memref<1x1148xf32, #tpu.memory_space<vmem>>, vector<1x1148xf32>
    %cst = arith.constant 0.000000e+00 : bf16
    %1 = vector.broadcast %cst : bf16 to vector<20x1350xbf16>
    %c0_1 = arith.constant 0 : index
    %c0_2 = arith.constant 0 : index
    %2 = vector.load %arg10[%c0_1, %c0_2] : memref<20x1350xbf16, #tpu.memory_space<vmem>>, vector<20x1350xbf16>
    tpu.vector_store %arg10[%c0_1, %c0_2], %1 {strides = array<i32>} : memref<20x1350xbf16, #tpu.memory_space<vmem>>, vector<20x1350xbf16>,
    %c0_3 = arith.constant 0 : index
    %c0_4 = arith.constant 0 : index
    %c0_5 = arith.constant 0 : index
    %3 = vector.load %arg1[%c0_3, %c0_4, %c0_5] : memref<1x4x1024xbf16, #tpu.memory_space<vmem>>, vector<1x4x32xbf16>
    %4 = vector.shape_cast %3 : vector<1x4x32xbf16> to vector<4x32xbf16>
    %c0_6 = arith.constant 0 : index
    %c128 = arith.constant 128 : index
    %5 = vector.load %arg10[%c0_6, %c128] : memref<20x1350xbf16, #tpu.memory_space<vmem>>, vector<4x32xbf16>
    tpu.vector_store %arg10[%c0_6, %c128], %4 {strides = array<i32>} : memref<20x1350xbf16, #tpu.memory_space<vmem>>, vector<4x32xbf16>,
    %c0_7 = arith.constant 0 : index
    %c0_8 = arith.constant 0 : index
    %c0_9 = arith.constant 0 : index
    %6 = vector.load %arg2[%c0_7, %c0_8, %c0_9] : memref<1x16x1024xbf16, #tpu.memory_space<vmem>>, vector<1x16x32xbf16>
    %7 = vector.shape_cast %6 : vector<1x16x32xbf16> to vector<16x32xbf16>
    %c4 = arith.constant 4 : index
    %c128_10 = arith.constant 128 : index
    %8 = vector.load %arg10[%c4, %c128_10] : memref<20x1350xbf16, #tpu.memory_space<vmem>>, vector<16x32xbf16>
    tpu.vector_store %arg10[%c4, %c128_10], %7 {strides = array<i32>} : memref<20x1350xbf16, #tpu.memory_space<vmem>>, vector<16x32xbf16>,
    %c0_11 = arith.constant 0 : index
    %c0_12 = arith.constant 0 : index
    %c32 = arith.constant 32 : index
    %9 = vector.load %arg1[%c0_11, %c0_12, %c32] : memref<1x4x1024xbf16, #tpu.memory_space<vmem>>, vector<1x4x32xbf16>
    %10 = vector.shape_cast %9 : vector<1x4x32xbf16> to vector<4x32xbf16>
    %c0_13 = arith.constant 0 : index
    %c164 = arith.constant 164 : index
    %11 = vector.load %arg10[%c0_13, %c164] : memref<20x1350xbf16, #tpu.memory_space<vmem>>, vector<4x32xbf16>
    tpu.vector_store %arg10[%c0_13, %c164], %10 {strides = array<i32>} : memref<20x1350xbf16, #tpu.memory_space<vmem>>, vector<4x32xbf16>,
    %c0_14 = arith.constant 0 : index
    %c0_15 = arith.constant 0 : index
    %c32_16 = arith.constant 32 : index
    %12 = vector.load %arg2[%c0_14, %c0_15, %c32_16] : memref<1x16x1024xbf16, #tpu.memory_space<vmem>>, vector<1x16x32xbf16>
    %13 = vector.shape_cast %12 : vector<1x16x32xbf16> to vector<16x32xbf16>
    %c4_17 = arith.constant 4 : index
    %c164_18 = arith.constant 164 : index
    %14 = vector.load %arg10[%c4_17, %c164_18] : memref<20x1350xbf16, #tpu.memory_space<vmem>>, vector<16x32xbf16>
    tpu.vector_store %arg10[%c4_17, %c164_18], %13 {strides = array<i32>} : memref<20x1350xbf16, #tpu.memory_space<vmem>>, vector<16x32xbf16>,
    %c0_19 = arith.constant 0 : index
    %c0_20 = arith.constant 0 : index
    %c64 = arith.constant 64 : index
    %15 = vector.load %arg1[%c0_19, %c0_20, %c64] : memref<1x4x1024xbf16, #tpu.memory_space<vmem>>, vector<1x4x32xbf16>
    %16 = vector.shape_cast %15 : vector<1x4x32xbf16> to vector<4x32xbf16>
    %c0_21 = arith.constant 0 : index
    %c200 = arith.constant 200 : index
    %17 = vector.load %arg10[%c0_21, %c200] : memref<20x1350xbf16, #tpu.memory_space<vmem>>, vector<4x32xbf16>
    tpu.vector_store %arg10[%c0_21, %c200], %16 {strides = array<i32>} : memref<20x1350xbf16, #tpu.memory_space<vmem>>, vector<4x32xbf16>,
    %c0_22 = arith.constant 0 : index
    %c0_23 = arith.constant 0 : index
    %c64_24 = arith.constant 64 : index
    %18 = vector.load %arg2[%c0_22, %c0_23, %c64_24] : memref<1x16x1024xbf16, #tpu.memory_space<vmem>>, vector<1x16x32xbf16>
    %19 = vector.shape_cast %18 : vector<1x16x32xbf16> to vector<16x32xbf16>
    %c4_25 = arith.constant 4 : index
    %c200_26 = arith.constant 200 : index
    %20 = vector.load %arg10[%c4_25, %c200_26] : memref<20x1350xbf16, #tpu.memory_space<vmem>>, vector<16x32xbf16>
    tpu.vector_store %arg10[%c4_25, %c200_26], %19 {strides = array<i32>} : memref<20x1350xbf16, #tpu.memory_space<vmem>>, vector<16x32xbf16>,
    %c0_27 = arith.constant 0 : index
    %c0_28 = arith.constant 0 : index
    %c96 = arith.constant 96 : index
    %21 = vector.load %arg1[%c0_27, %c0_28, %c96] : memref<1x4x1024xbf16, #tpu.memory_space<vmem>>, vector<1x4x32xbf16>
    %22 = vector.shape_cast %21 : vector<1x4x32xbf16> to vector<4x32xbf16>
    %c0_29 = arith.constant 0 : index
    %c236 = arith.constant 236 : index
    %23 = vector.load %arg10[%c0_29, %c236] : memref<20x1350xbf16, #tpu.memory_space<vmem>>, vector<4x32xbf16>
    tpu.vector_store %arg10[%c0_29, %c236], %22 {strides = array<i32>} : memref<20x1350xbf16, #tpu.memory_space<vmem>>, vector<4x32xbf16>,
    %c0_30 = arith.constant 0 : index
    %c0_31 = arith.constant 0 : index
    %c96_32 = arith.constant 96 : index
    %24 = vector.load %arg2[%c0_30, %c0_31, %c96_32] : memref<1x16x1024xbf16, #tpu.memory_space<vmem>>, vector<1x16x32xbf16>
    %25 = vector.shape_cast %24 : vector<1x16x32xbf16> to vector<16x32xbf16>
    %c4_33 = arith.constant 4 : index
    %c236_34 = arith.constant 236 : index
    %26 = vector.load %arg10[%c4_33, %c236_34] : memref<20x1350xbf16, #tpu.memory_space<vmem>>, vector<16x32xbf16>
    tpu.vector_store %arg10[%c4_33, %c236_34], %25 {strides = array<i32>} : memref<20x1350xbf16, #tpu.memory_space<vmem>>, vector<16x32xbf16>,
    %c0_35 = arith.constant 0 : index
    %c0_36 = arith.constant 0 : index
    %c128_37 = arith.constant 128 : index
    %27 = vector.load %arg1[%c0_35, %c0_36, %c128_37] : memref<1x4x1024xbf16, #tpu.memory_space<vmem>>, vector<1x4x32xbf16>
    %28 = vector.shape_cast %27 : vector<1x4x32xbf16> to vector<4x32xbf16>
    %c0_38 = arith.constant 0 : index
    %c272 = arith.constant 272 : index
    %29 = vector.load %arg10[%c0_38, %c272] : memref<20x1350xbf16, #tpu.memory_space<vmem>>, vector<4x32xbf16>
    tpu.vector_store %arg10[%c0_38, %c272], %28 {strides = array<i32>} : memref<20x1350xbf16, #tpu.memory_space<vmem>>, vector<4x32xbf16>,
    %c0_39 = arith.constant 0 : index
    %c0_40 = arith.constant 0 : index
    %c128_41 = arith.constant 128 : index
    %30 = vector.load %arg2[%c0_39, %c0_40, %c128_41] : memref<1x16x1024xbf16, #tpu.memory_space<vmem>>, vector<1x16x32xbf16>
    %31 = vector.shape_cast %30 : vector<1x16x32xbf16> to vector<16x32xbf16>
    %c4_42 = arith.constant 4 : index
    %c272_43 = arith.constant 272 : index
    %32 = vector.load %arg10[%c4_42, %c272_43] : memref<20x1350xbf16, #tpu.memory_space<vmem>>, vector<16x32xbf16>
    tpu.vector_store %arg10[%c4_42, %c272_43], %31 {strides = array<i32>} : memref<20x1350xbf16, #tpu.memory_space<vmem>>, vector<16x32xbf16>,
    %c0_44 = arith.constant 0 : index
    %c0_45 = arith.constant 0 : index
    %c160 = arith.constant 160 : index
    %33 = vector.load %arg1[%c0_44, %c0_45, %c160] : memref<1x4x1024xbf16, #tpu.memory_space<vmem>>, vector<1x4x32xbf16>
    %34 = vector.shape_cast %33 : vector<1x4x32xbf16> to vector<4x32xbf16>
    %c0_46 = arith.constant 0 : index
    %c308 = arith.constant 308 : index
    %35 = vector.load %arg10[%c0_46, %c308] : memref<20x1350xbf16, #tpu.memory_space<vmem>>, vector<4x32xbf16>
    tpu.vector_store %arg10[%c0_46, %c308], %34 {strides = array<i32>} : memref<20x1350xbf16, #tpu.memory_space<vmem>>, vector<4x32xbf16>,
    %c0_47 = arith.constant 0 : index
    %c0_48 = arith.constant 0 : index
    %c160_49 = arith.constant 160 : index
    %36 = vector.load %arg2[%c0_47, %c0_48, %c160_49] : memref<1x16x1024xbf16, #tpu.memory_space<vmem>>, vector<1x16x32xbf16>
    %37 = vector.shape_cast %36 : vector<1x16x32xbf16> to vector<16x32xbf16>
    %c4_50 = arith.constant 4 : index
    %c308_51 = arith.constant 308 : index
    %38 = vector.load %arg10[%c4_50, %c308_51] : memref<20x1350xbf16, #tpu.memory_space<vmem>>, vector<16x32xbf16>
    tpu.vector_store %arg10[%c4_50, %c308_51], %37 {strides = array<i32>} : memref<20x1350xbf16, #tpu.memory_space<vmem>>, vector<16x32xbf16>,
    %c0_52 = arith.constant 0 : index
    %c0_53 = arith.constant 0 : index
    %c192 = arith.constant 192 : index
    %39 = vector.load %arg1[%c0_52, %c0_53, %c192] : memref<1x4x1024xbf16, #tpu.memory_space<vmem>>, vector<1x4x32xbf16>
    %40 = vector.shape_cast %39 : vector<1x4x32xbf16> to vector<4x32xbf16>
    %c0_54 = arith.constant 0 : index
    %c344 = arith.constant 344 : index
    %41 = vector.load %arg10[%c0_54, %c344] : memref<20x1350xbf16, #tpu.memory_space<vmem>>, vector<4x32xbf16>
    tpu.vector_store %arg10[%c0_54, %c344], %40 {strides = array<i32>} : memref<20x1350xbf16, #tpu.memory_space<vmem>>, vector<4x32xbf16>,
    %c0_55 = arith.constant 0 : index
    %c0_56 = arith.constant 0 : index
    %c192_57 = arith.constant 192 : index
    %42 = vector.load %arg2[%c0_55, %c0_56, %c192_57] : memref<1x16x1024xbf16, #tpu.memory_space<vmem>>, vector<1x16x32xbf16>
    %43 = vector.shape_cast %42 : vector<1x16x32xbf16> to vector<16x32xbf16>
    %c4_58 = arith.constant 4 : index
    %c344_59 = arith.constant 344 : index
    %44 = vector.load %arg10[%c4_58, %c344_59] : memref<20x1350xbf16, #tpu.memory_space<vmem>>, vector<16x32xbf16>
    tpu.vector_store %arg10[%c4_58, %c344_59], %43 {strides = array<i32>} : memref<20x1350xbf16, #tpu.memory_space<vmem>>, vector<16x32xbf16>,
    %c0_60 = arith.constant 0 : index
    %c0_61 = arith.constant 0 : index
    %c224 = arith.constant 224 : index
    %45 = vector.load %arg1[%c0_60, %c0_61, %c224] : memref<1x4x1024xbf16, #tpu.memory_space<vmem>>, vector<1x4x32xbf16>
    %46 = vector.shape_cast %45 : vector<1x4x32xbf16> to vector<4x32xbf16>
    %c0_62 = arith.constant 0 : index
    %c380 = arith.constant 380 : index
    %47 = vector.load %arg10[%c0_62, %c380] : memref<20x1350xbf16, #tpu.memory_space<vmem>>, vector<4x32xbf16>
    tpu.vector_store %arg10[%c0_62, %c380], %46 {strides = array<i32>} : memref<20x1350xbf16, #tpu.memory_space<vmem>>, vector<4x32xbf16>,
    %c0_63 = arith.constant 0 : index
    %c0_64 = arith.constant 0 : index
    %c224_65 = arith.constant 224 : index
    %48 = vector.load %arg2[%c0_63, %c0_64, %c224_65] : memref<1x16x1024xbf16, #tpu.memory_space<vmem>>, vector<1x16x32xbf16>
    %49 = vector.shape_cast %48 : vector<1x16x32xbf16> to vector<16x32xbf16>
    %c4_66 = arith.constant 4 : index
    %c380_67 = arith.constant 380 : index
    %50 = vector.load %arg10[%c4_66, %c380_67] : memref<20x1350xbf16, #tpu.memory_space<vmem>>, vector<16x32xbf16>
    tpu.vector_store %arg10[%c4_66, %c380_67], %49 {strides = array<i32>} : memref<20x1350xbf16, #tpu.memory_space<vmem>>, vector<16x32xbf16>,
    %c0_68 = arith.constant 0 : index
    %c0_69 = arith.constant 0 : index
    %c256 = arith.constant 256 : index
    %51 = vector.load %arg1[%c0_68, %c0_69, %c256] : memref<1x4x1024xbf16, #tpu.memory_space<vmem>>, vector<1x4x32xbf16>
    %52 = vector.shape_cast %51 : vector<1x4x32xbf16> to vector<4x32xbf16>
    %c0_70 = arith.constant 0 : index
    %c416 = arith.constant 416 : index
    %53 = vector.load %arg10[%c0_70, %c416] : memref<20x1350xbf16, #tpu.memory_space<vmem>>, vector<4x32xbf16>
    tpu.vector_store %arg10[%c0_70, %c416], %52 {strides = array<i32>} : memref<20x1350xbf16, #tpu.memory_space<vmem>>, vector<4x32xbf16>,
    %c0_71 = arith.constant 0 : index
    %c0_72 = arith.constant 0 : index
    %c256_73 = arith.constant 256 : index
    %54 = vector.load %arg2[%c0_71, %c0_72, %c256_73] : memref<1x16x1024xbf16, #tpu.memory_space<vmem>>, vector<1x16x32xbf16>
    %55 = vector.shape_cast %54 : vector<1x16x32xbf16> to vector<16x32xbf16>
    %c4_74 = arith.constant 4 : index
    %c416_75 = arith.constant 416 : index
    %56 = vector.load %arg10[%c4_74, %c416_75] : memref<20x1350xbf16, #tpu.memory_space<vmem>>, vector<16x32xbf16>
    tpu.vector_store %arg10[%c4_74, %c416_75], %55 {strides = array<i32>} : memref<20x1350xbf16, #tpu.memory_space<vmem>>, vector<16x32xbf16>,
    %c0_76 = arith.constant 0 : index
    %c0_77 = arith.constant 0 : index
    %c288 = arith.constant 288 : index
    %57 = vector.load %arg1[%c0_76, %c0_77, %c288] : memref<1x4x1024xbf16, #tpu.memory_space<vmem>>, vector<1x4x32xbf16>
    %58 = vector.shape_cast %57 : vector<1x4x32xbf16> to vector<4x32xbf16>
    %c0_78 = arith.constant 0 : index
    %c452 = arith.constant 452 : index
    %59 = vector.load %arg10[%c0_78, %c452] : memref<20x1350xbf16, #tpu.memory_space<vmem>>, vector<4x32xbf16>
    tpu.vector_store %arg10[%c0_78, %c452], %58 {strides = array<i32>} : memref<20x1350xbf16, #tpu.memory_space<vmem>>, vector<4x32xbf16>,
    %c0_79 = arith.constant 0 : index
    %c0_80 = arith.constant 0 : index
    %c288_81 = arith.constant 288 : index
    %60 = vector.load %arg2[%c0_79, %c0_80, %c288_81] : memref<1x16x1024xbf16, #tpu.memory_space<vmem>>, vector<1x16x32xbf16>
    %61 = vector.shape_cast %60 : vector<1x16x32xbf16> to vector<16x32xbf16>
    %c4_82 = arith.constant 4 : index
    %c452_83 = arith.constant 452 : index
    %62 = vector.load %arg10[%c4_82, %c452_83] : memref<20x1350xbf16, #tpu.memory_space<vmem>>, vector<16x32xbf16>
    tpu.vector_store %arg10[%c4_82, %c452_83], %61 {strides = array<i32>} : memref<20x1350xbf16, #tpu.memory_space<vmem>>, vector<16x32xbf16>,
    %c0_84 = arith.constant 0 : index
    %c0_85 = arith.constant 0 : index
    %c320 = arith.constant 320 : index
    %63 = vector.load %arg1[%c0_84, %c0_85, %c320] : memref<1x4x1024xbf16, #tpu.memory_space<vmem>>, vector<1x4x32xbf16>
    %64 = vector.shape_cast %63 : vector<1x4x32xbf16> to vector<4x32xbf16>
    %c0_86 = arith.constant 0 : index
    %c488 = arith.constant 488 : index
    %65 = vector.load %arg10[%c0_86, %c488] : memref<20x1350xbf16, #tpu.memory_space<vmem>>, vector<4x32xbf16>
    tpu.vector_store %arg10[%c0_86, %c488], %64 {strides = array<i32>} : memref<20x1350xbf16, #tpu.memory_space<vmem>>, vector<4x32xbf16>,
    %c0_87 = arith.constant 0 : index
    %c0_88 = arith.constant 0 : index
    %c320_89 = arith.constant 320 : index
    %66 = vector.load %arg2[%c0_87, %c0_88, %c320_89] : memref<1x16x1024xbf16, #tpu.memory_space<vmem>>, vector<1x16x32xbf16>
    %67 = vector.shape_cast %66 : vector<1x16x32xbf16> to vector<16x32xbf16>
    %c4_90 = arith.constant 4 : index
    %c488_91 = arith.constant 488 : index
    %68 = vector.load %arg10[%c4_90, %c488_91] : memref<20x1350xbf16, #tpu.memory_space<vmem>>, vector<16x32xbf16>
    tpu.vector_store %arg10[%c4_90, %c488_91], %67 {strides = array<i32>} : memref<20x1350xbf16, #tpu.memory_space<vmem>>, vector<16x32xbf16>,
    %c0_92 = arith.constant 0 : index
    %c0_93 = arith.constant 0 : index
    %c352 = arith.constant 352 : index
    %69 = vector.load %arg1[%c0_92, %c0_93, %c352] : memref<1x4x1024xbf16, #tpu.memory_space<vmem>>, vector<1x4x32xbf16>
    %70 = vector.shape_cast %69 : vector<1x4x32xbf16> to vector<4x32xbf16>
    %c0_94 = arith.constant 0 : index
    %c524 = arith.constant 524 : index
    %71 = vector.load %arg10[%c0_94, %c524] : memref<20x1350xbf16, #tpu.memory_space<vmem>>, vector<4x32xbf16>
    tpu.vector_store %arg10[%c0_94, %c524], %70 {strides = array<i32>} : memref<20x1350xbf16, #tpu.memory_space<vmem>>, vector<4x32xbf16>,
    %c0_95 = arith.constant 0 : index
    %c0_96 = arith.constant 0 : index
    %c352_97 = arith.constant 352 : index
    %72 = vector.load %arg2[%c0_95, %c0_96, %c352_97] : memref<1x16x1024xbf16, #tpu.memory_space<vmem>>, vector<1x16x32xbf16>
    %73 = vector.shape_cast %72 : vector<1x16x32xbf16> to vector<16x32xbf16>
    %c4_98 = arith.constant 4 : index
    %c524_99 = arith.constant 524 : index
    %74 = vector.load %arg10[%c4_98, %c524_99] : memref<20x1350xbf16, #tpu.memory_space<vmem>>, vector<16x32xbf16>
    tpu.vector_store %arg10[%c4_98, %c524_99], %73 {strides = array<i32>} : memref<20x1350xbf16, #tpu.memory_space<vmem>>, vector<16x32xbf16>,
    %c0_100 = arith.constant 0 : index
    %c0_101 = arith.constant 0 : index
    %c384 = arith.constant 384 : index
    %75 = vector.load %arg1[%c0_100, %c0_101, %c384] : memref<1x4x1024xbf16, #tpu.memory_space<vmem>>, vector<1x4x32xbf16>
    %76 = vector.shape_cast %75 : vector<1x4x32xbf16> to vector<4x32xbf16>
    %c0_102 = arith.constant 0 : index
    %c560 = arith.constant 560 : index
    %77 = vector.load %arg10[%c0_102, %c560] : memref<20x1350xbf16, #tpu.memory_space<vmem>>, vector<4x32xbf16>
    tpu.vector_store %arg10[%c0_102, %c560], %76 {strides = array<i32>} : memref<20x1350xbf16, #tpu.memory_space<vmem>>, vector<4x32xbf16>,
    %c0_103 = arith.constant 0 : index
    %c0_104 = arith.constant 0 : index
    %c384_105 = arith.constant 384 : index
    %78 = vector.load %arg2[%c0_103, %c0_104, %c384_105] : memref<1x16x1024xbf16, #tpu.memory_space<vmem>>, vector<1x16x32xbf16>
    %79 = vector.shape_cast %78 : vector<1x16x32xbf16> to vector<16x32xbf16>
    %c4_106 = arith.constant 4 : index
    %c560_107 = arith.constant 560 : index
    %80 = vector.load %arg10[%c4_106, %c560_107] : memref<20x1350xbf16, #tpu.memory_space<vmem>>, vector<16x32xbf16>
    tpu.vector_store %arg10[%c4_106, %c560_107], %79 {strides = array<i32>} : memref<20x1350xbf16, #tpu.memory_space<vmem>>, vector<16x32xbf16>,
    %c0_108 = arith.constant 0 : index
    %c0_109 = arith.constant 0 : index
    %c416_110 = arith.constant 416 : index
    %81 = vector.load %arg1[%c0_108, %c0_109, %c416_110] : memref<1x4x1024xbf16, #tpu.memory_space<vmem>>, vector<1x4x32xbf16>
    %82 = vector.shape_cast %81 : vector<1x4x32xbf16> to vector<4x32xbf16>
    %c0_111 = arith.constant 0 : index
    %c596 = arith.constant 596 : index
    %83 = vector.load %arg10[%c0_111, %c596] : memref<20x1350xbf16, #tpu.memory_space<vmem>>, vector<4x32xbf16>
    tpu.vector_store %arg10[%c0_111, %c596], %82 {strides = array<i32>} : memref<20x1350xbf16, #tpu.memory_space<vmem>>, vector<4x32xbf16>,
    %c0_112 = arith.constant 0 : index
    %c0_113 = arith.constant 0 : index
    %c416_114 = arith.constant 416 : index
    %84 = vector.load %arg2[%c0_112, %c0_113, %c416_114] : memref<1x16x1024xbf16, #tpu.memory_space<vmem>>, vector<1x16x32xbf16>
    %85 = vector.shape_cast %84 : vector<1x16x32xbf16> to vector<16x32xbf16>
    %c4_115 = arith.constant 4 : index
    %c596_116 = arith.constant 596 : index
    %86 = vector.load %arg10[%c4_115, %c596_116] : memref<20x1350xbf16, #tpu.memory_space<vmem>>, vector<16x32xbf16>
    tpu.vector_store %arg10[%c4_115, %c596_116], %85 {strides = array<i32>} : memref<20x1350xbf16, #tpu.memory_space<vmem>>, vector<16x32xbf16>,
    %c0_117 = arith.constant 0 : index
    %c0_118 = arith.constant 0 : index
    %c448 = arith.constant 448 : index
    %87 = vector.load %arg1[%c0_117, %c0_118, %c448] : memref<1x4x1024xbf16, #tpu.memory_space<vmem>>, vector<1x4x32xbf16>
    %88 = vector.shape_cast %87 : vector<1x4x32xbf16> to vector<4x32xbf16>
    %c0_119 = arith.constant 0 : index
    %c632 = arith.constant 632 : index
    %89 = vector.load %arg10[%c0_119, %c632] : memref<20x1350xbf16, #tpu.memory_space<vmem>>, vector<4x32xbf16>
    tpu.vector_store %arg10[%c0_119, %c632], %88 {strides = array<i32>} : memref<20x1350xbf16, #tpu.memory_space<vmem>>, vector<4x32xbf16>,
    %c0_120 = arith.constant 0 : index
    %c0_121 = arith.constant 0 : index
    %c448_122 = arith.constant 448 : index
    %90 = vector.load %arg2[%c0_120, %c0_121, %c448_122] : memref<1x16x1024xbf16, #tpu.memory_space<vmem>>, vector<1x16x32xbf16>
    %91 = vector.shape_cast %90 : vector<1x16x32xbf16> to vector<16x32xbf16>
    %c4_123 = arith.constant 4 : index
    %c632_124 = arith.constant 632 : index
    %92 = vector.load %arg10[%c4_123, %c632_124] : memref<20x1350xbf16, #tpu.memory_space<vmem>>, vector<16x32xbf16>
    tpu.vector_store %arg10[%c4_123, %c632_124], %91 {strides = array<i32>} : memref<20x1350xbf16, #tpu.memory_space<vmem>>, vector<16x32xbf16>,
    %c0_125 = arith.constant 0 : index
    %c0_126 = arith.constant 0 : index
    %c480 = arith.constant 480 : index
    %93 = vector.load %arg1[%c0_125, %c0_126, %c480] : memref<1x4x1024xbf16, #tpu.memory_space<vmem>>, vector<1x4x32xbf16>
    %94 = vector.shape_cast %93 : vector<1x4x32xbf16> to vector<4x32xbf16>
    %c0_127 = arith.constant 0 : index
    %c668 = arith.constant 668 : index
    %95 = vector.load %arg10[%c0_127, %c668] : memref<20x1350xbf16, #tpu.memory_space<vmem>>, vector<4x32xbf16>
    tpu.vector_store %arg10[%c0_127, %c668], %94 {strides = array<i32>} : memref<20x1350xbf16, #tpu.memory_space<vmem>>, vector<4x32xbf16>,
    %c0_128 = arith.constant 0 : index
    %c0_129 = arith.constant 0 : index
    %c480_130 = arith.constant 480 : index
    %96 = vector.load %arg2[%c0_128, %c0_129, %c480_130] : memref<1x16x1024xbf16, #tpu.memory_space<vmem>>, vector<1x16x32xbf16>
    %97 = vector.shape_cast %96 : vector<1x16x32xbf16> to vector<16x32xbf16>
    %c4_131 = arith.constant 4 : index
    %c668_132 = arith.constant 668 : index
    %98 = vector.load %arg10[%c4_131, %c668_132] : memref<20x1350xbf16, #tpu.memory_space<vmem>>, vector<16x32xbf16>
    tpu.vector_store %arg10[%c4_131, %c668_132], %97 {strides = array<i32>} : memref<20x1350xbf16, #tpu.memory_space<vmem>>, vector<16x32xbf16>,
    %c0_133 = arith.constant 0 : index
    %c0_134 = arith.constant 0 : index
    %c512 = arith.constant 512 : index
    %99 = vector.load %arg1[%c0_133, %c0_134, %c512] : memref<1x4x1024xbf16, #tpu.memory_space<vmem>>, vector<1x4x32xbf16>
    %100 = vector.shape_cast %99 : vector<1x4x32xbf16> to vector<4x32xbf16>
    %c0_135 = arith.constant 0 : index
    %c704 = arith.constant 704 : index
    %101 = vector.load %arg10[%c0_135, %c704] : memref<20x1350xbf16, #tpu.memory_space<vmem>>, vector<4x32xbf16>
    tpu.vector_store %arg10[%c0_135, %c704], %100 {strides = array<i32>} : memref<20x1350xbf16, #tpu.memory_space<vmem>>, vector<4x32xbf16>,
    %c0_136 = arith.constant 0 : index
    %c0_137 = arith.constant 0 : index
    %c512_138 = arith.constant 512 : index
    %102 = vector.load %arg2[%c0_136, %c0_137, %c512_138] : memref<1x16x1024xbf16, #tpu.memory_space<vmem>>, vector<1x16x32xbf16>
    %103 = vector.shape_cast %102 : vector<1x16x32xbf16> to vector<16x32xbf16>
    %c4_139 = arith.constant 4 : index
    %c704_140 = arith.constant 704 : index
    %104 = vector.load %arg10[%c4_139, %c704_140] : memref<20x1350xbf16, #tpu.memory_space<vmem>>, vector<16x32xbf16>
    tpu.vector_store %arg10[%c4_139, %c704_140], %103 {strides = array<i32>} : memref<20x1350xbf16, #tpu.memory_space<vmem>>, vector<16x32xbf16>,
    %c0_141 = arith.constant 0 : index
    %c0_142 = arith.constant 0 : index
    %c544 = arith.constant 544 : index
    %105 = vector.load %arg1[%c0_141, %c0_142, %c544] : memref<1x4x1024xbf16, #tpu.memory_space<vmem>>, vector<1x4x32xbf16>
    %106 = vector.shape_cast %105 : vector<1x4x32xbf16> to vector<4x32xbf16>
    %c0_143 = arith.constant 0 : index
    %c740 = arith.constant 740 : index
    %107 = vector.load %arg10[%c0_143, %c740] : memref<20x1350xbf16, #tpu.memory_space<vmem>>, vector<4x32xbf16>
    tpu.vector_store %arg10[%c0_143, %c740], %106 {strides = array<i32>} : memref<20x1350xbf16, #tpu.memory_space<vmem>>, vector<4x32xbf16>,
    %c0_144 = arith.constant 0 : index
    %c0_145 = arith.constant 0 : index
    %c544_146 = arith.constant 544 : index
    %108 = vector.load %arg2[%c0_144, %c0_145, %c544_146] : memref<1x16x1024xbf16, #tpu.memory_space<vmem>>, vector<1x16x32xbf16>
    %109 = vector.shape_cast %108 : vector<1x16x32xbf16> to vector<16x32xbf16>
    %c4_147 = arith.constant 4 : index
    %c740_148 = arith.constant 740 : index
    %110 = vector.load %arg10[%c4_147, %c740_148] : memref<20x1350xbf16, #tpu.memory_space<vmem>>, vector<16x32xbf16>
    tpu.vector_store %arg10[%c4_147, %c740_148], %109 {strides = array<i32>} : memref<20x1350xbf16, #tpu.memory_space<vmem>>, vector<16x32xbf16>,
    %c0_149 = arith.constant 0 : index
    %c0_150 = arith.constant 0 : index
    %c576 = arith.constant 576 : index
    %111 = vector.load %arg1[%c0_149, %c0_150, %c576] : memref<1x4x1024xbf16, #tpu.memory_space<vmem>>, vector<1x4x32xbf16>
    %112 = vector.shape_cast %111 : vector<1x4x32xbf16> to vector<4x32xbf16>
    %c0_151 = arith.constant 0 : index
    %c776 = arith.constant 776 : index
    %113 = vector.load %arg10[%c0_151, %c776] : memref<20x1350xbf16, #tpu.memory_space<vmem>>, vector<4x32xbf16>
    tpu.vector_store %arg10[%c0_151, %c776], %112 {strides = array<i32>} : memref<20x1350xbf16, #tpu.memory_space<vmem>>, vector<4x32xbf16>,
    %c0_152 = arith.constant 0 : index
    %c0_153 = arith.constant 0 : index
    %c576_154 = arith.constant 576 : index
    %114 = vector.load %arg2[%c0_152, %c0_153, %c576_154] : memref<1x16x1024xbf16, #tpu.memory_space<vmem>>, vector<1x16x32xbf16>
    %115 = vector.shape_cast %114 : vector<1x16x32xbf16> to vector<16x32xbf16>
    %c4_155 = arith.constant 4 : index
    %c776_156 = arith.constant 776 : index
    %116 = vector.load %arg10[%c4_155, %c776_156] : memref<20x1350xbf16, #tpu.memory_space<vmem>>, vector<16x32xbf16>
    tpu.vector_store %arg10[%c4_155, %c776_156], %115 {strides = array<i32>} : memref<20x1350xbf16, #tpu.memory_space<vmem>>, vector<16x32xbf16>,
    %c0_157 = arith.constant 0 : index
    %c0_158 = arith.constant 0 : index
    %c608 = arith.constant 608 : index
    %117 = vector.load %arg1[%c0_157, %c0_158, %c608] : memref<1x4x1024xbf16, #tpu.memory_space<vmem>>, vector<1x4x32xbf16>
    %118 = vector.shape_cast %117 : vector<1x4x32xbf16> to vector<4x32xbf16>
    %c0_159 = arith.constant 0 : index
    %c812 = arith.constant 812 : index
    %119 = vector.load %arg10[%c0_159, %c812] : memref<20x1350xbf16, #tpu.memory_space<vmem>>, vector<4x32xbf16>
    tpu.vector_store %arg10[%c0_159, %c812], %118 {strides = array<i32>} : memref<20x1350xbf16, #tpu.memory_space<vmem>>, vector<4x32xbf16>,
    %c0_160 = arith.constant 0 : index
    %c0_161 = arith.constant 0 : index
    %c608_162 = arith.constant 608 : index
    %120 = vector.load %arg2[%c0_160, %c0_161, %c608_162] : memref<1x16x1024xbf16, #tpu.memory_space<vmem>>, vector<1x16x32xbf16>
    %121 = vector.shape_cast %120 : vector<1x16x32xbf16> to vector<16x32xbf16>
    %c4_163 = arith.constant 4 : index
    %c812_164 = arith.constant 812 : index
    %122 = vector.load %arg10[%c4_163, %c812_164] : memref<20x1350xbf16, #tpu.memory_space<vmem>>, vector<16x32xbf16>
    tpu.vector_store %arg10[%c4_163, %c812_164], %121 {strides = array<i32>} : memref<20x1350xbf16, #tpu.memory_space<vmem>>, vector<16x32xbf16>,
    %c0_165 = arith.constant 0 : index
    %c0_166 = arith.constant 0 : index
    %c640 = arith.constant 640 : index
    %123 = vector.load %arg1[%c0_165, %c0_166, %c640] : memref<1x4x1024xbf16, #tpu.memory_space<vmem>>, vector<1x4x32xbf16>
    %124 = vector.shape_cast %123 : vector<1x4x32xbf16> to vector<4x32xbf16>
    %c0_167 = arith.constant 0 : index
    %c848 = arith.constant 848 : index
    %125 = vector.load %arg10[%c0_167, %c848] : memref<20x1350xbf16, #tpu.memory_space<vmem>>, vector<4x32xbf16>
    tpu.vector_store %arg10[%c0_167, %c848], %124 {strides = array<i32>} : memref<20x1350xbf16, #tpu.memory_space<vmem>>, vector<4x32xbf16>,
    %c0_168 = arith.constant 0 : index
    %c0_169 = arith.constant 0 : index
    %c640_170 = arith.constant 640 : index
    %126 = vector.load %arg2[%c0_168, %c0_169, %c640_170] : memref<1x16x1024xbf16, #tpu.memory_space<vmem>>, vector<1x16x32xbf16>
    %127 = vector.shape_cast %126 : vector<1x16x32xbf16> to vector<16x32xbf16>
    %c4_171 = arith.constant 4 : index
    %c848_172 = arith.constant 848 : index
    %128 = vector.load %arg10[%c4_171, %c848_172] : memref<20x1350xbf16, #tpu.memory_space<vmem>>, vector<16x32xbf16>
    tpu.vector_store %arg10[%c4_171, %c848_172], %127 {strides = array<i32>} : memref<20x1350xbf16, #tpu.memory_space<vmem>>, vector<16x32xbf16>,
    %c0_173 = arith.constant 0 : index
    %c0_174 = arith.constant 0 : index
    %c672 = arith.constant 672 : index
    %129 = vector.load %arg1[%c0_173, %c0_174, %c672] : memref<1x4x1024xbf16, #tpu.memory_space<vmem>>, vector<1x4x32xbf16>
    %130 = vector.shape_cast %129 : vector<1x4x32xbf16> to vector<4x32xbf16>
    %c0_175 = arith.constant 0 : index
    %c884 = arith.constant 884 : index
    %131 = vector.load %arg10[%c0_175, %c884] : memref<20x1350xbf16, #tpu.memory_space<vmem>>, vector<4x32xbf16>
    tpu.vector_store %arg10[%c0_175, %c884], %130 {strides = array<i32>} : memref<20x1350xbf16, #tpu.memory_space<vmem>>, vector<4x32xbf16>,
    %c0_176 = arith.constant 0 : index
    %c0_177 = arith.constant 0 : index
    %c672_178 = arith.constant 672 : index
    %132 = vector.load %arg2[%c0_176, %c0_177, %c672_178] : memref<1x16x1024xbf16, #tpu.memory_space<vmem>>, vector<1x16x32xbf16>
    %133 = vector.shape_cast %132 : vector<1x16x32xbf16> to vector<16x32xbf16>
    %c4_179 = arith.constant 4 : index
    %c884_180 = arith.constant 884 : index
    %134 = vector.load %arg10[%c4_179, %c884_180] : memref<20x1350xbf16, #tpu.memory_space<vmem>>, vector<16x32xbf16>
    tpu.vector_store %arg10[%c4_179, %c884_180], %133 {strides = array<i32>} : memref<20x1350xbf16, #tpu.memory_space<vmem>>, vector<16x32xbf16>,
    %c0_181 = arith.constant 0 : index
    %c0_182 = arith.constant 0 : index
    %c704_183 = arith.constant 704 : index
    %135 = vector.load %arg1[%c0_181, %c0_182, %c704_183] : memref<1x4x1024xbf16, #tpu.memory_space<vmem>>, vector<1x4x32xbf16>
    %136 = vector.shape_cast %135 : vector<1x4x32xbf16> to vector<4x32xbf16>
    %c0_184 = arith.constant 0 : index
    %c920 = arith.constant 920 : index
    %137 = vector.load %arg10[%c0_184, %c920] : memref<20x1350xbf16, #tpu.memory_space<vmem>>, vector<4x32xbf16>
    tpu.vector_store %arg10[%c0_184, %c920], %136 {strides = array<i32>} : memref<20x1350xbf16, #tpu.memory_space<vmem>>, vector<4x32xbf16>,
    %c0_185 = arith.constant 0 : index
    %c0_186 = arith.constant 0 : index
    %c704_187 = arith.constant 704 : index
    %138 = vector.load %arg2[%c0_185, %c0_186, %c704_187] : memref<1x16x1024xbf16, #tpu.memory_space<vmem>>, vector<1x16x32xbf16>
    %139 = vector.shape_cast %138 : vector<1x16x32xbf16> to vector<16x32xbf16>
    %c4_188 = arith.constant 4 : index
    %c920_189 = arith.constant 920 : index
    %140 = vector.load %arg10[%c4_188, %c920_189] : memref<20x1350xbf16, #tpu.memory_space<vmem>>, vector<16x32xbf16>
    tpu.vector_store %arg10[%c4_188, %c920_189], %139 {strides = array<i32>} : memref<20x1350xbf16, #tpu.memory_space<vmem>>, vector<16x32xbf16>,
    %c0_190 = arith.constant 0 : index
    %c0_191 = arith.constant 0 : index
    %c736 = arith.constant 736 : index
    %141 = vector.load %arg1[%c0_190, %c0_191, %c736] : memref<1x4x1024xbf16, #tpu.memory_space<vmem>>, vector<1x4x32xbf16>
    %142 = vector.shape_cast %141 : vector<1x4x32xbf16> to vector<4x32xbf16>
    %c0_192 = arith.constant 0 : index
    %c956 = arith.constant 956 : index
    %143 = vector.load %arg10[%c0_192, %c956] : memref<20x1350xbf16, #tpu.memory_space<vmem>>, vector<4x32xbf16>
    tpu.vector_store %arg10[%c0_192, %c956], %142 {strides = array<i32>} : memref<20x1350xbf16, #tpu.memory_space<vmem>>, vector<4x32xbf16>,
    %c0_193 = arith.constant 0 : index
    %c0_194 = arith.constant 0 : index
    %c736_195 = arith.constant 736 : index
    %144 = vector.load %arg2[%c0_193, %c0_194, %c736_195] : memref<1x16x1024xbf16, #tpu.memory_space<vmem>>, vector<1x16x32xbf16>
    %145 = vector.shape_cast %144 : vector<1x16x32xbf16> to vector<16x32xbf16>
    %c4_196 = arith.constant 4 : index
    %c956_197 = arith.constant 956 : index
    %146 = vector.load %arg10[%c4_196, %c956_197] : memref<20x1350xbf16, #tpu.memory_space<vmem>>, vector<16x32xbf16>
    tpu.vector_store %arg10[%c4_196, %c956_197], %145 {strides = array<i32>} : memref<20x1350xbf16, #tpu.memory_space<vmem>>, vector<16x32xbf16>,
    %c0_198 = arith.constant 0 : index
    %c0_199 = arith.constant 0 : index
    %c768 = arith.constant 768 : index
    %147 = vector.load %arg1[%c0_198, %c0_199, %c768] : memref<1x4x1024xbf16, #tpu.memory_space<vmem>>, vector<1x4x32xbf16>
    %148 = vector.shape_cast %147 : vector<1x4x32xbf16> to vector<4x32xbf16>
    %c0_200 = arith.constant 0 : index
    %c992 = arith.constant 992 : index
    %149 = vector.load %arg10[%c0_200, %c992] : memref<20x1350xbf16, #tpu.memory_space<vmem>>, vector<4x32xbf16>
    tpu.vector_store %arg10[%c0_200, %c992], %148 {strides = array<i32>} : memref<20x1350xbf16, #tpu.memory_space<vmem>>, vector<4x32xbf16>,
    %c0_201 = arith.constant 0 : index
    %c0_202 = arith.constant 0 : index
    %c768_203 = arith.constant 768 : index
    %150 = vector.load %arg2[%c0_201, %c0_202, %c768_203] : memref<1x16x1024xbf16, #tpu.memory_space<vmem>>, vector<1x16x32xbf16>
    %151 = vector.shape_cast %150 : vector<1x16x32xbf16> to vector<16x32xbf16>
    %c4_204 = arith.constant 4 : index
    %c992_205 = arith.constant 992 : index
    %152 = vector.load %arg10[%c4_204, %c992_205] : memref<20x1350xbf16, #tpu.memory_space<vmem>>, vector<16x32xbf16>
    tpu.vector_store %arg10[%c4_204, %c992_205], %151 {strides = array<i32>} : memref<20x1350xbf16, #tpu.memory_space<vmem>>, vector<16x32xbf16>,
    %c0_206 = arith.constant 0 : index
    %c0_207 = arith.constant 0 : index
    %c800 = arith.constant 800 : index
    %153 = vector.load %arg1[%c0_206, %c0_207, %c800] : memref<1x4x1024xbf16, #tpu.memory_space<vmem>>, vector<1x4x32xbf16>
    %154 = vector.shape_cast %153 : vector<1x4x32xbf16> to vector<4x32xbf16>
    %c0_208 = arith.constant 0 : index
    %c1028 = arith.constant 1028 : index
    %155 = vector.load %arg10[%c0_208, %c1028] : memref<20x1350xbf16, #tpu.memory_space<vmem>>, vector<4x32xbf16>
    tpu.vector_store %arg10[%c0_208, %c1028], %154 {strides = array<i32>} : memref<20x1350xbf16, #tpu.memory_space<vmem>>, vector<4x32xbf16>,
    %c0_209 = arith.constant 0 : index
    %c0_210 = arith.constant 0 : index
    %c800_211 = arith.constant 800 : index
    %156 = vector.load %arg2[%c0_209, %c0_210, %c800_211] : memref<1x16x1024xbf16, #tpu.memory_space<vmem>>, vector<1x16x32xbf16>
    %157 = vector.shape_cast %156 : vector<1x16x32xbf16> to vector<16x32xbf16>
    %c4_212 = arith.constant 4 : index
    %c1028_213 = arith.constant 1028 : index
    %158 = vector.load %arg10[%c4_212, %c1028_213] : memref<20x1350xbf16, #tpu.memory_space<vmem>>, vector<16x32xbf16>
    tpu.vector_store %arg10[%c4_212, %c1028_213], %157 {strides = array<i32>} : memref<20x1350xbf16, #tpu.memory_space<vmem>>, vector<16x32xbf16>,
    %c0_214 = arith.constant 0 : index
    %c0_215 = arith.constant 0 : index
    %c832 = arith.constant 832 : index
    %159 = vector.load %arg1[%c0_214, %c0_215, %c832] : memref<1x4x1024xbf16, #tpu.memory_space<vmem>>, vector<1x4x32xbf16>
    %160 = vector.shape_cast %159 : vector<1x4x32xbf16> to vector<4x32xbf16>
    %c0_216 = arith.constant 0 : index
    %c1064 = arith.constant 1064 : index
    %161 = vector.load %arg10[%c0_216, %c1064] : memref<20x1350xbf16, #tpu.memory_space<vmem>>, vector<4x32xbf16>
    tpu.vector_store %arg10[%c0_216, %c1064], %160 {strides = array<i32>} : memref<20x1350xbf16, #tpu.memory_space<vmem>>, vector<4x32xbf16>,
    %c0_217 = arith.constant 0 : index
    %c0_218 = arith.constant 0 : index
    %c832_219 = arith.constant 832 : index
    %162 = vector.load %arg2[%c0_217, %c0_218, %c832_219] : memref<1x16x1024xbf16, #tpu.memory_space<vmem>>, vector<1x16x32xbf16>
    %163 = vector.shape_cast %162 : vector<1x16x32xbf16> to vector<16x32xbf16>
    %c4_220 = arith.constant 4 : index
    %c1064_221 = arith.constant 1064 : index
    %164 = vector.load %arg10[%c4_220, %c1064_221] : memref<20x1350xbf16, #tpu.memory_space<vmem>>, vector<16x32xbf16>
    tpu.vector_store %arg10[%c4_220, %c1064_221], %163 {strides = array<i32>} : memref<20x1350xbf16, #tpu.memory_space<vmem>>, vector<16x32xbf16>,
    %c0_222 = arith.constant 0 : index
    %c0_223 = arith.constant 0 : index
    %c864 = arith.constant 864 : index
    %165 = vector.load %arg1[%c0_222, %c0_223, %c864] : memref<1x4x1024xbf16, #tpu.memory_space<vmem>>, vector<1x4x32xbf16>
    %166 = vector.shape_cast %165 : vector<1x4x32xbf16> to vector<4x32xbf16>
    %c0_224 = arith.constant 0 : index
    %c1100 = arith.constant 1100 : index
    %167 = vector.load %arg10[%c0_224, %c1100] : memref<20x1350xbf16, #tpu.memory_space<vmem>>, vector<4x32xbf16>
    tpu.vector_store %arg10[%c0_224, %c1100], %166 {strides = array<i32>} : memref<20x1350xbf16, #tpu.memory_space<vmem>>, vector<4x32xbf16>,
    %c0_225 = arith.constant 0 : index
    %c0_226 = arith.constant 0 : index
    %c864_227 = arith.constant 864 : index
    %168 = vector.load %arg2[%c0_225, %c0_226, %c864_227] : memref<1x16x1024xbf16, #tpu.memory_space<vmem>>, vector<1x16x32xbf16>
    %169 = vector.shape_cast %168 : vector<1x16x32xbf16> to vector<16x32xbf16>
    %c4_228 = arith.constant 4 : index
    %c1100_229 = arith.constant 1100 : index
    %170 = vector.load %arg10[%c4_228, %c1100_229] : memref<20x1350xbf16, #tpu.memory_space<vmem>>, vector<16x32xbf16>
    tpu.vector_store %arg10[%c4_228, %c1100_229], %169 {strides = array<i32>} : memref<20x1350xbf16, #tpu.memory_space<vmem>>, vector<16x32xbf16>,
    %c0_230 = arith.constant 0 : index
    %c0_231 = arith.constant 0 : index
    %c896 = arith.constant 896 : index
    %171 = vector.load %arg1[%c0_230, %c0_231, %c896] : memref<1x4x1024xbf16, #tpu.memory_space<vmem>>, vector<1x4x32xbf16>
    %172 = vector.shape_cast %171 : vector<1x4x32xbf16> to vector<4x32xbf16>
    %c0_232 = arith.constant 0 : index
    %c1136 = arith.constant 1136 : index
    %173 = vector.load %arg10[%c0_232, %c1136] : memref<20x1350xbf16, #tpu.memory_space<vmem>>, vector<4x32xbf16>
    tpu.vector_store %arg10[%c0_232, %c1136], %172 {strides = array<i32>} : memref<20x1350xbf16, #tpu.memory_space<vmem>>, vector<4x32xbf16>,
    %c0_233 = arith.constant 0 : index
    %c0_234 = arith.constant 0 : index
    %c896_235 = arith.constant 896 : index
    %174 = vector.load %arg2[%c0_233, %c0_234, %c896_235] : memref<1x16x1024xbf16, #tpu.memory_space<vmem>>, vector<1x16x32xbf16>
    %175 = vector.shape_cast %174 : vector<1x16x32xbf16> to vector<16x32xbf16>
    %c4_236 = arith.constant 4 : index
    %c1136_237 = arith.constant 1136 : index
    %176 = vector.load %arg10[%c4_236, %c1136_237] : memref<20x1350xbf16, #tpu.memory_space<vmem>>, vector<16x32xbf16>
    tpu.vector_store %arg10[%c4_236, %c1136_237], %175 {strides = array<i32>} : memref<20x1350xbf16, #tpu.memory_space<vmem>>, vector<16x32xbf16>,
    %c0_238 = arith.constant 0 : index
    %c0_239 = arith.constant 0 : index
    %c928 = arith.constant 928 : index
    %177 = vector.load %arg1[%c0_238, %c0_239, %c928] : memref<1x4x1024xbf16, #tpu.memory_space<vmem>>, vector<1x4x32xbf16>
    %178 = vector.shape_cast %177 : vector<1x4x32xbf16> to vector<4x32xbf16>
    %c0_240 = arith.constant 0 : index
    %c1172 = arith.constant 1172 : index
    %179 = vector.load %arg10[%c0_240, %c1172] : memref<20x1350xbf16, #tpu.memory_space<vmem>>, vector<4x32xbf16>
    tpu.vector_store %arg10[%c0_240, %c1172], %178 {strides = array<i32>} : memref<20x1350xbf16, #tpu.memory_space<vmem>>, vector<4x32xbf16>,
    %c0_241 = arith.constant 0 : index
    %c0_242 = arith.constant 0 : index
    %c928_243 = arith.constant 928 : index
    %180 = vector.load %arg2[%c0_241, %c0_242, %c928_243] : memref<1x16x1024xbf16, #tpu.memory_space<vmem>>, vector<1x16x32xbf16>
    %181 = vector.shape_cast %180 : vector<1x16x32xbf16> to vector<16x32xbf16>
    %c4_244 = arith.constant 4 : index
    %c1172_245 = arith.constant 1172 : index
    %182 = vector.load %arg10[%c4_244, %c1172_245] : memref<20x1350xbf16, #tpu.memory_space<vmem>>, vector<16x32xbf16>
    tpu.vector_store %arg10[%c4_244, %c1172_245], %181 {strides = array<i32>} : memref<20x1350xbf16, #tpu.memory_space<vmem>>, vector<16x32xbf16>,
    %c0_246 = arith.constant 0 : index
    %c0_247 = arith.constant 0 : index
    %c960 = arith.constant 960 : index
    %183 = vector.load %arg1[%c0_246, %c0_247, %c960] : memref<1x4x1024xbf16, #tpu.memory_space<vmem>>, vector<1x4x32xbf16>
    %184 = vector.shape_cast %183 : vector<1x4x32xbf16> to vector<4x32xbf16>
    %c0_248 = arith.constant 0 : index
    %c1208 = arith.constant 1208 : index
    %185 = vector.load %arg10[%c0_248, %c1208] : memref<20x1350xbf16, #tpu.memory_space<vmem>>, vector<4x32xbf16>
    tpu.vector_store %arg10[%c0_248, %c1208], %184 {strides = array<i32>} : memref<20x1350xbf16, #tpu.memory_space<vmem>>, vector<4x32xbf16>,
    %c0_249 = arith.constant 0 : index
    %c0_250 = arith.constant 0 : index
    %c960_251 = arith.constant 960 : index
    %186 = vector.load %arg2[%c0_249, %c0_250, %c960_251] : memref<1x16x1024xbf16, #tpu.memory_space<vmem>>, vector<1x16x32xbf16>
    %187 = vector.shape_cast %186 : vector<1x16x32xbf16> to vector<16x32xbf16>
    %c4_252 = arith.constant 4 : index
    %c1208_253 = arith.constant 1208 : index
    %188 = vector.load %arg10[%c4_252, %c1208_253] : memref<20x1350xbf16, #tpu.memory_space<vmem>>, vector<16x32xbf16>
    tpu.vector_store %arg10[%c4_252, %c1208_253], %187 {strides = array<i32>} : memref<20x1350xbf16, #tpu.memory_space<vmem>>, vector<16x32xbf16>,
    %c0_254 = arith.constant 0 : index
    %c0_255 = arith.constant 0 : index
    %c992_256 = arith.constant 992 : index
    %189 = vector.load %arg1[%c0_254, %c0_255, %c992_256] : memref<1x4x1024xbf16, #tpu.memory_space<vmem>>, vector<1x4x32xbf16>
    %190 = vector.shape_cast %189 : vector<1x4x32xbf16> to vector<4x32xbf16>
    %c0_257 = arith.constant 0 : index
    %c1244 = arith.constant 1244 : index
    %191 = vector.load %arg10[%c0_257, %c1244] : memref<20x1350xbf16, #tpu.memory_space<vmem>>, vector<4x32xbf16>
    tpu.vector_store %arg10[%c0_257, %c1244], %190 {strides = array<i32>} : memref<20x1350xbf16, #tpu.memory_space<vmem>>, vector<4x32xbf16>,
    %c0_258 = arith.constant 0 : index
    %c0_259 = arith.constant 0 : index
    %c992_260 = arith.constant 992 : index
    %192 = vector.load %arg2[%c0_258, %c0_259, %c992_260] : memref<1x16x1024xbf16, #tpu.memory_space<vmem>>, vector<1x16x32xbf16>
    %193 = vector.shape_cast %192 : vector<1x16x32xbf16> to vector<16x32xbf16>
    %c4_261 = arith.constant 4 : index
    %c1244_262 = arith.constant 1244 : index
    %194 = vector.load %arg10[%c4_261, %c1244_262] : memref<20x1350xbf16, #tpu.memory_space<vmem>>, vector<16x32xbf16>
    tpu.vector_store %arg10[%c4_261, %c1244_262], %193 {strides = array<i32>} : memref<20x1350xbf16, #tpu.memory_space<vmem>>, vector<16x32xbf16>,
    %cst_263 = arith.constant 0.000000e+00 : f32
    %195 = vector.broadcast %cst_263 : f32 to vector<8x1148xf32>
    %c0_264 = arith.constant 0 : index
    %c91 = arith.constant 91 : index
    %196 = vector.load %arg10[%c0_264, %c91] : memref<20x1350xbf16, #tpu.memory_space<vmem>>, vector<20x1148xbf16>
    %c0_265 = arith.constant 0 : index
    %c0_266 = arith.constant 0 : index
    %c0_267 = arith.constant 0 : index
    %197 = vector.load %arg3[%c0_265, %c0_266, %c0_267] : memref<9x8x20xbf16, #tpu.memory_space<vmem>>, vector<1x8x20xbf16>
    %198 = vector.shape_cast %197 : vector<1x8x20xbf16> to vector<8x20xbf16>
    %cst_268 = arith.constant dense<0.000000e+00> : vector<8x1148xf32>
    %199 = tpu.matmul %198, %196, %cst_268 {dimension_numbers = #tpu.dot_dimension_numbers<[1], [0], [0], [1], [0, 0, 1, 1], [], []>} : vector<8x20xbf16>, vector<20x1148xbf16>, vector<8x1148xf32> -> vector<8x1148xf32>
    %200 = arith.addf %195, %199 : vector<8x1148xf32>
    %c0_269 = arith.constant 0 : index
    %c92 = arith.constant 92 : index
    %201 = vector.load %arg10[%c0_269, %c92] : memref<20x1350xbf16, #tpu.memory_space<vmem>>, vector<20x1148xbf16>
    %c1 = arith.constant 1 : index
    %c0_270 = arith.constant 0 : index
    %c0_271 = arith.constant 0 : index
    %202 = vector.load %arg3[%c1, %c0_270, %c0_271] : memref<9x8x20xbf16, #tpu.memory_space<vmem>>, vector<1x8x20xbf16>
    %203 = vector.shape_cast %202 : vector<1x8x20xbf16> to vector<8x20xbf16>
    %cst_272 = arith.constant dense<0.000000e+00> : vector<8x1148xf32>
    %204 = tpu.matmul %203, %201, %cst_272 {dimension_numbers = #tpu.dot_dimension_numbers<[1], [0], [0], [1], [0, 0, 1, 1], [], []>} : vector<8x20xbf16>, vector<20x1148xbf16>, vector<8x1148xf32> -> vector<8x1148xf32>
    %205 = arith.addf %200, %204 : vector<8x1148xf32>
    %c0_273 = arith.constant 0 : index
    %c93 = arith.constant 93 : index
    %206 = vector.load %arg10[%c0_273, %c93] : memref<20x1350xbf16, #tpu.memory_space<vmem>>, vector<20x1148xbf16>
    %c2 = arith.constant 2 : index
    %c0_274 = arith.constant 0 : index
    %c0_275 = arith.constant 0 : index
    %207 = vector.load %arg3[%c2, %c0_274, %c0_275] : memref<9x8x20xbf16, #tpu.memory_space<vmem>>, vector<1x8x20xbf16>
    %208 = vector.shape_cast %207 : vector<1x8x20xbf16> to vector<8x20xbf16>
    %cst_276 = arith.constant dense<0.000000e+00> : vector<8x1148xf32>
    %209 = tpu.matmul %208, %206, %cst_276 {dimension_numbers = #tpu.dot_dimension_numbers<[1], [0], [0], [1], [0, 0, 1, 1], [], []>} : vector<8x20xbf16>, vector<20x1148xbf16>, vector<8x1148xf32> -> vector<8x1148xf32>
    %210 = arith.addf %205, %209 : vector<8x1148xf32>
    %c0_277 = arith.constant 0 : index
    %c127 = arith.constant 127 : index
    %211 = vector.load %arg10[%c0_277, %c127] : memref<20x1350xbf16, #tpu.memory_space<vmem>>, vector<20x1148xbf16>
    %c3 = arith.constant 3 : index
    %c0_278 = arith.constant 0 : index
    %c0_279 = arith.constant 0 : index
    %212 = vector.load %arg3[%c3, %c0_278, %c0_279] : memref<9x8x20xbf16, #tpu.memory_space<vmem>>, vector<1x8x20xbf16>
    %213 = vector.shape_cast %212 : vector<1x8x20xbf16> to vector<8x20xbf16>
    %cst_280 = arith.constant dense<0.000000e+00> : vector<8x1148xf32>
    %214 = tpu.matmul %213, %211, %cst_280 {dimension_numbers = #tpu.dot_dimension_numbers<[1], [0], [0], [1], [0, 0, 1, 1], [], []>} : vector<8x20xbf16>, vector<20x1148xbf16>, vector<8x1148xf32> -> vector<8x1148xf32>
    %215 = arith.addf %210, %214 : vector<8x1148xf32>
    %c0_281 = arith.constant 0 : index
    %c128_282 = arith.constant 128 : index
    %216 = vector.load %arg10[%c0_281, %c128_282] : memref<20x1350xbf16, #tpu.memory_space<vmem>>, vector<20x1148xbf16>
    %c4_283 = arith.constant 4 : index
    %c0_284 = arith.constant 0 : index
    %c0_285 = arith.constant 0 : index
    %217 = vector.load %arg3[%c4_283, %c0_284, %c0_285] : memref<9x8x20xbf16, #tpu.memory_space<vmem>>, vector<1x8x20xbf16>
    %218 = vector.shape_cast %217 : vector<1x8x20xbf16> to vector<8x20xbf16>
    %cst_286 = arith.constant dense<0.000000e+00> : vector<8x1148xf32>
    %219 = tpu.matmul %218, %216, %cst_286 {dimension_numbers = #tpu.dot_dimension_numbers<[1], [0], [0], [1], [0, 0, 1, 1], [], []>} : vector<8x20xbf16>, vector<20x1148xbf16>, vector<8x1148xf32> -> vector<8x1148xf32>
    %220 = arith.addf %215, %219 : vector<8x1148xf32>
    %c0_287 = arith.constant 0 : index
    %c129 = arith.constant 129 : index
    %221 = vector.load %arg10[%c0_287, %c129] : memref<20x1350xbf16, #tpu.memory_space<vmem>>, vector<20x1148xbf16>
    %c5 = arith.constant 5 : index
    %c0_288 = arith.constant 0 : index
    %c0_289 = arith.constant 0 : index
    %222 = vector.load %arg3[%c5, %c0_288, %c0_289] : memref<9x8x20xbf16, #tpu.memory_space<vmem>>, vector<1x8x20xbf16>
    %223 = vector.shape_cast %222 : vector<1x8x20xbf16> to vector<8x20xbf16>
    %cst_290 = arith.constant dense<0.000000e+00> : vector<8x1148xf32>
    %224 = tpu.matmul %223, %221, %cst_290 {dimension_numbers = #tpu.dot_dimension_numbers<[1], [0], [0], [1], [0, 0, 1, 1], [], []>} : vector<8x20xbf16>, vector<20x1148xbf16>, vector<8x1148xf32> -> vector<8x1148xf32>
    %225 = arith.addf %220, %224 : vector<8x1148xf32>
    %c0_291 = arith.constant 0 : index
    %c163 = arith.constant 163 : index
    %226 = vector.load %arg10[%c0_291, %c163] : memref<20x1350xbf16, #tpu.memory_space<vmem>>, vector<20x1148xbf16>
    %c6 = arith.constant 6 : index
    %c0_292 = arith.constant 0 : index
    %c0_293 = arith.constant 0 : index
    %227 = vector.load %arg3[%c6, %c0_292, %c0_293] : memref<9x8x20xbf16, #tpu.memory_space<vmem>>, vector<1x8x20xbf16>
    %228 = vector.shape_cast %227 : vector<1x8x20xbf16> to vector<8x20xbf16>
    %cst_294 = arith.constant dense<0.000000e+00> : vector<8x1148xf32>
    %229 = tpu.matmul %228, %226, %cst_294 {dimension_numbers = #tpu.dot_dimension_numbers<[1], [0], [0], [1], [0, 0, 1, 1], [], []>} : vector<8x20xbf16>, vector<20x1148xbf16>, vector<8x1148xf32> -> vector<8x1148xf32>
    %230 = arith.addf %225, %229 : vector<8x1148xf32>
    %c0_295 = arith.constant 0 : index
    %c164_296 = arith.constant 164 : index
    %231 = vector.load %arg10[%c0_295, %c164_296] : memref<20x1350xbf16, #tpu.memory_space<vmem>>, vector<20x1148xbf16>
    %c7 = arith.constant 7 : index
    %c0_297 = arith.constant 0 : index
    %c0_298 = arith.constant 0 : index
    %232 = vector.load %arg3[%c7, %c0_297, %c0_298] : memref<9x8x20xbf16, #tpu.memory_space<vmem>>, vector<1x8x20xbf16>
    %233 = vector.shape_cast %232 : vector<1x8x20xbf16> to vector<8x20xbf16>
    %cst_299 = arith.constant dense<0.000000e+00> : vector<8x1148xf32>
    %234 = tpu.matmul %233, %231, %cst_299 {dimension_numbers = #tpu.dot_dimension_numbers<[1], [0], [0], [1], [0, 0, 1, 1], [], []>} : vector<8x20xbf16>, vector<20x1148xbf16>, vector<8x1148xf32> -> vector<8x1148xf32>
    %235 = arith.addf %230, %234 : vector<8x1148xf32>
    %c0_300 = arith.constant 0 : index
    %c165 = arith.constant 165 : index
    %236 = vector.load %arg10[%c0_300, %c165] : memref<20x1350xbf16, #tpu.memory_space<vmem>>, vector<20x1148xbf16>
    %c8 = arith.constant 8 : index
    %c0_301 = arith.constant 0 : index
    %c0_302 = arith.constant 0 : index
    %237 = vector.load %arg3[%c8, %c0_301, %c0_302] : memref<9x8x20xbf16, #tpu.memory_space<vmem>>, vector<1x8x20xbf16>
    %238 = vector.shape_cast %237 : vector<1x8x20xbf16> to vector<8x20xbf16>
    %cst_303 = arith.constant dense<0.000000e+00> : vector<8x1148xf32>
    %239 = tpu.matmul %238, %236, %cst_303 {dimension_numbers = #tpu.dot_dimension_numbers<[1], [0], [0], [1], [0, 0, 1, 1], [], []>} : vector<8x20xbf16>, vector<20x1148xbf16>, vector<8x1148xf32> -> vector<8x1148xf32>
    %240 = arith.addf %235, %239 : vector<8x1148xf32>
    %c0_304 = arith.constant 0 : index
    %c0_305 = arith.constant 0 : index
    %241 = vector.load %arg8[%c0_304, %c0_305] : memref<8x12xf32, #tpu.memory_space<vmem>>, vector<8x1xf32>
    %c0_306 = arith.constant 0 : index
    %c1_307 = arith.constant 1 : index
    %242 = vector.load %arg8[%c0_306, %c1_307] : memref<8x12xf32, #tpu.memory_space<vmem>>, vector<8x1xf32>
    %c0_308 = arith.constant 0 : index
    %c2_309 = arith.constant 2 : index
    %243 = vector.load %arg8[%c0_308, %c2_309] : memref<8x12xf32, #tpu.memory_space<vmem>>, vector<8x1xf32>
    %244 = vector.broadcast %241 : vector<8x1xf32> to vector<8x1148xf32>
    %245 = arith.addf %240, %244 : vector<8x1148xf32>
    %cst_310 = arith.constant 0.000000e+00 : f32
    %246 = vector.broadcast %cst_310 : f32 to vector<8x1148xf32>
    %247 = arith.cmpf oge, %245, %246 : vector<8x1148xf32>
    %cst_311 = arith.constant 0.00999999977 : f32
    %248 = vector.broadcast %cst_311 : f32 to vector<8x1148xf32>
    %249 = arith.mulf %248, %245 : vector<8x1148xf32>
    %250 = arith.select %247, %245, %249 : vector<8x1148xi1>, vector<8x1148xf32>
    %251 = vector.broadcast %242 : vector<8x1xf32> to vector<8x1148xf32>
    %252 = arith.mulf %250, %251 : vector<8x1148xf32>
    %253 = vector.broadcast %243 : vector<8x1xf32> to vector<8x1148xf32>
    %254 = arith.addf %252, %253 : vector<8x1148xf32>
    %255 = vector.broadcast %0 : vector<1x1148xf32> to vector<8x1148xf32>
    %256 = arith.mulf %254, %255 : vector<8x1148xf32>
    %cst_312 = arith.constant 0.000000e+00 : bf16
    %257 = vector.broadcast %cst_312 : bf16 to vector<8x128xbf16>
    %c0_313 = arith.constant 0 : index
    %c0_314 = arith.constant 0 : index
    %258 = vector.load %arg11[%c0_313, %c0_314] : memref<8x1350xbf16, #tpu.memory_space<vmem>>, vector<8x128xbf16>
    tpu.vector_store %arg11[%c0_313, %c0_314], %257 {strides = array<i32>} : memref<8x1350xbf16, #tpu.memory_space<vmem>>, vector<8x128xbf16>,
    %cst_315 = arith.constant 0.000000e+00 : bf16
    %259 = vector.broadcast %cst_315 : bf16 to vector<8x74xbf16>
    %c0_316 = arith.constant 0 : index
    %c1276 = arith.constant 1276 : index
    %260 = vector.load %arg11[%c0_316, %c1276] : memref<8x1350xbf16, #tpu.memory_space<vmem>>, vector<8x74xbf16>
    tpu.vector_store %arg11[%c0_316, %c1276], %259 {strides = array<i32>} : memref<8x1350xbf16, #tpu.memory_space<vmem>>, vector<8x74xbf16>,
    %261 = arith.truncf %256 : vector<8x1148xf32> to vector<8x1148xbf16>
    %c0_317 = arith.constant 0 : index
    %c128_318 = arith.constant 128 : index
    %262 = vector.load %arg11[%c0_317, %c128_318] : memref<8x1350xbf16, #tpu.memory_space<vmem>>, vector<8x1148xbf16>
    tpu.vector_store %arg11[%c0_317, %c128_318], %261 {strides = array<i32>} : memref<8x1350xbf16, #tpu.memory_space<vmem>>, vector<8x1148xbf16>,
    %cst_319 = arith.constant 0.000000e+00 : f32
    %263 = vector.broadcast %cst_319 : f32 to vector<8x1148xf32>
    %c0_320 = arith.constant 0 : index
    %c54 = arith.constant 54 : index
    %264 = vector.load %arg11[%c0_320, %c54] : memref<8x1350xbf16, #tpu.memory_space<vmem>>, vector<8x1148xbf16>
    %c0_321 = arith.constant 0 : index
    %c0_322 = arith.constant 0 : index
    %c0_323 = arith.constant 0 : index
    %265 = vector.load %arg4[%c0_321, %c0_322, %c0_323] : memref<9x8x8xbf16, #tpu.memory_space<vmem>>, vector<1x8x8xbf16>
    %266 = vector.shape_cast %265 : vector<1x8x8xbf16> to vector<8x8xbf16>
    %cst_324 = arith.constant dense<0.000000e+00> : vector<8x1148xf32>
    %267 = tpu.matmul %266, %264, %cst_324 {dimension_numbers = #tpu.dot_dimension_numbers<[1], [0], [0], [1], [0, 0, 1, 1], [], []>} : vector<8x8xbf16>, vector<8x1148xbf16>, vector<8x1148xf32> -> vector<8x1148xf32>
    %268 = arith.addf %263, %267 : vector<8x1148xf32>
    %c0_325 = arith.constant 0 : index
    %c56 = arith.constant 56 : index
    %269 = vector.load %arg11[%c0_325, %c56] : memref<8x1350xbf16, #tpu.memory_space<vmem>>, vector<8x1148xbf16>
    %c1_326 = arith.constant 1 : index
    %c0_327 = arith.constant 0 : index
    %c0_328 = arith.constant 0 : index
    %270 = vector.load %arg4[%c1_326, %c0_327, %c0_328] : memref<9x8x8xbf16, #tpu.memory_space<vmem>>, vector<1x8x8xbf16>
    %271 = vector.shape_cast %270 : vector<1x8x8xbf16> to vector<8x8xbf16>
    %cst_329 = arith.constant dense<0.000000e+00> : vector<8x1148xf32>
    %272 = tpu.matmul %271, %269, %cst_329 {dimension_numbers = #tpu.dot_dimension_numbers<[1], [0], [0], [1], [0, 0, 1, 1], [], []>} : vector<8x8xbf16>, vector<8x1148xbf16>, vector<8x1148xf32> -> vector<8x1148xf32>
    %273 = arith.addf %268, %272 : vector<8x1148xf32>
    %c0_330 = arith.constant 0 : index
    %c58 = arith.constant 58 : index
    %274 = vector.load %arg11[%c0_330, %c58] : memref<8x1350xbf16, #tpu.memory_space<vmem>>, vector<8x1148xbf16>
    %c2_331 = arith.constant 2 : index
    %c0_332 = arith.constant 0 : index
    %c0_333 = arith.constant 0 : index
    %275 = vector.load %arg4[%c2_331, %c0_332, %c0_333] : memref<9x8x8xbf16, #tpu.memory_space<vmem>>, vector<1x8x8xbf16>
    %276 = vector.shape_cast %275 : vector<1x8x8xbf16> to vector<8x8xbf16>
    %cst_334 = arith.constant dense<0.000000e+00> : vector<8x1148xf32>
    %277 = tpu.matmul %276, %274, %cst_334 {dimension_numbers = #tpu.dot_dimension_numbers<[1], [0], [0], [1], [0, 0, 1, 1], [], []>} : vector<8x8xbf16>, vector<8x1148xbf16>, vector<8x1148xf32> -> vector<8x1148xf32>
    %278 = arith.addf %273, %277 : vector<8x1148xf32>
    %c0_335 = arith.constant 0 : index
    %c126 = arith.constant 126 : index
    %279 = vector.load %arg11[%c0_335, %c126] : memref<8x1350xbf16, #tpu.memory_space<vmem>>, vector<8x1148xbf16>
    %c3_336 = arith.constant 3 : index
    %c0_337 = arith.constant 0 : index
    %c0_338 = arith.constant 0 : index
    %280 = vector.load %arg4[%c3_336, %c0_337, %c0_338] : memref<9x8x8xbf16, #tpu.memory_space<vmem>>, vector<1x8x8xbf16>
    %281 = vector.shape_cast %280 : vector<1x8x8xbf16> to vector<8x8xbf16>
    %cst_339 = arith.constant dense<0.000000e+00> : vector<8x1148xf32>
    %282 = tpu.matmul %281, %279, %cst_339 {dimension_numbers = #tpu.dot_dimension_numbers<[1], [0], [0], [1], [0, 0, 1, 1], [], []>} : vector<8x8xbf16>, vector<8x1148xbf16>, vector<8x1148xf32> -> vector<8x1148xf32>
    %283 = arith.addf %278, %282 : vector<8x1148xf32>
    %c0_340 = arith.constant 0 : index
    %c128_341 = arith.constant 128 : index
    %284 = vector.load %arg11[%c0_340, %c128_341] : memref<8x1350xbf16, #tpu.memory_space<vmem>>, vector<8x1148xbf16>
    %c4_342 = arith.constant 4 : index
    %c0_343 = arith.constant 0 : index
    %c0_344 = arith.constant 0 : index
    %285 = vector.load %arg4[%c4_342, %c0_343, %c0_344] : memref<9x8x8xbf16, #tpu.memory_space<vmem>>, vector<1x8x8xbf16>
    %286 = vector.shape_cast %285 : vector<1x8x8xbf16> to vector<8x8xbf16>
    %cst_345 = arith.constant dense<0.000000e+00> : vector<8x1148xf32>
    %287 = tpu.matmul %286, %284, %cst_345 {dimension_numbers = #tpu.dot_dimension_numbers<[1], [0], [0], [1], [0, 0, 1, 1], [], []>} : vector<8x8xbf16>, vector<8x1148xbf16>, vector<8x1148xf32> -> vector<8x1148xf32>
    %288 = arith.addf %283, %287 : vector<8x1148xf32>
    %c0_346 = arith.constant 0 : index
    %c130 = arith.constant 130 : index
    %289 = vector.load %arg11[%c0_346, %c130] : memref<8x1350xbf16, #tpu.memory_space<vmem>>, vector<8x1148xbf16>
    %c5_347 = arith.constant 5 : index
    %c0_348 = arith.constant 0 : index
    %c0_349 = arith.constant 0 : index
    %290 = vector.load %arg4[%c5_347, %c0_348, %c0_349] : memref<9x8x8xbf16, #tpu.memory_space<vmem>>, vector<1x8x8xbf16>
    %291 = vector.shape_cast %290 : vector<1x8x8xbf16> to vector<8x8xbf16>
    %cst_350 = arith.constant dense<0.000000e+00> : vector<8x1148xf32>
    %292 = tpu.matmul %291, %289, %cst_350 {dimension_numbers = #tpu.dot_dimension_numbers<[1], [0], [0], [1], [0, 0, 1, 1], [], []>} : vector<8x8xbf16>, vector<8x1148xbf16>, vector<8x1148xf32> -> vector<8x1148xf32>
    %293 = arith.addf %288, %292 : vector<8x1148xf32>
    %c0_351 = arith.constant 0 : index
    %c198 = arith.constant 198 : index
    %294 = vector.load %arg11[%c0_351, %c198] : memref<8x1350xbf16, #tpu.memory_space<vmem>>, vector<8x1148xbf16>
    %c6_352 = arith.constant 6 : index
    %c0_353 = arith.constant 0 : index
    %c0_354 = arith.constant 0 : index
    %295 = vector.load %arg4[%c6_352, %c0_353, %c0_354] : memref<9x8x8xbf16, #tpu.memory_space<vmem>>, vector<1x8x8xbf16>
    %296 = vector.shape_cast %295 : vector<1x8x8xbf16> to vector<8x8xbf16>
    %cst_355 = arith.constant dense<0.000000e+00> : vector<8x1148xf32>
    %297 = tpu.matmul %296, %294, %cst_355 {dimension_numbers = #tpu.dot_dimension_numbers<[1], [0], [0], [1], [0, 0, 1, 1], [], []>} : vector<8x8xbf16>, vector<8x1148xbf16>, vector<8x1148xf32> -> vector<8x1148xf32>
    %298 = arith.addf %293, %297 : vector<8x1148xf32>
    %c0_356 = arith.constant 0 : index
    %c200_357 = arith.constant 200 : index
    %299 = vector.load %arg11[%c0_356, %c200_357] : memref<8x1350xbf16, #tpu.memory_space<vmem>>, vector<8x1148xbf16>
    %c7_358 = arith.constant 7 : index
    %c0_359 = arith.constant 0 : index
    %c0_360 = arith.constant 0 : index
    %300 = vector.load %arg4[%c7_358, %c0_359, %c0_360] : memref<9x8x8xbf16, #tpu.memory_space<vmem>>, vector<1x8x8xbf16>
    %301 = vector.shape_cast %300 : vector<1x8x8xbf16> to vector<8x8xbf16>
    %cst_361 = arith.constant dense<0.000000e+00> : vector<8x1148xf32>
    %302 = tpu.matmul %301, %299, %cst_361 {dimension_numbers = #tpu.dot_dimension_numbers<[1], [0], [0], [1], [0, 0, 1, 1], [], []>} : vector<8x8xbf16>, vector<8x1148xbf16>, vector<8x1148xf32> -> vector<8x1148xf32>
    %303 = arith.addf %298, %302 : vector<8x1148xf32>
    %c0_362 = arith.constant 0 : index
    %c202 = arith.constant 202 : index
    %304 = vector.load %arg11[%c0_362, %c202] : memref<8x1350xbf16, #tpu.memory_space<vmem>>, vector<8x1148xbf16>
    %c8_363 = arith.constant 8 : index
    %c0_364 = arith.constant 0 : index
    %c0_365 = arith.constant 0 : index
    %305 = vector.load %arg4[%c8_363, %c0_364, %c0_365] : memref<9x8x8xbf16, #tpu.memory_space<vmem>>, vector<1x8x8xbf16>
    %306 = vector.shape_cast %305 : vector<1x8x8xbf16> to vector<8x8xbf16>
    %cst_366 = arith.constant dense<0.000000e+00> : vector<8x1148xf32>
    %307 = tpu.matmul %306, %304, %cst_366 {dimension_numbers = #tpu.dot_dimension_numbers<[1], [0], [0], [1], [0, 0, 1, 1], [], []>} : vector<8x8xbf16>, vector<8x1148xbf16>, vector<8x1148xf32> -> vector<8x1148xf32>
    %308 = arith.addf %303, %307 : vector<8x1148xf32>
    %c0_367 = arith.constant 0 : index
    %c3_368 = arith.constant 3 : index
    %309 = vector.load %arg8[%c0_367, %c3_368] : memref<8x12xf32, #tpu.memory_space<vmem>>, vector<8x1xf32>
    %c0_369 = arith.constant 0 : index
    %c4_370 = arith.constant 4 : index
    %310 = vector.load %arg8[%c0_369, %c4_370] : memref<8x12xf32, #tpu.memory_space<vmem>>, vector<8x1xf32>
    %c0_371 = arith.constant 0 : index
    %c5_372 = arith.constant 5 : index
    %311 = vector.load %arg8[%c0_371, %c5_372] : memref<8x12xf32, #tpu.memory_space<vmem>>, vector<8x1xf32>
    %312 = vector.broadcast %309 : vector<8x1xf32> to vector<8x1148xf32>
    %313 = arith.addf %308, %312 : vector<8x1148xf32>
    %cst_373 = arith.constant 0.000000e+00 : f32
    %314 = vector.broadcast %cst_373 : f32 to vector<8x1148xf32>
    %315 = arith.cmpf oge, %313, %314 : vector<8x1148xf32>
    %cst_374 = arith.constant 0.00999999977 : f32
    %316 = vector.broadcast %cst_374 : f32 to vector<8x1148xf32>
    %317 = arith.mulf %316, %313 : vector<8x1148xf32>
    %318 = arith.select %315, %313, %317 : vector<8x1148xi1>, vector<8x1148xf32>
    %319 = vector.broadcast %310 : vector<8x1xf32> to vector<8x1148xf32>
    %320 = arith.mulf %318, %319 : vector<8x1148xf32>
    %321 = vector.broadcast %311 : vector<8x1xf32> to vector<8x1148xf32>
    %322 = arith.addf %320, %321 : vector<8x1148xf32>
    %323 = vector.broadcast %0 : vector<1x1148xf32> to vector<8x1148xf32>
    %324 = arith.mulf %322, %323 : vector<8x1148xf32>
    %cst_375 = arith.constant 0.000000e+00 : bf16
    %325 = vector.broadcast %cst_375 : bf16 to vector<8x128xbf16>
    %c0_376 = arith.constant 0 : index
    %c0_377 = arith.constant 0 : index
    %326 = vector.load %arg12[%c0_376, %c0_377] : memref<8x1350xbf16, #tpu.memory_space<vmem>>, vector<8x128xbf16>
    tpu.vector_store %arg12[%c0_376, %c0_377], %325 {strides = array<i32>} : memref<8x1350xbf16, #tpu.memory_space<vmem>>, vector<8x128xbf16>,
    %cst_378 = arith.constant 0.000000e+00 : bf16
    %327 = vector.broadcast %cst_378 : bf16 to vector<8x74xbf16>
    %c0_379 = arith.constant 0 : index
    %c1276_380 = arith.constant 1276 : index
    %328 = vector.load %arg12[%c0_379, %c1276_380] : memref<8x1350xbf16, #tpu.memory_space<vmem>>, vector<8x74xbf16>
    tpu.vector_store %arg12[%c0_379, %c1276_380], %327 {strides = array<i32>} : memref<8x1350xbf16, #tpu.memory_space<vmem>>, vector<8x74xbf16>,
    %329 = arith.truncf %324 : vector<8x1148xf32> to vector<8x1148xbf16>
    %c0_381 = arith.constant 0 : index
    %c128_382 = arith.constant 128 : index
    %330 = vector.load %arg12[%c0_381, %c128_382] : memref<8x1350xbf16, #tpu.memory_space<vmem>>, vector<8x1148xbf16>
    tpu.vector_store %arg12[%c0_381, %c128_382], %329 {strides = array<i32>} : memref<8x1350xbf16, #tpu.memory_space<vmem>>, vector<8x1148xbf16>,
    %cst_383 = arith.constant 0.000000e+00 : f32
    %331 = vector.broadcast %cst_383 : f32 to vector<8x1148xf32>
    %c0_384 = arith.constant 0 : index
    %c91_385 = arith.constant 91 : index
    %332 = vector.load %arg12[%c0_384, %c91_385] : memref<8x1350xbf16, #tpu.memory_space<vmem>>, vector<8x1148xbf16>
    %c0_386 = arith.constant 0 : index
    %c0_387 = arith.constant 0 : index
    %c0_388 = arith.constant 0 : index
    %333 = vector.load %arg5[%c0_386, %c0_387, %c0_388] : memref<4x8x8xbf16, #tpu.memory_space<vmem>>, vector<1x8x8xbf16>
    %334 = vector.shape_cast %333 : vector<1x8x8xbf16> to vector<8x8xbf16>
    %cst_389 = arith.constant dense<0.000000e+00> : vector<8x1148xf32>
    %335 = tpu.matmul %334, %332, %cst_389 {dimension_numbers = #tpu.dot_dimension_numbers<[1], [0], [0], [1], [0, 0, 1, 1], [], []>} : vector<8x8xbf16>, vector<8x1148xbf16>, vector<8x1148xf32> -> vector<8x1148xf32>
    %336 = arith.addf %331, %335 : vector<8x1148xf32>
    %c0_390 = arith.constant 0 : index
    %c93_391 = arith.constant 93 : index
    %337 = vector.load %arg12[%c0_390, %c93_391] : memref<8x1350xbf16, #tpu.memory_space<vmem>>, vector<8x1148xbf16>
    %c1_392 = arith.constant 1 : index
    %c0_393 = arith.constant 0 : index
    %c0_394 = arith.constant 0 : index
    %338 = vector.load %arg5[%c1_392, %c0_393, %c0_394] : memref<4x8x8xbf16, #tpu.memory_space<vmem>>, vector<1x8x8xbf16>
    %339 = vector.shape_cast %338 : vector<1x8x8xbf16> to vector<8x8xbf16>
    %cst_395 = arith.constant dense<0.000000e+00> : vector<8x1148xf32>
    %340 = tpu.matmul %339, %337, %cst_395 {dimension_numbers = #tpu.dot_dimension_numbers<[1], [0], [0], [1], [0, 0, 1, 1], [], []>} : vector<8x8xbf16>, vector<8x1148xbf16>, vector<8x1148xf32> -> vector<8x1148xf32>
    %341 = arith.addf %336, %340 : vector<8x1148xf32>
    %c0_396 = arith.constant 0 : index
    %c163_397 = arith.constant 163 : index
    %342 = vector.load %arg12[%c0_396, %c163_397] : memref<8x1350xbf16, #tpu.memory_space<vmem>>, vector<8x1148xbf16>
    %c2_398 = arith.constant 2 : index
    %c0_399 = arith.constant 0 : index
    %c0_400 = arith.constant 0 : index
    %343 = vector.load %arg5[%c2_398, %c0_399, %c0_400] : memref<4x8x8xbf16, #tpu.memory_space<vmem>>, vector<1x8x8xbf16>
    %344 = vector.shape_cast %343 : vector<1x8x8xbf16> to vector<8x8xbf16>
    %cst_401 = arith.constant dense<0.000000e+00> : vector<8x1148xf32>
    %345 = tpu.matmul %344, %342, %cst_401 {dimension_numbers = #tpu.dot_dimension_numbers<[1], [0], [0], [1], [0, 0, 1, 1], [], []>} : vector<8x8xbf16>, vector<8x1148xbf16>, vector<8x1148xf32> -> vector<8x1148xf32>
    %346 = arith.addf %341, %345 : vector<8x1148xf32>
    %c0_402 = arith.constant 0 : index
    %c165_403 = arith.constant 165 : index
    %347 = vector.load %arg12[%c0_402, %c165_403] : memref<8x1350xbf16, #tpu.memory_space<vmem>>, vector<8x1148xbf16>
    %c3_404 = arith.constant 3 : index
    %c0_405 = arith.constant 0 : index
    %c0_406 = arith.constant 0 : index
    %348 = vector.load %arg5[%c3_404, %c0_405, %c0_406] : memref<4x8x8xbf16, #tpu.memory_space<vmem>>, vector<1x8x8xbf16>
    %349 = vector.shape_cast %348 : vector<1x8x8xbf16> to vector<8x8xbf16>
    %cst_407 = arith.constant dense<0.000000e+00> : vector<8x1148xf32>
    %350 = tpu.matmul %349, %347, %cst_407 {dimension_numbers = #tpu.dot_dimension_numbers<[1], [0], [0], [1], [0, 0, 1, 1], [], []>} : vector<8x8xbf16>, vector<8x1148xbf16>, vector<8x1148xf32> -> vector<8x1148xf32>
    %351 = arith.addf %346, %350 : vector<8x1148xf32>
    %c0_408 = arith.constant 0 : index
    %c6_409 = arith.constant 6 : index
    %352 = vector.load %arg8[%c0_408, %c6_409] : memref<8x12xf32, #tpu.memory_space<vmem>>, vector<8x1xf32>
    %c0_410 = arith.constant 0 : index
    %c7_411 = arith.constant 7 : index
    %353 = vector.load %arg8[%c0_410, %c7_411] : memref<8x12xf32, #tpu.memory_space<vmem>>, vector<8x1xf32>
    %c0_412 = arith.constant 0 : index
    %c8_413 = arith.constant 8 : index
    %354 = vector.load %arg8[%c0_412, %c8_413] : memref<8x12xf32, #tpu.memory_space<vmem>>, vector<8x1xf32>
    %355 = vector.broadcast %352 : vector<8x1xf32> to vector<8x1148xf32>
    %356 = arith.addf %351, %355 : vector<8x1148xf32>
    %cst_414 = arith.constant 0.000000e+00 : f32
    %357 = vector.broadcast %cst_414 : f32 to vector<8x1148xf32>
    %358 = arith.cmpf oge, %356, %357 : vector<8x1148xf32>
    %cst_415 = arith.constant 0.00999999977 : f32
    %359 = vector.broadcast %cst_415 : f32 to vector<8x1148xf32>
    %360 = arith.mulf %359, %356 : vector<8x1148xf32>
    %361 = arith.select %358, %356, %360 : vector<8x1148xi1>, vector<8x1148xf32>
    %362 = vector.broadcast %353 : vector<8x1xf32> to vector<8x1148xf32>
    %363 = arith.mulf %361, %362 : vector<8x1148xf32>
    %364 = vector.broadcast %354 : vector<8x1xf32> to vector<8x1148xf32>
    %365 = arith.addf %363, %364 : vector<8x1148xf32>
    %c0_416 = arith.constant 0 : index
    %c0_417 = arith.constant 0 : index
    %c0_418 = arith.constant 0 : index
    %366 = vector.load %arg6[%c0_416, %c0_417, %c0_418] : memref<3x8x8xbf16, #tpu.memory_space<vmem>>, vector<1x8x8xbf16>
    %367 = vector.shape_cast %366 : vector<1x8x8xbf16> to vector<8x8xbf16>
    %c0_419 = arith.constant 0 : index
    %c128_420 = arith.constant 128 : index
    %368 = vector.load %arg11[%c0_419, %c128_420] : memref<8x1350xbf16, #tpu.memory_space<vmem>>, vector<8x1148xbf16>
    %cst_421 = arith.constant dense<0.000000e+00> : vector<8x1148xf32>
    %369 = tpu.matmul %367, %368, %cst_421 {dimension_numbers = #tpu.dot_dimension_numbers<[1], [0], [0], [1], [0, 0, 1, 1], [], []>} : vector<8x8xbf16>, vector<8x1148xbf16>, vector<8x1148xf32> -> vector<8x1148xf32>
    %c1_422 = arith.constant 1 : index
    %c0_423 = arith.constant 0 : index
    %c0_424 = arith.constant 0 : index
    %370 = vector.load %arg6[%c1_422, %c0_423, %c0_424] : memref<3x8x8xbf16, #tpu.memory_space<vmem>>, vector<1x8x8xbf16>
    %371 = vector.shape_cast %370 : vector<1x8x8xbf16> to vector<8x8xbf16>
    %c0_425 = arith.constant 0 : index
    %c128_426 = arith.constant 128 : index
    %372 = vector.load %arg12[%c0_425, %c128_426] : memref<8x1350xbf16, #tpu.memory_space<vmem>>, vector<8x1148xbf16>
    %cst_427 = arith.constant dense<0.000000e+00> : vector<8x1148xf32>
    %373 = tpu.matmul %371, %372, %cst_427 {dimension_numbers = #tpu.dot_dimension_numbers<[1], [0], [0], [1], [0, 0, 1, 1], [], []>} : vector<8x8xbf16>, vector<8x1148xbf16>, vector<8x1148xf32> -> vector<8x1148xf32>
    %374 = arith.addf %369, %373 : vector<8x1148xf32>
    %c2_428 = arith.constant 2 : index
    %c0_429 = arith.constant 0 : index
    %c0_430 = arith.constant 0 : index
    %375 = vector.load %arg6[%c2_428, %c0_429, %c0_430] : memref<3x8x8xbf16, #tpu.memory_space<vmem>>, vector<1x8x8xbf16>
    %376 = vector.shape_cast %375 : vector<1x8x8xbf16> to vector<8x8xbf16>
    %377 = arith.truncf %365 : vector<8x1148xf32> to vector<8x1148xbf16>
    %cst_431 = arith.constant dense<0.000000e+00> : vector<8x1148xf32>
    %378 = tpu.matmul %376, %377, %cst_431 {dimension_numbers = #tpu.dot_dimension_numbers<[1], [0], [0], [1], [0, 0, 1, 1], [], []>} : vector<8x8xbf16>, vector<8x1148xbf16>, vector<8x1148xf32> -> vector<8x1148xf32>
    %379 = arith.addf %374, %378 : vector<8x1148xf32>
    %c0_432 = arith.constant 0 : index
    %c9 = arith.constant 9 : index
    %380 = vector.load %arg8[%c0_432, %c9] : memref<8x12xf32, #tpu.memory_space<vmem>>, vector<8x1xf32>
    %c0_433 = arith.constant 0 : index
    %c10 = arith.constant 10 : index
    %381 = vector.load %arg8[%c0_433, %c10] : memref<8x12xf32, #tpu.memory_space<vmem>>, vector<8x1xf32>
    %c0_434 = arith.constant 0 : index
    %c11 = arith.constant 11 : index
    %382 = vector.load %arg8[%c0_434, %c11] : memref<8x12xf32, #tpu.memory_space<vmem>>, vector<8x1xf32>
    %383 = vector.broadcast %380 : vector<8x1xf32> to vector<8x1148xf32>
    %384 = arith.addf %379, %383 : vector<8x1148xf32>
    %cst_435 = arith.constant 0.000000e+00 : f32
    %385 = vector.broadcast %cst_435 : f32 to vector<8x1148xf32>
    %386 = arith.cmpf oge, %384, %385 : vector<8x1148xf32>
    %cst_436 = arith.constant 0.00999999977 : f32
    %387 = vector.broadcast %cst_436 : f32 to vector<8x1148xf32>
    %388 = arith.mulf %387, %384 : vector<8x1148xf32>
    %389 = arith.select %386, %384, %388 : vector<8x1148xi1>, vector<8x1148xf32>
    %390 = vector.broadcast %381 : vector<8x1xf32> to vector<8x1148xf32>
    %391 = arith.mulf %389, %390 : vector<8x1148xf32>
    %392 = vector.broadcast %382 : vector<8x1xf32> to vector<8x1148xf32>
    %393 = arith.addf %391, %392 : vector<8x1148xf32>
    %c0_437 = arith.constant 0 : index
    %c0_438 = arith.constant 0 : index
    %394 = vector.load %arg13[%c0_437, %c0_438] : memref<8x1148xf32, #tpu.memory_space<vmem>>, vector<8x1148xf32>
    tpu.vector_store %arg13[%c0_437, %c0_438], %393 {strides = array<i32>} : memref<8x1148xf32, #tpu.memory_space<vmem>>, vector<8x1148xf32>,
    %c0_439 = arith.constant 0 : index
    %c0_440 = arith.constant 0 : index
    %395 = vector.load %arg13[%c0_439, %c0_440] : memref<8x1148xf32, #tpu.memory_space<vmem>>, vector<8x32xf32>
    %c0_441 = arith.constant 0 : index
    %c0_442 = arith.constant 0 : index
    %c0_443 = arith.constant 0 : index
    %396 = vector.load %arg9[%c0_441, %c0_442, %c0_443] : memref<1x8x1024xf32, #tpu.memory_space<vmem>>, vector<1x8x32xf32>
    %397 = vector.shape_cast %396 : vector<1x8x32xf32> to vector<8x32xf32>
    %398 = vector.shape_cast %395 : vector<8x32xf32> to vector<1x8x32xf32>
    tpu.vector_store %arg9[%c0_441, %c0_442, %c0_443], %398 {strides = array<i32>} : memref<1x8x1024xf32, #tpu.memory_space<vmem>>, vector<1x8x32xf32>,
    %c0_444 = arith.constant 0 : index
    %c36 = arith.constant 36 : index
    %399 = vector.load %arg13[%c0_444, %c36] : memref<8x1148xf32, #tpu.memory_space<vmem>>, vector<8x32xf32>
    %c0_445 = arith.constant 0 : index
    %c0_446 = arith.constant 0 : index
    %c32_447 = arith.constant 32 : index
    %400 = vector.load %arg9[%c0_445, %c0_446, %c32_447] : memref<1x8x1024xf32, #tpu.memory_space<vmem>>, vector<1x8x32xf32>
    %401 = vector.shape_cast %400 : vector<1x8x32xf32> to vector<8x32xf32>
    %402 = vector.shape_cast %399 : vector<8x32xf32> to vector<1x8x32xf32>
    tpu.vector_store %arg9[%c0_445, %c0_446, %c32_447], %402 {strides = array<i32>} : memref<1x8x1024xf32, #tpu.memory_space<vmem>>, vector<1x8x32xf32>,
    %c0_448 = arith.constant 0 : index
    %c72 = arith.constant 72 : index
    %403 = vector.load %arg13[%c0_448, %c72] : memref<8x1148xf32, #tpu.memory_space<vmem>>, vector<8x32xf32>
    %c0_449 = arith.constant 0 : index
    %c0_450 = arith.constant 0 : index
    %c64_451 = arith.constant 64 : index
    %404 = vector.load %arg9[%c0_449, %c0_450, %c64_451] : memref<1x8x1024xf32, #tpu.memory_space<vmem>>, vector<1x8x32xf32>
    %405 = vector.shape_cast %404 : vector<1x8x32xf32> to vector<8x32xf32>
    %406 = vector.shape_cast %403 : vector<8x32xf32> to vector<1x8x32xf32>
    tpu.vector_store %arg9[%c0_449, %c0_450, %c64_451], %406 {strides = array<i32>} : memref<1x8x1024xf32, #tpu.memory_space<vmem>>, vector<1x8x32xf32>,
    %c0_452 = arith.constant 0 : index
    %c108 = arith.constant 108 : index
    %407 = vector.load %arg13[%c0_452, %c108] : memref<8x1148xf32, #tpu.memory_space<vmem>>, vector<8x32xf32>
    %c0_453 = arith.constant 0 : index
    %c0_454 = arith.constant 0 : index
    %c96_455 = arith.constant 96 : index
    %408 = vector.load %arg9[%c0_453, %c0_454, %c96_455] : memref<1x8x1024xf32, #tpu.memory_space<vmem>>, vector<1x8x32xf32>
    %409 = vector.shape_cast %408 : vector<1x8x32xf32> to vector<8x32xf32>
    %410 = vector.shape_cast %407 : vector<8x32xf32> to vector<1x8x32xf32>
    tpu.vector_store %arg9[%c0_453, %c0_454, %c96_455], %410 {strides = array<i32>} : memref<1x8x1024xf32, #tpu.memory_space<vmem>>, vector<1x8x32xf32>,
    %c0_456 = arith.constant 0 : index
    %c144 = arith.constant 144 : index
    %411 = vector.load %arg13[%c0_456, %c144] : memref<8x1148xf32, #tpu.memory_space<vmem>>, vector<8x32xf32>
    %c0_457 = arith.constant 0 : index
    %c0_458 = arith.constant 0 : index
    %c128_459 = arith.constant 128 : index
    %412 = vector.load %arg9[%c0_457, %c0_458, %c128_459] : memref<1x8x1024xf32, #tpu.memory_space<vmem>>, vector<1x8x32xf32>
    %413 = vector.shape_cast %412 : vector<1x8x32xf32> to vector<8x32xf32>
    %414 = vector.shape_cast %411 : vector<8x32xf32> to vector<1x8x32xf32>
    tpu.vector_store %arg9[%c0_457, %c0_458, %c128_459], %414 {strides = array<i32>} : memref<1x8x1024xf32, #tpu.memory_space<vmem>>, vector<1x8x32xf32>,
    %c0_460 = arith.constant 0 : index
    %c180 = arith.constant 180 : index
    %415 = vector.load %arg13[%c0_460, %c180] : memref<8x1148xf32, #tpu.memory_space<vmem>>, vector<8x32xf32>
    %c0_461 = arith.constant 0 : index
    %c0_462 = arith.constant 0 : index
    %c160_463 = arith.constant 160 : index
    %416 = vector.load %arg9[%c0_461, %c0_462, %c160_463] : memref<1x8x1024xf32, #tpu.memory_space<vmem>>, vector<1x8x32xf32>
    %417 = vector.shape_cast %416 : vector<1x8x32xf32> to vector<8x32xf32>
    %418 = vector.shape_cast %415 : vector<8x32xf32> to vector<1x8x32xf32>
    tpu.vector_store %arg9[%c0_461, %c0_462, %c160_463], %418 {strides = array<i32>} : memref<1x8x1024xf32, #tpu.memory_space<vmem>>, vector<1x8x32xf32>,
    %c0_464 = arith.constant 0 : index
    %c216 = arith.constant 216 : index
    %419 = vector.load %arg13[%c0_464, %c216] : memref<8x1148xf32, #tpu.memory_space<vmem>>, vector<8x32xf32>
    %c0_465 = arith.constant 0 : index
    %c0_466 = arith.constant 0 : index
    %c192_467 = arith.constant 192 : index
    %420 = vector.load %arg9[%c0_465, %c0_466, %c192_467] : memref<1x8x1024xf32, #tpu.memory_space<vmem>>, vector<1x8x32xf32>
    %421 = vector.shape_cast %420 : vector<1x8x32xf32> to vector<8x32xf32>
    %422 = vector.shape_cast %419 : vector<8x32xf32> to vector<1x8x32xf32>
    tpu.vector_store %arg9[%c0_465, %c0_466, %c192_467], %422 {strides = array<i32>} : memref<1x8x1024xf32, #tpu.memory_space<vmem>>, vector<1x8x32xf32>,
    %c0_468 = arith.constant 0 : index
    %c252 = arith.constant 252 : index
    %423 = vector.load %arg13[%c0_468, %c252] : memref<8x1148xf32, #tpu.memory_space<vmem>>, vector<8x32xf32>
    %c0_469 = arith.constant 0 : index
    %c0_470 = arith.constant 0 : index
    %c224_471 = arith.constant 224 : index
    %424 = vector.load %arg9[%c0_469, %c0_470, %c224_471] : memref<1x8x1024xf32, #tpu.memory_space<vmem>>, vector<1x8x32xf32>
    %425 = vector.shape_cast %424 : vector<1x8x32xf32> to vector<8x32xf32>
    %426 = vector.shape_cast %423 : vector<8x32xf32> to vector<1x8x32xf32>
    tpu.vector_store %arg9[%c0_469, %c0_470, %c224_471], %426 {strides = array<i32>} : memref<1x8x1024xf32, #tpu.memory_space<vmem>>, vector<1x8x32xf32>,
    %c0_472 = arith.constant 0 : index
    %c288_473 = arith.constant 288 : index
    %427 = vector.load %arg13[%c0_472, %c288_473] : memref<8x1148xf32, #tpu.memory_space<vmem>>, vector<8x32xf32>
    %c0_474 = arith.constant 0 : index
    %c0_475 = arith.constant 0 : index
    %c256_476 = arith.constant 256 : index
    %428 = vector.load %arg9[%c0_474, %c0_475, %c256_476] : memref<1x8x1024xf32, #tpu.memory_space<vmem>>, vector<1x8x32xf32>
    %429 = vector.shape_cast %428 : vector<1x8x32xf32> to vector<8x32xf32>
    %430 = vector.shape_cast %427 : vector<8x32xf32> to vector<1x8x32xf32>
    tpu.vector_store %arg9[%c0_474, %c0_475, %c256_476], %430 {strides = array<i32>} : memref<1x8x1024xf32, #tpu.memory_space<vmem>>, vector<1x8x32xf32>,
    %c0_477 = arith.constant 0 : index
    %c324 = arith.constant 324 : index
    %431 = vector.load %arg13[%c0_477, %c324] : memref<8x1148xf32, #tpu.memory_space<vmem>>, vector<8x32xf32>
    %c0_478 = arith.constant 0 : index
    %c0_479 = arith.constant 0 : index
    %c288_480 = arith.constant 288 : index
    %432 = vector.load %arg9[%c0_478, %c0_479, %c288_480] : memref<1x8x1024xf32, #tpu.memory_space<vmem>>, vector<1x8x32xf32>
    %433 = vector.shape_cast %432 : vector<1x8x32xf32> to vector<8x32xf32>
    %434 = vector.shape_cast %431 : vector<8x32xf32> to vector<1x8x32xf32>
    tpu.vector_store %arg9[%c0_478, %c0_479, %c288_480], %434 {strides = array<i32>} : memref<1x8x1024xf32, #tpu.memory_space<vmem>>, vector<1x8x32xf32>,
    %c0_481 = arith.constant 0 : index
    %c360 = arith.constant 360 : index
    %435 = vector.load %arg13[%c0_481, %c360] : memref<8x1148xf32, #tpu.memory_space<vmem>>, vector<8x32xf32>
    %c0_482 = arith.constant 0 : index
    %c0_483 = arith.constant 0 : index
    %c320_484 = arith.constant 320 : index
    %436 = vector.load %arg9[%c0_482, %c0_483, %c320_484] : memref<1x8x1024xf32, #tpu.memory_space<vmem>>, vector<1x8x32xf32>
    %437 = vector.shape_cast %436 : vector<1x8x32xf32> to vector<8x32xf32>
    %438 = vector.shape_cast %435 : vector<8x32xf32> to vector<1x8x32xf32>
    tpu.vector_store %arg9[%c0_482, %c0_483, %c320_484], %438 {strides = array<i32>} : memref<1x8x1024xf32, #tpu.memory_space<vmem>>, vector<1x8x32xf32>,
    %c0_485 = arith.constant 0 : index
    %c396 = arith.constant 396 : index
    %439 = vector.load %arg13[%c0_485, %c396] : memref<8x1148xf32, #tpu.memory_space<vmem>>, vector<8x32xf32>
    %c0_486 = arith.constant 0 : index
    %c0_487 = arith.constant 0 : index
    %c352_488 = arith.constant 352 : index
    %440 = vector.load %arg9[%c0_486, %c0_487, %c352_488] : memref<1x8x1024xf32, #tpu.memory_space<vmem>>, vector<1x8x32xf32>
    %441 = vector.shape_cast %440 : vector<1x8x32xf32> to vector<8x32xf32>
    %442 = vector.shape_cast %439 : vector<8x32xf32> to vector<1x8x32xf32>
    tpu.vector_store %arg9[%c0_486, %c0_487, %c352_488], %442 {strides = array<i32>} : memref<1x8x1024xf32, #tpu.memory_space<vmem>>, vector<1x8x32xf32>,
    %c0_489 = arith.constant 0 : index
    %c432 = arith.constant 432 : index
    %443 = vector.load %arg13[%c0_489, %c432] : memref<8x1148xf32, #tpu.memory_space<vmem>>, vector<8x32xf32>
    %c0_490 = arith.constant 0 : index
    %c0_491 = arith.constant 0 : index
    %c384_492 = arith.constant 384 : index
    %444 = vector.load %arg9[%c0_490, %c0_491, %c384_492] : memref<1x8x1024xf32, #tpu.memory_space<vmem>>, vector<1x8x32xf32>
    %445 = vector.shape_cast %444 : vector<1x8x32xf32> to vector<8x32xf32>
    %446 = vector.shape_cast %443 : vector<8x32xf32> to vector<1x8x32xf32>
    tpu.vector_store %arg9[%c0_490, %c0_491, %c384_492], %446 {strides = array<i32>} : memref<1x8x1024xf32, #tpu.memory_space<vmem>>, vector<1x8x32xf32>,
    %c0_493 = arith.constant 0 : index
    %c468 = arith.constant 468 : index
    %447 = vector.load %arg13[%c0_493, %c468] : memref<8x1148xf32, #tpu.memory_space<vmem>>, vector<8x32xf32>
    %c0_494 = arith.constant 0 : index
    %c0_495 = arith.constant 0 : index
    %c416_496 = arith.constant 416 : index
    %448 = vector.load %arg9[%c0_494, %c0_495, %c416_496] : memref<1x8x1024xf32, #tpu.memory_space<vmem>>, vector<1x8x32xf32>
    %449 = vector.shape_cast %448 : vector<1x8x32xf32> to vector<8x32xf32>
    %450 = vector.shape_cast %447 : vector<8x32xf32> to vector<1x8x32xf32>
    tpu.vector_store %arg9[%c0_494, %c0_495, %c416_496], %450 {strides = array<i32>} : memref<1x8x1024xf32, #tpu.memory_space<vmem>>, vector<1x8x32xf32>,
    %c0_497 = arith.constant 0 : index
    %c504 = arith.constant 504 : index
    %451 = vector.load %arg13[%c0_497, %c504] : memref<8x1148xf32, #tpu.memory_space<vmem>>, vector<8x32xf32>
    %c0_498 = arith.constant 0 : index
    %c0_499 = arith.constant 0 : index
    %c448_500 = arith.constant 448 : index
    %452 = vector.load %arg9[%c0_498, %c0_499, %c448_500] : memref<1x8x1024xf32, #tpu.memory_space<vmem>>, vector<1x8x32xf32>
    %453 = vector.shape_cast %452 : vector<1x8x32xf32> to vector<8x32xf32>
    %454 = vector.shape_cast %451 : vector<8x32xf32> to vector<1x8x32xf32>
    tpu.vector_store %arg9[%c0_498, %c0_499, %c448_500], %454 {strides = array<i32>} : memref<1x8x1024xf32, #tpu.memory_space<vmem>>, vector<1x8x32xf32>,
    %c0_501 = arith.constant 0 : index
    %c540 = arith.constant 540 : index
    %455 = vector.load %arg13[%c0_501, %c540] : memref<8x1148xf32, #tpu.memory_space<vmem>>, vector<8x32xf32>
    %c0_502 = arith.constant 0 : index
    %c0_503 = arith.constant 0 : index
    %c480_504 = arith.constant 480 : index
    %456 = vector.load %arg9[%c0_502, %c0_503, %c480_504] : memref<1x8x1024xf32, #tpu.memory_space<vmem>>, vector<1x8x32xf32>
    %457 = vector.shape_cast %456 : vector<1x8x32xf32> to vector<8x32xf32>
    %458 = vector.shape_cast %455 : vector<8x32xf32> to vector<1x8x32xf32>
    tpu.vector_store %arg9[%c0_502, %c0_503, %c480_504], %458 {strides = array<i32>} : memref<1x8x1024xf32, #tpu.memory_space<vmem>>, vector<1x8x32xf32>,
    %c0_505 = arith.constant 0 : index
    %c576_506 = arith.constant 576 : index
    %459 = vector.load %arg13[%c0_505, %c576_506] : memref<8x1148xf32, #tpu.memory_space<vmem>>, vector<8x32xf32>
    %c0_507 = arith.constant 0 : index
    %c0_508 = arith.constant 0 : index
    %c512_509 = arith.constant 512 : index
    %460 = vector.load %arg9[%c0_507, %c0_508, %c512_509] : memref<1x8x1024xf32, #tpu.memory_space<vmem>>, vector<1x8x32xf32>
    %461 = vector.shape_cast %460 : vector<1x8x32xf32> to vector<8x32xf32>
    %462 = vector.shape_cast %459 : vector<8x32xf32> to vector<1x8x32xf32>
    tpu.vector_store %arg9[%c0_507, %c0_508, %c512_509], %462 {strides = array<i32>} : memref<1x8x1024xf32, #tpu.memory_space<vmem>>, vector<1x8x32xf32>,
    %c0_510 = arith.constant 0 : index
    %c612 = arith.constant 612 : index
    %463 = vector.load %arg13[%c0_510, %c612] : memref<8x1148xf32, #tpu.memory_space<vmem>>, vector<8x32xf32>
    %c0_511 = arith.constant 0 : index
    %c0_512 = arith.constant 0 : index
    %c544_513 = arith.constant 544 : index
    %464 = vector.load %arg9[%c0_511, %c0_512, %c544_513] : memref<1x8x1024xf32, #tpu.memory_space<vmem>>, vector<1x8x32xf32>
    %465 = vector.shape_cast %464 : vector<1x8x32xf32> to vector<8x32xf32>
    %466 = vector.shape_cast %463 : vector<8x32xf32> to vector<1x8x32xf32>
    tpu.vector_store %arg9[%c0_511, %c0_512, %c544_513], %466 {strides = array<i32>} : memref<1x8x1024xf32, #tpu.memory_space<vmem>>, vector<1x8x32xf32>,
    %c0_514 = arith.constant 0 : index
    %c648 = arith.constant 648 : index
    %467 = vector.load %arg13[%c0_514, %c648] : memref<8x1148xf32, #tpu.memory_space<vmem>>, vector<8x32xf32>
    %c0_515 = arith.constant 0 : index
    %c0_516 = arith.constant 0 : index
    %c576_517 = arith.constant 576 : index
    %468 = vector.load %arg9[%c0_515, %c0_516, %c576_517] : memref<1x8x1024xf32, #tpu.memory_space<vmem>>, vector<1x8x32xf32>
    %469 = vector.shape_cast %468 : vector<1x8x32xf32> to vector<8x32xf32>
    %470 = vector.shape_cast %467 : vector<8x32xf32> to vector<1x8x32xf32>
    tpu.vector_store %arg9[%c0_515, %c0_516, %c576_517], %470 {strides = array<i32>} : memref<1x8x1024xf32, #tpu.memory_space<vmem>>, vector<1x8x32xf32>,
    %c0_518 = arith.constant 0 : index
    %c684 = arith.constant 684 : index
    %471 = vector.load %arg13[%c0_518, %c684] : memref<8x1148xf32, #tpu.memory_space<vmem>>, vector<8x32xf32>
    %c0_519 = arith.constant 0 : index
    %c0_520 = arith.constant 0 : index
    %c608_521 = arith.constant 608 : index
    %472 = vector.load %arg9[%c0_519, %c0_520, %c608_521] : memref<1x8x1024xf32, #tpu.memory_space<vmem>>, vector<1x8x32xf32>
    %473 = vector.shape_cast %472 : vector<1x8x32xf32> to vector<8x32xf32>
    %474 = vector.shape_cast %471 : vector<8x32xf32> to vector<1x8x32xf32>
    tpu.vector_store %arg9[%c0_519, %c0_520, %c608_521], %474 {strides = array<i32>} : memref<1x8x1024xf32, #tpu.memory_space<vmem>>, vector<1x8x32xf32>,
    %c0_522 = arith.constant 0 : index
    %c720 = arith.constant 720 : index
    %475 = vector.load %arg13[%c0_522, %c720] : memref<8x1148xf32, #tpu.memory_space<vmem>>, vector<8x32xf32>
    %c0_523 = arith.constant 0 : index
    %c0_524 = arith.constant 0 : index
    %c640_525 = arith.constant 640 : index
    %476 = vector.load %arg9[%c0_523, %c0_524, %c640_525] : memref<1x8x1024xf32, #tpu.memory_space<vmem>>, vector<1x8x32xf32>
    %477 = vector.shape_cast %476 : vector<1x8x32xf32> to vector<8x32xf32>
    %478 = vector.shape_cast %475 : vector<8x32xf32> to vector<1x8x32xf32>
    tpu.vector_store %arg9[%c0_523, %c0_524, %c640_525], %478 {strides = array<i32>} : memref<1x8x1024xf32, #tpu.memory_space<vmem>>, vector<1x8x32xf32>,
    %c0_526 = arith.constant 0 : index
    %c756 = arith.constant 756 : index
    %479 = vector.load %arg13[%c0_526, %c756] : memref<8x1148xf32, #tpu.memory_space<vmem>>, vector<8x32xf32>
    %c0_527 = arith.constant 0 : index
    %c0_528 = arith.constant 0 : index
    %c672_529 = arith.constant 672 : index
    %480 = vector.load %arg9[%c0_527, %c0_528, %c672_529] : memref<1x8x1024xf32, #tpu.memory_space<vmem>>, vector<1x8x32xf32>
    %481 = vector.shape_cast %480 : vector<1x8x32xf32> to vector<8x32xf32>
    %482 = vector.shape_cast %479 : vector<8x32xf32> to vector<1x8x32xf32>
    tpu.vector_store %arg9[%c0_527, %c0_528, %c672_529], %482 {strides = array<i32>} : memref<1x8x1024xf32, #tpu.memory_space<vmem>>, vector<1x8x32xf32>,
    %c0_530 = arith.constant 0 : index
    %c792 = arith.constant 792 : index
    %483 = vector.load %arg13[%c0_530, %c792] : memref<8x1148xf32, #tpu.memory_space<vmem>>, vector<8x32xf32>
    %c0_531 = arith.constant 0 : index
    %c0_532 = arith.constant 0 : index
    %c704_533 = arith.constant 704 : index
    %484 = vector.load %arg9[%c0_531, %c0_532, %c704_533] : memref<1x8x1024xf32, #tpu.memory_space<vmem>>, vector<1x8x32xf32>
    %485 = vector.shape_cast %484 : vector<1x8x32xf32> to vector<8x32xf32>
    %486 = vector.shape_cast %483 : vector<8x32xf32> to vector<1x8x32xf32>
    tpu.vector_store %arg9[%c0_531, %c0_532, %c704_533], %486 {strides = array<i32>} : memref<1x8x1024xf32, #tpu.memory_space<vmem>>, vector<1x8x32xf32>,
    %c0_534 = arith.constant 0 : index
    %c828 = arith.constant 828 : index
    %487 = vector.load %arg13[%c0_534, %c828] : memref<8x1148xf32, #tpu.memory_space<vmem>>, vector<8x32xf32>
    %c0_535 = arith.constant 0 : index
    %c0_536 = arith.constant 0 : index
    %c736_537 = arith.constant 736 : index
    %488 = vector.load %arg9[%c0_535, %c0_536, %c736_537] : memref<1x8x1024xf32, #tpu.memory_space<vmem>>, vector<1x8x32xf32>
    %489 = vector.shape_cast %488 : vector<1x8x32xf32> to vector<8x32xf32>
    %490 = vector.shape_cast %487 : vector<8x32xf32> to vector<1x8x32xf32>
    tpu.vector_store %arg9[%c0_535, %c0_536, %c736_537], %490 {strides = array<i32>} : memref<1x8x1024xf32, #tpu.memory_space<vmem>>, vector<1x8x32xf32>,
    %c0_538 = arith.constant 0 : index
    %c864_539 = arith.constant 864 : index
    %491 = vector.load %arg13[%c0_538, %c864_539] : memref<8x1148xf32, #tpu.memory_space<vmem>>, vector<8x32xf32>
    %c0_540 = arith.constant 0 : index
    %c0_541 = arith.constant 0 : index
    %c768_542 = arith.constant 768 : index
    %492 = vector.load %arg9[%c0_540, %c0_541, %c768_542] : memref<1x8x1024xf32, #tpu.memory_space<vmem>>, vector<1x8x32xf32>
    %493 = vector.shape_cast %492 : vector<1x8x32xf32> to vector<8x32xf32>
    %494 = vector.shape_cast %491 : vector<8x32xf32> to vector<1x8x32xf32>
    tpu.vector_store %arg9[%c0_540, %c0_541, %c768_542], %494 {strides = array<i32>} : memref<1x8x1024xf32, #tpu.memory_space<vmem>>, vector<1x8x32xf32>,
    %c0_543 = arith.constant 0 : index
    %c900 = arith.constant 900 : index
    %495 = vector.load %arg13[%c0_543, %c900] : memref<8x1148xf32, #tpu.memory_space<vmem>>, vector<8x32xf32>
    %c0_544 = arith.constant 0 : index
    %c0_545 = arith.constant 0 : index
    %c800_546 = arith.constant 800 : index
    %496 = vector.load %arg9[%c0_544, %c0_545, %c800_546] : memref<1x8x1024xf32, #tpu.memory_space<vmem>>, vector<1x8x32xf32>
    %497 = vector.shape_cast %496 : vector<1x8x32xf32> to vector<8x32xf32>
    %498 = vector.shape_cast %495 : vector<8x32xf32> to vector<1x8x32xf32>
    tpu.vector_store %arg9[%c0_544, %c0_545, %c800_546], %498 {strides = array<i32>} : memref<1x8x1024xf32, #tpu.memory_space<vmem>>, vector<1x8x32xf32>,
    %c0_547 = arith.constant 0 : index
    %c936 = arith.constant 936 : index
    %499 = vector.load %arg13[%c0_547, %c936] : memref<8x1148xf32, #tpu.memory_space<vmem>>, vector<8x32xf32>
    %c0_548 = arith.constant 0 : index
    %c0_549 = arith.constant 0 : index
    %c832_550 = arith.constant 832 : index
    %500 = vector.load %arg9[%c0_548, %c0_549, %c832_550] : memref<1x8x1024xf32, #tpu.memory_space<vmem>>, vector<1x8x32xf32>
    %501 = vector.shape_cast %500 : vector<1x8x32xf32> to vector<8x32xf32>
    %502 = vector.shape_cast %499 : vector<8x32xf32> to vector<1x8x32xf32>
    tpu.vector_store %arg9[%c0_548, %c0_549, %c832_550], %502 {strides = array<i32>} : memref<1x8x1024xf32, #tpu.memory_space<vmem>>, vector<1x8x32xf32>,
    %c0_551 = arith.constant 0 : index
    %c972 = arith.constant 972 : index
    %503 = vector.load %arg13[%c0_551, %c972] : memref<8x1148xf32, #tpu.memory_space<vmem>>, vector<8x32xf32>
    %c0_552 = arith.constant 0 : index
    %c0_553 = arith.constant 0 : index
    %c864_554 = arith.constant 864 : index
    %504 = vector.load %arg9[%c0_552, %c0_553, %c864_554] : memref<1x8x1024xf32, #tpu.memory_space<vmem>>, vector<1x8x32xf32>
    %505 = vector.shape_cast %504 : vector<1x8x32xf32> to vector<8x32xf32>
    %506 = vector.shape_cast %503 : vector<8x32xf32> to vector<1x8x32xf32>
    tpu.vector_store %arg9[%c0_552, %c0_553, %c864_554], %506 {strides = array<i32>} : memref<1x8x1024xf32, #tpu.memory_space<vmem>>, vector<1x8x32xf32>,
    %c0_555 = arith.constant 0 : index
    %c1008 = arith.constant 1008 : index
    %507 = vector.load %arg13[%c0_555, %c1008] : memref<8x1148xf32, #tpu.memory_space<vmem>>, vector<8x32xf32>
    %c0_556 = arith.constant 0 : index
    %c0_557 = arith.constant 0 : index
    %c896_558 = arith.constant 896 : index
    %508 = vector.load %arg9[%c0_556, %c0_557, %c896_558] : memref<1x8x1024xf32, #tpu.memory_space<vmem>>, vector<1x8x32xf32>
    %509 = vector.shape_cast %508 : vector<1x8x32xf32> to vector<8x32xf32>
    %510 = vector.shape_cast %507 : vector<8x32xf32> to vector<1x8x32xf32>
    tpu.vector_store %arg9[%c0_556, %c0_557, %c896_558], %510 {strides = array<i32>} : memref<1x8x1024xf32, #tpu.memory_space<vmem>>, vector<1x8x32xf32>,
    %c0_559 = arith.constant 0 : index
    %c1044 = arith.constant 1044 : index
    %511 = vector.load %arg13[%c0_559, %c1044] : memref<8x1148xf32, #tpu.memory_space<vmem>>, vector<8x32xf32>
    %c0_560 = arith.constant 0 : index
    %c0_561 = arith.constant 0 : index
    %c928_562 = arith.constant 928 : index
    %512 = vector.load %arg9[%c0_560, %c0_561, %c928_562] : memref<1x8x1024xf32, #tpu.memory_space<vmem>>, vector<1x8x32xf32>
    %513 = vector.shape_cast %512 : vector<1x8x32xf32> to vector<8x32xf32>
    %514 = vector.shape_cast %511 : vector<8x32xf32> to vector<1x8x32xf32>
    tpu.vector_store %arg9[%c0_560, %c0_561, %c928_562], %514 {strides = array<i32>} : memref<1x8x1024xf32, #tpu.memory_space<vmem>>, vector<1x8x32xf32>,
    %c0_563 = arith.constant 0 : index
    %c1080 = arith.constant 1080 : index
    %515 = vector.load %arg13[%c0_563, %c1080] : memref<8x1148xf32, #tpu.memory_space<vmem>>, vector<8x32xf32>
    %c0_564 = arith.constant 0 : index
    %c0_565 = arith.constant 0 : index
    %c960_566 = arith.constant 960 : index
    %516 = vector.load %arg9[%c0_564, %c0_565, %c960_566] : memref<1x8x1024xf32, #tpu.memory_space<vmem>>, vector<1x8x32xf32>
    %517 = vector.shape_cast %516 : vector<1x8x32xf32> to vector<8x32xf32>
    %518 = vector.shape_cast %515 : vector<8x32xf32> to vector<1x8x32xf32>
    tpu.vector_store %arg9[%c0_564, %c0_565, %c960_566], %518 {strides = array<i32>} : memref<1x8x1024xf32, #tpu.memory_space<vmem>>, vector<1x8x32xf32>,
    %c0_567 = arith.constant 0 : index
    %c1116 = arith.constant 1116 : index
    %519 = vector.load %arg13[%c0_567, %c1116] : memref<8x1148xf32, #tpu.memory_space<vmem>>, vector<8x32xf32>
    %c0_568 = arith.constant 0 : index
    %c0_569 = arith.constant 0 : index
    %c992_570 = arith.constant 992 : index
    %520 = vector.load %arg9[%c0_568, %c0_569, %c992_570] : memref<1x8x1024xf32, #tpu.memory_space<vmem>>, vector<1x8x32xf32>
    %521 = vector.shape_cast %520 : vector<1x8x32xf32> to vector<8x32xf32>
    %522 = vector.shape_cast %519 : vector<8x32xf32> to vector<1x8x32xf32>
    tpu.vector_store %arg9[%c0_568, %c0_569, %c992_570], %522 {strides = array<i32>} : memref<1x8x1024xf32, #tpu.memory_space<vmem>>, vector<1x8x32xf32>,
    return
  }
  func.func @transform_0(%arg0: i32) -> (i32, i32, i32) {
    %c0_i32 = arith.constant 0 : i32
    %c0_i32_0 = arith.constant 0 : i32
    %c0_i32_1 = arith.constant 0 : i32
    return %arg0, %c0_i32, %c0_i32_0 : i32, i32, i32
  }
  func.func @transform_1(%arg0: i32) -> (i32, i32, i32) {
    %c0_i32 = arith.constant 0 : i32
    %c0_i32_0 = arith.constant 0 : i32
    %c0_i32_1 = arith.constant 0 : i32
    return %arg0, %c0_i32, %c0_i32_0 : i32, i32, i32
  }
  func.func @transform_2(%arg0: i32) -> (i32, i32, i32) {
    %c0_i32 = arith.constant 0 : i32
    %c0_i32_0 = arith.constant 0 : i32
    %c0_i32_1 = arith.constant 0 : i32
    %c0_i32_2 = arith.constant 0 : i32
    return %c0_i32, %c0_i32_0, %c0_i32_1 : i32, i32, i32
  }
  func.func @transform_3(%arg0: i32) -> (i32, i32, i32) {
    %c0_i32 = arith.constant 0 : i32
    %c0_i32_0 = arith.constant 0 : i32
    %c0_i32_1 = arith.constant 0 : i32
    %c0_i32_2 = arith.constant 0 : i32
    return %c0_i32, %c0_i32_0, %c0_i32_1 : i32, i32, i32
  }
  func.func @transform_4(%arg0: i32) -> (i32, i32, i32) {
    %c0_i32 = arith.constant 0 : i32
    %c0_i32_0 = arith.constant 0 : i32
    %c0_i32_1 = arith.constant 0 : i32
    %c0_i32_2 = arith.constant 0 : i32
    return %c0_i32, %c0_i32_0, %c0_i32_1 : i32, i32, i32
  }
  func.func @transform_5(%arg0: i32) -> (i32, i32, i32) {
    %c0_i32 = arith.constant 0 : i32
    %c0_i32_0 = arith.constant 0 : i32
    %c0_i32_1 = arith.constant 0 : i32
    %c0_i32_2 = arith.constant 0 : i32
    return %c0_i32, %c0_i32_0, %c0_i32_1 : i32, i32, i32
  }
  func.func @transform_6(%arg0: i32) -> (i32, i32) {
    %c0_i32 = arith.constant 0 : i32
    %c0_i32_0 = arith.constant 0 : i32
    %c0_i32_1 = arith.constant 0 : i32
    return %c0_i32, %c0_i32_0 : i32, i32
  }
  func.func @transform_7(%arg0: i32) -> (i32, i32) {
    %c0_i32 = arith.constant 0 : i32
    %c0_i32_0 = arith.constant 0 : i32
    %c0_i32_1 = arith.constant 0 : i32
    return %c0_i32, %c0_i32_0 : i32, i32
  }
  func.func @transform_8(%arg0: i32) -> (i32, i32, i32) {
    %c0_i32 = arith.constant 0 : i32
    %c0_i32_0 = arith.constant 0 : i32
    %c0_i32_1 = arith.constant 0 : i32
    return %arg0, %c0_i32, %c0_i32_0 : i32, i32, i32
  }
}

</mosaic_0001>

<bundles_post_ra>
// kernel: upblock_bev_forward.1
= control target key start
LH: loop header
LB: loop body
LE: loop exit
PB: predicated region body
PF: predicated region fallthrough
CT: control target
= control target key end

     0   :  { %s10721_s27 = smov 0   ;;  %s13592_s0 = inlined_call_operand.vmem [shape: bf16[2,4,1024], index: 0, kind: input, shape index: {}]   ;;  %s13593_s1 = inlined_call_operand.vmem [shape: bf16[2,16,1024], index: 1, kind: input, shape index: {}]   ;;  %s13594_s2 = inlined_call_operand.vmem [shape: bf16[9,8,20], index: 2, kind: input, shape index: {}]   ;;  %s13595_s3 = inlined_call_operand.vmem [shape: bf16[9,8,8], index: 3, kind: input, shape index: {}]   ;;  %s13596_s4 = inlined_call_operand.vmem [shape: bf16[4,8,8], index: 4, kind: input, shape index: {}]   ;;  %s13597_s5 = inlined_call_operand.vmem [shape: bf16[3,8,8], index: 5, kind: input, shape index: {}]   ;;  %s13598_s6 = inlined_call_operand.vmem [shape: f32[1,1148], index: 6, kind: input, shape index: {}]   ;;  %s13599_s7 = inlined_call_operand.vmem [shape: f32[8,12], index: 7, kind: input, shape index: {}]   ;;  %s13600_s8 = inlined_call_operand.vmem [shape: f32[2,8,1024], index: 8, kind: output, shape index: {}]  }
   0x1 LB: > { %s9761_s28 = sadd.s32 4294967295, %s10617_s27   ;;  %p9765_p0 = scmp.ge.s32.totalorder %s10617_s27, 1  ;;  %s10617_s27 = sphi %s10721_s27, %s18_s27  }
   0x2   : > { %p272_p1 = scmp.lt.s32.totalorder %s10617_s27, 3 }
   0x4   : > { %p273_p2 = pnand %p9765_p0, %p272_p1 }
   0x5   : > { %p311_p3 = scmp.lt.s32.totalorder (!%p273_p2), %s9761_s28, 1  ;;  %s13608_s15 = smov (!%p273_p2), 12  }
   0x6   : > { %276 = sbr.rel (%p273_p2) target bundleno = 2288 (0x8f0), region = 52  ;;  %s13605_s16 = smov (!%p273_p2), 8  }
   0x7   : > { %s13604_s17 = smov (!%p273_p2), 28   ;;  %s13602_s18 = smov (!%p273_p2), 4  }
   0x8   : > { %s13606_s19 = smov (!%p273_p2), 16   ;;  %s13601_s20 = smov (!%p273_p2), 20  }
   0x9   : > { %s13603_s21 = smov (!%p273_p2), 24   ;;  %s13610_s22 = smov (!%p273_p2), 40  }
   0xa   : > { %s13611_s23 = smov (!%p273_p2), 32   ;;  %s13621_s24 = smov (!%p273_p2), 36  }
   0xb   : > { %s13761_s28 = smov (!%p311_p3, %s9761_s28), 1  ;;  %v10619_v0 = vmov 0   ;;  %vm13617_vm0 = vcmask 1041408   ;;  %vm357_vm1 = vcmask 1045508   ;;  %vm350_vm3 = vcmask 254976   ;;  %s10630_s25 = smov 56  }
   0xc   : > { %342 = vst [vmem:[#allocation2 + $0x58] sm:$0x33] %v10619_v0  ;;  %329 = vst [vmem:[#allocation2] sm:$0xff] %v10619_v0  ;;  %1839 = vmatprep.mubr.bf16.mxu0 %v10619_v0  ;;  %1880 = vmatprep.mubr.bf16.mxu1 %v10619_v0  ;;  %s10187_s29 = sshll.u32 %s13761_s28, 4  ;;  %s10188_s30 = sshll.u32 %s13761_s28, 6  ;;  %vm367_vm4 = vcmask 257026  }
   0xd   : > { %330 = vst [vmem:[#allocation2 + $0x8] sm:$0xff] %v10619_v0  ;;  %331 = vst [vmem:[#allocation2 + $0x10] sm:$0xff] %v10619_v0  ;;  %10492 = vset.pattern.permute.xlu0 %v10619_v0  ;;  %s10756_s11 = scalar_lea.vmem %s13592_s0, %s10187_s29  ;;  %s10763_s14 = scalar_lea.vmem %s13593_s1, %s10188_s30  ;;  %vm369_vm5 = vcmask 257024   ;;  %vm656_vm6 = vcmask 1044448   ;;  %vm4719_vm7 = vcmask 572420   ;;  %vm384_vm9 = vcmask 550176  }
   0xe   : > { %332 = vst [vmem:[#allocation2 + $0x18] sm:$0xff] %v10619_v0  ;;  %333 = vst [vmem:[#allocation2 + $0x20] sm:$0xff] %v10619_v0  ;;  %v9774_v1 = vld.sshfl [vmem:[%s10756_s11] sm:$0x3 pattern:$0x76325410] }
   0xf   : > { %336 = vst [vmem:[#allocation2 + $0x2c] sm:$0xff] %v10619_v0  ;;  %337 = vst [vmem:[#allocation2 + $0x34] sm:$0xff] %v10619_v0  ;;  %v465_v2 = vld [vmem:[%s10763_s14] sm:$0xf]  ;;  %455 = vrot.lane.b32.xlu1 %v9774_v1, %s13608_s15  ;;  %v10771_v8 = vld [vmem:[%s10763_s14 + $0x24] sm:$0xf] }
  0x10   : > { %338 = vst [vmem:[#allocation2 + $0x3c] sm:$0xff] %v10619_v0  ;;  %339 = vst [vmem:[#allocation2 + $0x44] sm:$0xff] %v10619_v0  ;;  %v469_v3 = vrot.slane %v465_v2, 6  ;;  %v424_v4 = vld [vmem:[%s10763_s14 + $0x20] sm:$0xf]  ;;  %v634_v10 = vrot.slane %v10771_v8, 6 }
  0x11   : > { %340 = vst [vmem:[#allocation2 + $0x4c] sm:$0xff] %v10619_v0  ;;  %343 = vst [vmem:[#allocation2 + $0x60] sm:$0x33] %v10619_v0  ;;  %v466_v5 = vld [vmem:[%s10763_s14 + $0x20] sm:$0xf]  ;;  %v429_v6 = vrot.slane %v424_v4, 6 }
  0x12   : > { %344 = vst [vmem:[#allocation2 + $0x68] sm:$0x33] %v10619_v0  ;;  %345 = vst [vmem:[#allocation2 + $0x70] sm:$0x33] %v10619_v0  ;;  %v471_v7 = vrot.slane %v466_v5, 6  ;;  %474 = vrot.lane.b32.xlu0 %v469_v3, %s13608_s15  ;;  %v636_v15 = vrot.slane %v634_v10, 4 }
  0x13   : > { %346 = vst [vmem:[#allocation2 + $0x78] sm:$0x33] %v10619_v0  ;;  %4718 = vst [vmem:[#allocation3] sm:$0xf] %v10619_v0  ;;  %v387_v9 = vld [vmem:[%s10763_s14 + $0x20] sm:$0xf] }
  0x14   : > { %7354 = vst [vmem:[#allocation4] sm:$0xf] %v10619_v0  ;;  %v392_v11 = vrot.slane %v387_v9, 6  ;;  %v431_v12 = vrot.slane %v429_v6, 4  ;;  %v473_v13 = vrot.slane %v471_v7, 4  ;;  %v470_v16 = vrot.slane %v469_v3, 4  ;;  %vm10785_vm2 = vmor %vm13617_vm0, %vm357_vm1 }
  0x15   : > { %v10777_v14 = vld [vmem:[%s10763_s14 + $0x24] sm:$0xf]  ;;  %v386_v22 = vld [vmem:[%s10763_s14] sm:$0xf]  ;;  %v10814_v34 = vld [vmem:[%s10763_s14 + $0x28] sm:$0xf] }
  0x16   : > { %436 = vrot.lane.b32.xlu1 %v431_v12, %s13605_s16  ;;  %478 = vrot.lane.b32.xlu0 %v473_v13, %s13608_s15  ;;  %v394_v17 = vrot.slane %v392_v11, 4  ;;  %v518_v18 = vrot.slane %v10777_v14, 6  ;;  %v472_v20 = vsel %vm10785_vm2, %v470_v16, %v471_v7  ;;  %v10795_v23 = vld [vmem:[%s10763_s14 + $0x24] sm:$0xf]  ;;  %v390_v24 = vrot.slane %v386_v22, 6  ;;  %vm4720_vm8 = vmor %vm4719_vm7, %vm656_vm6  ;;  %s13613_s26 = smov 44  }
  0x17   : > { %v555_v25 = vrot.slane %v10795_v23, 6  ;;  %v423_v28 = vld [vmem:[%s10763_s14] sm:$0xf]  ;;  %v10806_v29 = vld [vmem:[%s10763_s14 + $0x24] sm:$0xf]  ;;  %v760_v38 = vrot.slane %v10814_v34, 6 }
  0x18   : > { %v520_v21 = vrot.slane %v518_v18, 4  ;;  %v391_v26 = vrot.slane %v390_v24, 4  ;;  %v427_v31 = vrot.slane %v423_v28, 6  ;;  %v592_v32 = vrot.slane %v10806_v29, 6  ;;  %v512_v35 = vld [vmem:[%s10763_s14 + $0x4] sm:$0xf] }
  0x19   : > { %v557_v27 = vrot.slane %v555_v25, 4  ;;  %v353_v36 = vld [vmem:[%s10763_s14 + $0x20] sm:$0xf]  ;;  %v516_v39 = vrot.slane %v512_v35, 6  ;;  %v762_v46 = vrot.slane %v760_v38, 4  ;;  %4721 = vst.msk [vmem:[#allocation3 + $0x24] sm:$0xff] %vm4720_vm8, %v10619_v0 }
  0x1a   : > { %641 = vrot.lane.b32.xlu1 %v636_v15, %s13604_s17  ;;  %399 = vrot.lane.b32.xlu0 %v394_v17, %s13602_s18  ;;  %v393_v30 = vsel %vm10785_vm2, %v391_v26, %v392_v11  ;;  %v428_v33 = vrot.slane %v427_v31, 4  ;;  %v594_v37 = vrot.slane %v592_v32, 4  ;;  %v361_v40 = vrot.slane %v353_v36, 6  ;;  %v352_v43 = vld [vmem:[%s10763_s14] sm:$0xf]  ;;  %7355 = vst.msk [vmem:[#allocation4 + $0x24] sm:$0xff] %vm4720_vm8, %v10619_v0 }
  0x1b   : > { %v9775_v44 = vld.sshfl [vmem:[%s10756_s11 + $0x2] sm:$0x3 pattern:$0x76325410]  ;;  %v359_v45 = vrot.slane %v352_v43, 6  ;;  %v517_v47 = vrot.slane %v516_v39, 4 }
  0x1c   : > { %v430_v41 = vsel %vm10785_vm2, %v428_v33, %v429_v6  ;;  %v363_v42 = vrot.slane %v361_v40, 4  ;;  %v349_v48 = vld [vmem:[%s10756_s11] sm:$0x3]  ;;  %v628_v52 = vld [vmem:[%s10763_s14 + $0x4] sm:$0xf]  ;;  %s13612_s29 = smov 48  }
  0x1d   : > { %v360_v49 = vrot.slane %v359_v45, 4  ;;  %368 = vst.msk [vmem:[#allocation2 + $0x4] sm:$0xc] %vm367_vm4, %v359_v45  ;;  %v519_v51 = vsel %vm10785_vm2, %v517_v47, %v518_v18  ;;  %v10840_v53 = vld [vmem:[%s10763_s14 + $0x28] sm:$0xf]  ;;  %v632_v54 = vrot.slane %v628_v52, 6 }
  0x1e   : > { %476 = vrot.lane.b32.xlu1 %v472_v20, %s13608_s15  ;;  %525 = vrot.lane.b32.xlu0 %v520_v21, %s13606_s19  ;;  %371 = vst.msk [vmem:[#allocation2 + $0x5c] sm:$0x3] %vm350_vm3, %v363_v42  ;;  %351 = vst.msk [vmem:[#allocation2 + $0x4] sm:$0x3] %vm350_vm3, %v349_v48  ;;  %v681_v55 = vrot.slane %v10840_v53, 6  ;;  %s13609_s9 = smov 52  }
  0x1f   : > { %v362_v50 = vsel %vm10785_vm2, %v360_v49, %v361_v40  ;;  %v633_v56 = vrot.slane %v632_v54, 4  ;;  %v549_v58 = vld [vmem:[%s10763_s14 + $0x4] sm:$0xf]  ;;  %v10851_v59 = vld [vmem:[%s10763_s14 + $0x28] sm:$0xf]  ;;  %s13623_s10 = smov 68  }
  0x20   : > { %370 = vst.msk [vmem:[#allocation2 + $0x30] sm:$0xf] %vm369_vm5, %v362_v50  ;;  %v683_v57 = vrot.slane %v681_v55, 4  ;;  %v553_v61 = vrot.slane %v549_v58, 6  ;;  %v718_v62 = vrot.slane %v10851_v59, 6  ;;  %s13625_s12 = smov 60  }
  0x21   : > { %v635_v60 = vsel %vm10785_vm2, %v633_v56, %v634_v10  ;;  %v586_v2 = vld [vmem:[%s10763_s14 + $0x4] sm:$0xf]  ;;  %v754_v4 = vld [vmem:[%s10763_s14 + $0x8] sm:$0xf]  ;;  %v10876_v10 = vld [vmem:[%s10763_s14 + $0x2c] sm:$0xf] }
  0x22   : > { %395 = vrot.lane.b32.xlu1 %v390_v24, %s13602_s18  ;;  %381 = vrot.lane.b32.xlu0 %v9774_v1, %s13602_s18  ;;  %v554_v63 = vrot.slane %v553_v61, 4  ;;  %v590_v5 = vrot.slane %v586_v2, 6  ;;  %v758_v6 = vrot.slane %v754_v4, 6  ;;  %v802_v12 = vld [vmem:[%s10763_s14 + $0x28] sm:$0xf]  ;;  %v923_v13 = vrot.slane %v10876_v10, 6 }
  0x23   : > { %v9781_v8 = vld.sshfl [vmem:[%s10756_s11 + $0x4] sm:$0x3 pattern:$0x76325410]  ;;  %v807_v15 = vrot.slane %v802_v12, 6  ;;  %s10636_s13 = smov 64  }
  0x24   : > { %v556_v3 = vsel %vm10785_vm2, %v554_v63, %v555_v25  ;;  %v591_v7 = vrot.slane %v590_v5, 4  ;;  %v759_v9 = vrot.slane %v758_v6, 4  ;;  %v925_v16 = vrot.slane %v923_v13, 4  ;;  %v675_v18 = vld [vmem:[%s10763_s14 + $0x8] sm:$0xf]  ;;  %s10643_s15 = smov 104  }
  0x25   : > { %v809_v17 = vrot.slane %v807_v15, 4  ;;  %v10896_v20 = vld [vmem:[%s10763_s14 + $0x2c] sm:$0xf]  ;;  %v679_v21 = vrot.slane %v675_v18, 6  ;;  %v712_v25 = vld [vmem:[%s10763_s14 + $0x8] sm:$0xf] }
  0x26   : > { %562 = vrot.lane.b32.xlu1 %v557_v27, %s13601_s20  ;;  %397 = vrot.lane.b32.xlu0 %v393_v30, %s13602_s18  ;;  %v593_v11 = vsel %vm10785_vm2, %v591_v7, %v592_v32  ;;  %v761_v14 = vsel %vm10785_vm2, %v759_v9, %v760_v38  ;;  %v844_v22 = vrot.slane %v10896_v20, 6  ;;  %v10908_v26 = vld [vmem:[%s10763_s14 + $0x2c] sm:$0xf]  ;;  %v716_v27 = vrot.slane %v712_v25, 6  ;;  %v10918_v30 = vld [vmem:[%s10763_s14 + $0x30] sm:$0xf] }
  0x27   : > { %v680_v23 = vrot.slane %v679_v21, 4  ;;  %v881_v28 = vrot.slane %v10908_v26, 6  ;;  %v1049_v33 = vrot.slane %v10918_v30, 6  ;;  %v10936_v40 = vld [vmem:[%s10763_s14 + $0x2c] sm:$0xf]  ;;  %vm461_vm10 = vcmask 1042272  }
  0x28   : > { %v846_v24 = vrot.slane %v844_v22, 4  ;;  %v717_v29 = vrot.slane %v716_v27, 4  ;;  %v970_v42 = vrot.slane %v10936_v40, 6  ;;  %v10951_v47 = vld [vmem:[%s10763_s14 + $0x30] sm:$0xf]  ;;  %vm462_vm11 = vcmask 95236  }
  0x29   : > { %v682_v0 = vsel %vm10785_vm2, %v680_v23, %v681_v55  ;;  %v883_v32 = vrot.slane %v881_v28, 4  ;;  %v1051_v36 = vrot.slane %v1049_v33, 4  ;;  %v1007_v50 = vrot.slane %v10951_v47, 6  ;;  %v875_v53 = vld [vmem:[%s10763_s14 + $0xc] sm:$0xf]  ;;  %vm11008_vm13 = vmor %vm462_vm11, %vm461_vm10  ;;  %s13627_s18 = smov 72  }
  0x2a   : > { %432 = vrot.lane.b32.xlu1 %v427_v31, %s13605_s16  ;;  %418 = vrot.lane.b32.xlu0 %v9774_v1, %s13605_s16  ;;  %v720_v1 = vrot.slane %v718_v62, 4  ;;  %v801_v31 = vld [vmem:[%s10763_s14 + $0x8] sm:$0xf]  ;;  %v719_v35 = vsel %vm10785_vm2, %v717_v29, %v718_v62  ;;  %v972_v45 = vrot.slane %v970_v42, 4  ;;  %v1043_v55 = vld [vmem:[%s10763_s14 + $0x10] sm:$0xf] }
  0x2b   : > { %v805_v34 = vrot.slane %v801_v31, 6  ;;  %v1009_v52 = vrot.slane %v1007_v50, 4  ;;  %v879_v56 = vrot.slane %v875_v53, 6  ;;  %v10980_v62 = vld [vmem:[%s10763_s14 + $0x34] sm:$0xf]  ;;  %vm421_vm12 = vcmask 845376  }
  0x2c   : > { %v10973_v59 = vld.sshfl [vmem:[%s10756_s11 + $0x8] sm:$0x3 pattern:$0x76325410]  ;;  %v11004_v12 = vld [vmem:[%s10763_s14 + $0x30] sm:$0xf] }
  0x2d   : > { %v880_v58 = vrot.slane %v879_v56, 4  ;;  %vm458_vm14 = vcmask 97280   ;;  %vm510_vm15 = vcmask 386176   ;;  %vm404_vm1 = vcmask 552226   ;;  %v11030_v25 = vld [vmem:[%s10763_s14 + $0x34] sm:$0xf] }
  0x2e   : > { %599 = vrot.lane.b32.xlu1 %v594_v37, %s13603_s21  ;;  %434 = vrot.lane.b32.xlu0 %v430_v41, %s13605_s16  ;;  %v806_v37 = vrot.slane %v805_v34, 4  ;;  %vm547_vm3 = vcmask 681376   ;;  %v1170_v29 = vrot.slane %v11030_v25, 6  ;;  %vm406_vm4 = vcmask 552224   ;;  %v11041_v30 = vld [vmem:[%s10763_s14 + $0x3c] sm:$0xf] }
  0x2f   : > { %v882_v63 = vsel %vm10785_vm2, %v880_v58, %v881_v28  ;;  %vm489_vm5 = vcmask 1044322   ;;  %vm490_vm7 = vcmask 97286   ;;  %vm441_vm8 = vcmask 847426   ;;  %s10641_s16 = smov 112   ;;  %s13741_s28 = smov 60  }
  0x30   : > { %v808_v38 = vsel %vm10785_vm2, %v806_v37, %v807_v15  ;;  %v1172_v37 = vrot.slane %v1170_v29, 4  ;;  %vm11056_vm10 = vmor %vm490_vm7, %vm489_vm5  ;;  %vm624_vm11 = vcmask 1042400   ;;  %vm494_vm5 = vcmask 97284   ;;  %v1127_v15 = vld [vmem:[%s10763_s14 + $0x10] sm:$0xf] }
  0x31   : > { %vm584_vm7 = vcmask 976576   ;;  %v11196_v25 = vld.sshfl [vmem:[%s10756_s11 + $0xc] sm:$0x3 pattern:$0x76325410]  ;;  %vm1231_vm0 = vcmask 162822  }
  0x32   : > { %507 = vrot.lane.b32.xlu1 %v9775_v44, %s13606_s19  ;;  %767 = vrot.lane.b32.xlu0 %v762_v46, %s13610_s22  ;;  %v838_v46 = vld [vmem:[%s10763_s14 + $0xc] sm:$0xf] }
  0x33   : > { %v842_v49 = vrot.slane %v838_v46, 6 }
  0x36   : > { %523 = vrot.lane.b32.xlu1 %v519_v51, %s13606_s19  ;;  %521 = vrot.lane.b32.xlu0 %v516_v39, %s13606_s19  ;;  %v917_v39 = vld [vmem:[%s10763_s14 + $0xc] sm:$0xf]  ;;  %v843_v51 = vrot.slane %v842_v49, 4  ;;  %s10642_s19 = smov 100  }
  0x37   : > { %v921_v41 = vrot.slane %v917_v39, 6 }
  0x39   : > { %v922_v43 = vrot.slane %v921_v41, 4 }
  0x3a   : > { %637 = vrot.lane.b32.xlu1 %v632_v54, %s13604_s17  ;;  %618 = vrot.lane.b32.xlu0 %v9775_v44, %s13604_s17  ;;  %v845_v54 = vsel %vm10785_vm2, %v843_v51, %v844_v22 }
  0x3b   : > { %v924_v48 = vsel %vm10785_vm2, %v922_v43, %v923_v13  ;;  %v11065_v43 = vld [vmem:[%s10763_s14 + $0x38] sm:$0xf] }
  0x3e   : > { %688 = vrot.lane.b32.xlu1 %v683_v57, %s13611_s23  ;;  %639 = vrot.lane.b32.xlu0 %v635_v60, %s13604_s17  ;;  %v1047_v57 = vrot.slane %v1043_v55, 6  ;;  %s13624_s17 = smov 80  }
  0x42   : > { %558 = vrot.lane.b32.xlu1 %v553_v61, %s13601_s20  ;;  %544 = vrot.lane.b32.xlu0 %v9775_v44, %s13601_s20  ;;  %v1048_v61 = vrot.slane %v1047_v57, 4 }
  0x44   : > { %v1050_v4 = vsel %vm10785_vm2, %v1048_v61, %v1049_v33  ;;  %v11044_v33 = vld [vmem:[%s10763_s14 + $0x38] sm:$0xf] }
  0x45   : > { %v1370_v39 = vrot.slane %v11044_v33, 6 }
  0x46   : > { %725 = vrot.lane.b32.xlu1 %v720_v1, %s13621_s24  ;;  %560 = vrot.lane.b32.xlu0 %v556_v3, %s13601_s20  ;;  %v10985_v1 = vld [vmem:[%s10763_s14 + $0x30] sm:$0xf]  ;;  %v1212_v3 = vrot.slane %v10980_v62, 6  ;;  %s13615_s20 = smov 84   ;;  %v1164_v62 = vld [vmem:[%s10763_s14 + $0x14] sm:$0xf] }
  0x47   : > { %v1372_v51 = vrot.slane %v1370_v39, 4 }
  0x4a   : > { %595 = vrot.lane.b32.xlu1 %v590_v5, %s13603_s21  ;;  %581 = vrot.lane.b32.xlu0 %v9775_v44, %s13603_s21  ;;  %v10942_v44 = vld.sshfl [vmem:[%s10756_s11 + $0x6] sm:$0x3 pattern:$0x76325410]  ;;  %v1096_v5 = vrot.slane %v10985_v1, 6 }
  0x4b   : > { %v11121_v1 = vld.sshfl [vmem:[%s10756_s11 + $0xa] sm:$0x3 pattern:$0x76325410] }
  0x4c   : > { %v1098_v10 = vrot.slane %v1096_v5, 4 }
  0x4e   : > { %744 = vrot.lane.b32.xlu1 %v9781_v8, %s13610_s22  ;;  %597 = vrot.lane.b32.xlu0 %v593_v11, %s13603_s21  ;;  %v964_v11 = vld [vmem:[%s10763_s14 + $0xc] sm:$0xf]  ;;  %s13622_s21 = smov 76  }
  0x52   : > { %765 = vrot.lane.b32.xlu1 %v761_v14, %s13610_s22  ;;  %763 = vrot.lane.b32.xlu0 %v758_v6, %s13610_s22  ;;  %s10645_s22 = smov 108  }
  0x56   : > { %930 = vrot.lane.b32.xlu1 %v925_v16, %s10630_s25  ;;  %814 = vrot.lane.b32.xlu0 %v809_v17, %s13613_s26  ;;  %v968_v16 = vrot.slane %v964_v11, 6  ;;  %v1133_v17 = vrot.slane %v11004_v12, 6 }
  0x58   : > { %v1135_v23 = vrot.slane %v1133_v17, 4 }
  0x5a   : > { %684 = vrot.lane.b32.xlu1 %v679_v21, %s13611_s23  ;;  %670 = vrot.lane.b32.xlu0 %v9781_v8, %s13611_s23  ;;  %v969_v21 = vrot.slane %v968_v16, 4 }
  0x5e   : > { %851 = vrot.lane.b32.xlu1 %v846_v24, %s13612_s29  ;;  %686 = vrot.lane.b32.xlu0 %v682_v0, %s13611_s23  ;;  %v1001_v24 = vld [vmem:[%s10763_s14 + $0x10] sm:$0xf]  ;;  %v971_v0 = vsel %vm10785_vm2, %v969_v21, %v970_v42  ;;  %v1131_v21 = vrot.slane %v1127_v15, 6  ;;  %s10646_s23 = smov 92  }
  0x5f   : > { %v1005_v28 = vrot.slane %v1001_v24, 6 }
  0x62   : > { %721 = vrot.lane.b32.xlu1 %v716_v27, %s13621_s24  ;;  %707 = vrot.lane.b32.xlu0 %v9781_v8, %s13621_s24 }
  0x66   : > { %888 = vrot.lane.b32.xlu1 %v883_v32, %s13609_s9  ;;  %723 = vrot.lane.b32.xlu0 %v719_v35, %s13621_s24  ;;  %v1006_v32 = vrot.slane %v1005_v28, 4 }
  0x68   : > { %v1008_v42 = vsel %vm10785_vm2, %v1006_v32, %v1007_v50 }
  0x6a   : > { %796 = vrot.lane.b32.xlu1 %v9781_v8, %s13613_s26  ;;  %1056 = vrot.lane.b32.xlu0 %v1051_v36, %s13623_s10  ;;  %v1214_v8 = vrot.slane %v1212_v3, 4 }
  0x6e   : > { %812 = vrot.lane.b32.xlu1 %v808_v38, %s13613_s26  ;;  %810 = vrot.lane.b32.xlu0 %v805_v34, %s13613_s26  ;;  %v1486_v38 = vrot.slane %v11041_v30, 6  ;;  %s10649_s26 = smov 120  }
  0x70   : > { %v1488_v50 = vrot.slane %v1486_v38, 4 }
  0x72   : > { %926 = vrot.lane.b32.xlu1 %v921_v41, %s10630_s25  ;;  %907 = vrot.lane.b32.xlu0 %v10942_v44, %s10630_s25 }
  0x76   : > { %977 = vrot.lane.b32.xlu1 %v972_v45, %s13625_s12  ;;  %928 = vrot.lane.b32.xlu0 %v924_v48, %s10630_s25 }
  0x7a   : > { %847 = vrot.lane.b32.xlu1 %v842_v49, %s13612_s29  ;;  %833 = vrot.lane.b32.xlu0 %v10942_v44, %s13612_s29 }
  0x7e   : > { %1014 = vrot.lane.b32.xlu1 %v1009_v52, %s10636_s13  ;;  %849 = vrot.lane.b32.xlu0 %v845_v54, %s13612_s29  ;;  %v1407_v52 = vrot.slane %v11065_v43, 6  ;;  %s10647_s29 = smov 96  }
  0x81   : > { %v10975_v60 = vpop.permute.xlu1 %455 }
  0x82   : > { %884 = vrot.lane.b32.xlu1 %v879_v56, %s13609_s9  ;;  %870 = vrot.lane.b32.xlu0 %v10942_v44, %s13609_s9  ;;  %v457_v36 = vrot.slane %v10975_v60, 4 }
  0x84   : > { %v10987_v2 = vpop.permute.xlu0 %474  ;;  %v459_v47 = vsel %vm458_vm14, %v457_v36, %v10975_v60  ;;  %v1409_v60 = vrot.slane %v1407_v52, 4  ;;  %v1438_v36 = vld [vmem:[%s10763_s14 + $0x18] sm:$0xf] }
  0x85   : > { %v480_v34 = vrot.slane %v10987_v2, 4 }
  0x86   : > { %1033 = vrot.lane.b32.xlu1 %v10973_v59, %s13623_s10  ;;  %886 = vrot.lane.b32.xlu0 %v882_v63, %s13609_s9  ;;  %s10644_s9 = smov 88  }
  0x87   : > { %v483_v45 = vsel %vm458_vm14, %v480_v34, %v10987_v2 }
  0x88   : > { %v437_v6 = vpop.permute.xlu1 %436  ;;  %v479_v7 = vpop.permute.xlu0 %478 }
  0x89   : > { %v482_v9 = vrot.slane %v479_v7, 4 }
  0x8a   : > { %1054 = vrot.lane.b32.xlu1 %v1050_v4, %s13623_s10  ;;  %1052 = vrot.lane.b32.xlu0 %v1047_v57, %s13623_s10  ;;  %s10656_s10 = smov 127  }
  0x8b   : > { %v485_v18 = vsel %vm458_vm14, %v482_v9, %v479_v7  ;;  %v11115_v7 = vld [vmem:[%s10763_s14 + $0x34] sm:$0xf] }
  0x8c   : > { %v11006_v13 = vpop.permute.xlu1 %641  ;;  %v400_v14 = vpop.permute.xlu0 %399  ;;  %v1259_v11 = vrot.slane %v11115_v7, 6 }
  0x8d   : > { %408 = vst.msk [vmem:[#allocation2 + $0x5c] sm:$0x3] %vm384_vm9, %v400_v14  ;;  %v645_v46 = vrot.slane %v11006_v13, 4  ;;  %v11124_v14 = vld [vmem:[%s10763_s14 + $0x38] sm:$0xf] }
  0x8e   : > { %1219 = vrot.lane.b32.xlu1 %v1214_v8, %s13615_s20  ;;  %445 = vst.msk [vmem:[#allocation2 + $0x5c] sm:$0x3] %vm421_vm12, %v437_v6  ;;  %1103 = vrot.lane.b32.xlu0 %v1098_v10, %s13627_s18  ;;  %v1206_v6 = vld [vmem:[%s10763_s14 + $0x14] sm:$0xf] }
  0x8f   : > { %497 = vst.msk [vmem:[#allocation2 + $0x5c] sm:$0x33] %vm11008_vm13, %v485_v18  ;;  %v1210_v10 = vrot.slane %v1206_v6, 6  ;;  %v1261_v18 = vrot.slane %v1259_v11, 4 }
  0x90   : > { %v11018_v20 = vpop.permute.xlu1 %476  ;;  %v526_v22 = vpop.permute.xlu0 %525 }
  0x91   : > { %534 = vst.msk [vmem:[#allocation2 + $0x60] sm:$0x3] %vm510_vm15, %v526_v22  ;;  %v481_v49 = vrot.slane %v11018_v20, 4 }
  0x92   : > { %973 = vrot.lane.b32.xlu1 %v968_v16, %s13625_s12  ;;  %959 = vrot.lane.b32.xlu0 %v10942_v44, %s13625_s12  ;;  %v1090_v44 = vld [vmem:[%s10763_s14 + $0x10] sm:$0xf] }
  0x93   : > { %v1094_v53 = vrot.slane %v1090_v44, 6  ;;  %v484_v58 = vsel %vm458_vm14, %v481_v49, %v11018_v20  ;;  %vm530_vm14 = vcmask 388226   ;;  %v1444_v20 = vrot.slane %v11124_v14, 6 }
  0x94   : > { %v396_v26 = vpop.permute.xlu1 %395  ;;  %v382_v27 = vpop.permute.xlu0 %381 }
  0x95   : > { %405 = vst.msk [vmem:[#allocation2 + $0x4] sm:$0xc] %vm404_vm1, %v396_v26  ;;  %vm625_vm1 = vcmask 226308   ;;  %v1095_v61 = vrot.slane %v1094_v53, 4  ;;  %v1446_v26 = vrot.slane %v1444_v20, 4 }
  0x96   : > { %1140 = vrot.lane.b32.xlu1 %v1135_v23, %s13622_s21  ;;  %385 = vst.msk [vmem:[#allocation2 + $0x4] sm:$0x3] %vm384_vm9, %v382_v27  ;;  %975 = vrot.lane.b32.xlu0 %v971_v0, %s13625_s12  ;;  %vm621_vm9 = vcmask 228352   ;;  %v1132_v0 = vrot.slane %v1131_v21, 4  ;;  %s10661_s12 = smov 74  }
  0x97   : > { %v648_v56 = vsel %vm621_vm9, %v645_v46, %v11006_v13  ;;  %v1097_v4 = vsel %vm10785_vm2, %v1095_v61, %v1096_v5  ;;  %v1211_v5 = vrot.slane %v1210_v10, 4  ;;  %v1364_v46 = vld [vmem:[%s10763_s14 + $0x18] sm:$0xf] }
  0x98   : > { %v563_v31 = vpop.permute.xlu1 %562  ;;  %v398_v35 = vpop.permute.xlu0 %397  ;;  %v1134_v32 = vsel %vm10785_vm2, %v1132_v0, %v1133_v17 }
  0x99   : > { %571 = vst.msk [vmem:[#allocation2 + $0x60] sm:$0x3] %vm547_vm3, %v563_v31  ;;  %v1213_v23 = vsel %vm10785_vm2, %v1211_v5, %v1212_v3 }
  0x9a   : > { %1010 = vrot.lane.b32.xlu1 %v1005_v28, %s10636_s13  ;;  %407 = vst.msk [vmem:[#allocation2 + $0x30] sm:$0xf] %vm406_vm4, %v398_v35  ;;  %996 = vrot.lane.b32.xlu0 %v10973_v59, %s10636_s13  ;;  %vm493_vm4 = vcmask 1044320   ;;  %v11145_v28 = vld [vmem:[%s10763_s14 + $0x34] sm:$0xf]  ;;  %v1168_v35 = vrot.slane %v1164_v62, 6 }
  0x9b   : > { %v1296_v34 = vrot.slane %v11145_v28, 6 }
  0x9c   : > { %v433_v41 = vpop.permute.xlu1 %432  ;;  %v419_v48 = vpop.permute.xlu0 %418 }
  0x9d   : > { %442 = vst.msk [vmem:[#allocation2 + $0x4] sm:$0xc] %vm441_vm8, %v433_v41  ;;  %vm443_vm8 = vcmask 847424   ;;  %v1298_v41 = vrot.slane %v1296_v34, 4 }
  0x9e   : > { %1177 = vrot.lane.b32.xlu1 %v1172_v37, %s13624_s17  ;;  %422 = vst.msk [vmem:[#allocation2 + $0x4] sm:$0x3] %vm421_vm12, %v419_v48  ;;  %1012 = vrot.lane.b32.xlu0 %v1008_v42, %s10636_s13  ;;  %vm11088_vm12 = vmor %vm625_vm1, %vm624_vm11  ;;  %vm567_vm11 = vcmask 683426   ;;  %vm750_vm1 = vcmask 1042240   ;;  %v1169_v42 = vrot.slane %v1168_v35, 4 }
  0x9f   : > { %492 = vst.msk [vmem:[#allocation2 + $0x4] sm:$0xcc] %vm11056_vm10, %v483_v45  ;;  %vm495_vm10 = vmor %vm494_vm5, %vm493_vm4  ;;  %vm751_vm4 = vcmask 62468   ;;  %vm747_vm5 = vcmask 326656   ;;  %v11171_v45 = vld [vmem:[%s10763_s14 + $0x38] sm:$0xf] }
  0xa0   : > { %464 = vst.msk [vmem:[#allocation2 + $0x4] sm:$0x33] %vm11008_vm13, %v459_v47  ;;  %v600_v55 = vpop.permute.xlu1 %599  ;;  %v435_v57 = vpop.permute.xlu0 %434  ;;  %vm532_vm13 = vcmask 388224  }
  0xa1   : > { %608 = vst.msk [vmem:[#allocation2 + $0x60] sm:$0x3] %vm584_vm7, %v600_v55  ;;  %v1368_v55 = vrot.slane %v1364_v46, 6 }
  0xa2   : > { %1493 = vrot.lane.b32.xlu1 %v1488_v50, %s10641_s16  ;;  %444 = vst.msk [vmem:[#allocation2 + $0x30] sm:$0xf] %vm443_vm8, %v435_v57  ;;  %1377 = vrot.lane.b32.xlu0 %v1372_v51, %s10642_s19  ;;  %vm710_vm8 = vcmask 812576   ;;  %v1171_v51 = vsel %vm10785_vm2, %v1169_v42, %v1170_v29 }
  0xa3   : > { %660 = vst.msk [vmem:[#allocation2 + $0x60] sm:$0x33] %vm11088_vm12, %v648_v56 }
  0xa4   : > { %496 = vst.msk [vmem:[#allocation2 + $0x30] sm:$0xff] %vm495_vm10, %v484_v58  ;;  %v508_v63 = vpop.permute.xlu1 %507  ;;  %v768_v2 = vpop.permute.xlu0 %767  ;;  %vm569_vm10 = vcmask 683424   ;;  %v1369_v58 = vrot.slane %v1368_v55, 4 }
  0xa5   : > { %511 = vst.msk [vmem:[#allocation2 + $0x8] sm:$0x3] %vm510_vm15, %v508_v63  ;;  %vm673_vm15 = vcmask 517376   ;;  %v771_v3 = vrot.slane %v768_v2, 4 }
  0xa6   : > { %1085 = vrot.lane.b32.xlu1 %v10973_v59, %s13627_s18  ;;  %1414 = vrot.lane.b32.xlu0 %v1409_v60, %s10643_s15  ;;  %v1371_v63 = vsel %vm10785_vm2, %v1369_v58, %v1370_v39 }
  0xa7   : > { %v774_v37 = vsel %vm747_vm5, %v771_v3, %v768_v2  ;;  %v1480_v2 = vld [vmem:[%s10763_s14 + $0x1c] sm:$0xf] }
  0xa8   : > { %v524_v8 = vpop.permute.xlu1 %523  ;;  %v522_v9 = vpop.permute.xlu0 %521 }
  0xa9   : > { %533 = vst.msk [vmem:[#allocation2 + $0x34] sm:$0xf] %vm532_vm13, %v524_v8  ;;  %vm11158_vm13 = vmor %vm751_vm4, %vm750_vm1  ;;  %vm657_vm4 = vcmask 228356  }
  0xaa   : > { %1101 = vrot.lane.b32.xlu1 %v1097_v4, %s13627_s18  ;;  %531 = vst.msk [vmem:[#allocation2 + $0x8] sm:$0xc] %vm530_vm14, %v522_v9  ;;  %1099 = vrot.lane.b32.xlu0 %v1094_v53, %s13627_s18  ;;  %vm653_vm14 = vcmask 228358   ;;  %v1333_v53 = vrot.slane %v11171_v45, 6  ;;  %v11211_v4 = vld [vmem:[%s10763_s14 + $0x3c] sm:$0xf] }
  0xab   : > { %v1484_v9 = vrot.slane %v1480_v2, 6  ;;  %v1533_v33 = vrot.slane %v11211_v4, 6 }
  0xac   : > { %v638_v13 = vpop.permute.xlu1 %637  ;;  %v619_v16 = vpop.permute.xlu0 %618  ;;  %v1335_v29 = vrot.slane %v1333_v53, 4 }
  0xad   : > { %v643_v12 = vrot.slane %v638_v13, 4  ;;  %v620_v40 = vrot.slane %v619_v16, 4  ;;  %v1535_v15 = vrot.slane %v1533_v33, 4 }
  0xae   : > { %1215 = vrot.lane.b32.xlu1 %v1210_v10, %s13615_s20  ;;  %1196 = vrot.lane.b32.xlu0 %v11121_v1, %s13615_s20  ;;  %v1485_v10 = vrot.slane %v1484_v9, 4 }
  0xaf   : > { %v646_v48 = vsel %vm621_vm9, %v643_v12, %v638_v13  ;;  %v622_v49 = vsel %vm621_vm9, %v620_v40, %v619_v16  ;;  %v11220_v13 = vld.sshfl [vmem:[%s10756_s11 + $0xe] sm:$0x3 pattern:$0x76325410]  ;;  %v1401_v16 = vld [vmem:[%s10763_s14 + $0x18] sm:$0xf] }
  0xb0   : > { %v689_v22 = vpop.permute.xlu1 %688  ;;  %v11138_v24 = vpop.permute.xlu0 %639  ;;  %s10648_s11 = smov 116   ;;  %v1405_v0 = vrot.slane %v1401_v16, 6  ;;  %v1253_v12 = vld [vmem:[%s10763_s14 + $0x14] sm:$0xf] }
  0xb1   : > { %697 = vst.msk [vmem:[#allocation2 + $0x64] sm:$0x3] %vm673_vm15, %v689_v22  ;;  %v644_v50 = vrot.slane %v11138_v24, 4  ;;  %v1487_v22 = vsel %vm10785_vm2, %v1485_v10, %v1486_v38  ;;  %v1257_v43 = vrot.slane %v1253_v12, 6 }
  0xb2   : > { %1266 = vrot.lane.b32.xlu1 %v1261_v18, %s10644_s9  ;;  %1217 = vrot.lane.b32.xlu0 %v1213_v23, %s13615_s20  ;;  %v11230_v18 = vld [vmem:[%s10763_s14 + $0x3c] sm:$0xf]  ;;  %v1406_v62 = vrot.slane %v1405_v0, 4  ;;  %s10650_s20 = smov 124  }
  0xb3   : > { %v647_v54 = vsel %vm621_vm9, %v644_v50, %v11138_v24  ;;  %vm693_vm9 = vcmask 519426  }
  0xb4   : > { %v559_v27 = vpop.permute.xlu1 %558  ;;  %v545_v31 = vpop.permute.xlu0 %544 }
  0xb5   : > { %568 = vst.msk [vmem:[#allocation2 + $0x8] sm:$0xc] %vm567_vm11, %v559_v27  ;;  %vm604_vm11 = vcmask 978626   ;;  %v1570_v27 = vrot.slane %v11230_v18, 6 }
  0xb6   : > { %1122 = vrot.lane.b32.xlu1 %v10973_v59, %s13622_s21  ;;  %548 = vst.msk [vmem:[#allocation2 + $0x8] sm:$0x3] %vm547_vm3, %v545_v31  ;;  %1451 = vrot.lane.b32.xlu0 %v1446_v26, %s10645_s22  ;;  %vm652_vm3 = vcmask 1044450  }
  0xb7   : > { %vm654_vm1 = vmor %vm653_vm14, %vm652_vm3  ;;  %vm695_vm3 = vcmask 519424   ;;  %vm778_vm14 = vcmask 1044290  }
  0xb8   : > { %v726_v59 = vpop.permute.xlu1 %725  ;;  %v561_v17 = vpop.permute.xlu0 %560 }
  0xb9   : > { %734 = vst.msk [vmem:[#allocation2 + $0x64] sm:$0x3] %vm710_vm8, %v726_v59 }
  0xba   : > { %1138 = vrot.lane.b32.xlu1 %v1134_v32, %s13622_s21  ;;  %570 = vst.msk [vmem:[#allocation2 + $0x34] sm:$0xf] %vm569_vm10, %v561_v17  ;;  %1136 = vrot.lane.b32.xlu0 %v1131_v21, %s13622_s21  ;;  %vm606_vm10 = vcmask 978624   ;;  %s10652_s21 = smov 35  }
  0xbb   : > { %786 = vst.msk [vmem:[#allocation2 + $0x64] sm:$0x33] %vm11158_vm13, %v774_v37  ;;  %v1572_v37 = vrot.slane %v1570_v27, 4 }
  0xbc   : > { %v596_v44 = vpop.permute.xlu1 %595  ;;  %v582_v47 = vpop.permute.xlu0 %581 }
  0xbd   : > { %605 = vst.msk [vmem:[#allocation2 + $0x8] sm:$0xc] %vm604_vm11, %v596_v44  ;;  %vm779_vm11 = vcmask 64518  }
  0xbe   : > { %1159 = vrot.lane.b32.xlu1 %v11121_v1, %s13624_s17  ;;  %585 = vst.msk [vmem:[#allocation2 + $0x8] sm:$0x3] %vm584_vm7, %v582_v47  ;;  %1303 = vrot.lane.b32.xlu0 %v1298_v41, %s10646_s23  ;;  %vm658_vm7 = vmor %vm657_vm4, %vm656_vm6  ;;  %vm799_vm6 = vcmask 353376   ;;  %vm13616_vm4 = vcmask 457728   ;;  %v1408_v41 = vsel %vm10785_vm2, %v1406_v62, %v1407_v52  ;;  %v1442_v52 = vrot.slane %v1438_v36, 6 }
  0xbf   : > { %655 = vst.msk [vmem:[#allocation2 + $0x8] sm:$0xcc] %vm654_vm1, %v646_v48  ;;  %vm11241_vm1 = vmor %vm779_vm11, %vm778_vm14  ;;  %vm873_vm14 = vcmask 943776   ;;  %vm732_vm11 = vcmask 814624   ;;  %v1258_v47 = vrot.slane %v1257_v43, 4 }
  0xc0   : > { %627 = vst.msk [vmem:[#allocation2 + $0x8] sm:$0x33] %vm11088_vm12, %v622_v49  ;;  %v11188_v56 = vpop.permute.xlu1 %744  ;;  %v598_v57 = vpop.permute.xlu0 %597  ;;  %vm836_vm12 = vcmask 648576   ;;  %v1443_v50 = vrot.slane %v1442_v52, 4 }
  0xc1   : > { %607 = vst.msk [vmem:[#allocation2 + $0x34] sm:$0xf] %vm606_vm10, %v598_v57  ;;  %v746_v26 = vrot.slane %v11188_v56, 4  ;;  %vm913_vm10 = vcmask 1042368   ;;  %v1290_v57 = vld [vmem:[%s10763_s14 + $0x14] sm:$0xf] }
  0xc2   : > { %1175 = vrot.lane.b32.xlu1 %v1171_v51, %s13624_s17  ;;  %1173 = vrot.lane.b32.xlu0 %v1168_v35, %s13624_s17  ;;  %659 = vst.msk [vmem:[#allocation2 + $0x34] sm:$0xff] %vm658_vm7, %v647_v54  ;;  %vm914_vm7 = vcmask 193540   ;;  %v11295_v54 = vld [vmem:[#allocation2 + $0x18] sm:$0xff]  ;;  %v1445_v7 = vsel %vm10785_vm2, %v1443_v50, %v1444_v20  ;;  %v1294_v58 = vrot.slane %v1290_v57, 6  ;;  %s10657_s17 = smov 93  }
  0xc3   : > { %v748_v35 = vsel %vm747_vm5, %v746_v26, %v11188_v56  ;;  %v11292_v56 = vld [vmem:[%s10763_s14 + $0x3c] sm:$0xf] }
  0xc4   : > { %v11200_v60 = vpop.permute.xlu1 %765  ;;  %v764_v61 = vpop.permute.xlu0 %763  ;;  %v1295_v2 = vrot.slane %v1294_v58, 4 }
  0xc5   : > { %v769_v23 = vrot.slane %v764_v61, 4  ;;  %v770_v59 = vrot.slane %v11200_v60, 4 }
  0xc6   : > { %1359 = vrot.lane.b32.xlu1 %v11196_v25, %s10642_s19  ;;  %1340 = vrot.lane.b32.xlu0 %v1335_v29, %s10647_s29 }
  0xc7   : > { %v772_v3 = vsel %vm747_vm5, %v769_v23, %v764_v61  ;;  %v773_v46 = vsel %vm747_vm5, %v770_v59, %v11200_v60  ;;  %vm821_vm5 = vcmask 355424  }
  0xc8   : > { %v11213_v6 = vpop.permute.xlu1 %930  ;;  %v815_v8 = vpop.permute.xlu0 %814 }
  0xc9   : > { %823 = vst.msk [vmem:[#allocation2 + $0x68] sm:$0x3] %vm799_vm6, %v815_v8  ;;  %v934_v31 = vrot.slane %v11213_v6, 4  ;;  %v1327_v8 = vld [vmem:[%s10763_s14 + $0x18] sm:$0xf] }
  0xca   : > { %1375 = vrot.lane.b32.xlu1 %v1371_v63, %s10642_s19  ;;  %1373 = vrot.lane.b32.xlu0 %v1368_v55, %s10642_s19  ;;  %v1260_v55 = vsel %vm10785_vm2, %v1258_v47, %v1259_v11  ;;  %v1607_v11 = vrot.slane %v11292_v56, 6  ;;  %v1635_v47 = vld [vmem:[#allocation2 + $0x60] sm:$0x33] }
  0xcb   : > { %v937_v42 = vsel %vm13616_vm4, %v934_v31, %v11213_v6  ;;  %v1297_v6 = vsel %vm10785_vm2, %v1295_v2, %v1296_v34  ;;  %v11416_v2 = vld [vmem:[#allocation2 + $0x4] ss:$44 sps:$4 sm:$0xff]  }
  0xcc   : > { %v685_v39 = vpop.permute.xlu1 %684  ;;  %v671_v5 = vpop.permute.xlu0 %670  ;;  %v1609_v63 = vrot.slane %v1607_v11, 4 }
  0xcd   : > { %694 = vst.msk [vmem:[#allocation2 + $0xc] sm:$0xc] %vm693_vm9, %v685_v39  ;;  %vm782_vm9 = vcmask 1044288   ;;  %v1527_v39 = vld [vmem:[%s10763_s14 + $0x1c] sm:$0xf] }
  0xce   : > { %1489 = vrot.lane.b32.xlu1 %v1484_v9, %s10641_s16  ;;  %674 = vst.msk [vmem:[#allocation2 + $0xc] sm:$0x3] %vm673_vm15, %v671_v5  ;;  %1470 = vrot.lane.b32.xlu0 %v11220_v13, %s10641_s16  ;;  %vm730_vm15 = vcmask 814626   ;;  %v1531_v28 = vrot.slane %v1527_v39, 6  ;;  %v1624_v39 = vld [vmem:[#allocation2] sm:$0xff] }
  0xd0   : > { %v852_v21 = vpop.permute.xlu1 %851  ;;  %v687_v24 = vpop.permute.xlu0 %686  ;;  %v1532_v26 = vrot.slane %v1531_v28, 4 }
  0xd1   : > { %860 = vst.msk [vmem:[#allocation2 + $0x68] sm:$0x3] %vm836_vm12, %v852_v21 }
  0xd2   : > { %1540 = vrot.lane.b32.xlu1 %v1535_v15, %s10648_s11  ;;  %696 = vst.msk [vmem:[#allocation2 + $0x38] sm:$0xf] %vm695_vm3, %v687_v24  ;;  %1491 = vrot.lane.b32.xlu0 %v1487_v22, %s10641_s16  ;;  %vm783_vm3 = vcmask 64516   ;;  %v1534_v45 = vsel %vm10785_vm2, %v1532_v26, %v1533_v33 }
  0xd4   : > { %v722_v38 = vpop.permute.xlu1 %721  ;;  %v708_v32 = vpop.permute.xlu0 %707 }
  0xd5   : > { %731 = vst.msk [vmem:[#allocation2 + $0xc] sm:$0xc] %vm730_vm15, %v722_v38  ;;  %vm11263_vm15 = vmor %vm914_vm7, %vm913_vm10  ;;  %vm856_vm10 = vcmask 650626   ;;  %vm1039_vm7 = vcmask 1042208  }
  0xd6   : > { %1410 = vrot.lane.b32.xlu1 %v1405_v0, %s10643_s15  ;;  %711 = vst.msk [vmem:[#allocation2 + $0xc] sm:$0x3] %vm710_vm8, %v708_v32  ;;  %1396 = vrot.lane.b32.xlu0 %v11196_v25, %s10643_s15  ;;  %vm784_vm8 = vmor %vm783_vm3, %vm782_vm9  ;;  %vm1040_vm9 = vcmask 29700   ;;  %vm1036_vm3 = vcmask 556032   ;;  %v1601_v32 = vld [vmem:[%s10763_s14 + $0x1c] sm:$0xf] }
  0xd7   : > { %781 = vst.msk [vmem:[#allocation2 + $0xc] sm:$0xcc] %vm11241_vm1, %v772_v3  ;;  %vm347_vm1 = vcmask 566272   ;;  %v1605_v12 = vrot.slane %v1601_v32, 6 }
  0xd8   : > { %753 = vst.msk [vmem:[#allocation2 + $0xc] sm:$0x33] %vm11158_vm13, %v748_v35  ;;  %v889_v40 = vpop.permute.xlu1 %888  ;;  %v724_v44 = vpop.permute.xlu0 %723  ;;  %vm819_vm13 = vcmask 355426  }
  0xd9   : > { %897 = vst.msk [vmem:[#allocation2 + $0x68] sm:$0x3] %vm873_vm14, %v889_v40  ;;  %v1606_v40 = vrot.slane %v1605_v12, 4 }
  0xda   : > { %1577 = vrot.lane.b32.xlu1 %v1572_v37, %s10649_s26  ;;  %733 = vst.msk [vmem:[#allocation2 + $0x38] sm:$0xf] %vm732_vm11, %v724_v44  ;;  %1412 = vrot.lane.b32.xlu0 %v1408_v41, %s10643_s15  ;;  %vm999_vm11 = vcmask 779776  }
  0xdb   : > { %949 = vst.msk [vmem:[#allocation2 + $0x68] sm:$0x33] %vm11263_vm15, %v937_v42  ;;  %v1608_v44 = vsel %vm10785_vm2, %v1606_v40, %v1607_v11 }
  0xdc   : > { %785 = vst.msk [vmem:[#allocation2 + $0x38] sm:$0xff] %vm784_vm8, %v773_v46  ;;  %v797_v48 = vpop.permute.xlu1 %796  ;;  %v1057_v49 = vpop.permute.xlu0 %1056  ;;  %vm858_vm8 = vcmask 650624  }
  0xdd   : > { %800 = vst.msk [vmem:[#allocation2 + $0x10] sm:$0x3] %vm799_vm6, %v797_v48  ;;  %vm962_vm6 = vcmask 484576   ;;  %v1060_v10 = vrot.slane %v1057_v49, 4 }
  0xde   : > { %1262 = vrot.lane.b32.xlu1 %v1257_v43, %s10644_s9  ;;  %1248 = vrot.lane.b32.xlu0 %v11121_v1, %s10644_s9  ;;  %348 = vst.msk [vmem:[#allocation2 + $0x80] sm:$0x3] %vm347_vm1, %v11295_v54  ;;  %vm942_vm1 = vcmask 195590   ;;  %v1634_v43 = vld [vmem:[#allocation2 + $0x58] sm:$0x33] }
  0xdf   : > { %v1063_v21 = vsel %vm1036_vm3, %v1060_v10, %v1057_v49  ;;  %v11382_v48 = vcombine.low %v1634_v43, %v1634_v43 }
  0xe0   : > { %v813_v51 = vpop.permute.xlu1 %812  ;;  %v811_v29 = vpop.permute.xlu0 %810 }
  0xe1   : > { %822 = vst.msk [vmem:[#allocation2 + $0x3c] sm:$0xf] %vm821_vm5, %v813_v51  ;;  %vm11323_vm5 = vmor %vm1040_vm9, %vm1039_vm7  ;;  %vm945_vm7 = vcmask 1044416   ;;  %vm946_vm9 = vcmask 195588  }
  0xe2   : > { %1433 = vrot.lane.b32.xlu1 %v11196_v25, %s10645_s22  ;;  %820 = vst.msk [vmem:[#allocation2 + $0x10] sm:$0xc] %vm819_vm13, %v811_v29  ;;  %1264 = vrot.lane.b32.xlu0 %v1260_v55, %s10644_s9  ;;  %vm941_vm13 = vcmask 1044418   ;;  %v11393_v55 = vcombine.high %v1635_v47, %v1635_v47 }
  0xe3   : > { %v1630_v34 = vld [vmem:[#allocation2 + $0x34] sm:$0xff] }
  0xe4   : > { %v927_v60 = vpop.permute.xlu1 %926  ;;  %v908_v61 = vpop.permute.xlu0 %907 }
  0xe5   : > { %v932_v22 = vrot.slane %v927_v60, 4  ;;  %v909_v24 = vrot.slane %v908_v61, 4 }
  0xe6   : > { %1449 = vrot.lane.b32.xlu1 %v1445_v7, %s10645_s22  ;;  %1447 = vrot.lane.b32.xlu0 %v1442_v52, %s10645_s22  ;;  %v11396_v7 = vcombine.low %v1635_v47, %v1635_v47 }
  0xe7   : > { %v935_v38 = vsel %vm13616_vm4, %v932_v22, %v927_v60  ;;  %v911_v3 = vsel %vm13616_vm4, %v909_v24, %v908_v61 }
  0xe8   : > { %v978_v14 = vpop.permute.xlu1 %977  ;;  %v929_v20 = vpop.permute.xlu0 %928 }
  0xe9   : > { %986 = vst.msk [vmem:[#allocation2 + $0x6c] sm:$0x3] %vm962_vm6, %v978_v14  ;;  %v933_v31 = vrot.slane %v929_v20, 4 }
  0xea   : > { %1285 = vrot.lane.b32.xlu1 %v11121_v1, %s10646_s23  ;;  %1614 = vrot.lane.b32.xlu0 %v1609_v63, %s10650_s20  ;;  %v1331_v1 = vrot.slane %v1327_v8, 6 }
  0xeb   : > { %v936_v59 = vsel %vm13616_vm4, %v933_v31, %v929_v20  ;;  %vm1235_vm4 = vcmask 162820  }
  0xec   : > { %v848_v9 = vpop.permute.xlu1 %847  ;;  %v834_v5 = vpop.permute.xlu0 %833  ;;  %v1332_v16 = vrot.slane %v1331_v1, 4 }
  0xed   : > { %857 = vst.msk [vmem:[#allocation2 + $0x10] sm:$0xc] %vm856_vm10, %v848_v9  ;;  %vm943_vm10 = vmor %vm942_vm1, %vm941_vm13  ;;  %vm982_vm1 = vcmask 486626  }
  0xee   : > { %1301 = vrot.lane.b32.xlu1 %v1297_v6, %s10646_s23  ;;  %837 = vst.msk [vmem:[#allocation2 + $0x10] sm:$0x3] %vm836_vm12, %v834_v5  ;;  %1299 = vrot.lane.b32.xlu0 %v1294_v58, %s10646_s23  ;;  %vm893_vm12 = vcmask 945826   ;;  %v1334_v30 = vsel %vm10785_vm2, %v1332_v16, %v1333_v53  ;;  %v1564_v53 = vld [vmem:[%s10763_s14 + $0x1c] sm:$0xf]  ;;  %vm947_vm13 = vmor %vm946_vm9, %vm945_vm7  ;;  %vm1067_vm7 = vcmask 1044258  }
  0xef   : > { %v1568_v37 = vrot.slane %v1564_v53, 6  ;;  %vm1068_vm9 = vcmask 31750   ;;  %v1629_v6 = vld [vmem:[#allocation2 + $0x2c] sm:$0xff]  ;;  %s10651_s14 = smov 37  }
  0xf0   : > { %v1015_v15 = vpop.permute.xlu1 %1014  ;;  %v850_v23 = vpop.permute.xlu0 %849  ;;  %v11432_v5 = vcombine.low %v1624_v39, %v1629_v6  ;;  %v1625_v16 = vld [vmem:[#allocation2 + $0x8] sm:$0xff] }
  0xf1   : > { %1023 = vst.msk [vmem:[#allocation2 + $0x6c] sm:$0x3] %vm999_vm11, %v1015_v15  ;;  %v1569_v33 = vrot.slane %v1568_v37, 4  ;;  %v11442_v22 = vcombine.high %v1625_v16, %v1630_v34 }
  0xf2   : > { %1336 = vrot.lane.b32.xlu1 %v1331_v1, %s10647_s29  ;;  %859 = vst.msk [vmem:[#allocation2 + $0x3c] sm:$0xf] %vm858_vm8, %v850_v23  ;;  %1322 = vrot.lane.b32.xlu0 %v11196_v25, %s10647_s29  ;;  %vm895_vm8 = vcmask 945824  }
  0xf3   : > { %1075 = vst.msk [vmem:[#allocation2 + $0x6c] sm:$0x33] %vm11323_vm5, %v1063_v21  ;;  %v1571_v36 = vsel %vm10785_vm2, %v1569_v33, %v1570_v27  ;;  %v11379_v27 = vcombine.high %v1634_v43, %v1634_v43  ;;  %vm1019_vm2 = vcmask 781826  }
  0xf4   : > { %v885_v0 = vpop.permute.xlu1 %884  ;;  %v871_v62 = vpop.permute.xlu0 %870 }
  0xf5   : > { %894 = vst.msk [vmem:[#allocation2 + $0x10] sm:$0xc] %vm893_vm12, %v885_v0  ;;  %vm1125_vm12 = vcmask 615776  }
  0xf6   : > { %1522 = vrot.lane.b32.xlu1 %v11220_v13, %s10648_s11  ;;  %874 = vst.msk [vmem:[#allocation2 + $0x10] sm:$0x3] %vm873_vm14, %v871_v62  ;;  %1338 = vrot.lane.b32.xlu0 %v1334_v30, %s10647_s29  ;;  %vm334_vm14 = vcmask 568320  }
  0xf7   : > { %944 = vst.msk [vmem:[#allocation2 + $0x10] sm:$0xcc] %vm943_vm10, %v935_v38  ;;  %vm984_vm10 = vcmask 486624  }
  0xf8   : > { %916 = vst.msk [vmem:[#allocation2 + $0x10] sm:$0x33] %vm11263_vm15, %v911_v3  ;;  %v11351_v25 = vpop.permute.xlu1 %1033  ;;  %v887_v35 = vpop.permute.xlu0 %886  ;;  %vm1088_vm15 = vcmask 320576  }
  0xf9   : > { %896 = vst.msk [vmem:[#allocation2 + $0x3c] sm:$0xf] %vm895_vm8, %v887_v35  ;;  %v1035_v49 = vrot.slane %v11351_v25, 4  ;;  %vm1071_vm8 = vcmask 1044256  }
  0xfa   : > { %1538 = vrot.lane.b32.xlu1 %v1534_v45, %s10648_s11  ;;  %1536 = vrot.lane.b32.xlu0 %v1531_v28, %s10648_s11  ;;  %948 = vst.msk [vmem:[#allocation2 + $0x3c] sm:$0xff] %vm947_vm13, %v936_v59  ;;  %vm1202_vm13 = vcmask 1042336   ;;  %v1636_v60 = vld [vmem:[#allocation2 + $0x68] sm:$0x33] }
  0xfb   : > { %335 = vst.msk [vmem:[#allocation2 + $0x28] sm:$0xf] %vm334_vm14, %v11295_v54  ;;  %341 = vst.msk [vmem:[#allocation2 + $0x54] sm:$0xf] %vm334_vm14, %v11295_v54  ;;  %vm1203_vm14 = vcmask 160772   ;;  %v1037_v11 = vsel %vm1036_vm3, %v1035_v49, %v11351_v25  ;;  %v11422_v8 = vcombine.low %v1636_v60, %v1636_v60  ;;  %v11451_v0 = vcombine.high %v1636_v60, %v1636_v60 }
  0xfc   : > { %v11357_v4 = vpop.permute.xlu1 %1054  ;;  %v1053_v17 = vpop.permute.xlu0 %1052  ;;  %v11434_v28 = vld [vmem:[#allocation2 + $0x8] ss:$44 sps:$4 sm:$0xff]  }
  0xfd   : > { %v1058_v52 = vrot.slane %v1053_v17, 4  ;;  %v1059_v58 = vrot.slane %v11357_v4, 4 }
  0xfe   : > { %1573 = vrot.lane.b32.xlu1 %v1568_v37, %s10649_s26  ;;  %1559 = vrot.lane.b32.xlu0 %v11220_v13, %s10649_s26 }
  0xff   : > { %v1061_v56 = vsel %vm1036_vm3, %v1058_v52, %v1053_v17  ;;  %v1062_v9 = vsel %vm1036_vm3, %v1059_v58, %v11357_v4  ;;  %vm1399_vm3 = vcmask 582976  }
 0x100   : > { %v1220_v41 = vpop.permute.xlu1 %1219  ;;  %v1104_v42 = vpop.permute.xlu0 %1103 }
 0x101   : > { %1112 = vst.msk [vmem:[#allocation2 + $0x70] sm:$0x3] %vm1088_vm15, %v1104_v42  ;;  %v1223_v57 = vrot.slane %v1220_v41, 4  ;;  %v11445_v23 = vld [vmem:[#allocation2 + $0x10] ss:$44 sps:$4 sm:$0xff]  }
 0x102   : > { %1596 = vrot.lane.b32.xlu1 %v11220_v13, %s10650_s20  ;;  %1575 = vrot.lane.b32.xlu0 %v1571_v36, %s10649_s26 }
 0x104   : > { %v974_v46 = vpop.permute.xlu1 %973  ;;  %v960_v18 = vpop.permute.xlu0 %959 }
 0x105   : > { %983 = vst.msk [vmem:[#allocation2 + $0x14] sm:$0xc] %vm982_vm1, %v974_v46  ;;  %vm1072_vm1 = vcmask 31748  }
 0x106   : > { %1612 = vrot.lane.b32.xlu1 %v1608_v44, %s10650_s20  ;;  %963 = vst.msk [vmem:[#allocation2 + $0x14] sm:$0x3] %vm962_vm6, %v960_v18  ;;  %1610 = vrot.lane.b32.xlu0 %v1605_v12, %s10650_s20  ;;  %vm11389_vm6 = vmor %vm1068_vm9, %vm1067_vm7  ;;  %vm1162_vm7 = vcmask 910976   ;;  %vm1021_vm9 = vcmask 781824  }
 0x108   : > { %v1141_v13 = vpop.permute.xlu1 %1140  ;;  %v976_v19 = vpop.permute.xlu0 %975 }
 0x109   : > { %1149 = vst.msk [vmem:[#allocation2 + $0x70] sm:$0x3] %vm1125_vm12, %v1141_v13 }
 0x10a   : > { %1729 = vrot.lane.b32.xlu1 %v11379_v27, %s13621_s24  ;;  %985 = vst.msk [vmem:[#allocation2 + $0x40] sm:$0xf] %vm984_vm10, %v976_v19  ;;  %1727 = vrot.lane.b32.xlu0 %v11382_v48, %s13621_s24  ;;  %vm1199_vm10 = vcmask 687104  }
 0x10b   : > { %v1226_v14 = vsel %vm1199_vm10, %v1223_v57, %v1220_v41 }
 0x10c   : > { %v1011_v51 = vpop.permute.xlu1 %1010  ;;  %v997_v29 = vpop.permute.xlu0 %996 }
 0x10d   : > { %1020 = vst.msk [vmem:[#allocation2 + $0x14] sm:$0xc] %vm1019_vm2, %v1011_v51  ;;  %vm11412_vm2 = vmor %vm1203_vm14, %vm1202_vm13  ;;  %vm1476_vm13 = vcmask 1042304   ;;  %vm1477_vm14 = vcmask 128004  }
 0x10e   : > { %1733 = vrot.lane.b32.xlu1 %v11393_v55, %s13621_s24  ;;  %1000 = vst.msk [vmem:[#allocation2 + $0x14] sm:$0x3] %vm999_vm11, %v997_v29  ;;  %1731 = vrot.lane.b32.xlu0 %v11396_v7, %s13621_s24  ;;  %vm1073_vm11 = vmor %vm1072_vm1, %vm1071_vm8  ;;  %vm1108_vm8 = vcmask 322626   ;;  %vm13619_vm1 = vcmask 916480  }
 0x10f   : > { %1070 = vst.msk [vmem:[#allocation2 + $0x14] sm:$0xcc] %vm11389_vm6, %v1061_v56  ;;  %vm1110_vm6 = vcmask 322624  }
 0x110   : > { %1042 = vst.msk [vmem:[#allocation2 + $0x14] sm:$0x33] %vm11323_vm5, %v1037_v11  ;;  %v1178_v63 = vpop.permute.xlu1 %1177  ;;  %v1013_v20 = vpop.permute.xlu0 %1012  ;;  %vm1362_vm5 = vcmask 287776  }
 0x111   : > { %1186 = vst.msk [vmem:[#allocation2 + $0x70] sm:$0x3] %vm1162_vm7, %v1178_v63 }
 0x112   : > { %1022 = vst.msk [vmem:[#allocation2 + $0x40] sm:$0xf] %vm1021_vm9, %v1013_v20  ;;  %1709 = vrot.lane.b32.xlu1 %v11416_v2, %s13621_s24  ;;  %1735 = vrot.lane.b32.xlu0 %v11422_v8, %s13621_s24  ;;  %vm13618_vm9 = vcmask 878176  }
 0x113   : > { %1238 = vst.msk [vmem:[#allocation2 + $0x70] sm:$0x33] %vm11412_vm2, %v1226_v14 }
 0x114   : > { %1074 = vst.msk [vmem:[#allocation2 + $0x40] sm:$0xff] %vm1073_vm11, %v1062_v9  ;;  %v1494_v10 = vpop.permute.xlu1 %1493  ;;  %v1378_v1 = vpop.permute.xlu0 %1377  ;;  %vm11456_vm11 = vmor %vm1477_vm14, %vm1476_vm13  ;;  %vm1288_vm13 = vcmask 746976   ;;  %vm1234_vm14 = vcmask 1044384  }
 0x115   : > { %1386 = vst.msk [vmem:[#allocation2 + $0x78] sm:$0x3] %vm1362_vm5, %v1378_v1  ;;  %v1497_v31 = vrot.slane %v1494_v10, 4 }
 0x116   : > { %1707 = vrot.lane.b32.xlu1 %v11432_v5, %s13621_s24  ;;  %1711 = vrot.lane.b32.xlu0 %v11434_v28, %s13621_s24 }
 0x117   : > { %v1500_v32 = vsel %vm13619_vm1, %v1497_v31, %v1494_v10  ;;  %v1626_v57 = vld [vmem:[#allocation2 + $0x10] sm:$0xff] }
 0x118   : > { %v1086_v15 = vpop.permute.xlu1 %1085  ;;  %v1415_v21 = vpop.permute.xlu0 %1414 }
 0x119   : > { %1089 = vst.msk [vmem:[#allocation2 + $0x18] sm:$0x3] %vm1088_vm15, %v1086_v15  ;;  %vm1251_vm15 = vcmask 451776  }
 0x11a   : > { %1423 = vst.msk [vmem:[#allocation2 + $0x78] sm:$0x3] %vm1399_vm3, %v1415_v21  ;;  %1713 = vrot.lane.b32.xlu0 %v11442_v22, %s13621_s24  ;;  %1715 = vrot.lane.b32.xlu1 %v11445_v23, %s13621_s24 }
 0x11b   : > { %v1631_v51 = vld [vmem:[#allocation2 + $0x3c] sm:$0xff] }
 0x11c   : > { %v1102_v24 = vpop.permute.xlu1 %1101  ;;  %v1100_v26 = vpop.permute.xlu0 %1099  ;;  %v11483_v11 = vcombine.high %v1626_v57, %v1631_v51 }
 0x11d   : > { %1111 = vst.msk [vmem:[#allocation2 + $0x44] sm:$0xf] %vm1110_vm6, %v1102_v24  ;;  %vm1147_vm6 = vcmask 617824  }
 0x11e   : > { %1109 = vst.msk [vmem:[#allocation2 + $0x18] sm:$0xc] %vm1108_vm8, %v1100_v26  ;;  %1737 = vrot.lane.b32.xlu0 %v11451_v0, %s13621_s24  ;;  %vm1145_vm8 = vcmask 617826  }
 0x120   : > { %v1216_v30 = vpop.permute.xlu1 %1215  ;;  %v1197_v38 = vpop.permute.xlu0 %1196 }
 0x121   : > { %v1198_v59 = vrot.slane %v1197_v38, 4  ;;  %v1221_v40 = vrot.slane %v1216_v30, 4 }
 0x123   : > { %v1200_v4 = vsel %vm1199_vm10, %v1198_v59, %v1197_v38  ;;  %v1224_v44 = vsel %vm1199_vm10, %v1221_v40, %v1216_v30 }
 0x124   : > { %v1267_v62 = vpop.permute.xlu1 %1266  ;;  %v1218_v3 = vpop.permute.xlu0 %1217 }
 0x125   : > { %1275 = vst.msk [vmem:[#allocation2 + $0x74] sm:$0x3] %vm1251_vm15, %v1267_v62  ;;  %v1222_v33 = vrot.slane %v1218_v3, 4 }
 0x127   : > { %v1225_v36 = vsel %vm1199_vm10, %v1222_v33, %v1218_v3  ;;  %vm1419_vm10 = vcmask 585026  }
 0x128   : > { %v1123_v45 = vpop.permute.xlu1 %1122  ;;  %v1452_v25 = vpop.permute.xlu0 %1451 }
 0x129   : > { %1126 = vst.msk [vmem:[#allocation2 + $0x18] sm:$0x3] %vm1125_vm12, %v1123_v45  ;;  %vm1230_vm12 = vcmask 1044386  }
 0x12a   : > { %1460 = vst.msk [vmem:[#allocation2 + $0x78] sm:$0x3] %vm13618_vm9, %v1452_v25  ;;  %vm1236_vm9 = vmor %vm1235_vm4, %vm1234_vm14  ;;  %vm1382_vm4 = vcmask 289826   ;;  %vm1273_vm14 = vcmask 453824  }
 0x12b   : > { %1512 = vst.msk [vmem:[#allocation2 + $0x78] sm:$0x33] %vm11456_vm11, %v1500_v32  ;;  %vm1232_vm1 = vmor %vm1231_vm0, %vm1230_vm12  ;;  %vm1525_vm0 = vcmask 418976   ;;  %vm1508_vm12 = vcmask 1044352  }
 0x12c   : > { %v1139_v35 = vpop.permute.xlu1 %1138  ;;  %v1137_v37 = vpop.permute.xlu0 %1136 }
 0x12d   : > { %1148 = vst.msk [vmem:[#allocation2 + $0x44] sm:$0xf] %vm1147_vm6, %v1139_v35  ;;  %vm1184_vm6 = vcmask 913024  }
 0x12e   : > { %1146 = vst.msk [vmem:[#allocation2 + $0x18] sm:$0xc] %vm1145_vm8, %v1137_v37  ;;  %vm1182_vm8 = vcmask 913026  }
 0x130   : > { %v1160_v12 = vpop.permute.xlu1 %1159  ;;  %v1304_v17 = vpop.permute.xlu0 %1303 }
 0x131   : > { %1163 = vst.msk [vmem:[#allocation2 + $0x18] sm:$0x3] %vm1162_vm7, %v1160_v12  ;;  %vm1325_vm7 = vcmask 1042176  }
 0x132   : > { %1205 = vst.msk [vmem:[#allocation2 + $0x18] sm:$0x33] %vm11412_vm2, %v1200_v4  ;;  %vm1384_vm2 = vcmask 289824  }
 0x133   : > { %1312 = vst.msk [vmem:[#allocation2 + $0x74] sm:$0x3] %vm1288_vm13, %v1304_v17 }
 0x134   : > { %v1176_v41 = vpop.permute.xlu1 %1175  ;;  %v1174_v42 = vpop.permute.xlu0 %1173 }
 0x135   : > { %1185 = vst.msk [vmem:[#allocation2 + $0x44] sm:$0xf] %vm1184_vm6, %v1176_v41  ;;  %vm1509_vm6 = vcmask 130052  }
 0x136   : > { %1183 = vst.msk [vmem:[#allocation2 + $0x18] sm:$0xc] %vm1182_vm8, %v1174_v42  ;;  %vm13651_vm8 = vcmask 916480  }
 0x137   : > { %1237 = vst.msk [vmem:[#allocation2 + $0x44] sm:$0xff] %vm1236_vm9, %v1225_v36  ;;  %vm1271_vm9 = vcmask 453826  }
 0x138   : > { %1233 = vst.msk [vmem:[#allocation2 + $0x18] sm:$0xcc] %vm1232_vm1, %v1224_v44  ;;  %v1360_v46 = vpop.permute.xlu1 %1359  ;;  %v1341_v18 = vpop.permute.xlu0 %1340  ;;  %vm1421_vm1 = vcmask 585024  }
 0x139   : > { %1363 = vst.msk [vmem:[#allocation2 + $0x20] sm:$0x3] %vm1362_vm5, %v1360_v46  ;;  %vm13620_vm5 = vcmask 714176  }
 0x13a   : > { %1349 = vst.msk [vmem:[#allocation2 + $0x74] sm:$0x3] %vm1325_vm7, %v1341_v18 }
 0x13c   : > { %v1376_v43 = vpop.permute.xlu1 %1375  ;;  %v1374_v13 = vpop.permute.xlu0 %1373 }
 0x13d   : > { %1385 = vst.msk [vmem:[#allocation2 + $0x4c] sm:$0xf] %vm1384_vm2, %v1376_v43  ;;  %vm1504_vm2 = vcmask 1044354  }
 0x13e   : > { %1383 = vst.msk [vmem:[#allocation2 + $0x20] sm:$0xc] %vm1382_vm4, %v1374_v13  ;;  %vm1505_vm4 = vcmask 130054  }
 0x13f   : > { %v11506_v33 = vld [vmem:[#allocation2 + $0x18] ss:$44 sps:$4 sm:$0xff]  }
 0x140   : > { %v1490_v52 = vpop.permute.xlu1 %1489  ;;  %v1471_v19 = vpop.permute.xlu0 %1470 }
 0x141   : > { %v1637_v47 = vld [vmem:[#allocation2 + $0x70] sm:$0x33]  ;;  %v1472_v20 = vrot.slane %v1471_v19, 4  ;;  %v1495_v34 = vrot.slane %v1490_v52, 4 }
 0x142   : > { %v11474_v49 = vcombine.high %v1637_v47, %v1637_v47  ;;  %v11476_v50 = vcombine.low %v1637_v47, %v1637_v47 }
 0x143   : > { %v1474_v39 = vsel %vm13651_vm8, %v1472_v20, %v1471_v19 }
 0x144   : > { %v1541_v56 = vpop.permute.xlu1 %1540  ;;  %1741 = vrot.lane.b32.xlu0 %v11474_v49, %s13621_s24  ;;  %1739 = vrot.lane.b32.xlu1 %v11476_v50, %s13621_s24  ;;  %v1492_v29 = vpop.permute.xlu0 %1491 }
 0x145   : > { %1549 = vst.msk [vmem:[#allocation2 + $0x7c] sm:$0x3] %vm1525_vm0, %v1541_v56  ;;  %v1496_v10 = vrot.slane %v1492_v29, 4 }
 0x148   : > { %v1411_v58 = vpop.permute.xlu1 %1410  ;;  %1717 = vrot.lane.b32.xlu0 %v11483_v11, %s13621_s24  ;;  %v1397_v60 = vpop.permute.xlu0 %1396 }
 0x149   : > { %1420 = vst.msk [vmem:[#allocation2 + $0x20] sm:$0xc] %vm1419_vm10, %v1411_v58  ;;  %vm1458_vm10 = vcmask 880224  }
 0x14a   : > { %1400 = vst.msk [vmem:[#allocation2 + $0x20] sm:$0x3] %vm1399_vm3, %v1397_v60  ;;  %vm13652_vm3 = vcmask 878176  }
 0x14c   : > { %v1578_v61 = vpop.permute.xlu1 %1577  ;;  %v1413_v63 = vpop.permute.xlu0 %1412 }
 0x14d   : > { %1586 = vst.msk [vmem:[#allocation2 + $0x7c] sm:$0x3] %vm13620_vm5, %v1578_v61  ;;  %vm13653_vm5 = vmmov %vm13651_vm8 }
 0x14e   : > { %1422 = vst.msk [vmem:[#allocation2 + $0x4c] sm:$0xf] %vm1421_vm1, %v1413_v63  ;;  %vm1456_vm1 = vcmask 880226   ;;  %v1499_v16 = vsel %vm13653_vm5, %v1496_v10, %v1492_v29  ;;  %vm13654_vm8 = vmmov %vm13653_vm5  ;;  %vm1345_vm5 = vcmask 1044226  }
 0x14f   : > { %v1498_v24 = vsel %vm13654_vm8, %v1495_v34, %v1490_v52 }
 0x150   : > { %v1263_v14 = vpop.permute.xlu1 %1262  ;;  %v1249_v6 = vpop.permute.xlu0 %1248 }
 0x151   : > { %1272 = vst.msk [vmem:[#allocation2 + $0x1c] sm:$0xc] %vm1271_vm9, %v1263_v14  ;;  %vm1506_vm9 = vmor %vm1505_vm4, %vm1504_vm2  ;;  %vm1582_vm2 = vcmask 716226   ;;  %vm1621_vm4 = vcmask 1011424  }
 0x152   : > { %1252 = vst.msk [vmem:[#allocation2 + $0x1c] sm:$0x3] %vm1251_vm15, %v1249_v6  ;;  %vm1510_vm15 = vmor %vm1509_vm6, %vm1508_vm12  ;;  %vm1347_vm12 = vcmask 1044224   ;;  %vm1545_vm6 = vcmask 421026   ;;  %v11549_v6 = vld [vmem:[%s13594_s2 + $0x4] sm:$0xf] }
 0x154   : > { %v1434_v9 = vpop.permute.xlu1 %1433  ;;  %v1265_v1 = vpop.permute.xlu0 %1264 }
 0x155   : > { %1437 = vst.msk [vmem:[#allocation2 + $0x20] sm:$0x3] %vm13652_vm3, %v1434_v9  ;;  %vm1599_vm3 = vcmask 1009376  }
 0x156   : > { %1479 = vst.msk [vmem:[#allocation2 + $0x20] sm:$0x33] %vm11456_vm11, %v1474_v39  ;;  %vm1310_vm11 = vcmask 749024  }
 0x157   : > { %1274 = vst.msk [vmem:[#allocation2 + $0x48] sm:$0xf] %vm1273_vm14, %v1265_v1  ;;  %vm1308_vm14 = vcmask 749026  }
 0x158   : > { %v1450_v15 = vpop.permute.xlu1 %1449  ;;  %v1448_v21 = vpop.permute.xlu0 %1447 }
 0x159   : > { %1459 = vst.msk [vmem:[#allocation2 + $0x4c] sm:$0xf] %vm1458_vm10, %v1450_v15  ;;  %vm1619_vm10 = vcmask 1011426  }
 0x15a   : > { %1457 = vst.msk [vmem:[#allocation2 + $0x20] sm:$0xc] %vm1456_vm1, %v1448_v21  ;;  %vm1747_vm1 = vcmask 293888  }
 0x15b   : > { %1511 = vst.msk [vmem:[#allocation2 + $0x4c] sm:$0xff] %vm1510_vm15, %v1499_v16  ;;  %vm13656_vm15 = vcmask 1041408  }
 0x15c   : > { %1507 = vst.msk [vmem:[#allocation2 + $0x20] sm:$0xcc] %vm1506_vm9, %v1498_v24  ;;  %v1286_v26 = vpop.permute.xlu1 %1285  ;;  %v1615_v30 = vpop.permute.xlu0 %1614  ;;  %vm13657_vm9 = vmmov %vm13656_vm15 }
 0x15d   : > { %1289 = vst.msk [vmem:[#allocation2 + $0x1c] sm:$0x3] %vm1288_vm13, %v1286_v26  ;;  %vm1547_vm13 = vcmask 421024   ;;  %vm13658_vm8 = vmmov %vm13657_vm9 }
 0x15e   : > { %1623 = vst.msk [vmem:[#allocation2 + $0x7c] sm:$0x3] %vm1599_vm3, %v1615_v30 }
 0x160   : > { %v1302_v38 = vpop.permute.xlu1 %1301  ;;  %v1300_v62 = vpop.permute.xlu0 %1299 }
 0x161   : > { %1311 = vst.msk [vmem:[#allocation2 + $0x48] sm:$0xf] %vm1310_vm11, %v1302_v38  ;;  %vm1775_vm11 = vcmask 162816  }
 0x162   : > { %1309 = vst.msk [vmem:[#allocation2 + $0x1c] sm:$0xc] %vm1308_vm14, %v1300_v62 }
 0x163   : > { %v11523_v19 = vld [vmem:[#allocation2 + $0x20] ss:$44 sps:$4 sm:$0xff]  }
 0x164   : > { %v1337_v3 = vpop.permute.xlu1 %1336  ;;  %v1323_v31 = vpop.permute.xlu0 %1322 }
 0x165   : > { %1346 = vst.msk [vmem:[#allocation2 + $0x1c] sm:$0xc] %vm1345_vm5, %v1337_v3  ;;  %v1638_v45 = vld [vmem:[#allocation2 + $0x78] sm:$0x33] }
 0x166   : > { %1326 = vst.msk [vmem:[#allocation2 + $0x1c] sm:$0x3] %vm1325_vm7, %v1323_v31  ;;  %v11499_v53 = vcombine.low %v1638_v45, %v1638_v45  ;;  %vm13655_vm7 = vcmask 714176   ;;  %v11514_v41 = vcombine.high %v1638_v45, %v1638_v45  ;;  %v2950_v45 = vld [vmem:[#allocation2 + $0x64] sm:$0x33] }
 0x168   : > { %v1523_v25 = vpop.permute.xlu1 %1522  ;;  %1743 = vrot.lane.b32.xlu1 %v11499_v53, %s13621_s24  ;;  %v1339_v32 = vpop.permute.xlu0 %1338 }
 0x169   : > { %1526 = vst.msk [vmem:[#allocation2 + $0x24] sm:$0x3] %vm1525_vm0, %v1523_v25  ;;  %vm1584_vm0 = vcmask 716224  }
 0x16a   : > { %1348 = vst.msk [vmem:[#allocation2 + $0x48] sm:$0xf] %vm1347_vm12, %v1339_v32 }
 0x16c   : > { %v1539_v35 = vpop.permute.xlu1 %1538  ;;  %v1537_v59 = vpop.permute.xlu0 %1536  ;;  %1719 = vrot.lane.b32.xlu1 %v11506_v33, %s13621_s24 }
 0x16d   : > { %1548 = vst.msk [vmem:[#allocation2 + $0x50] sm:$0xf] %vm1547_vm13, %v1539_v35 }
 0x16e   : > { %1546 = vst.msk [vmem:[#allocation2 + $0x24] sm:$0xc] %vm1545_vm6, %v1537_v59  ;;  %v11696_v59 = vcombine.low %v2950_v45, %v2950_v45 }
 0x170   : > { %v1574_v37 = vpop.permute.xlu1 %1573  ;;  %v1560_v12 = vpop.permute.xlu0 %1559  ;;  %1723 = vrot.lane.b32.xlu1 %v11523_v19, %s13621_s24 }
 0x171   : > { %1583 = vst.msk [vmem:[#allocation2 + $0x24] sm:$0xc] %vm1582_vm2, %v1574_v37  ;;  %v11504_v4 = vld [vmem:[#allocation2 + $0x1c] ss:$44 sps:$4 sm:$0xff]   ;;  %vm10655_vm2 = vmmov 0  }
 0x172   : > { %1563 = vst.msk [vmem:[#allocation2 + $0x24] sm:$0x3] %vm13655_vm7, %v1560_v12  ;;  %1721 = vrot.lane.b32.xlu0 %v11504_v4, %s13621_s24  ;;  %vm2051_vm7 = vcmask 302080  }
 0x174   : > { %v1597_v17 = vpop.permute.xlu1 %1596  ;;  %v1576_v40 = vpop.permute.xlu0 %1575  ;;  %2031 = vrot.lane.b32.xlu1 %v11382_v48, %s10651_s14 }
 0x175   : > { %1600 = vst.msk [vmem:[#allocation2 + $0x24] sm:$0x3] %vm1599_vm3, %v1597_v17  ;;  %vm13659_vm3 = vmmov %vm13658_vm8 }
 0x176   : > { %1585 = vst.msk [vmem:[#allocation2 + $0x50] sm:$0xf] %vm1584_vm0, %v1576_v40  ;;  %1745 = vrot.lane.b32.xlu0 %v11514_v41, %s13621_s24  ;;  %vm13660_vm14 = vmmov %vm13659_vm3 }
 0x177   : > { %vm13661_vm5 = vmmov %vm13659_vm3 }
 0x178   : > { %v1613_v36 = vpop.permute.xlu1 %1612  ;;  %v1611_v42 = vpop.permute.xlu0 %1610  ;;  %2035 = vrot.lane.b32.xlu1 %v11396_v7, %s10651_s14  ;;  %vm13662_vm12 = vmmov %vm13659_vm3 }
 0x179   : > { %1622 = vst.msk [vmem:[#allocation2 + $0x50] sm:$0xf] %vm1621_vm4, %v1613_v36  ;;  %vm13663_vm13 = vmmov %vm13659_vm3  ;;  %v11718_v36 = vcombine.high %v2950_v45, %v2950_v45 }
 0x17a   : > { %1620 = vst.msk [vmem:[#allocation2 + $0x24] sm:$0xc] %vm1619_vm10, %v1611_v42  ;;  %2033 = vrot.lane.b32.xlu0 %v11379_v27, %s10651_s14  ;;  %vm13664_vm6 = vmmov %vm13659_vm3 }
 0x17b   : > { %vm13665_vm0 = vmmov %vm13659_vm3 }
 0x17c   : > { %v1730_v44 = vpop.permute.xlu1 %1729  ;;  %v1728_v46 = vpop.permute.xlu0 %1727  ;;  %2013 = vrot.lane.b32.xlu1 %v11416_v2, %s10651_s14  ;;  %vm13666_vm4 = vmmov %vm13665_vm0 }
 0x17d   : > { %v1757_v43 = vsel %vm1747_vm1, %v1728_v46, %v1730_v44  ;;  %v2951_v46 = vld [vmem:[#allocation2 + $0x6c] sm:$0x33]  ;;  %vm13667_vm10 = vmmov %vm13665_vm0 }
 0x17e   : > { %v1781_v51 = vsel %vm13657_vm9, %v1757_v43, 0  ;;  %vm13670_vm9 = vmmov %vm13665_vm0 }
 0x180   : > { %v1734_v18 = vpop.permute.xlu1 %1733  ;;  %v1732_v13 = vpop.permute.xlu0 %1731  ;;  %2011 = vrot.lane.b32.xlu1 %v11432_v5, %s10651_s14 }
 0x181   : > { %v11521_v52 = vld [vmem:[#allocation2 + $0x24] ss:$44 sps:$4 sm:$0xff]   ;;  %v1758_v47 = vsel %vm1747_vm1, %v1730_v44, %v1732_v13  ;;  %v1759_v57 = vsel %vm1747_vm1, %v1732_v13, %v1734_v18  ;;  %v11728_v13 = vcombine.high %v2951_v46, %v2951_v46 }
 0x182   : > { %9824 = vmatprep.subr.msk.bf16.mxu0 %vm13656_vm15, %v1758_v47  ;;  %1725 = vrot.lane.b32.xlu0 %v11521_v52, %s13621_s24  ;;  %v1787_v60 = vsel %vm13659_vm3, %v1759_v57, 0  ;;  %s10653_s24 = smov 1   ;;  %vm13669_vm15 = vmmov %vm13665_vm0 }
 0x183   : > { %1820 = vmatpush1.bf16.msra.mxu0 %v1781_v51  ;;  %v11740_v51 = vld [vmem:[%s13594_s2] sm:$0xf]  ;;  %vm13672_vm3 = vmmov %vm13665_vm0 }
 0x184   : > { %v1710_v56 = vpop.permute.xlu1 %1709  ;;  %v1736_v29 = vpop.permute.xlu0 %1735  ;;  %2039 = vrot.lane.b32.xlu1 %v11422_v8, %s10651_s14 }
 0x185   : > { %v1760_v58 = vsel %vm1747_vm1, %v1734_v18, %v1736_v29 }
 0x186   : > { %9826 = vmatprep.subr.msk.bf16.mxu1 %vm13658_vm8, %v1760_v58  ;;  %2015 = vrot.lane.b32.xlu0 %v11434_v28, %s10651_s14  ;;  %vm13671_vm8 = vmmov %vm13665_vm0 }
 0x187   : > { %1861 = vmatpush1.bf16.msra.mxu1 %v1787_v60  ;;  %v11745_v60 = vld [vmem:[#allocation2 + $0x4] ss:$44 sps:$4 sm:$0xff]  }
 0x188   : > { %v1708_v61 = vpop.permute.xlu1 %1707  ;;  %v1712_v63 = vpop.permute.xlu0 %1711  ;;  %2043 = vrot.lane.b32.xlu1 %v11476_v50, %s10651_s14 }
 0x189   : > { %v1749_v14 = vsel %vm1747_vm1, %v1710_v56, %v1712_v63  ;;  %v1748_v20 = vsel %vm1747_vm1, %v1708_v61, %v1710_v56 }
 0x18a   : > { %1821 = vmatprep.subr.bf16.mxu0 %v1749_v14  ;;  %2037 = vrot.lane.b32.xlu0 %v11393_v55, %s10651_s14 }
 0x18b   : > { %1822 = vmatpush1.bf16.msra.mxu0 %v1748_v20 }
 0x18c   : > { %v1714_v9 = vpop.permute.xlu0 %1713  ;;  %v11551_v39 = vpop.permute.xlu1 %1715  ;;  %2019 = vrot.lane.b32.xlu1 %v11445_v23, %s10651_s14 }
 0x18d   : > { %v1751_v10 = vsel %vm1747_vm1, %v1714_v9, %v11551_v39  ;;  %v1750_v1 = vsel %vm1747_vm1, %v1712_v63, %v1714_v9 }
 0x18e   : > { %2041 = vrot.lane.b32.xlu0 %v11451_v0, %s10651_s14  ;;  %9825 = vmatmul.mubr.msk.bf16.vlgmr.msra.gmra.mxu0 %vm1775_vm11, %v11549_v6 }
 0x18f   : > { %1862 = vmatprep.subr.bf16.mxu1 %v1751_v10  ;;  %1921 = vmatprep.mubr.bf16.mxu0 %v11295_v54  ;;  %v2952_v10 = vld [vmem:[#allocation2 + $0x74] sm:$0x33] }
 0x190   : > { %1863 = vmatpush1.bf16.msra.mxu1 %v1750_v1  ;;  %2023 = vrot.lane.b32.xlu1 %v11506_v33, %s10651_s14  ;;  %v1738_v34 = vpop.permute.xlu0 %1737 }
 0x191   : > { %v1761_v15 = vsel %vm1747_vm1, %v1736_v29, %v1738_v34  ;;  %v11743_v29 = vld [vmem:[#allocation2 + $0x10] ss:$44 sps:$4 sm:$0xff]  }
 0x192   : > { %2017 = vrot.lane.b32.xlu0 %v11442_v22, %s10651_s14  ;;  %v1793_v24 = vsel %vm13661_vm5, %v1761_v15, 0  ;;  %vm2355_vm5 = vcmask 285696  }
 0x193   : > { %9827 = vmatmul.mubr.msk.bf16.vlgmr.msra.gmra.mxu1 %vm1775_vm11, %v11549_v6 }
 0x194   : > { %1962 = vmatprep.mubr.bf16.mxu1 %v11295_v54  ;;  %2047 = vrot.lane.b32.xlu1 %v11499_v53, %s10651_s14 }
 0x196   : > { %2021 = vrot.lane.b32.xlu0 %v11483_v11, %s10651_s14 }
 0x198   : > { %2025 = vrot.lane.b32.xlu1 %v11504_v4, %s10651_s14 }
 0x19a   : > { %2045 = vrot.lane.b32.xlu0 %v11474_v49, %s10651_s14 }
 0x19c   : > { %2029 = vrot.lane.b32.xlu1 %v11521_v52, %s10651_s14 }
 0x19e   : > { %2049 = vrot.lane.b32.xlu0 %v11514_v41, %s10651_s14 }
 0x1a0   : > { %2337 = vrot.lane.b32.xlu1 %v11379_v27, %s10652_s21 }
 0x1a2   : > { %2027 = vrot.lane.b32.xlu0 %v11523_v19, %s10651_s14 }
 0x1a4   : > { %2341 = vrot.lane.b32.xlu1 %v11393_v55, %s10652_s21 }
 0x1a6   : > { %2335 = vrot.lane.b32.xlu0 %v11382_v48, %s10652_s21 }
 0x1a8   : > { %2317 = vrot.lane.b32.xlu1 %v11416_v2, %s10652_s21 }
 0x1aa   : > { %2339 = vrot.lane.b32.xlu0 %v11396_v7, %s10652_s21 }
 0x1ac   : > { %2315 = vrot.lane.b32.xlu1 %v11432_v5, %s10652_s21 }
 0x1ae   : > { %2343 = vrot.lane.b32.xlu0 %v11422_v8, %s10652_s21 }
 0x1b0   : > { %2323 = vrot.lane.b32.xlu1 %v11445_v23, %s10652_s21 }
 0x1b2   : > { %2319 = vrot.lane.b32.xlu0 %v11434_v28, %s10652_s21 }
 0x1b4   : > { %2347 = vrot.lane.b32.xlu1 %v11476_v50, %s10652_s21 }
 0x1b6   : > { %v1740_v16 = vpop.permute.xlu1 %1739  ;;  %2321 = vrot.lane.b32.xlu0 %v11442_v22, %s10652_s21  ;;  %v1742_v26 = vpop.permute.xlu0 %1741 }
 0x1b7   : > { %v1762_v21 = vsel %vm1747_vm1, %v1738_v34, %v1740_v16  ;;  %v1763_v30 = vsel %vm1747_vm1, %v1740_v16, %v1742_v26  ;;  %v11769_v16 = vcombine.high %v2952_v10, %v2952_v10 }
 0x1b8   : > { %9828 = vmatprep.subr.msk.bf16.mxu0 %vm13660_vm14, %v1762_v21  ;;  %2351 = vrot.lane.b32.xlu1 %v11499_v53, %s10652_s21  ;;  %v1799_v62 = vsel %vm13663_vm13, %v1763_v30, 0  ;;  %vm13673_vm14 = vmmov %vm13665_vm0 }
 0x1b9   : > { %1902 = vmatpush1.bf16.msra.mxu0 %v1793_v24  ;;  %v11771_v24 = vcombine.low %v2952_v10, %v2952_v10  ;;  %vm13675_vm13 = vmmov %vm13665_vm0 }
 0x1ba   : > { %2345 = vrot.lane.b32.xlu0 %v11451_v0, %s10652_s21 }
 0x1bc   : > { %2327 = vrot.lane.b32.xlu1 %v11506_v33, %s10652_s21 }
 0x1be   : > { %2349 = vrot.lane.b32.xlu0 %v11474_v49, %s10652_s21 }
 0x1c0   : > { %2331 = vrot.lane.b32.xlu1 %v11523_v19, %s10652_s21 }
 0x1c2   : > { %2325 = vrot.lane.b32.xlu0 %v11483_v11, %s10652_s21 }
 0x1c4   : > { %2648 = vrot.lane.b32.xlu1 %v11382_v48, %s10653_s24  ;;  %v1718_v48 = vpop.permute.xlu0 %1717 }
 0x1c6   : > { %2329 = vrot.lane.b32.xlu0 %v11504_v4, %s10652_s21 }
 0x1c8   : > { %2652 = vrot.lane.b32.xlu1 %v11396_v7, %s10653_s24 }
 0x1ca   : > { %2353 = vrot.lane.b32.xlu0 %v11514_v41, %s10652_s21 }
 0x1cc   : > { %2630 = vrot.lane.b32.xlu1 %v11416_v2, %s10653_s24 }
 0x1ce   : > { %2650 = vrot.lane.b32.xlu0 %v11379_v27, %s10653_s24 }
 0x1d0   : > { %2628 = vrot.lane.b32.xlu1 %v11432_v5, %s10653_s24 }
 0x1d2   : > { %2333 = vrot.lane.b32.xlu0 %v11521_v52, %s10652_s21 }
 0x1d4   : > { %2656 = vrot.lane.b32.xlu1 %v11422_v8, %s10653_s24 }
 0x1d6   : > { %2632 = vrot.lane.b32.xlu0 %v11434_v28, %s10653_s24 }
 0x1d8   : > { %2660 = vrot.lane.b32.xlu1 %v11476_v50, %s10653_s24 }
 0x1da   : > { %v1744_v38 = vpop.permute.xlu1 %1743  ;;  %2654 = vrot.lane.b32.xlu0 %v11393_v55, %s10653_s24 }
 0x1db   : > { %v1764_v27 = vsel %vm1747_vm1, %v1742_v26, %v1744_v38 }
 0x1dc   : > { %9830 = vmatprep.subr.msk.bf16.mxu1 %vm13662_vm12, %v1764_v27  ;;  %2636 = vrot.lane.b32.xlu1 %v11445_v23, %s10653_s24  ;;  %v11780_v27 = vld [vmem:[#allocation2 + $0x20] ss:$44 sps:$4 sm:$0xff]   ;;  %vm13674_vm12 = vmmov %vm13665_vm0 }
 0x1dd   : > { %1943 = vmatpush1.bf16.msra.mxu1 %v1799_v62 }
 0x1de   : > { %2658 = vrot.lane.b32.xlu0 %v11451_v0, %s10653_s24  ;;  %v1720_v28 = vpop.permute.xlu1 %1719  ;;  %v1752_v0 = vsel %vm1747_vm1, %v11551_v39, %v1718_v48  ;;  %v11760_v39 = vcombine.low %v2951_v46, %v2951_v46 }
 0x1df   : > { %v1753_v7 = vsel %vm1747_vm1, %v1718_v48, %v1720_v28  ;;  %v11782_v48 = vld [vmem:[#allocation2 + $0x14] ss:$44 sps:$4 sm:$0xff]  }
 0x1e0   : > { %1903 = vmatprep.subr.bf16.mxu0 %v1753_v7  ;;  %2640 = vrot.lane.b32.xlu1 %v11506_v33, %s10653_s24  ;;  %v11705_v33 = vld [vmem:[#allocation2 + $0xc] ss:$44 sps:$4 sm:$0xff]  }
 0x1e1   : > { %1904 = vmatpush1.bf16.msra.mxu0 %v1752_v0 }
 0x1e2   : > { %2634 = vrot.lane.b32.xlu0 %v11442_v22, %s10653_s24  ;;  %v10654_v22 = vmov 0.0   ;;  %v1724_v31 = vpop.permute.xlu1 %1723 }
 0x1e3   : > { %10259 = vmatprep.subr.bf16.mxu0 %v10654_v22 }
 0x1e4   : > { %v1722_v55 = vpop.permute.xlu0 %1721  ;;  %9829 = vmatmul.mubr.msk.bf16.vlgmr.msra.gmra.mxu0 %vm1775_vm11, %v11549_v6  ;;  %2664 = vrot.lane.b32.xlu1 %v11499_v53, %s10653_s24 }
 0x1e5   : > { %10263 = vmatprep.mubr.msk.bf16.mxu0 %vm10655_vm2, %v10654_v22  ;;  %v1755_v25 = vsel %vm1747_vm1, %v1722_v55, %v1724_v31  ;;  %v1754_v32 = vsel %vm1747_vm1, %v1720_v28, %v1722_v55  ;;  %v3585_v55 = vld [vmem:[#allocation2 + $0x5c] sm:$0x33] }
 0x1e6   : > { %2638 = vrot.lane.b32.xlu0 %v11483_v11, %s10653_s24  ;;  %1944 = vmatprep.subr.bf16.mxu1 %v1755_v25  ;;  %v2032_v37 = vpop.permute.xlu1 %2031 }
 0x1e7   : > { %1945 = vmatpush1.bf16.msra.mxu1 %v1754_v32 }
 0x1e8   : > { %v1746_v2 = vpop.permute.xlu0 %1745  ;;  %2642 = vrot.lane.b32.xlu1 %v11504_v4, %s10653_s24 }
 0x1e9   : > { %v1765_v5 = vsel %vm1747_vm1, %v1744_v38, %v1746_v2 }
 0x1ea   : > { %v1805_v3 = vsel %vm13664_vm6, %v1765_v5, 0  ;;  %2662 = vrot.lane.b32.xlu0 %v11474_v49, %s10653_s24  ;;  %v2949_v49 = vld [vmem:[#allocation2 + $0x5c] sm:$0x33]  ;;  %9831 = vmatmul.mubr.msk.bf16.vlgmr.msra.gmra.mxu1 %vm1775_vm11, %v11549_v6  ;;  %v2036_v17 = vpop.permute.xlu1 %2035  ;;  %v11791_v5 = vcombine.low %v3585_v55, %v3585_v55  ;;  %vm13676_vm6 = vmmov %vm13665_vm0 }
 0x1eb   : > { %10260 = vmatpush3.bf16.msra.mxu0 %v1805_v3  ;;  %v11685_v11 = vcombine.low %v2949_v49, %v2949_v49  ;;  %2141 = vmatprep.mubr.bf16.mxu1 %v11295_v54  ;;  %v11720_v44 = vcombine.high %v2949_v49, %v2949_v49  ;;  %v3586_v49 = vld [vmem:[#allocation2 + $0x64] sm:$0x33] }
 0x1ec   : > { %10261 = vmatprep.subr.bf16.mxu0 %v10654_v22  ;;  %v2034_v8 = vpop.permute.xlu0 %2033  ;;  %2646 = vrot.lane.b32.xlu1 %v11521_v52, %s10653_s24  ;;  %v11810_v32 = vcombine.low %v3586_v49, %v3586_v49 }
 0x1ed   : > { %v2061_v53 = vsel %vm2051_vm7, %v2032_v37, %v2034_v8  ;;  %v2062_v4 = vsel %vm2051_vm7, %v2034_v8, %v2036_v17  ;;  %v11795_v8 = vld [vmem:[#allocation2 + $0x1c] ss:$44 sps:$4 sm:$0xff]  }
 0x1ee   : > { %2666 = vrot.lane.b32.xlu0 %v11514_v41, %s10653_s24  ;;  %v2083_v40 = vsel %vm13665_vm0, %v2061_v53, 0  ;;  %9833 = vmatprep.subr.msk.bf16.mxu1 %vm13666_vm4, %v2062_v4  ;;  %v2014_v42 = vpop.permute.xlu1 %2013  ;;  %v11812_v37 = vld [vmem:[#allocation2 + $0x7c] ss:$0 sps:$4 sm:$0x33]   ;;  %v3587_v53 = vld [vmem:[#allocation2 + $0x6c] sm:$0x33]  ;;  %vm13677_vm4 = vmmov %vm13665_vm0 }
 0x1ef   : > { %2122 = vmatpush1.bf16.msra.mxu1 %v2083_v40  ;;  %v11823_v40 = vcombine.low %v3587_v53, %v3587_v53  ;;  %v11858_v10 = vcombine.high %v3587_v53, %v3587_v53 }
 0x1f0   : > { %3290 = vrot.lane.b32.xlu1 %v11720_v44, %s10656_s10 }
 0x1f2   : > { %2644 = vrot.lane.b32.xlu0 %v11523_v19, %s10653_s24  ;;  %v2012_v52 = vpop.permute.xlu1 %2011  ;;  %v11730_v19 = vld [vmem:[#allocation2 + $0x8] ss:$44 sps:$4 sm:$0xff]   ;;  %s10662_s24 = smov 70  }
 0x1f3   : > { %v2052_v47 = vsel %vm2051_vm7, %v2012_v52, %v2014_v42  ;;  %v11834_v52 = vcombine.high %v3585_v55, %v3585_v55 }
 0x1f4   : > { %v1726_v50 = vpop.permute.xlu0 %1725  ;;  %3272 = vrot.lane.b32.xlu1 %v11730_v19, %s10656_s10 }
 0x1f5   : > { %v1756_v23 = vsel %vm1747_vm1, %v1724_v31, %v1726_v50  ;;  %vm13668_vm1 = vmmov %vm13665_vm0 }
 0x1f6   : > { %3288 = vrot.lane.b32.xlu0 %v11685_v11, %s10656_s10  ;;  %10262 = vmatpush3.bf16.msra.mxu0 %v1756_v23  ;;  %v2040_v58 = vpop.permute.xlu1 %2039 }
 0x1f8   : > { %v11694_v35 = vpop.permute.xlu0 %2015  ;;  %3270 = vrot.lane.b32.xlu1 %v11745_v60, %s10656_s10 }
 0x1f9   : > { %10264 = vmatmul.mubr.msk.bf16.vlgmr.msra.gmra.mxu0 %vm1775_vm11, %v11549_v6  ;;  %v2053_v18 = vsel %vm2051_vm7, %v2014_v42, %v11694_v35  ;;  %v11757_v6 = vld [vmem:[#allocation2 + $0x18] ss:$44 sps:$4 sm:$0xff]  }
 0x1fa   : > { %3292 = vrot.lane.b32.xlu0 %v11696_v59, %s10656_s10  ;;  %2182 = vmatprep.mubr.bf16.mxu0 %v11295_v54  ;;  %v2044_v9 = vpop.permute.xlu1 %2043  ;;  %v11825_v42 = vld [vmem:[#allocation2 + $0x24] ss:$44 sps:$4 sm:$0xff]  }
 0x1fb   : > { %2123 = vmatprep.subr.bf16.mxu1 %v2053_v18 }
 0x1fc   : > { %v2038_v12 = vpop.permute.xlu0 %2037  ;;  %2124 = vmatpush1.bf16.msra.mxu1 %v2052_v47  ;;  %3296 = vrot.lane.b32.xlu1 %v11760_v39, %s10656_s10 }
 0x1fd   : > { %v2063_v56 = vsel %vm2051_vm7, %v2036_v17, %v2038_v12  ;;  %v2064_v61 = vsel %vm2051_vm7, %v2038_v12, %v2040_v58 }
 0x1fe   : > { %3274 = vrot.lane.b32.xlu0 %v11705_v33, %s10656_s10  ;;  %9835 = vmatprep.subr.msk.bf16.mxu0 %vm13667_vm10, %v2064_v61  ;;  %v2089_v63 = vsel %vm13668_vm1, %v2063_v56, 0  ;;  %v2020_v21 = vpop.permute.xlu1 %2019  ;;  %vm13678_vm10 = vmmov %vm13665_vm0 }
 0x1ff   : > { %9834 = vmatmul.mubr.msk.bf16.vlgmr.msra.gmra.mxu1 %vm1775_vm11, %v11740_v51  ;;  %2163 = vmatpush1.bf16.msra.mxu0 %v2089_v63  ;;  %v11848_v63 = vcombine.high %v3586_v49, %v3586_v49  ;;  %vm13679_vm1 = vmmov %vm13665_vm0 }
 0x200   : > { %v2042_v41 = vpop.permute.xlu0 %2041  ;;  %2223 = vmatprep.mubr.bf16.mxu1 %v11295_v54  ;;  %3300 = vrot.lane.b32.xlu1 %v11771_v24, %s10656_s10 }
 0x201   : > { %v2065_v14 = vsel %vm2051_vm7, %v2040_v58, %v2042_v41  ;;  %v2066_v1 = vsel %vm2051_vm7, %v2042_v41, %v2044_v9 }
 0x202   : > { %3294 = vrot.lane.b32.xlu0 %v11718_v36, %s10656_s10  ;;  %9837 = vmatprep.subr.msk.bf16.mxu1 %vm13669_vm15, %v2066_v1  ;;  %v2095_v34 = vsel %vm13670_vm9, %v2065_v14, 0  ;;  %v2024_v62 = vpop.permute.xlu1 %2023  ;;  %vm13680_vm15 = vmmov %vm13665_vm0 }
 0x203   : > { %2204 = vmatpush1.bf16.msra.mxu1 %v2095_v34  ;;  %v3588_v34 = vld [vmem:[#allocation2 + $0x74] sm:$0x33]  ;;  %vm13681_vm9 = vmmov %vm13665_vm0 }
 0x204   : > { %v2018_v43 = vpop.permute.xlu0 %2017  ;;  %3278 = vrot.lane.b32.xlu1 %v11782_v48, %s10656_s10 }
 0x205   : > { %v2055_v26 = vsel %vm2051_vm7, %v2018_v43, %v2020_v21  ;;  %v2054_v30 = vsel %vm2051_vm7, %v11694_v35, %v2018_v43 }
 0x206   : > { %3298 = vrot.lane.b32.xlu0 %v11728_v13, %s10656_s10  ;;  %2164 = vmatprep.subr.bf16.mxu0 %v2055_v26  ;;  %v2048_v3 = vpop.permute.xlu1 %2047  ;;  %v11865_v26 = vcombine.high %v3588_v34, %v3588_v34 }
 0x207   : > { %2165 = vmatpush1.bf16.msra.mxu0 %v2054_v30 }
 0x208   : > { %v2022_v57 = vpop.permute.xlu0 %2021  ;;  %3282 = vrot.lane.b32.xlu1 %v11795_v8, %s10656_s10 }
 0x209   : > { %v2057_v28 = vsel %vm2051_vm7, %v2022_v57, %v2024_v62  ;;  %v2056_v7 = vsel %vm2051_vm7, %v2020_v21, %v2022_v57 }
 0x20a   : > { %3276 = vrot.lane.b32.xlu0 %v11743_v29, %s10656_s10  ;;  %2205 = vmatprep.subr.bf16.mxu1 %v2057_v28  ;;  %v2026_v35 = vpop.permute.xlu1 %2025 }
 0x20b   : > { %2206 = vmatpush1.bf16.msra.mxu1 %v2056_v7  ;;  %9836 = vmatmul.mubr.msk.bf16.vlgmr.msra.gmra.mxu0 %vm1775_vm11, %v11740_v51  ;;  %v2058_v17 = vsel %vm2051_vm7, %v2024_v62, %v2026_v35  ;;  %v11875_v62 = vld [vmem:[%s13594_s2 + $0x8] sm:$0xf] }
 0x20c   : > { %v2046_v20 = vpop.permute.xlu0 %2045  ;;  %10267 = vmatprep.subr.bf16.mxu1 %v10654_v22  ;;  %2264 = vmatprep.mubr.bf16.mxu0 %v11295_v54 }
 0x20d   : > { %v2067_v0 = vsel %vm2051_vm7, %v2044_v9, %v2046_v20  ;;  %v2068_v31 = vsel %vm2051_vm7, %v2046_v20, %v2048_v3  ;;  %3304 = vrot.lane.b32.xlu1 %v11812_v37, %s10656_s10 }
 0x20e   : > { %3280 = vrot.lane.b32.xlu0 %v11757_v6, %s10656_s10  ;;  %9839 = vmatprep.subr.msk.bf16.mxu0 %vm13671_vm8, %v2068_v31  ;;  %v2101_v45 = vsel %vm13672_vm3, %v2067_v0, 0  ;;  %v2030_v41 = vpop.permute.xlu1 %2029  ;;  %v3589_v31 = vld [vmem:[#allocation2 + $0x7c] sm:$0x33]  ;;  %vm2668_vm8 = vcmask 7168   ;;  %vm13682_vm3 = vmmov %vm13665_vm0 }
 0x20f   : > { %9838 = vmatmul.mubr.msk.bf16.vlgmr.msra.gmra.mxu1 %vm1775_vm11, %v11740_v51  ;;  %2245 = vmatpush1.bf16.msra.mxu0 %v2101_v45  ;;  %v11897_v53 = vcombine.high %v3589_v31, %v3589_v31 }
 0x210   : > { %v2050_v15 = vpop.permute.xlu0 %2049  ;;  %10271 = vmatprep.mubr.msk.bf16.mxu1 %vm10655_vm2, %v10654_v22 }
 0x211   : > { %v2069_v50 = vsel %vm2051_vm7, %v2048_v3, %v2050_v15  ;;  %3286 = vrot.lane.b32.xlu1 %v11825_v42, %s10656_s10 }
 0x212   : > { %3302 = vrot.lane.b32.xlu0 %v11769_v16, %s10656_s10  ;;  %v2107_v25 = vsel %vm13673_vm14, %v2069_v50, 0  ;;  %v2338_v43 = vpop.permute.xlu1 %2337  ;;  %v11887_v50 = vcombine.low %v3588_v34, %v3588_v34  ;;  %vm13683_vm14 = vmmov %vm13665_vm0 }
 0x213   : > { %10268 = vmatpush3.bf16.msra.mxu1 %v2107_v25 }
 0x214   : > { %v2028_v38 = vpop.permute.xlu0 %2027  ;;  %10269 = vmatprep.subr.bf16.mxu1 %v10654_v22 }
 0x215   : > { %v2059_v12 = vsel %vm2051_vm7, %v2026_v35, %v2028_v38  ;;  %v2060_v46 = vsel %vm2051_vm7, %v2028_v38, %v2030_v41  ;;  %3679 = vrot.lane.b32.xlu1 %v11834_v52, %s10657_s17 }
 0x216   : > { %3284 = vrot.lane.b32.xlu0 %v11780_v27, %s10656_s10  ;;  %2246 = vmatprep.subr.bf16.mxu0 %v2059_v12  ;;  %v2342_v61 = vpop.permute.xlu1 %2341  ;;  %s10658_s10 = smov 91  }
 0x217   : > { %2247 = vmatpush1.bf16.msra.mxu0 %v2058_v17  ;;  %10270 = vmatpush3.bf16.msra.mxu1 %v2060_v46  ;;  %v11901_v17 = vcombine.low %v3589_v31, %v3589_v31 }
 0x218   : > { %v2336_v2 = vpop.permute.xlu0 %2335 }
 0x219   : > { %v2365_v47 = vsel %vm2355_vm5, %v2336_v2, %v2338_v43  ;;  %3683 = vrot.lane.b32.xlu1 %v11848_v63, %s10657_s17 }
 0x21a   : > { %3677 = vrot.lane.b32.xlu0 %v11791_v5, %s10657_s17  ;;  %9840 = vmatmul.mubr.msk.bf16.vlgmr.msra.gmra.mxu0 %vm1775_vm11, %v11740_v51  ;;  %v2387_v57 = vsel %vm13675_vm13, %v2365_v47, 0  ;;  %v2318_v1 = vpop.permute.xlu1 %2317  ;;  %vm13685_vm13 = vmmov %vm13665_vm0 }
 0x21b   : > { %2445 = vmatprep.mubr.bf16.mxu0 %v11295_v54  ;;  %10272 = vmatmul.mubr.msk.bf16.vlgmr.msra.gmra.mxu1 %vm1775_vm11, %v11740_v51 }
 0x21c   : > { %v2340_v23 = vpop.permute.xlu0 %2339  ;;  %2486 = vmatprep.mubr.bf16.mxu1 %v11295_v54 }
 0x21d   : > { %v2366_v56 = vsel %vm2355_vm5, %v2338_v43, %v2340_v23  ;;  %v2367_v14 = vsel %vm2355_vm5, %v2340_v23, %v2342_v61  ;;  %3659 = vrot.lane.b32.xlu1 %v11730_v19, %s10657_s17 }
 0x21e   : > { %3681 = vrot.lane.b32.xlu0 %v11810_v32, %s10657_s17  ;;  %9843 = vmatprep.subr.msk.bf16.mxu0 %vm13674_vm12, %v2366_v56  ;;  %v2393_v20 = vsel %vm13665_vm0, %v2367_v14, 0  ;;  %v2316_v30 = vpop.permute.xlu1 %2315  ;;  %v11920_v14 = vld [vmem:[#allocation2 + $0x24] ss:$44 sps:$4 sm:$0xff]   ;;  %vm13684_vm12 = vmmov %vm13665_vm0 }
 0x21f   : > { %2426 = vmatpush1.bf16.msra.mxu0 %v2387_v57  ;;  %v2356_v38 = vsel %vm2355_vm5, %v2316_v30, %v2318_v1  ;;  %v11917_v57 = vld [vmem:[#allocation2 + $0x28] ss:$44 sps:$4 sm:$0xff]  }
 0x220   : > { %v2344_v4 = vpop.permute.xlu0 %2343 }
 0x221   : > { %v2368_v51 = vsel %vm2355_vm5, %v2342_v61, %v2344_v4  ;;  %3657 = vrot.lane.b32.xlu1 %v11745_v60, %s10657_s17 }
 0x222   : > { %3685 = vrot.lane.b32.xlu0 %v11823_v40, %s10657_s17  ;;  %9845 = vmatprep.subr.msk.bf16.mxu1 %vm13676_vm6, %v2368_v51  ;;  %v2324_v28 = vpop.permute.xlu1 %2323  ;;  %vm13686_vm6 = vmmov %vm13665_vm0 }
 0x223   : > { %2467 = vmatpush1.bf16.msra.mxu1 %v2393_v20 }
 0x224   : > { %v2320_v18 = vpop.permute.xlu0 %2319 }
 0x225   : > { %v2357_v15 = vsel %vm2355_vm5, %v2318_v1, %v2320_v18  ;;  %3665 = vrot.lane.b32.xlu1 %v11782_v48, %s10657_s17 }
 0x226   : > { %3661 = vrot.lane.b32.xlu0 %v11705_v33, %s10657_s17  ;;  %2427 = vmatprep.subr.bf16.mxu0 %v2357_v15  ;;  %v2348_v49 = vpop.permute.xlu1 %2347 }
 0x227   : > { %2428 = vmatpush1.bf16.msra.mxu0 %v2356_v38 }
 0x228   : > { %v2322_v58 = vpop.permute.xlu0 %2321 }
 0x229   : > { %v2359_v7 = vsel %vm2355_vm5, %v2322_v58, %v2324_v28  ;;  %v2358_v0 = vsel %vm2355_vm5, %v2320_v18, %v2322_v58  ;;  %3689 = vrot.lane.b32.xlu1 %v11887_v50, %s10657_s17 }
 0x22a   : > { %3663 = vrot.lane.b32.xlu0 %v11743_v29, %s10657_s17  ;;  %9844 = vmatmul.mubr.msk.bf16.vlgmr.msra.gmra.mxu0 %vm1775_vm11, %v11875_v62  ;;  %v2352_v12 = vpop.permute.xlu1 %2351 }
 0x22b   : > { %2468 = vmatprep.subr.bf16.mxu1 %v2359_v7  ;;  %2527 = vmatprep.mubr.bf16.mxu0 %v11295_v54 }
 0x22c   : > { %v2346_v9 = vpop.permute.xlu0 %2345  ;;  %2469 = vmatpush1.bf16.msra.mxu1 %v2358_v0 }
 0x22d   : > { %v2369_v2 = vsel %vm2355_vm5, %v2344_v4, %v2346_v9  ;;  %v2370_v45 = vsel %vm2355_vm5, %v2346_v9, %v2348_v49  ;;  %3693 = vrot.lane.b32.xlu1 %v11901_v17, %s10657_s17 }
 0x22e   : > { %3687 = vrot.lane.b32.xlu0 %v11858_v10, %s10657_s17  ;;  %9847 = vmatprep.subr.msk.bf16.mxu0 %vm13677_vm4, %v2370_v45  ;;  %v2399_v25 = vsel %vm13678_vm10, %v2369_v2, 0  ;;  %v2328_v18 = vpop.permute.xlu1 %2327  ;;  %vm13687_vm4 = vmmov %vm13665_vm0 }
 0x22f   : > { %2508 = vmatpush1.bf16.msra.mxu0 %v2399_v25  ;;  %9846 = vmatmul.mubr.msk.bf16.vlgmr.msra.gmra.mxu1 %vm1775_vm11, %v11875_v62  ;;  %vm13688_vm10 = vmmov %vm13665_vm0 }
 0x230   : > { %v2350_v21 = vpop.permute.xlu0 %2349  ;;  %2568 = vmatprep.mubr.bf16.mxu1 %v11295_v54 }
 0x231   : > { %v2371_v23 = vsel %vm2355_vm5, %v2348_v49, %v2350_v21  ;;  %v2372_v4 = vsel %vm2355_vm5, %v2350_v21, %v2352_v12  ;;  %3669 = vrot.lane.b32.xlu1 %v11795_v8, %s10657_s17 }
 0x232   : > { %3691 = vrot.lane.b32.xlu0 %v11865_v26, %s10657_s17  ;;  %9849 = vmatprep.subr.msk.bf16.mxu1 %vm13679_vm1, %v2372_v4  ;;  %v2405_v41 = vsel %vm13680_vm15, %v2371_v23, 0  ;;  %v2332_v61 = vpop.permute.xlu1 %2331  ;;  %vm13689_vm1 = vmmov %vm13665_vm0 }
 0x233   : > { %2549 = vmatpush1.bf16.msra.mxu1 %v2405_v41  ;;  %vm13690_vm15 = vmmov %vm13665_vm0 }
 0x234   : > { %v2326_v55 = vpop.permute.xlu0 %2325 }
 0x235   : > { %v2361_v43 = vsel %vm2355_vm5, %v2326_v55, %v2328_v18  ;;  %v2360_v47 = vsel %vm2355_vm5, %v2324_v28, %v2326_v55  ;;  %3673 = vrot.lane.b32.xlu1 %v11920_v14, %s10657_s17 }
 0x236   : > { %3667 = vrot.lane.b32.xlu0 %v11757_v6, %s10657_s17  ;;  %2509 = vmatprep.subr.bf16.mxu0 %v2361_v43  ;;  %v2649_v34 = vpop.permute.xlu1 %2648 }
 0x237   : > { %2510 = vmatpush1.bf16.msra.mxu0 %v2360_v47 }
 0x238   : > { %v2330_v3 = vpop.permute.xlu0 %2329  ;;  %10275 = vmatprep.subr.bf16.mxu0 %v10654_v22 }
 0x239   : > { %v2363_v51 = vsel %vm2355_vm5, %v2330_v3, %v2332_v61  ;;  %v2362_v20 = vsel %vm2355_vm5, %v2328_v18, %v2330_v3  ;;  %3990 = vrot.lane.b32.xlu1 %v11791_v5, %s10646_s23 }
 0x23a   : > { %3671 = vrot.lane.b32.xlu0 %v11780_v27, %s10657_s17  ;;  %2550 = vmatprep.subr.bf16.mxu1 %v2363_v51  ;;  %v2653_v38 = vpop.permute.xlu1 %2652 }
 0x23b   : > { %9848 = vmatmul.mubr.msk.bf16.vlgmr.msra.gmra.mxu0 %vm1775_vm11, %v11875_v62  ;;  %2551 = vmatpush1.bf16.msra.mxu1 %v2362_v20 }
 0x23c   : > { %v2354_v35 = vpop.permute.xlu0 %2353  ;;  %10279 = vmatprep.mubr.msk.bf16.mxu0 %vm10655_vm2, %v10654_v22 }
 0x23d   : > { %v2373_v58 = vsel %vm2355_vm5, %v2352_v12, %v2354_v35  ;;  %3994 = vrot.lane.b32.xlu1 %v11810_v32, %s10646_s23 }
 0x23e   : > { %3695 = vrot.lane.b32.xlu0 %v11897_v53, %s10657_s17  ;;  %v2411_v9 = vsel %vm13681_vm9, %v2373_v58, 0  ;;  %9850 = vmatmul.mubr.msk.bf16.vlgmr.msra.gmra.mxu1 %vm1775_vm11, %v11875_v62  ;;  %v2631_v0 = vpop.permute.xlu1 %2630  ;;  %vm13691_vm9 = vmmov %vm13665_vm0 }
 0x23f   : > { %10276 = vmatpush3.bf16.msra.mxu0 %v2411_v9  ;;  %2758 = vmatprep.mubr.bf16.mxu1 %v11295_v54 }
 0x240   : > { %v2651_v46 = vpop.permute.xlu0 %2650  ;;  %10277 = vmatprep.subr.bf16.mxu0 %v10654_v22 }
 0x241   : > { %v2678_v15 = vsel %vm2668_vm8, %v2649_v34, %v2651_v46  ;;  %v2679_v55 = vsel %vm2668_vm8, %v2651_v46, %v2653_v38  ;;  %3972 = vrot.lane.b32.xlu1 %v11730_v19, %s10646_s23 }
 0x242   : > { %3992 = vrot.lane.b32.xlu0 %v11834_v52, %s10646_s23  ;;  %v2700_v28 = vsel %vm13682_vm3, %v2678_v15, 0  ;;  %9853 = vmatprep.subr.msk.bf16.mxu1 %vm13683_vm14, %v2679_v55  ;;  %v2629_v49 = vpop.permute.xlu1 %2628  ;;  %vm13692_vm3 = vmmov %vm13665_vm0 }
 0x243   : > { %2739 = vmatpush1.bf16.msra.mxu1 %v2700_v28  ;;  %v2669_v31 = vsel %vm2668_vm8, %v2629_v49, %v2631_v0  ;;  %vm13694_vm14 = vmmov %vm13665_vm0 }
 0x244   : > { %v2334_v56 = vpop.permute.xlu0 %2333 }
 0x245   : > { %v2364_v21 = vsel %vm2355_vm5, %v2332_v61, %v2334_v56  ;;  %3970 = vrot.lane.b32.xlu1 %v11745_v60, %s10646_s23 }
 0x246   : > { %3675 = vrot.lane.b32.xlu0 %v11917_v57, %s10657_s17  ;;  %10278 = vmatpush3.bf16.msra.mxu0 %v2364_v21  ;;  %v2657_v23 = vpop.permute.xlu1 %2656 }
 0x248   : > { %v11932_v1 = vpop.permute.xlu0 %2632 }
 0x249   : > { %10280 = vmatmul.mubr.msk.bf16.vlgmr.msra.gmra.mxu0 %vm1775_vm11, %v11875_v62  ;;  %v2670_v2 = vsel %vm2668_vm8, %v2631_v0, %v11932_v1  ;;  %v11970_v62 = vld [vmem:[%s13594_s2 + $0xc] sm:$0xf]  ;;  %3998 = vrot.lane.b32.xlu1 %v11823_v40, %s10646_s23 }
 0x24a   : > { %3974 = vrot.lane.b32.xlu0 %v11705_v33, %s10646_s23  ;;  %2799 = vmatprep.mubr.bf16.mxu0 %v11295_v54  ;;  %v2661_v46 = vpop.permute.xlu1 %2660 }
 0x24b   : > { %2740 = vmatprep.subr.bf16.mxu1 %v2670_v2 }
 0x24c   : > { %v2655_v30 = vpop.permute.xlu0 %2654  ;;  %2741 = vmatpush1.bf16.msra.mxu1 %v2669_v31 }
 0x24d   : > { %v2680_v45 = vsel %vm2668_vm8, %v2653_v38, %v2655_v30  ;;  %v2681_v35 = vsel %vm2668_vm8, %v2655_v30, %v2657_v23  ;;  %4002 = vrot.lane.b32.xlu1 %v11887_v50, %s10646_s23 }
 0x24e   : > { %3996 = vrot.lane.b32.xlu0 %v11848_v63, %s10646_s23  ;;  %9855 = vmatprep.subr.msk.bf16.mxu0 %vm13684_vm12, %v2681_v35  ;;  %v2706_v12 = vsel %vm13685_vm13, %v2680_v45, 0  ;;  %v2637_v56 = vpop.permute.xlu1 %2636  ;;  %v12004_v15 = vpop.f32.mrf.mxu0  ;;  %vm13695_vm12 = vmmov %vm13665_vm0 }
 0x24f   : > { %9854 = vmatmul.mubr.msk.bf16.vlgmr.msra.gmra.mxu1 %vm1775_vm11, %v11970_v62  ;;  %2780 = vmatpush1.bf16.msra.mxu0 %v2706_v12  ;;  %vm13696_vm13 = vmmov %vm13665_vm0 }
 0x250   : > { %v2659_v7 = vpop.permute.xlu0 %2658  ;;  %2840 = vmatprep.mubr.bf16.mxu1 %v11295_v54  ;;  %v12017_v28 = vpop.f32.mrf.mxu0 }
 0x251   : > { %v2682_v4 = vsel %vm2668_vm8, %v2657_v23, %v2659_v7  ;;  %v2683_v18 = vsel %vm2668_vm8, %v2659_v7, %v2661_v46  ;;  %3978 = vrot.lane.b32.xlu1 %v11782_v48, %s10646_s23 }
 0x252   : > { %4000 = vrot.lane.b32.xlu0 %v11858_v10, %s10646_s23  ;;  %9857 = vmatprep.subr.msk.bf16.mxu1 %vm13686_vm6, %v2683_v18  ;;  %v2712_v43 = vsel %vm13665_vm0, %v2682_v4, 0  ;;  %v2641_v20 = vpop.permute.xlu1 %2640  ;;  %v9862_v18 = vld [vmem:[%s13594_s2 + $0x10] sm:$0xf]  ;;  %vm13697_vm6 = vmmov %vm13665_vm0 }
 0x253   : > { %2821 = vmatpush1.bf16.msra.mxu1 %v2712_v43  ;;  %v12030_v49 = vpop.f32.mrf.mxu1 }
 0x254   : > { %v2635_v3 = vpop.permute.xlu0 %2634 }
 0x255   : > { %v2672_v58 = vsel %vm2668_vm8, %v2635_v3, %v2637_v56  ;;  %v2671_v61 = vsel %vm2668_vm8, %v11932_v1, %v2635_v3  ;;  %3982 = vrot.lane.b32.xlu1 %v11795_v8, %s10646_s23  ;;  %v12039_v23 = vpop.f32.mrf.mxu1 }
 0x256   : > { %3976 = vrot.lane.b32.xlu0 %v11743_v29, %s10646_s23  ;;  %2781 = vmatprep.subr.bf16.mxu0 %v2672_v58  ;;  %v2665_v30 = vpop.permute.xlu1 %2664 }
 0x257   : > { %2782 = vmatpush1.bf16.msra.mxu0 %v2671_v61  ;;  %v1886_v12 = vpop.f32.mrf.mxu1 }
 0x258   : > { %v2639_v25 = vpop.permute.xlu0 %2638 }
 0x259   : > { %v2674_v9 = vsel %vm2668_vm8, %v2639_v25, %v2641_v20  ;;  %v2673_v34 = vsel %vm2668_vm8, %v2637_v56, %v2639_v25  ;;  %4006 = vrot.lane.b32.xlu1 %v11901_v17, %s10646_s23 }
 0x25a   : > { %3980 = vrot.lane.b32.xlu0 %v11757_v6, %s10646_s23  ;;  %2822 = vmatprep.subr.bf16.mxu1 %v2674_v9  ;;  %v2643_v3 = vpop.permute.xlu1 %2642 }
 0x25b   : > { %2823 = vmatpush1.bf16.msra.mxu1 %v2673_v34  ;;  %9856 = vmatmul.mubr.msk.bf16.vlgmr.msra.gmra.mxu0 %vm1775_vm11, %v11970_v62  ;;  %v2675_v45 = vsel %vm2668_vm8, %v2641_v20, %v2643_v3 }
 0x25c   : > { %v2663_v41 = vpop.permute.xlu0 %2662  ;;  %10283 = vmatprep.subr.bf16.mxu1 %v10654_v22  ;;  %2881 = vmatprep.mubr.bf16.mxu0 %v11295_v54 }
 0x25d   : > { %v2684_v21 = vsel %vm2668_vm8, %v2661_v46, %v2663_v41  ;;  %v2685_v55 = vsel %vm2668_vm8, %v2663_v41, %v2665_v30  ;;  %3984 = vrot.lane.b32.xlu1 %v11780_v27, %s10646_s23  ;;  %v3029_v41 = vsel %vm13691_vm9, %v11685_v11, 0  ;;  %v1887_v46 = vpop.f32.mrf.mxu1  ;;  %vm13701_vm9 = vmmov %vm13689_vm1 }
 0x25e   : > { %4004 = vrot.lane.b32.xlu0 %v11865_v26, %s10646_s23  ;;  %9859 = vmatprep.subr.msk.bf16.mxu0 %vm13687_vm4, %v2685_v55  ;;  %v2718_v7 = vsel %vm13688_vm10, %v2684_v21, 0  ;;  %vm13698_vm4 = vmmov %vm13689_vm1 }
 0x25f   : > { %9858 = vmatmul.mubr.msk.bf16.vlgmr.msra.gmra.mxu1 %vm1775_vm11, %v11970_v62  ;;  %2862 = vmatpush1.bf16.msra.mxu0 %v2718_v7  ;;  %vm13699_vm10 = vmmov %vm13689_vm1 }
 0x260   : > { %v2667_v47 = vpop.permute.xlu0 %2666  ;;  %10287 = vmatprep.mubr.msk.bf16.mxu1 %vm10655_vm2, %v10654_v22 }
 0x261   : > { %v2686_v38 = vsel %vm2668_vm8, %v2665_v30, %v2667_v47  ;;  %3988 = vrot.lane.b32.xlu1 %v11917_v57, %s10646_s23 }
 0x262   : > { %4008 = vrot.lane.b32.xlu0 %v11897_v53, %s10646_s23  ;;  %v2724_v0 = vsel %vm13689_vm1, %v2686_v38, 0 }
 0x263   : > { %10284 = vmatpush3.bf16.msra.mxu1 %v2724_v0 }
 0x264   : > { %v2645_v51 = vpop.permute.xlu0 %2644  ;;  %10285 = vmatprep.subr.bf16.mxu1 %v10654_v22 }
 0x265   : > { %v2676_v31 = vsel %vm2668_vm8, %v2643_v3, %v2645_v51  ;;  %4305 = vrot.lane.b32.xlu1 %v11834_v52, %s10658_s10 }
 0x266   : > { %3986 = vrot.lane.b32.xlu0 %v11920_v14, %s10646_s23  ;;  %2863 = vmatprep.subr.bf16.mxu0 %v2676_v31 }
 0x267   : > { %2864 = vmatpush1.bf16.msra.mxu0 %v2675_v45 }
 0x268   : > { %v12007_v1 = vpop.permute.xlu0 %3288  ;;  %9881 = vmatprep.subr.msk.bf16.mxu0 %vm13690_vm15, %v11720_v44  ;;  %vm13700_vm15 = vmmov %vm13689_vm1 }
 0x269   : > { %4309 = vrot.lane.b32.xlu1 %v11848_v63, %s10658_s10 }
 0x26a   : > { %4303 = vrot.lane.b32.xlu0 %v11791_v5, %s10658_s10  ;;  %v1845_v5 = vpop.f32.mrf.mxu0  ;;  %9860 = vmatmul.mubr.msk.bf16.vlgmr.msra.gmra.mxu0 %vm1775_vm11, %v11970_v62 }
 0x26b   : > { %3068 = vmatpush1.bf16.msra.mxu0 %v3029_v41  ;;  %3087 = vmatprep.mubr.bf16.mxu0 %v11295_v54 }
 0x26c   : > { %v12026_v2 = vpop.permute.xlu0 %3292  ;;  %v1846_v25 = vpop.f32.mrf.mxu0  ;;  %3069 = vmatprep.subr.bf16.mxu0 %v11730_v19 }
 0x26d   : > { %4285 = vrot.lane.b32.xlu1 %v11730_v19, %s10658_s10  ;;  %v3053_v19 = vsel %vm13698_vm4, %v11812_v37, 0  ;;  %vm13707_vm4 = vmmov %vm13689_vm1 }
 0x26e   : > { %4307 = vrot.lane.b32.xlu0 %v11810_v32, %s10658_s10  ;;  %v2647_v32 = vpop.permute.xlu1 %2646 }
 0x26f   : > { %v2677_v4 = vsel %vm2668_vm8, %v2645_v51, %v2647_v32  ;;  %vm13693_vm8 = vmmov %vm13665_vm0  ;;  %3070 = vmatpush1.bf16.msra.mxu0 %v11745_v60  ;;  %vm3306_vm0 = vcmask 1039360  }
 0x270   : > { %v12041_v35 = vpop.permute.xlu0 %3274  ;;  %10286 = vmatpush3.bf16.msra.mxu1 %v2677_v4  ;;  %v3035_v11 = vsel %vm13693_vm8, %v11696_v59, 0  ;;  %9885 = vmatprep.subr.msk.bf16.mxu0 %vm13694_vm14, %v11728_v13  ;;  %v3041_v59 = vsel %vm13695_vm12, %v11760_v39, 0  ;;  %vm13703_vm8 = vmmov %vm13689_vm1 }
 0x271   : > { %9883 = vmatprep.subr.msk.bf16.mxu1 %vm13692_vm3, %v11718_v36  ;;  %4283 = vrot.lane.b32.xlu1 %v11745_v60, %s10658_s10  ;;  %vm13702_vm3 = vmmov %vm13689_vm1 }
 0x272   : > { %4311 = vrot.lane.b32.xlu0 %v11823_v40, %s10658_s10  ;;  %v3291_v40 = vpop.permute.xlu1 %3290  ;;  %9882 = vmatmul.mubr.msk.bf16.vlgmr.msra.gmra.mxu0 %vm1775_vm11, %v9862_v18  ;;  %vm13704_vm14 = vmmov %vm13689_vm1 }
 0x273   : > { %10288 = vmatmul.mubr.msk.bf16.vlgmr.msra.gmra.mxu1 %vm1775_vm11, %v11970_v62  ;;  %3150 = vmatpush1.bf16.msra.mxu0 %v3041_v59  ;;  %vm13705_vm12 = vmmov %vm13689_vm1 }
 0x274   : > { %v12054_v44 = vpop.permute.xlu0 %3294  ;;  %3109 = vmatpush1.bf16.msra.mxu1 %v3035_v11  ;;  %3128 = vmatprep.mubr.bf16.mxu1 %v11295_v54 }
 0x275   : > { %3110 = vmatprep.subr.bf16.mxu1 %v11743_v29  ;;  %3151 = vmatprep.subr.bf16.mxu0 %v11757_v6  ;;  %v3317_v37 = vsel %vm3306_vm0, %v12026_v2, %v12054_v44 }
 0x276   : > { %4287 = vrot.lane.b32.xlu0 %v11705_v33, %s10658_s10  ;;  %v3273_v62 = vpop.permute.xlu1 %3272  ;;  %3169 = vmatprep.mubr.bf16.mxu0 %v11295_v54 }
 0x277   : > { %3152 = vmatpush1.bf16.msra.mxu0 %v11782_v48  ;;  %4291 = vrot.lane.b32.xlu1 %v11782_v48, %s10658_s10 }
 0x278   : > { %v12069_v36 = vpop.permute.xlu0 %3298  ;;  %3111 = vmatpush1.bf16.msra.mxu1 %v11705_v33  ;;  %v3047_v33 = vsel %vm13697_vm6, %v11771_v24, 0  ;;  %10291 = vmatprep.subr.bf16.mxu0 %v10654_v22  ;;  %v3316_v24 = vsel %vm3306_vm0, %v3291_v40, %v12026_v2  ;;  %vm3697_vm6 = vcmask 760832  }
 0x279   : > { %9887 = vmatprep.subr.msk.bf16.mxu1 %vm13696_vm13, %v11769_v16  ;;  %v3315_v16 = vsel %vm3306_vm0, %v12007_v1, %v3291_v40  ;;  %vm13706_vm13 = vmmov %vm13689_vm1 }
 0x27a   : > { %4289 = vrot.lane.b32.xlu0 %v11743_v29, %s10658_s10  ;;  %v3271_v13 = vpop.permute.xlu1 %3270  ;;  %9886 = vmatmul.mubr.msk.bf16.vlgmr.msra.gmra.mxu0 %vm1775_vm11, %v9862_v18  ;;  %v3336_v60 = vsel %vm13689_vm1, %v3315_v16, 0 }
 0x27b   : > { %9884 = vmatmul.mubr.msk.bf16.vlgmr.msra.gmra.mxu1 %vm1775_vm11, %v9862_v18  ;;  %10292 = vmatpush3.bf16.msra.mxu0 %v3053_v19  ;;  %v3307_v47 = vsel %vm3306_vm0, %v3271_v13, %v3273_v62 }
 0x27c   : > { %v12086_v52 = vpop.permute.xlu0 %3276  ;;  %3191 = vmatpush1.bf16.msra.mxu1 %v3047_v33  ;;  %3210 = vmatprep.mubr.bf16.mxu1 %v11295_v54 }
 0x27d   : > { %3192 = vmatprep.subr.bf16.mxu1 %v11780_v27  ;;  %10293 = vmatprep.subr.bf16.mxu0 %v10654_v22  ;;  %v3309_v34 = vsel %vm3306_vm0, %v12041_v35, %v12086_v52 }
 0x27e   : > { %4313 = vrot.lane.b32.xlu0 %v11858_v10, %s10658_s10  ;;  %v3297_v39 = vpop.permute.xlu1 %3296  ;;  %10295 = vmatprep.mubr.msk.bf16.mxu0 %vm10655_vm2, %v10654_v22 }
 0x27f   : > { %10294 = vmatpush3.bf16.msra.mxu0 %v11825_v42  ;;  %v3318_v43 = vsel %vm3306_vm0, %v12054_v44, %v3297_v39  ;;  %4315 = vrot.lane.b32.xlu1 %v11887_v50, %s10658_s10  ;;  %v3342_v42 = vsel %vm13701_vm9, %v3317_v37, 0  ;;  %v3319_v56 = vsel %vm3306_vm0, %v3297_v39, %v12069_v36  ;;  %v9890_v50 = vld [vmem:[%s13594_s2 + $0x14] sm:$0xf] }
 0x280   : > { %v12100_v29 = vpop.permute.xlu0 %3280  ;;  %3193 = vmatpush1.bf16.msra.mxu1 %v11795_v8  ;;  %9893 = vmatprep.subr.msk.bf16.mxu0 %vm13700_vm15, %v3318_v43  ;;  %v3348_v9 = vsel %vm13703_vm8, %v3319_v56, 0 }
 0x281   : > { %9891 = vmatprep.subr.msk.bf16.mxu1 %vm13699_vm10, %v3316_v24  ;;  %vm13708_vm10 = vmmov %vm13689_vm1 }
 0x282   : > { %4317 = vrot.lane.b32.xlu0 %v11865_v26, %s10658_s10  ;;  %v3301_v10 = vpop.permute.xlu1 %3300  ;;  %10296 = vmatmul.mubr.msk.bf16.vlgmr.msra.gmra.mxu0 %vm1775_vm11, %v9862_v18 }
 0x283   : > { %9888 = vmatmul.mubr.msk.bf16.vlgmr.msra.gmra.mxu1 %vm1775_vm11, %v9862_v18  ;;  %3416 = vmatpush1.bf16.msra.mxu0 %v3342_v42  ;;  %v3320_v58 = vsel %vm3306_vm0, %v12069_v36, %v3301_v10  ;;  %v12206_v36 = vld [vmem:[%s13594_s2 + $0x18] sm:$0xf] }
 0x284   : > { %v3303_v63 = vpop.permute.xlu0 %3302  ;;  %3375 = vmatpush1.bf16.msra.mxu1 %v3336_v60  ;;  %3394 = vmatprep.mubr.bf16.mxu1 %v11295_v54 }
 0x285   : > { %3435 = vmatprep.mubr.bf16.mxu0 %v11295_v54  ;;  %4319 = vrot.lane.b32.xlu1 %v11901_v17, %s10658_s10 }
 0x286   : > { %4293 = vrot.lane.b32.xlu0 %v11757_v6, %s10658_s10  ;;  %v3308_v6 = vsel %vm3306_vm0, %v3273_v62, %v12041_v35  ;;  %v3279_v48 = vpop.permute.xlu1 %3278 }
 0x287   : > { %3376 = vmatprep.subr.bf16.mxu1 %v3308_v6  ;;  %v3310_v61 = vsel %vm3306_vm0, %v12086_v52, %v3279_v48  ;;  %v3311_v17 = vsel %vm3306_vm0, %v3279_v48, %v12100_v29 }
 0x288   : > { %v3285_v26 = vpop.permute.xlu0 %3284  ;;  %3377 = vmatpush1.bf16.msra.mxu1 %v3307_v47  ;;  %3417 = vmatprep.subr.bf16.mxu0 %v3310_v61 }
 0x289   : > { %9895 = vmatprep.subr.msk.bf16.mxu1 %vm13702_vm3, %v3320_v58  ;;  %3418 = vmatpush1.bf16.msra.mxu0 %v3309_v34 }
 0x28a   : > { %4297 = vrot.lane.b32.xlu0 %v11780_v27, %s10658_s10  ;;  %v3283_v51 = vpop.permute.xlu1 %3282  ;;  %4295 = vrot.lane.b32.xlu1 %v11795_v8, %s10658_s10 }
 0x28b   : > { %v3312_v20 = vsel %vm3306_vm0, %v12100_v29, %v3283_v51  ;;  %9892 = vmatmul.mubr.msk.bf16.vlgmr.msra.gmra.mxu1 %vm1775_vm11, %v9890_v50  ;;  %v3313_v2 = vsel %vm3306_vm0, %v3283_v51, %v3285_v26 }
 0x28c   : > { %v3678_v27 = vpop.permute.xlu0 %3677  ;;  %3457 = vmatpush1.bf16.msra.mxu1 %v3348_v9  ;;  %3476 = vmatprep.mubr.bf16.mxu1 %v11295_v54 }
 0x28d   : > { %3458 = vmatprep.subr.bf16.mxu1 %v3312_v20  ;;  %9894 = vmatmul.mubr.msk.bf16.vlgmr.msra.gmra.mxu0 %vm1775_vm11, %v9890_v50 }
 0x28e   : > { %4321 = vrot.lane.b32.xlu0 %v11897_v53, %s10658_s10  ;;  %v3321_v53 = vsel %vm3306_vm0, %v3301_v10, %v3303_v63  ;;  %v3305_v1 = vpop.permute.xlu1 %3304  ;;  %3517 = vmatprep.mubr.bf16.mxu0 %v11295_v54 }
 0x28f   : > { %v3322_v30 = vsel %vm3306_vm0, %v3303_v63, %v3305_v1  ;;  %v3354_v38 = vsel %vm13705_vm12, %v3321_v53, 0  ;;  %4299 = vrot.lane.b32.xlu1 %v11920_v14, %s10658_s10  ;;  %v3360_v8 = vsel %vm13706_vm13, %v3305_v1, 0  ;;  %vm4010_vm12 = vcmask 752640  }
 0x290   : > { %v3682_v21 = vpop.permute.xlu0 %3681  ;;  %3459 = vmatpush1.bf16.msra.mxu1 %v3311_v17  ;;  %9897 = vmatprep.subr.msk.bf16.mxu0 %vm13704_vm14, %v3322_v30 }
 0x291   : > { %3498 = vmatpush1.bf16.msra.mxu0 %v3354_v38  ;;  %10299 = vmatprep.subr.bf16.mxu1 %v10654_v22 }
 0x292   : > { %v3287_v7 = vpop.permute.xlu1 %3286 }
 0x293   : > { %v3314_v0 = vsel %vm3306_vm0, %v3285_v26, %v3287_v7  ;;  %9896 = vmatmul.mubr.msk.bf16.vlgmr.msra.gmra.mxu1 %vm1775_vm11, %v9890_v50  ;;  %4301 = vrot.lane.b32.xlu1 %v11917_v57, %s10658_s10  ;;  %vm13709_vm0 = vmmov %vm13689_vm1 }
 0x294   : > { %v3686_v55 = vpop.permute.xlu0 %3685  ;;  %3499 = vmatprep.subr.bf16.mxu0 %v3314_v0  ;;  %10300 = vmatpush3.bf16.msra.mxu1 %v3360_v8  ;;  %vm13710_vm1 = vmmov %vm13709_vm0 }
 0x295   : > { %3500 = vmatpush1.bf16.msra.mxu0 %v3313_v2  ;;  %10301 = vmatprep.subr.bf16.mxu1 %v10654_v22  ;;  %vm13711_vm15 = vmmov %vm13709_vm0 }
 0x296   : > { %v3680_v3 = vpop.permute.xlu1 %3679  ;;  %10303 = vmatprep.mubr.msk.bf16.mxu1 %vm10655_vm2, %v10654_v22  ;;  %vm13712_vm9 = vmmov %vm13709_vm0 }
 0x297   : > { %v3707_v31 = vsel %vm3697_vm6, %v3678_v27, %v3680_v3  ;;  %v3708_v45 = vsel %vm3697_vm6, %v3680_v3, %v3682_v21  ;;  %vm13713_vm3 = vmmov %vm13709_vm0 }
 0x298   : > { %v3662_v5 = vpop.permute.xlu0 %3661  ;;  %9921 = vmatprep.subr.msk.bf16.mxu0 %vm13707_vm4, %v3708_v45  ;;  %v3729_v14 = vsel %vm13708_vm10, %v3707_v31, 0  ;;  %9898 = vmatmul.mubr.msk.bf16.vlgmr.msra.gmra.mxu0 %vm1775_vm11, %v9890_v50  ;;  %vm13714_vm8 = vmmov %vm13709_vm0 }
 0x299   : > { %10302 = vmatpush3.bf16.msra.mxu1 %v3287_v7  ;;  %3768 = vmatpush1.bf16.msra.mxu0 %v3729_v14  ;;  %vm13715_vm14 = vmmov %vm13709_vm0 }
 0x29a   : > { %v3684_v35 = vpop.permute.xlu1 %3683  ;;  %3787 = vmatprep.mubr.bf16.mxu0 %v11295_v54  ;;  %vm13716_vm13 = vmmov %vm13709_vm0 }
 0x29b   : > { %v3709_v32 = vsel %vm3697_vm6, %v3682_v21, %v3684_v35  ;;  %v3710_v12 = vsel %vm3697_vm6, %v3684_v35, %v3686_v55  ;;  %vm13717_vm4 = vmmov %vm13709_vm0  ;;  %v10659_v35 = vmov 1  }
 0x29c   : > { %v3664_v25 = vpop.permute.xlu0 %3663  ;;  %10304 = vmatmul.mubr.msk.bf16.vlgmr.msra.gmra.mxu1 %vm1775_vm11, %v9890_v50  ;;  %9923 = vmatprep.subr.msk.bf16.mxu1 %vm13709_vm0, %v3710_v12  ;;  %v3735_v57 = vsel %vm13710_vm1, %v3709_v32, 0  ;;  %vm13718_vm10 = vmmov %vm13709_vm0 }
 0x29d   : > { %3809 = vmatpush1.bf16.msra.mxu1 %v3735_v57  ;;  %3828 = vmatprep.mubr.bf16.mxu1 %v11295_v54  ;;  %v3700_v13 = vsel %vm3697_vm6, %v3662_v5, %v3664_v25  ;;  %vm13719_vm1 = vmmov %vm13709_vm0 }
 0x29e   : > { %v3660_v41 = vpop.permute.xlu1 %3659  ;;  %10493 = vset.pattern.permute.xlu1 %v10659_v35 }
 0x29f   : > { %v3699_v46 = vsel %vm3697_vm6, %v3660_v41, %v3662_v5  ;;  %v4594_v5 = vld [vmem:[%s13599_s7] sm:$0xff] }
 0x2a0   : > { %v3688_v4 = vpop.permute.xlu0 %3687  ;;  %3769 = vmatprep.subr.bf16.mxu0 %v3699_v46  ;;  %4597 = vperm.xlu0 %10492, %v4594_v5   ;;  %v10660_v46 = vmov 2  }
 0x2a1   : > { %v3711_v33 = vsel %vm3697_vm6, %v3686_v55, %v3688_v4  ;;  %4637 = vperm.xlu1 %10493, %v4594_v5  }
 0x2a2   : > { %v3658_v40 = vpop.permute.xlu1 %3657  ;;  %v3741_v63 = vsel %vm13712_vm9, %v3711_v33, 0  ;;  %vm13721_vm9 = vmmov %vm13709_vm0 }
 0x2a3   : > { %v3698_v11 = vsel %vm3697_vm6, %v3658_v40, %v3660_v41 }
 0x2a4   : > { %v3692_v44 = vpop.permute.xlu0 %3691  ;;  %3770 = vmatpush1.bf16.msra.mxu0 %v3698_v11  ;;  %v12211_v52 = vpop.f32.mrf.mxu0 }
 0x2a5   : > { %10494 = vset.pattern.permute.xlu1 %v10660_v46 }
 0x2a6   : > { %v3666_v62 = vpop.permute.xlu1 %3665  ;;  %v12216_v39 = vpop.f32.mrf.mxu0  ;;  %4650 = vperm.xlu1 %10494, %v4594_v5  }
 0x2a7   : > { %9922 = vmatmul.mubr.msk.bf16.vlgmr.msra.gmra.mxu0 %vm1775_vm11, %v12206_v36  ;;  %v3701_v59 = vsel %vm3697_vm6, %v3664_v25, %v3666_v62 }
 0x2a8   : > { %v3668_v18 = vpop.permute.xlu0 %3667  ;;  %3810 = vmatprep.subr.bf16.mxu1 %v3701_v59  ;;  %3869 = vmatprep.mubr.bf16.mxu0 %v11295_v54  ;;  %v1927_v24 = vpop.f32.mrf.mxu0 }
 0x2a9   : > { %3811 = vmatpush1.bf16.msra.mxu1 %v3700_v13  ;;  %v3702_v56 = vsel %vm3697_vm6, %v3666_v62, %v3668_v18 }
 0x2aa   : > { %v3690_v19 = vpop.permute.xlu1 %3689  ;;  %v1928_v37 = vpop.f32.mrf.mxu0 }
 0x2ab   : > { %v3712_v16 = vsel %vm3697_vm6, %v3688_v4, %v3690_v19  ;;  %v3713_v10 = vsel %vm3697_vm6, %v3690_v19, %v3692_v44  ;;  %v12237_v9 = vpop.f32.mrf.mxu1 }
 0x2ac   : > { %v3672_v29 = vpop.permute.xlu0 %3671  ;;  %9924 = vmatmul.mubr.msk.bf16.vlgmr.msra.gmra.mxu1 %vm1775_vm11, %v12206_v36  ;;  %9925 = vmatprep.subr.msk.bf16.mxu0 %vm13711_vm15, %v3712_v16  ;;  %v3747_v43 = vsel %vm13714_vm8, %v3713_v10, 0  ;;  %vm13720_vm15 = vmmov %vm13709_vm0 }
 0x2ad   : > { %3850 = vmatpush1.bf16.msra.mxu0 %v3741_v63  ;;  %3910 = vmatprep.mubr.bf16.mxu1 %v11295_v54  ;;  %v12246_v1 = vpop.f32.mrf.mxu1  ;;  %vm13723_vm8 = vmmov %vm13709_vm0 }
 0x2ae   : > { %v3694_v6 = vpop.permute.xlu1 %3693 }
 0x2af   : > { %v3714_v26 = vsel %vm3697_vm6, %v3692_v44, %v3694_v6  ;;  %v1968_v38 = vpop.f32.mrf.mxu1  ;;  %v12270_v44 = vld [vmem:[%s13594_s2 + $0x1c] sm:$0xf] }
 0x2b0   : > { %v3696_v60 = vpop.permute.xlu0 %3695  ;;  %9927 = vmatprep.subr.msk.bf16.mxu1 %vm13713_vm3, %v3714_v26  ;;  %vm13722_vm3 = vmmov %vm13709_vm0 }
 0x2b1   : > { %3891 = vmatpush1.bf16.msra.mxu1 %v3747_v43  ;;  %v3715_v58 = vsel %vm3697_vm6, %v3694_v6, %v3696_v60  ;;  %v1969_v2 = vpop.f32.mrf.mxu1 }
 0x2b2   : > { %v3670_v47 = vpop.permute.xlu1 %3669  ;;  %v3753_v20 = vsel %vm13715_vm14, %v3715_v58, 0  ;;  %vm4323_vm14 = vcmask 744448  }
 0x2b3   : > { %v3703_v42 = vsel %vm3697_vm6, %v3668_v18, %v3670_v47  ;;  %v3704_v51 = vsel %vm3697_vm6, %v3670_v47, %v3672_v29 }
 0x2b4   : > { %v3993_v48 = vpop.permute.xlu0 %3992  ;;  %3851 = vmatprep.subr.bf16.mxu0 %v3703_v42 }
 0x2b5   : > { %3852 = vmatpush1.bf16.msra.mxu0 %v3702_v56 }
 0x2b6   : > { %v3674_v61 = vpop.permute.xlu1 %3673  ;;  %10307 = vmatprep.subr.bf16.mxu0 %v10654_v22 }
 0x2b7   : > { %v3705_v50 = vsel %vm3697_vm6, %v3672_v29, %v3674_v61 }
 0x2b8   : > { %v3676_v27 = vpop.permute.xlu0 %3675  ;;  %9926 = vmatmul.mubr.msk.bf16.vlgmr.msra.gmra.mxu0 %vm1775_vm11, %v12206_v36  ;;  %3892 = vmatprep.subr.bf16.mxu1 %v3705_v50 }
 0x2b9   : > { %3893 = vmatpush1.bf16.msra.mxu1 %v3704_v51  ;;  %10308 = vmatpush3.bf16.msra.mxu0 %v3753_v20  ;;  %v12241_v21 = vpop.f32.mrf.mxu0  ;;  %v3706_v17 = vsel %vm3697_vm6, %v3674_v61, %v3676_v27 }
 0x2ba   : > { %v3991_v53 = vpop.permute.xlu1 %3990  ;;  %10309 = vmatprep.subr.bf16.mxu0 %v10654_v22  ;;  %10311 = vmatprep.mubr.msk.bf16.mxu0 %vm10655_vm2, %v10654_v22 }
 0x2bb   : > { %v10265_v30 = vpop.f32.mrf.mxu0  ;;  %v4020_v55 = vsel %vm4010_vm12, %v3991_v53, %v3993_v48 }
 0x2bc   : > { %v12239_v34 = vpop.permute.xlu0 %3974  ;;  %9928 = vmatmul.mubr.msk.bf16.vlgmr.msra.gmra.mxu1 %vm1775_vm11, %v12206_v36  ;;  %v4042_v45 = vsel %vm13716_vm13, %v4020_v55, 0  ;;  %vm13725_vm13 = vmmov %vm13709_vm0 }
 0x2bd   : > { %10310 = vmatpush3.bf16.msra.mxu0 %v3706_v17  ;;  %4100 = vmatprep.mubr.bf16.mxu1 %v11295_v54  ;;  %v2008_v0 = vpop.f32.mrf.mxu0 }
 0x2be   : > { %v3995_v8 = vpop.permute.xlu1 %3994 }
 0x2bf   : > { %v4021_v3 = vsel %vm4010_vm12, %v3993_v48, %v3995_v8  ;;  %v10266_v31 = vpop.f32.mrf.mxu0  ;;  %v12265_v41 = vpop.f32.mrf.mxu1 }
 0x2c0   : > { %v3997_v7 = vpop.permute.xlu0 %3996  ;;  %10312 = vmatmul.mubr.msk.bf16.vlgmr.msra.gmra.mxu0 %vm1775_vm11, %v12206_v36  ;;  %9931 = vmatprep.subr.msk.bf16.mxu1 %vm13717_vm4, %v4021_v3  ;;  %vm13726_vm4 = vmmov %vm13709_vm0 }
 0x2c1   : > { %4081 = vmatpush1.bf16.msra.mxu1 %v4042_v45  ;;  %4141 = vmatprep.mubr.bf16.mxu0 %v11295_v54  ;;  %v4022_v40 = vsel %vm4010_vm12, %v3995_v8, %v3997_v7  ;;  %v12273_v36 = vpop.f32.mrf.mxu1 }
 0x2c2   : > { %v3973_v25 = vpop.permute.xlu1 %3972  ;;  %v4048_v13 = vsel %vm13709_vm0, %v4022_v40, 0 }
 0x2c3   : > { %v4012_v32 = vsel %vm4010_vm12, %v3973_v25, %v12239_v34  ;;  %v2147_v59 = vpop.f32.mrf.mxu1 }
 0x2c4   : > { %v4001_v14 = vpop.permute.xlu0 %4000  ;;  %4082 = vmatprep.subr.bf16.mxu1 %v4012_v32 }
 0x2c5   : > { %v2148_v19 = vpop.f32.mrf.mxu1 }
 0x2c6   : > { %v3971_v57 = vpop.permute.xlu1 %3970 }
 0x2c7   : > { %v4011_v4 = vsel %vm4010_vm12, %v3971_v57, %v3973_v25 }
 0x2c8   : > { %v3977_v12 = vpop.permute.xlu0 %3976  ;;  %4083 = vmatpush1.bf16.msra.mxu1 %v4011_v4 }
 0x2c9   : > { %v4013_v6 = vsel %vm4010_vm12, %v12239_v34, %v3977_v12 }
 0x2ca   : > { %v3999_v18 = vpop.permute.xlu1 %3998 }
 0x2cb   : > { %9932 = vmatmul.mubr.msk.bf16.vlgmr.msra.gmra.mxu1 %vm1775_vm11, %v12270_v44  ;;  %v4023_v62 = vsel %vm4010_vm12, %v3997_v7, %v3999_v18  ;;  %v4024_v33 = vsel %vm4010_vm12, %v3999_v18, %v4001_v14  ;;  %v12288_v43 = vpop.f32.mrf.mxu0 }
 0x2cc   : > { %v3981_v11 = vpop.permute.xlu0 %3980  ;;  %9933 = vmatprep.subr.msk.bf16.mxu0 %vm13718_vm10, %v4023_v62  ;;  %4182 = vmatprep.mubr.bf16.mxu1 %v11295_v54  ;;  %v4054_v63 = vsel %vm13720_vm15, %v4024_v33, 0  ;;  %vm13727_vm10 = vmmov %vm13709_vm0 }
 0x2cd   : > { %4122 = vmatpush1.bf16.msra.mxu0 %v4048_v13  ;;  %v12291_v42 = vpop.f32.mrf.mxu0  ;;  %vm13729_vm15 = vmmov %vm13709_vm0 }
 0x2ce   : > { %v4003_v16 = vpop.permute.xlu1 %4002 }
 0x2cf   : > { %v4025_v24 = vsel %vm4010_vm12, %v4001_v14, %v4003_v16  ;;  %v2188_v61 = vpop.f32.mrf.mxu0  ;;  %v2225_v51 = vpop.f32.mrf.mxu1 }
 0x2d0   : > { %v4005_v29 = vpop.permute.xlu0 %4004  ;;  %9935 = vmatprep.subr.msk.bf16.mxu1 %vm13719_vm1, %v4025_v24  ;;  %v12302_v53 = vadd.f32 %v2225_v51, %v12211_v52  ;;  %v2187_v51 = vadd.f32 %v12291_v42, %v12039_v23  ;;  %vm13728_vm1 = vmmov %vm13709_vm0 }
 0x2d1   : > { %4163 = vmatpush1.bf16.msra.mxu1 %v4054_v63  ;;  %v4026_v58 = vsel %vm4010_vm12, %v4003_v16, %v4005_v29  ;;  %v2189_v30 = vpop.f32.mrf.mxu0  ;;  %v2227_v55 = vpop.f32.mrf.mxu1 }
 0x2d2   : > { %v3979_v60 = vpop.permute.xlu1 %3978  ;;  %v4060_v17 = vsel %vm13722_vm3, %v4026_v58, 0  ;;  %v12310_v0 = vadd.f32 %v2227_v55, %v12216_v39  ;;  %vm13731_vm3 = vmmov %vm13709_vm0 }
 0x2d3   : > { %v4014_v37 = vsel %vm4010_vm12, %v3977_v12, %v3979_v60  ;;  %v4015_v56 = vsel %vm4010_vm12, %v3979_v60, %v3981_v11  ;;  %v2229_v52 = vpop.f32.mrf.mxu1 }
 0x2d4   : > { %v4009_v10 = vpop.permute.xlu0 %4008  ;;  %4123 = vmatprep.subr.bf16.mxu0 %v4014_v37 }
 0x2d5   : > { %4124 = vmatpush1.bf16.msra.mxu0 %v4013_v6  ;;  %v2230_v3 = vpop.f32.mrf.mxu1  ;;  %v2146_v6 = vadd.f32 %v12273_v36, %v12017_v28 }
 0x2d6   : > { %v3983_v48 = vpop.permute.xlu1 %3982 }
 0x2d7   : > { %v4016_v47 = vsel %vm4010_vm12, %v3981_v11, %v3983_v48 }
 0x2d8   : > { %v3987_v26 = vpop.permute.xlu0 %3986  ;;  %9934 = vmatmul.mubr.msk.bf16.vlgmr.msra.gmra.mxu0 %vm1775_vm11, %v12270_v44  ;;  %4164 = vmatprep.subr.bf16.mxu1 %v4016_v47  ;;  %v12350_v47 = vld [vmem:[%s13594_s2 + $0x20] sm:$0xf] }
 0x2d9   : > { %4165 = vmatpush1.bf16.msra.mxu1 %v4015_v56  ;;  %4223 = vmatprep.mubr.bf16.mxu0 %v11295_v54 }
 0x2da   : > { %v4007_v50 = vpop.permute.xlu1 %4006  ;;  %10315 = vmatprep.subr.bf16.mxu1 %v10654_v22  ;;  %v2266_v45 = vpop.f32.mrf.mxu0 }
 0x2db   : > { %v4028_v20 = vsel %vm4010_vm12, %v4007_v50, %v4009_v10  ;;  %v4027_v34 = vsel %vm4010_vm12, %v4005_v29, %v4007_v50  ;;  %v12318_v39 = vadd.f32 %v2266_v45, %v12237_v9  ;;  %v2307_v32 = vpop.f32.mrf.mxu1  ;;  %v2144_v10 = vadd.f32 %v12265_v41, %v12004_v15 }
 0x2dc   : > { %v4304_v27 = vpop.permute.xlu0 %4303  ;;  %9936 = vmatmul.mubr.msk.bf16.vlgmr.msra.gmra.mxu1 %vm1775_vm11, %v12270_v44  ;;  %9937 = vmatprep.subr.msk.bf16.mxu0 %vm13721_vm9, %v4027_v34  ;;  %v4066_v38 = vsel %vm13723_vm8, %v4028_v20, 0  ;;  %v2268_v35 = vpop.f32.mrf.mxu0  ;;  %v12327_v57 = vadd.f32 %v2307_v32, %v12241_v21  ;;  %v2185_v15 = vadd.f32 %v12288_v43, %v12030_v49  ;;  %vm13730_vm9 = vmmov %vm13709_vm0 }
 0x2dd   : > { %4204 = vmatpush1.bf16.msra.mxu0 %v4060_v17  ;;  %10316 = vmatpush3.bf16.msra.mxu1 %v4066_v38  ;;  %v12324_v12 = vadd.f32 %v2268_v35, %v12246_v1  ;;  %v10273_v40 = vpop.f32.mrf.mxu1 }
 0x2de   : > { %v3985_v8 = vpop.permute.xlu1 %3984  ;;  %10317 = vmatprep.subr.bf16.mxu1 %v10654_v22  ;;  %10319 = vmatprep.mubr.msk.bf16.mxu1 %vm10655_vm2, %v10654_v22  ;;  %v2270_v9 = vpop.f32.mrf.mxu0 }
 0x2df   : > { %v4018_v2 = vsel %vm4010_vm12, %v3985_v8, %v3987_v26  ;;  %v4017_v5 = vsel %vm4010_vm12, %v3983_v48, %v3985_v8  ;;  %v2310_v21 = vpop.f32.mrf.mxu1 }
 0x2e0   : > { %v4308_v7 = vpop.permute.xlu0 %4307  ;;  %4205 = vmatprep.subr.bf16.mxu0 %v4018_v2  ;;  %v2271_v62 = vpop.f32.mrf.mxu0 }
 0x2e1   : > { %4206 = vmatpush1.bf16.msra.mxu0 %v4017_v5  ;;  %v10274_v33 = vpop.f32.mrf.mxu1 }
 0x2e2   : > { %v3989_v14 = vpop.permute.xlu1 %3988 }
 0x2e3   : > { %v4019_v25 = vsel %vm4010_vm12, %v3987_v26, %v3989_v14  ;;  %vm13724_vm12 = vmmov %vm13709_vm0 }
 0x2e4   : > { %v4312_v31 = vpop.permute.xlu0 %4311  ;;  %9938 = vmatmul.mubr.msk.bf16.vlgmr.msra.gmra.mxu0 %vm1775_vm11, %v12270_v44  ;;  %10318 = vmatpush3.bf16.msra.mxu1 %v4019_v25 }
 0x2e5   : > { %4413 = vmatprep.mubr.bf16.mxu0 %v11295_v54 }
 0x2e6   : > { %v4306_v46 = vpop.permute.xlu1 %4305 }
 0x2e7   : > { %v4333_v11 = vsel %vm4323_vm14, %v4304_v27, %v4306_v46  ;;  %10320 = vmatmul.mubr.msk.bf16.vlgmr.msra.gmra.mxu1 %vm1775_vm11, %v12270_v44  ;;  %v4334_v18 = vsel %vm4323_vm14, %v4306_v46, %v4308_v7 }
 0x2e8   : > { %v4288_v4 = vpop.permute.xlu0 %4287  ;;  %9941 = vmatprep.subr.msk.bf16.mxu0 %vm13724_vm12, %v4334_v18  ;;  %v4355_v1 = vsel %vm13725_vm13, %v4333_v11, 0  ;;  %4454 = vmatprep.mubr.bf16.mxu1 %v11295_v54 }
 0x2e9   : > { %4394 = vmatpush1.bf16.msra.mxu0 %v4355_v1 }
 0x2ea   : > { %v4310_v13 = vpop.permute.xlu1 %4309  ;;  %v2447_v48 = vpop.f32.mrf.mxu0 }
 0x2eb   : > { %v4335_v29 = vsel %vm4323_vm14, %v4308_v7, %v4310_v13  ;;  %v4336_v19 = vsel %vm4323_vm14, %v4310_v13, %v4312_v31  ;;  %v12352_v56 = vadd.f32 %v2447_v48, %v2144_v10 }
 0x2ec   : > { %v4290_v59 = vpop.permute.xlu0 %4289  ;;  %9943 = vmatprep.subr.msk.bf16.mxu1 %vm13726_vm4, %v4336_v19  ;;  %v4361_v44 = vsel %vm13727_vm10, %v4335_v29, 0  ;;  %v2449_v58 = vpop.f32.mrf.mxu0 }
 0x2ed   : > { %4435 = vmatpush1.bf16.msra.mxu1 %v4361_v44  ;;  %v12356_v41 = vadd.f32 %v2449_v58, %v2146_v6  ;;  %v4326_v50 = vsel %vm4323_vm14, %v4288_v4, %v4290_v59 }
 0x2ee   : > { %v4286_v24 = vpop.permute.xlu1 %4285  ;;  %v2451_v36 = vpop.f32.mrf.mxu0 }
 0x2ef   : > { %v4325_v63 = vsel %vm4323_vm14, %v4286_v24, %v4288_v4  ;;  %v2488_v49 = vpop.f32.mrf.mxu1 }
 0x2f0   : > { %v4314_v16 = vpop.permute.xlu0 %4313  ;;  %4395 = vmatprep.subr.bf16.mxu0 %v4325_v63  ;;  %v12366_v34 = vadd.f32 %v2488_v49, %v2185_v15  ;;  %v2452_v30 = vpop.f32.mrf.mxu0 }
 0x2f1   : > { %v4337_v20 = vsel %vm4323_vm14, %v4312_v31, %v4314_v16  ;;  %v2490_v38 = vpop.f32.mrf.mxu1 }
 0x2f2   : > { %v4284_v37 = vpop.permute.xlu1 %4283  ;;  %v4367_v23 = vsel %vm13728_vm1, %v4337_v20, 0  ;;  %v2620_v42 = vadd.f32 %v2490_v38, %v2187_v51 }
 0x2f3   : > { %v4324_v26 = vsel %vm4323_vm14, %v4284_v37, %v4286_v24  ;;  %v2492_v8 = vpop.f32.mrf.mxu1 }
 0x2f4   : > { %v4318_v60 = vpop.permute.xlu0 %4317  ;;  %4396 = vmatpush1.bf16.msra.mxu0 %v4324_v26 }
 0x2f5   : > { %v2493_v5 = vpop.f32.mrf.mxu1 }
 0x2f6   : > { %v4292_v61 = vpop.permute.xlu1 %4291 }
 0x2f7   : > { %9942 = vmatmul.mubr.msk.bf16.vlgmr.msra.gmra.mxu0 %vm1775_vm11, %v12350_v47  ;;  %v4327_v28 = vsel %vm4323_vm14, %v4290_v59, %v4292_v61 }
 0x2f8   : > { %v4294_v27 = vpop.permute.xlu0 %4293  ;;  %4436 = vmatprep.subr.bf16.mxu1 %v4327_v28  ;;  %4495 = vmatprep.mubr.bf16.mxu0 %v11295_v54 }
 0x2f9   : > { %4437 = vmatpush1.bf16.msra.mxu1 %v4326_v50  ;;  %v4328_v25 = vsel %vm4323_vm14, %v4292_v61, %v4294_v27 }
 0x2fa   : > { %v4316_v43 = vpop.permute.xlu1 %4315 }
 0x2fb   : > { %v4338_v17 = vsel %vm4323_vm14, %v4314_v16, %v4316_v43  ;;  %v4339_v7 = vsel %vm4323_vm14, %v4316_v43, %v4318_v60  ;;  %v2529_v32 = vpop.f32.mrf.mxu0 }
 0x2fc   : > { %v4298_v55 = vpop.permute.xlu0 %4297  ;;  %9944 = vmatmul.mubr.msk.bf16.vlgmr.msra.gmra.mxu1 %vm1775_vm11, %v12350_v47  ;;  %9945 = vmatprep.subr.msk.bf16.mxu0 %vm13709_vm0, %v4338_v17  ;;  %v4373_v3 = vsel %vm13730_vm9, %v4339_v7, 0  ;;  %v2621_v9 = vadd.f32 %v2529_v32, %v12302_v53  ;;  %vm4763_vm9 = vcmask 1010688  }
 0x2fd   : > { %4476 = vmatpush1.bf16.msra.mxu0 %v4367_v23  ;;  %4536 = vmatprep.mubr.bf16.mxu1 %v11295_v54  ;;  %v2531_v40 = vpop.f32.mrf.mxu0 }
 0x2fe   : > { %v4320_v52 = vpop.permute.xlu1 %4319  ;;  %v2622_v62 = vadd.f32 %v2531_v40, %v12310_v0  ;;  %v2570_v1 = vpop.f32.mrf.mxu1 }
 0x2ff   : > { %v4340_v2 = vsel %vm4323_vm14, %v4318_v60, %v4320_v52  ;;  %v2533_v21 = vpop.f32.mrf.mxu0  ;;  %v2623_v59 = vadd.f32 %v2570_v1, %v12318_v39 }
 0x300   : > { %9947 = vmatprep.subr.msk.bf16.mxu1 %vm13729_vm15, %v4340_v2  ;;  %v4322_v31 = vpop.permute.xlu0 %4321  ;;  %v2572_v13 = vpop.f32.mrf.mxu1 }
 0x301   : > { %4517 = vmatpush1.bf16.msra.mxu1 %v4373_v3  ;;  %v4341_v35 = vsel %vm4323_vm14, %v4320_v52, %v4322_v31  ;;  %v2534_v29 = vpop.f32.mrf.mxu0  ;;  %v2624_v19 = vadd.f32 %v2572_v13, %v12324_v12 }
 0x302   : > { %v4296_v45 = vpop.permute.xlu1 %4295  ;;  %v4379_v18 = vsel %vm13731_vm3, %v4341_v35, 0  ;;  %v2574_v0 = vpop.f32.mrf.mxu1  ;;  %vm4818_vm3 = vcmask 588800  }
 0x303   : > { %v4329_v14 = vsel %vm4323_vm14, %v4294_v27, %v4296_v45  ;;  %v4330_v11 = vsel %vm4323_vm14, %v4296_v45, %v4298_v55 }
 0x304   : > { %4477 = vmatprep.subr.bf16.mxu0 %v4329_v14  ;;  %v2575_v16 = vpop.f32.mrf.mxu1 }
 0x305   : > { %4478 = vmatpush1.bf16.msra.mxu0 %v4328_v25 }
 0x306   : > { %v4300_v4 = vpop.permute.xlu1 %4299  ;;  %10323 = vmatprep.subr.bf16.mxu0 %v10654_v22 }
 0x307   : > { %v4331_v46 = vsel %vm4323_vm14, %v4298_v55, %v4300_v4 }
 0x308   : > { %9946 = vmatmul.mubr.msk.bf16.vlgmr.msra.gmra.mxu0 %vm1775_vm11, %v12350_v47  ;;  %4518 = vmatprep.subr.bf16.mxu1 %v4331_v46 }
 0x309   : > { %4519 = vmatpush1.bf16.msra.mxu1 %v4330_v11  ;;  %10324 = vmatpush3.bf16.msra.mxu0 %v4379_v18  ;;  %v2611_v44 = vpop.f32.mrf.mxu0 }
 0x30a   : > { %v4302_v53 = vpop.permute.xlu1 %4301  ;;  %10325 = vmatprep.subr.bf16.mxu0 %v10654_v22  ;;  %10327 = vmatprep.mubr.msk.bf16.mxu0 %vm10655_vm2, %v10654_v22  ;;  %v2625_v39 = vadd.f32 %v2611_v44, %v12327_v57 }
 0x30b   : > { %v4332_v33 = vsel %vm4323_vm14, %v4300_v4, %v4302_v53  ;;  %v10281_v24 = vpop.f32.mrf.mxu0 }
 0x30c   : > { %9948 = vmatmul.mubr.msk.bf16.vlgmr.msra.gmra.mxu1 %vm1775_vm11, %v12350_v47 }
 0x30d   : > { %10326 = vmatpush3.bf16.msra.mxu0 %v4332_v33  ;;  %4892 = vmatprep.mubr.bf16.mxu1 %v11295_v54  ;;  %v2614_v63 = vpop.f32.mrf.mxu0 }
 0x30f   : > { %v10282_v10 = vpop.f32.mrf.mxu0  ;;  %v2760_v12 = vpop.f32.mrf.mxu1 }
 0x310   : > { %10328 = vmatmul.mubr.msk.bf16.vlgmr.msra.gmra.mxu0 %vm1775_vm11, %v12350_v47  ;;  %v2930_v60 = vadd.f32 %v2760_v12, %v12352_v56 }
 0x311   : > { %4933 = vmatprep.mubr.bf16.mxu0 %v11295_v54  ;;  %v2762_v37 = vpop.f32.mrf.mxu1 }
 0x312   : > { %v2931_v6 = vadd.f32 %v2762_v37, %v12356_v41 }
 0x313   : > { %v2764_v26 = vpop.f32.mrf.mxu1 }
 0x315   : > { %v2765_v48 = vpop.f32.mrf.mxu1 }
 0x31b   : > { %v2801_v58 = vpop.f32.mrf.mxu0 }
 0x31c   : > { %v2932_v57 = vadd.f32 %v2801_v58, %v12366_v34 }
 0x31d   : > { %v2803_v27 = vpop.f32.mrf.mxu0 }
 0x31e   : > { %v2933_v61 = vadd.f32 %v2803_v27, %v2620_v42 }
 0x31f   : > { %v2842_v15 = vpop.f32.mrf.mxu1  ;;  %v2805_v28 = vpop.f32.mrf.mxu0 }
 0x320   : > { %v2934_v47 = vadd.f32 %v2842_v15, %v2621_v9 }
 0x321   : > { %v2844_v36 = vpop.f32.mrf.mxu1  ;;  %v2806_v50 = vpop.f32.mrf.mxu0 }
 0x322   : > { %v2935_v51 = vadd.f32 %v2844_v36, %v2622_v62 }
 0x323   : > { %v2846_v20 = vpop.f32.mrf.mxu1 }
 0x325   : > { %v2847_v49 = vpop.f32.mrf.mxu1 }
 0x32a   : > { %v2883_v43 = vpop.f32.mrf.mxu0 }
 0x32b   : > { %v2936_v56 = vadd.f32 %v2883_v43, %v2623_v59 }
 0x32c   : > { %v2885_v30 = vpop.f32.mrf.mxu0 }
 0x32d   : > { %v2937_v17 = vadd.f32 %v2885_v30, %v2624_v19 }
 0x32e   : > { %v2887_v38 = vpop.f32.mrf.mxu0 }
 0x330   : > { %v2888_v7 = vpop.f32.mrf.mxu0 }
 0x332   : > { %v3089_v8 = vpop.f32.mrf.mxu0 }
 0x333   : > { %v2924_v41 = vpop.f32.mrf.mxu1  ;;  %v3259_v42 = vadd.f32 %v3089_v8, %v2930_v60 }
 0x334   : > { %v2938_v55 = vadd.f32 %v2924_v41, %v2625_v39  ;;  %v3091_v2 = vpop.f32.mrf.mxu0 }
 0x335   : > { %v10289_v23 = vpop.f32.mrf.mxu1  ;;  %v3260_v5 = vadd.f32 %v3091_v2, %v2931_v6 }
 0x336   : > { %v3093_v31 = vpop.f32.mrf.mxu0 }
 0x337   : > { %v2927_v34 = vpop.f32.mrf.mxu1 }
 0x338   : > { %v3094_v25 = vpop.f32.mrf.mxu0 }
 0x339   : > { %v10290_v52 = vpop.f32.mrf.mxu1 }
 0x33a   : > { %v3171_v4 = vpop.f32.mrf.mxu0 }
 0x33b   : > { %v3130_v3 = vpop.f32.mrf.mxu1  ;;  %v3263_v9 = vadd.f32 %v3171_v4, %v2934_v47 }
 0x33c   : > { %v3261_v45 = vadd.f32 %v3130_v3, %v2932_v57  ;;  %v3173_v40 = vpop.f32.mrf.mxu0 }
 0x33d   : > { %v3132_v14 = vpop.f32.mrf.mxu1  ;;  %v3264_v11 = vadd.f32 %v3173_v40, %v2935_v51 }
 0x33e   : > { %v3262_v35 = vadd.f32 %v3132_v14, %v2933_v61  ;;  %v3175_v62 = vpop.f32.mrf.mxu0 }
 0x33f   : > { %v3134_v32 = vpop.f32.mrf.mxu1 }
 0x340   : > { %v3176_v59 = vpop.f32.mrf.mxu0 }
 0x341   : > { %v3135_v46 = vpop.f32.mrf.mxu1 }
 0x342   : > { %v3253_v33 = vpop.f32.mrf.mxu0 }
 0x343   : > { %v3212_v18 = vpop.f32.mrf.mxu1  ;;  %v3267_v29 = vadd.f32 %v3253_v33, %v2938_v55 }
 0x344   : > { %v3265_v1 = vadd.f32 %v3212_v18, %v2936_v56  ;;  %v10297_v0 = vpop.f32.mrf.mxu0 }
 0x345   : > { %v3214_v21 = vpop.f32.mrf.mxu1 }
 0x346   : > { %v3266_v53 = vadd.f32 %v3214_v21, %v2937_v17  ;;  %v3256_v39 = vpop.f32.mrf.mxu0 }
 0x347   : > { %v3216_v13 = vpop.f32.mrf.mxu1 }
 0x348   : > { %v10298_v63 = vpop.f32.mrf.mxu0 }
 0x349   : > { %v3217_v19 = vpop.f32.mrf.mxu1 }
 0x34b   : > { %v3396_v44 = vpop.f32.mrf.mxu1 }
 0x34c   : > { %v3566_v16 = vadd.f32 %v3396_v44, %v3259_v42 }
 0x34d   : > { %v3398_v24 = vpop.f32.mrf.mxu1  ;;  %v3437_v60 = vpop.f32.mrf.mxu0 }
 0x34e   : > { %v3567_v10 = vadd.f32 %v3398_v24, %v3260_v5  ;;  %v3568_v37 = vadd.f32 %v3437_v60, %v3261_v45 }
 0x34f   : > { %v3400_v12 = vpop.f32.mrf.mxu1  ;;  %v3439_v26 = vpop.f32.mrf.mxu0 }
 0x350   : > { %v3569_v48 = vadd.f32 %v3439_v26, %v3262_v35 }
 0x351   : > { %v3401_v6 = vpop.f32.mrf.mxu1  ;;  %v3441_v57 = vpop.f32.mrf.mxu0 }
 0x353   : > { %v3478_v58 = vpop.f32.mrf.mxu1  ;;  %v3442_v15 = vpop.f32.mrf.mxu0 }
 0x354   : > { %v3570_v27 = vadd.f32 %v3478_v58, %v3263_v9 }
 0x355   : > { %v3480_v61 = vpop.f32.mrf.mxu1 }
 0x356   : > { %v3571_v28 = vadd.f32 %v3480_v61, %v3264_v11 }
 0x357   : > { %v3482_v47 = vpop.f32.mrf.mxu1 }
 0x358   : > { %v3519_v36 = vpop.f32.mrf.mxu0  ;;  %v4664_v47 = vlaneseq }
 0x359   : > { %v3572_v50 = vadd.f32 %v3519_v36, %v3265_v1  ;;  %v3483_v51 = vpop.f32.mrf.mxu1 }
 0x35a   : > { %v3521_v20 = vpop.f32.mrf.mxu0  ;;  %v12425_v51 = vpop.permute.xlu0 %4597 }
 0x35b   : > { %v3573_v49 = vadd.f32 %v3521_v20, %v3266_v53  ;;  %v12427_v20 = vshrl.u32 %v4664_v47, 7 }
 0x35c   : > { %v3560_v43 = vpop.f32.mrf.mxu1  ;;  %v3523_v30 = vpop.f32.mrf.mxu0 }
 0x35d   : > { %v3574_v56 = vadd.f32 %v3560_v43, %v3267_v29  ;;  %v12429_v30 = vpop.permute.xlu1 %4637 }
 0x35e   : > { %v10305_v17 = vpop.f32.mrf.mxu1  ;;  %v3524_v41 = vpop.f32.mrf.mxu0 }
 0x360   : > { %v3563_v38 = vpop.f32.mrf.mxu1 }
 0x362   : > { %v10306_v55 = vpop.f32.mrf.mxu1 }
 0x367   : > { %v3789_v23 = vpop.f32.mrf.mxu0 }
 0x368   : > { %v3959_v7 = vadd.f32 %v3789_v23, %v3566_v16  ;;  %v4666_v23 = vsub.s32 0, %v12427_v20 }
 0x369   : > { %v3791_v34 = vpop.f32.mrf.mxu0 }
 0x36a   : > { %v3960_v8 = vadd.f32 %v3791_v34, %v3567_v10 }
 0x36b   : > { %v3793_v42 = vpop.f32.mrf.mxu0 }
 0x36c   : > { %v3830_v52 = vpop.f32.mrf.mxu1 }
 0x36d   : > { %v3961_v2 = vadd.f32 %v3830_v52, %v3568_v37  ;;  %v3794_v5 = vpop.f32.mrf.mxu0  ;;  %v4670_v52 = vsub.s32 1, %v12427_v20 }
 0x36e   : > { %v3832_v3 = vpop.f32.mrf.mxu1 }
 0x36f   : > { %v3962_v31 = vadd.f32 %v3832_v3, %v3569_v48 }
 0x370   : > { %v3834_v45 = vpop.f32.mrf.mxu1 }
 0x371   : > { %v12438_v45 = vld [vmem:[%s13598_s6] sm:$0xff] }
 0x372   : > { %v3835_v14 = vpop.f32.mrf.mxu1 }
 0x378   : > { %v3871_v25 = vpop.f32.mrf.mxu0 }
 0x379   : > { %v12405_v35 = vadd.f32 %v3871_v25, %v3570_v27 }
 0x37a   : > { %v3873_v32 = vpop.f32.mrf.mxu0 }
 0x37b   : > { %v12407_v4 = vadd.f32 %v3873_v32, %v3571_v28 }
 0x37c   : > { %v3875_v9 = vpop.f32.mrf.mxu0  ;;  %v3912_v46 = vpop.f32.mrf.mxu1 }
 0x37d   : > { %v12409_v40 = vadd.f32 %v3912_v46, %v3572_v50 }
 0x37e   : > { %v3876_v11 = vpop.f32.mrf.mxu0  ;;  %v3914_v18 = vpop.f32.mrf.mxu1 }
 0x37f   : > { %v12411_v62 = vadd.f32 %v3914_v18, %v3573_v49  ;;  %v12442_v11 = vpop.permute.xlu1 %4650 }
 0x380   : > { %v3953_v1 = vpop.f32.mrf.mxu0  ;;  %v3916_v21 = vpop.f32.mrf.mxu1 }
 0x381   : > { %v12413_v59 = vadd.f32 %v3953_v1, %v3574_v56  ;;  %v12445_v1 = vrot.slane %v12438_v45, %v4666_v23  ;;  %v12448_v21 = vrot.slane %v12438_v45, %v4670_v52  ;;  %v4686_v23 = vsub.s32 5, %v12427_v20 }
 0x382   : > { %v3917_v53 = vpop.f32.mrf.mxu1  ;;  %v10313_v13 = vpop.f32.mrf.mxu0 }
 0x384   : > { %v3956_v33 = vpop.f32.mrf.mxu0 }
 0x386   : > { %v10314_v29 = vpop.f32.mrf.mxu0 }
 0x38b   : > { %v4102_v19 = vpop.f32.mrf.mxu1 }
 0x38c   : > { %v4272_v36 = vadd.f32 %v4102_v19, %v3959_v7 }
 0x38d   : > { %v4104_v0 = vpop.f32.mrf.mxu1 }
 0x38e   : > { %v4273_v49 = vadd.f32 %v4104_v0, %v3960_v8  ;;  %v4674_v0 = vsub.s32 2, %v12427_v20 }
 0x38f   : > { %v4106_v44 = vpop.f32.mrf.mxu1 }
 0x390   : > { %v4678_v44 = vsub.s32 3, %v12427_v20 }
 0x391   : > { %v4107_v39 = vpop.f32.mrf.mxu1 }
 0x398   : > { %v4143_v16 = vpop.f32.mrf.mxu0 }
 0x399   : > { %v4274_v38 = vadd.f32 %v4143_v16, %v3961_v2 }
 0x39a   : > { %v4145_v24 = vpop.f32.mrf.mxu0 }
 0x39b   : > { %v4275_v5 = vadd.f32 %v4145_v24, %v3962_v31 }
 0x39c   : > { %v12415_v63 = vpop.f32.mrf.mxu1  ;;  %v4147_v10 = vpop.f32.mrf.mxu0 }
 0x39e   : > { %v12417_v12 = vpop.f32.mrf.mxu1  ;;  %v4148_v60 = vpop.f32.mrf.mxu0 }
 0x3a0   : > { %v4188_v37 = vpop.f32.mrf.mxu1 }
 0x3a2   : > { %v4189_v6 = vpop.f32.mrf.mxu1 }
 0x3a4   : > { %v12419_v26 = vpop.f32.mrf.mxu0 }
 0x3a6   : > { %v12421_v48 = vpop.f32.mrf.mxu0 }
 0x3a7   : > { %v12423_v58 = vpop.f32.mrf.mxu1 }
 0x3a8   : > { %v4229_v57 = vpop.f32.mrf.mxu0 }
 0x3a9   : > { %v10321_v27 = vpop.f32.mrf.mxu1 }
 0x3aa   : > { %v4230_v61 = vpop.f32.mrf.mxu0 }
 0x3ab   : > { %v4269_v15 = vpop.f32.mrf.mxu1  ;;  %v12466_v61 = vrot.slane %v12438_v45, %v4674_v0 }
 0x3ac   : > { %v12469_v15 = vrot.slane %v12438_v45, %v4678_v44 }
 0x3ad   : > { %v10322_v28 = vpop.f32.mrf.mxu1 }
 0x3ae   : > { %v4276_v28 = vadd.f32 %v12415_v63, %v12405_v35  ;;  %v4278_v35 = vadd.f32 %v12419_v26, %v12409_v40  ;;  %v4280_v40 = vadd.f32 %v12423_v58, %v12413_v59 }
 0x3b7   : > { %v4415_v50 = vpop.f32.mrf.mxu0 }
 0x3b8   : > { %v4585_v43 = vadd.f32 %v4415_v50, %v4272_v36 }
 0x3b9   : > { %v4417_v56 = vpop.f32.mrf.mxu0 }
 0x3ba   : > { %v4600_v17 = vadd.f32 %v12425_v51, %v4585_v43  ;;  %v4586_v41 = vadd.f32 %v4417_v56, %v4273_v49  ;;  %v4277_v49 = vadd.f32 %v12417_v12, %v12407_v4  ;;  %v4682_v56 = vsub.s32 4, %v12427_v20 }
 0x3bb   : > { %v4419_v55 = vpop.f32.mrf.mxu0 }
 0x3bc   : > { %v4618_v34 = vmul.f32 0.01, %v4600_v17  ;;  %v4601_v7 = vadd.f32 %v12425_v51, %v4586_v41  ;;  %v4456_v42 = vpop.f32.mrf.mxu1  ;;  %vm4609_vm11 = vcmp.ge.f32.partialorder %v4600_v17, 0.0  ;;  %v12497_v26 = vrot.slane %v12438_v45, %v4682_v56 }
 0x3bd   : > { %v4587_v8 = vadd.f32 %v4456_v42, %v4274_v38  ;;  %v4420_v3 = vpop.f32.mrf.mxu0 }
 0x3be   : > { %vm4610_vm8 = vcmp.ge.f32.partialorder %v4601_v7, 0.0  ;;  %v4619_v2 = vmul.f32 0.01, %v4601_v7  ;;  %v4627_v14 = vsel %vm4609_vm11, %v4600_v17, %v4618_v34  ;;  %v4458_v25 = vpop.f32.mrf.mxu1  ;;  %vm4832_vm11 = vcmask 1043456  }
 0x3bf   : > { %v4602_v32 = vadd.f32 %v12425_v51, %v4587_v8  ;;  %v4640_v9 = vmul.f32 %v12429_v30, %v4627_v14  ;;  %v4588_v46 = vadd.f32 %v4458_v25, %v4275_v5  ;;  %v4279_v5 = vadd.f32 %v12421_v48, %v12411_v62 }
 0x3c0   : > { %v4628_v18 = vsel %vm4610_vm8, %v4601_v7, %v4619_v2  ;;  %v4460_v31 = vpop.f32.mrf.mxu1  ;;  %v4690_v62 = vsub.s32 6, %v12427_v20  ;;  %vm4828_vm8 = vcmask 64512  }
 0x3c1   : > { %vm4611_vm12 = vcmp.ge.f32.partialorder %v4602_v32, 0.0  ;;  %v4620_v53 = vmul.f32 0.01, %v4602_v32  ;;  %v4641_v13 = vmul.f32 %v12429_v30, %v4628_v18  ;;  %v4603_v33 = vadd.f32 %v12425_v51, %v4588_v46 }
 0x3c2   : > { %v4653_v29 = vadd.f32 %v12442_v11, %v4640_v9  ;;  %v4461_v19 = vpop.f32.mrf.mxu1  ;;  %v12502_v9 = vrot.slane %v12438_v45, %v4686_v23  ;;  %v12531_v56 = vrot.slane %v12438_v45, %v4690_v62 }
 0x3c3   : > { %v4629_v39 = vsel %vm4611_vm12, %v4602_v32, %v4620_v53  ;;  %vm4612_vm13 = vcmp.ge.f32.partialorder %v4603_v33, 0.0  ;;  %v4621_v16 = vmul.f32 0.01, %v4603_v33  ;;  %v4654_v24 = vadd.f32 %v12442_v11, %v4641_v13 }
 0x3c4   : > { %v4642_v10 = vmul.f32 %v12429_v30, %v4629_v39  ;;  %v12458_v37 = vmul.f32 %v12445_v1, %v4653_v29  ;;  %vm5084_vm12 = vcmask 605184  }
 0x3c5   : > { %v4630_v60 = vsel %vm4612_vm13, %v4603_v33, %v4621_v16  ;;  %v12461_v6 = vmul.f32 %v12448_v21, %v4654_v24  ;;  %v4694_v16 = vsub.s32 7, %v12427_v20  ;;  %vm5350_vm13 = vcmask 572416  }
 0x3c6   : > { %v4643_v57 = vmul.f32 %v12429_v30, %v4630_v60  ;;  %v4655_v27 = vadd.f32 %v12442_v11, %v4642_v10 }
 0x3c7   : > { %v10190_v47 = vpack.c.bf16 %v12461_v6, %v12458_v37 }
 0x3c8   : > { %v4656_v36 = vadd.f32 %v12442_v11, %v4643_v57  ;;  %v4497_v50 = vpop.f32.mrf.mxu0  ;;  %v12480_v41 = vmul.f32 %v12466_v61, %v4655_v27 }
 0x3c9   : > { %v4589_v43 = vadd.f32 %v4497_v50, %v4276_v28  ;;  %4759 = vst [vmem:[#allocation3 + $0x4] sm:$0xff] %v10190_v47 }
 0x3ca   : > { %v4499_v17 = vpop.f32.mrf.mxu0  ;;  %v12483_v38 = vmul.f32 %v12469_v15, %v4656_v36 }
 0x3cb   : > { %v4604_v63 = vadd.f32 %v12425_v51, %v4589_v43  ;;  %v4590_v55 = vadd.f32 %v4499_v17, %v4277_v49 }
 0x3cc   : > { %v4501_v4 = vpop.f32.mrf.mxu0  ;;  %v4538_v12 = vpop.f32.mrf.mxu1  ;;  %v10191_v34 = vpack.c.bf16 %v12483_v38, %v12480_v41 }
 0x3cd   : > { %vm4613_vm4 = vcmp.ge.f32.partialorder %v4604_v63, 0.0  ;;  %v4622_v7 = vmul.f32 0.01, %v4604_v63  ;;  %v4605_v42 = vadd.f32 %v12425_v51, %v4590_v55  ;;  %v4591_v52 = vadd.f32 %v4538_v12, %v4278_v35 }
 0x3ce   : > { %v4502_v8 = vpop.f32.mrf.mxu0  ;;  %v4540_v3 = vpop.f32.mrf.mxu1  ;;  %4760 = vst [vmem:[#allocation3 + $0xc] sm:$0xff] %v10191_v34  ;;  %v12534_v35 = vrot.slane %v12438_v45, %v4694_v16  ;;  %v9950_v34 = vld [vmem:[%s13598_s6 + $0x8] ss:$0 sm:$0xff] }
 0x3cf   : > { %v4631_v2 = vsel %vm4613_vm4, %v4604_v63, %v4622_v7  ;;  %vm4614_vm10 = vcmp.ge.f32.partialorder %v4605_v42, 0.0  ;;  %v4623_v14 = vmul.f32 0.01, %v4605_v42  ;;  %v4606_v25 = vadd.f32 %v12425_v51, %v4591_v52 }
 0x3d0   : > { %v4644_v32 = vmul.f32 %v12429_v30, %v4631_v2  ;;  %v4592_v48 = vadd.f32 %v4540_v3, %v4279_v5  ;;  %v4542_v59 = vpop.f32.mrf.mxu1  ;;  %v4579_v58 = vpop.f32.mrf.mxu0  ;;  %v4765_v46 = vld [vmem:[#allocation3] sm:$0xff]  ;;  %vm5625_vm4 = vcmask 15360  }
 0x3d1   : > { %v4632_v18 = vsel %vm4614_vm10, %v4605_v42, %v4623_v14  ;;  %vm4615_vm0 = vcmp.ge.f32.partialorder %v4606_v25, 0.0  ;;  %v4624_v31 = vmul.f32 0.01, %v4606_v25  ;;  %v4593_v53 = vadd.f32 %v4579_v58, %v4280_v40 }
 0x3d2   : > { %v4657_v13 = vadd.f32 %v12442_v11, %v4644_v32  ;;  %v4645_v33 = vmul.f32 %v12429_v30, %v4632_v18  ;;  %v4607_v29 = vadd.f32 %v12425_v51, %v4592_v48  ;;  %v4543_v19 = vpop.f32.mrf.mxu1  ;;  %v10329_v0 = vpop.f32.mrf.mxu0  ;;  %v12508_v44 = vcombine.high %v4765_v46, %v4765_v46 }
 0x3d3   : > { %v4633_v39 = vsel %vm4615_vm0, %v4606_v25, %v4624_v31  ;;  %v4608_v24 = vadd.f32 %v12425_v51, %v4593_v53  ;;  %v12512_v10 = vcombine.low %v4765_v46, %v4765_v46  ;;  %v12579_v59 = vpack.c.bf16 %v12461_v6, %v12461_v6 }
 0x3d4   : > { %v4658_v60 = vadd.f32 %v12442_v11, %v4645_v33  ;;  %v4646_v57 = vmul.f32 %v12429_v30, %v4633_v39  ;;  %vm4616_vm1 = vcmp.ge.f32.partialorder %v4607_v29, 0.0  ;;  %4800 = vrot.lane.b32.xlu1 %v12508_v44, %s13627_s18  ;;  %v4582_v27 = vpop.f32.mrf.mxu0  ;;  %v4625_v28 = vmul.f32 0.01, %v4607_v29 }
 0x3d5   : > { %vm4617_vm15 = vcmp.ge.f32.partialorder %v4608_v24, 0.0  ;;  %v4626_v47 = vmul.f32 0.01, %v4608_v24  ;;  %4798 = vrot.lane.b32.xlu0 %v12512_v10, %s13627_s18  ;;  %v4766_v20 = vld [vmem:[#allocation3 + $0x8] sm:$0xff]  ;;  %v12521_v51 = vmul.f32 %v12497_v26, %v4657_v13  ;;  %v12583_v58 = vpack.c.bf16 %v12458_v37, %v12458_v37 }
 0x3d6   : > { %v12524_v36 = vmul.f32 %v12502_v9, %v4658_v60  ;;  %v10330_v50 = vpop.f32.mrf.mxu0  ;;  %v12526_v49 = vcombine.high %v4766_v20, %v4766_v20  ;;  %v12528_v43 = vcombine.low %v4766_v20, %v4766_v20  ;;  %v4634_v17 = vsel %vm4616_vm1, %v4607_v29, %v4625_v28 }
 0x3d7   : > { %v4635_v63 = vsel %vm4617_vm15, %v4608_v24, %v4626_v47  ;;  %v4659_v23 = vadd.f32 %v12442_v11, %v4646_v57  ;;  %v4647_v4 = vmul.f32 %v12429_v30, %v4634_v17  ;;  %v12589_v46 = vpack.c.bf16 %v12483_v38, %v12483_v38  ;;  %v9956_v24 = vld [vmem:[%s13595_s3 + $0x4] sm:$0xf] }
 0x3d8   : > { %v10192_v55 = vpack.c.bf16 %v12524_v36, %v12521_v51  ;;  %v4648_v12 = vmul.f32 %v12429_v30, %v4635_v63  ;;  %4804 = vrot.lane.b32.xlu1 %v12526_v49, %s13627_s18  ;;  %v12593_v18 = vpack.c.bf16 %v12480_v41, %v12480_v41  ;;  %v12599_v37 = vpack.c.bf16 %v12524_v36, %v12524_v36 }
 0x3d9   : > { %4802 = vrot.lane.b32.xlu0 %v12528_v43, %s13627_s18  ;;  %v4660_v45 = vadd.f32 %v12442_v11, %v4647_v4  ;;  %v12551_v42 = vmul.f32 %v12531_v56, %v4659_v23  ;;  %v12603_v6 = vpack.c.bf16 %v12521_v51, %v12521_v51  ;;  %vm6171_vm10 = vcmask 1031168  }
 0x3da   : > { %4761 = vst [vmem:[#allocation3 + $0x14] sm:$0xff] %v10192_v55  ;;  %v4661_v7 = vadd.f32 %v12442_v11, %v4648_v12  ;;  %vm6475_vm0 = vcmask 474112   ;;  %vm13732_vm1 = vcmask 457728  }
 0x3db   : > { %v12554_v30 = vmul.f32 %v12534_v35, %v4660_v45  ;;  %v12613_v38 = vpack.c.bf16 %v12551_v42, %v12551_v42  ;;  %vm13733_vm15 = vmmov %vm13732_vm1 }
 0x3dc   : > { %v4717_v52 = vmul.f32 %v9950_v34, %v4661_v7 }
 0x3dd   : > { %v10193_v5 = vpack.c.bf16 %v12554_v30, %v12551_v42  ;;  %v12609_v41 = vpack.c.bf16 %v12554_v30, %v12554_v30 }
 0x3de   : > { %v10194_v40 = vpack.c.bf16 %v4717_v52, %v4717_v52 }
 0x3df   : > { %4762 = vst [vmem:[#allocation3 + $0x1c] sm:$0xff] %v10193_v5 }
 0x3e0   : > { %4764 = vst.msk [vmem:[#allocation3 + $0x24] sm:$0xf] %vm4763_vm9, %v10194_v40 }
 0x3e1   : > { %v4767_v8 = vld [vmem:[#allocation3 + $0x10] sm:$0xff] }
 0x3e2   : > { %v9962_v3 = vcombine.high %v4767_v8, %v4767_v8  ;;  %v9961_v2 = vcombine.low %v4767_v8, %v4767_v8 }
 0x3e4   : > { %4808 = vrot.lane.b32.xlu1 %v9962_v3, %s13627_s18  ;;  %4806 = vrot.lane.b32.xlu0 %v9961_v2, %s13627_s18 }
 0x3e6   : > { %v4768_v11 = vld [vmem:[#allocation3 + $0x18] sm:$0xff] }
 0x3e7   : > { %v9964_v14 = vcombine.high %v4768_v11, %v4768_v11  ;;  %v9963_v25 = vcombine.low %v4768_v11, %v4768_v11  ;;  %v4769_v32 = vld [vmem:[#allocation3 + $0x20] sm:$0xff] }
 0x3e8   : > { %v9966_v62 = vcombine.high %v4769_v32, %v4769_v32  ;;  %v9965_v48 = vcombine.low %v4769_v32, %v4769_v32  ;;  %v12617_v31 = vld [vmem:[#allocation3 + $0x24] ss:$0 sps:$4 sm:$0xff]  }
 0x3e9   : > { %4812 = vrot.lane.b32.xlu1 %v9964_v14, %s13627_s18  ;;  %4810 = vrot.lane.b32.xlu0 %v9963_v25, %s13627_s18  ;;  %v6427_v33 = vld [vmem:[#allocation3 + $0x24] sm:$0xff] }
 0x3ea   : > { %v12628_v0 = vcombine.low %v6427_v33, %v6427_v33  ;;  %v12635_v16 = vcombine.high %v6427_v33, %v6427_v33 }
 0x3ed   : > { %4816 = vrot.lane.b32.xlu1 %v9966_v62, %s13627_s18  ;;  %4814 = vrot.lane.b32.xlu0 %v9965_v48, %s13627_s18  ;;  %s10663_s18 = smov 2  }
 0x3f1   : > { %5066 = vrot.lane.b32.xlu1 %v12508_v44, %s10661_s12  ;;  %5064 = vrot.lane.b32.xlu0 %v12512_v10, %s10661_s12 }
 0x3f5   : > { %5070 = vrot.lane.b32.xlu1 %v12526_v49, %s10661_s12  ;;  %5068 = vrot.lane.b32.xlu0 %v12528_v43, %s10661_s12 }
 0x3f9   : > { %5074 = vrot.lane.b32.xlu1 %v9962_v3, %s10661_s12  ;;  %5072 = vrot.lane.b32.xlu0 %v9961_v2, %s10661_s12 }
 0x3fd   : > { %5078 = vrot.lane.b32.xlu1 %v9964_v14, %s10661_s12  ;;  %5076 = vrot.lane.b32.xlu0 %v9963_v25, %s10661_s12 }
 0x401   : > { %5082 = vrot.lane.b32.xlu1 %v9966_v62, %s10661_s12  ;;  %5080 = vrot.lane.b32.xlu0 %v9965_v48, %s10661_s12  ;;  %s10664_s12 = smov 126  }
 0x405   : > { %5332 = vrot.lane.b32.xlu1 %v12508_v44, %s10662_s24  ;;  %5330 = vrot.lane.b32.xlu0 %v12512_v10, %s10662_s24 }
 0x409   : > { %5336 = vrot.lane.b32.xlu1 %v12526_v49, %s10662_s24  ;;  %5334 = vrot.lane.b32.xlu0 %v12528_v43, %s10662_s24 }
 0x40d   : > { %5340 = vrot.lane.b32.xlu1 %v9962_v3, %s10662_s24  ;;  %5338 = vrot.lane.b32.xlu0 %v9961_v2, %s10662_s24 }
 0x411   : > { %5344 = vrot.lane.b32.xlu1 %v9964_v14, %s10662_s24  ;;  %5342 = vrot.lane.b32.xlu0 %v9963_v25, %s10662_s24 }
 0x415   : > { %5348 = vrot.lane.b32.xlu1 %v9966_v62, %s10662_s24  ;;  %5346 = vrot.lane.b32.xlu0 %v9965_v48, %s10662_s24  ;;  %s13754_s24 = smov 16  }
 0x419   : > { %5607 = vrot.lane.b32.xlu1 %v12508_v44, %s10663_s18  ;;  %5605 = vrot.lane.b32.xlu0 %v12512_v10, %s10663_s18 }
 0x41d   : > { %5611 = vrot.lane.b32.xlu1 %v12526_v49, %s10663_s18  ;;  %5609 = vrot.lane.b32.xlu0 %v12528_v43, %s10663_s18 }
 0x421   : > { %5615 = vrot.lane.b32.xlu1 %v9962_v3, %s10663_s18  ;;  %5613 = vrot.lane.b32.xlu0 %v9961_v2, %s10663_s18  ;;  %v4770_v2 = vld [vmem:[%s13595_s3] sm:$0xf] }
 0x425   : > { %5619 = vrot.lane.b32.xlu1 %v9964_v14, %s10663_s18  ;;  %5617 = vrot.lane.b32.xlu0 %v9963_v25, %s10663_s18 }
 0x429   : > { %5623 = vrot.lane.b32.xlu1 %v9966_v62, %s10663_s18  ;;  %5621 = vrot.lane.b32.xlu0 %v9965_v48, %s10663_s18  ;;  %s10665_s18 = smov 58  }
 0x42d   : > { %6155 = vrot.lane.b32.xlu1 %v12579_v59, %s10664_s12  ;;  %6153 = vrot.lane.b32.xlu0 %v12583_v58, %s10664_s12 }
 0x431   : > { %6159 = vrot.lane.b32.xlu1 %v12589_v46, %s10664_s12  ;;  %6157 = vrot.lane.b32.xlu0 %v12593_v18, %s10664_s12 }
 0x435   : > { %6163 = vrot.lane.b32.xlu1 %v12599_v37, %s10664_s12  ;;  %6161 = vrot.lane.b32.xlu0 %v12603_v6, %s10664_s12 }
 0x439   : > { %6167 = vrot.lane.b32.xlu1 %v12609_v41, %s10664_s12  ;;  %6165 = vrot.lane.b32.xlu0 %v12613_v38, %s10664_s12 }
 0x43d   : > { %6455 = vrot.lane.b32.xlu1 %v12583_v58, %s10665_s18  ;;  %6169 = vrot.lane.b32.xlu0 %v12617_v31, %s10664_s12  ;;  %s13755_s12 = smov 8  }
 0x441   : > { %6459 = vrot.lane.b32.xlu1 %v12593_v18, %s10665_s18  ;;  %6457 = vrot.lane.b32.xlu0 %v12579_v59, %s10665_s18 }
 0x445   : > { %6463 = vrot.lane.b32.xlu1 %v12603_v6, %s10665_s18  ;;  %6461 = vrot.lane.b32.xlu0 %v12589_v46, %s10665_s18 }
 0x446   : > { %v4801_v13 = vpop.permute.xlu1 %4800 }
 0x447   : > { %v4799_v53 = vpop.permute.xlu0 %4798 }
 0x448   : > { %v4819_v29 = vsel %vm4818_vm3, %v4799_v53, %v4801_v13 }
 0x449   : > { %6467 = vrot.lane.b32.xlu1 %v12613_v38, %s10665_s18  ;;  %6465 = vrot.lane.b32.xlu0 %v12599_v37, %s10665_s18  ;;  %v4834_v39 = vsel %vm4832_vm11, %v4819_v29, 0 }
 0x44a   : > { %v4805_v10 = vpop.permute.xlu1 %4804 }
 0x44b   : > { %v4803_v19 = vpop.permute.xlu0 %4802 }
 0x44c   : > { %v4820_v44 = vsel %vm4818_vm3, %v4801_v13, %v4803_v19  ;;  %v4821_v60 = vsel %vm4818_vm3, %v4803_v19, %v4805_v10 }
 0x44d   : > { %9967 = vmatprep.subr.msk.bf16.mxu1 %vm4832_vm11, %v4820_v44  ;;  %6471 = vrot.lane.b32.xlu1 %v12628_v0, %s10665_s18  ;;  %v4840_v47 = vsel %vm4832_vm11, %v4821_v60, 0 }
 0x44e   : > { %6469 = vrot.lane.b32.xlu0 %v12609_v41, %s10665_s18  ;;  %4875 = vmatpush1.bf16.msra.mxu1 %v4834_v39 }
 0x451   : > { %6730 = vrot.lane.b32.xlu1 %v12583_v58, %s10630_s25  ;;  %9968 = vmatmul.mubr.msk.bf16.vlgmr.msra.gmra.mxu1 %vm4828_vm8, %v9956_v24 }
 0x452   : > { %6473 = vrot.lane.b32.xlu0 %v12635_v16, %s10665_s18  ;;  %4974 = vmatprep.mubr.bf16.mxu1 %v11295_v54  ;;  %s10666_s18 = smov 54  }
 0x455   : > { %6734 = vrot.lane.b32.xlu1 %v12593_v18, %s10630_s25 }
 0x456   : > { %6732 = vrot.lane.b32.xlu0 %v12579_v59, %s10630_s25  ;;  %v4809_v57 = vpop.permute.xlu1 %4808  ;;  %v4807_v27 = vpop.permute.xlu0 %4806 }
 0x457   : > { %v4822_v28 = vsel %vm4818_vm3, %v4805_v10, %v4807_v27  ;;  %v4823_v20 = vsel %vm4818_vm3, %v4807_v27, %v4809_v57 }
 0x458   : > { %9969 = vmatprep.subr.msk.bf16.mxu0 %vm4832_vm11, %v4822_v28  ;;  %v4846_v49 = vsel %vm4832_vm11, %v4823_v20, 0 }
 0x459   : > { %4916 = vmatpush1.bf16.msra.mxu0 %v4840_v47  ;;  %6738 = vrot.lane.b32.xlu1 %v12603_v6, %s10630_s25 }
 0x45a   : > { %6736 = vrot.lane.b32.xlu0 %v12589_v46, %s10630_s25 }
 0x45b   : > { %v4813_v51 = vpop.permute.xlu1 %4812  ;;  %v4811_v36 = vpop.permute.xlu0 %4810 }
 0x45c   : > { %9970 = vmatmul.mubr.msk.bf16.vlgmr.msra.gmra.mxu0 %vm4828_vm8, %v9956_v24  ;;  %v4824_v50 = vsel %vm4818_vm3, %v4809_v57, %v4811_v36  ;;  %v4825_v43 = vsel %vm4818_vm3, %v4811_v36, %v4813_v51  ;;  %v9985_v36 = vld [vmem:[%s13595_s3 + $0x8] sm:$0xf] }
 0x45d   : > { %5015 = vmatprep.mubr.bf16.mxu0 %v11295_v54  ;;  %6742 = vrot.lane.b32.xlu1 %v12613_v38, %s10630_s25  ;;  %v4852_v12 = vsel %vm4832_vm11, %v4825_v43, 0 }
 0x45e   : > { %6740 = vrot.lane.b32.xlu0 %v12599_v37, %s10630_s25  ;;  %9971 = vmatprep.subr.msk.bf16.mxu1 %vm4832_vm11, %v4824_v50 }
 0x45f   : > { %4957 = vmatpush1.bf16.msra.mxu1 %v4846_v49  ;;  %v4817_v17 = vpop.permute.xlu1 %4816  ;;  %v4815_v63 = vpop.permute.xlu0 %4814 }
 0x460   : > { %v4827_v55 = vsel %vm4818_vm3, %v4815_v63, %v4817_v17  ;;  %v4826_v23 = vsel %vm4818_vm3, %v4813_v51, %v4815_v63  ;;  %10331 = vmatprep.subr.bf16.mxu1 %v10654_v22 }
 0x461   : > { %6746 = vrot.lane.b32.xlu1 %v12628_v0, %s10630_s25  ;;  %v4858_v4 = vsel %vm4832_vm11, %v4827_v55, 0  ;;  %9973 = vmatprep.subr.msk.bf16.mxu0 %vm4832_vm11, %v4826_v23 }
 0x462   : > { %6744 = vrot.lane.b32.xlu0 %v12609_v41, %s10630_s25  ;;  %9972 = vmatmul.mubr.msk.bf16.vlgmr.msra.gmra.mxu1 %vm4828_vm8, %v9956_v24 }
 0x463   : > { %4998 = vmatpush1.bf16.msra.mxu0 %v4852_v12  ;;  %10332 = vmatpush3.bf16.msra.mxu1 %v4858_v4  ;;  %v5067_v34 = vpop.permute.xlu1 %5066  ;;  %v5065_v45 = vpop.permute.xlu0 %5064 }
 0x464   : > { %10333 = vmatprep.mubr.msk.bf16.mxu1 %vm10655_vm2, %v10654_v22  ;;  %v5085_v7 = vsel %vm5084_vm12, %v5065_v45, %v5067_v34 }
 0x465   : > { %7004 = vrot.lane.b32.xlu1 %v12583_v58, %s10666_s18  ;;  %v5098_v5 = vsel %vm4832_vm11, %v5085_v7, 0 }
 0x466   : > { %6748 = vrot.lane.b32.xlu0 %v12635_v16, %s10630_s25  ;;  %9974 = vmatmul.mubr.msk.bf16.vlgmr.msra.gmra.mxu0 %vm4828_vm8, %v9956_v24 }
 0x467   : > { %v5071_v42 = vpop.permute.xlu1 %5070  ;;  %v5069_v30 = vpop.permute.xlu0 %5068  ;;  %5156 = vmatprep.mubr.bf16.mxu0 %v11295_v54 }
 0x468   : > { %v5086_v52 = vsel %vm5084_vm12, %v5067_v34, %v5069_v30  ;;  %v5087_v40 = vsel %vm5084_vm12, %v5069_v30, %v5071_v42 }
 0x469   : > { %7008 = vrot.lane.b32.xlu1 %v12593_v18, %s10666_s18  ;;  %9976 = vmatprep.subr.msk.bf16.mxu0 %vm4832_vm11, %v5086_v52  ;;  %v5104_v14 = vsel %vm4832_vm11, %v5087_v40, 0 }
 0x46a   : > { %7006 = vrot.lane.b32.xlu0 %v12579_v59, %s10666_s18  ;;  %10334 = vmatmul.mubr.msk.bf16.vlgmr.msra.gmra.mxu1 %vm4828_vm8, %v9956_v24 }
 0x46b   : > { %5139 = vmatpush1.bf16.msra.mxu0 %v5098_v5  ;;  %v5075_v8 = vpop.permute.xlu1 %5074  ;;  %v5073_v3 = vpop.permute.xlu0 %5072  ;;  %5197 = vmatprep.mubr.bf16.mxu1 %v11295_v54 }
 0x46c   : > { %v5088_v11 = vsel %vm5084_vm12, %v5071_v42, %v5073_v3  ;;  %v5089_v25 = vsel %vm5084_vm12, %v5073_v3, %v5075_v8 }
 0x46d   : > { %7012 = vrot.lane.b32.xlu1 %v12603_v6, %s10666_s18  ;;  %9978 = vmatprep.subr.msk.bf16.mxu1 %vm4832_vm11, %v5088_v11  ;;  %v5110_v53 = vsel %vm4832_vm11, %v5089_v25, 0 }
 0x46e   : > { %7010 = vrot.lane.b32.xlu0 %v12589_v46, %s10666_s18  ;;  %9977 = vmatmul.mubr.msk.bf16.vlgmr.msra.gmra.mxu0 %vm4828_vm8, %v4770_v2 }
 0x46f   : > { %5180 = vmatpush1.bf16.msra.mxu1 %v5104_v14  ;;  %v5079_v32 = vpop.permute.xlu1 %5078  ;;  %v5077_v62 = vpop.permute.xlu0 %5076  ;;  %5238 = vmatprep.mubr.bf16.mxu0 %v11295_v54 }
 0x470   : > { %v5090_v48 = vsel %vm5084_vm12, %v5075_v8, %v5077_v62  ;;  %v5091_v13 = vsel %vm5084_vm12, %v5077_v62, %v5079_v32  ;;  %v9995_v62 = vld [vmem:[%s13595_s3 + $0xc] sm:$0xf] }
 0x471   : > { %7016 = vrot.lane.b32.xlu1 %v12613_v38, %s10666_s18  ;;  %9980 = vmatprep.subr.msk.bf16.mxu0 %vm4832_vm11, %v5090_v48  ;;  %v5116_v24 = vsel %vm4832_vm11, %v5091_v13, 0 }
 0x472   : > { %7014 = vrot.lane.b32.xlu0 %v12599_v37, %s10666_s18  ;;  %9979 = vmatmul.mubr.msk.bf16.vlgmr.msra.gmra.mxu1 %vm4828_vm8, %v4770_v2 }
 0x473   : > { %5221 = vmatpush1.bf16.msra.mxu0 %v5110_v53  ;;  %v5083_v33 = vpop.permute.xlu1 %5082  ;;  %v5081_v29 = vpop.permute.xlu0 %5080  ;;  %5279 = vmatprep.mubr.bf16.mxu1 %v11295_v54 }
 0x474   : > { %v5093_v19 = vsel %vm5084_vm12, %v5081_v29, %v5083_v33  ;;  %v5092_v44 = vsel %vm5084_vm12, %v5079_v32, %v5081_v29  ;;  %10337 = vmatprep.subr.bf16.mxu0 %v10654_v22  ;;  %vm13734_vm12 = vmmov %vm13732_vm1 }
 0x475   : > { %7020 = vrot.lane.b32.xlu1 %v12628_v0, %s10666_s18  ;;  %v5122_v39 = vsel %vm4832_vm11, %v5093_v19, 0  ;;  %9982 = vmatprep.subr.msk.bf16.mxu1 %vm4832_vm11, %v5092_v44 }
 0x476   : > { %7018 = vrot.lane.b32.xlu0 %v12609_v41, %s10666_s18  ;;  %9981 = vmatmul.mubr.msk.bf16.vlgmr.msra.gmra.mxu0 %vm4828_vm8, %v4770_v2 }
 0x477   : > { %5262 = vmatpush1.bf16.msra.mxu1 %v5116_v24  ;;  %10338 = vmatpush3.bf16.msra.mxu0 %v5122_v39  ;;  %v5333_v10 = vpop.permute.xlu1 %5332  ;;  %v5331_v60 = vpop.permute.xlu0 %5330 }
 0x478   : > { %10339 = vmatprep.mubr.msk.bf16.mxu0 %vm10655_vm2, %v10654_v22  ;;  %v5351_v0 = vsel %vm5350_vm13, %v5331_v60, %v5333_v10 }
 0x479   : > { %v5364_v47 = vsel %vm4832_vm11, %v5351_v0, 0 }
 0x47a   : > { %7022 = vrot.lane.b32.xlu0 %v12635_v16, %s10666_s18  ;;  %9983 = vmatmul.mubr.msk.bf16.vlgmr.msra.gmra.mxu1 %vm4828_vm8, %v4770_v2  ;;  %s13461_s18 = scalar_lea.vmem %s13600_s8, %s10188_s30  ;;  %s13742_s30 = smov 72  }
 0x47b   : > { %v5337_v57 = vpop.permute.xlu1 %5336  ;;  %v5335_v27 = vpop.permute.xlu0 %5334  ;;  %5422 = vmatprep.mubr.bf16.mxu1 %v11295_v54 }
 0x47c   : > { %v5352_v28 = vsel %vm5350_vm13, %v5333_v10, %v5335_v27  ;;  %v5353_v20 = vsel %vm5350_vm13, %v5335_v27, %v5337_v57 }
 0x47d   : > { %9986 = vmatprep.subr.msk.bf16.mxu1 %vm4832_vm11, %v5352_v28  ;;  %v5370_v49 = vsel %vm4832_vm11, %v5353_v20, 0  ;;  %v5912_v20 = vsel %vm4832_vm11, %v12583_v58, 0  ;;  %v10005_v58 = vld [vmem:[%s13595_s3 + $0x10] sm:$0xf] }
 0x47e   : > { %10340 = vmatmul.mubr.msk.bf16.vlgmr.msra.gmra.mxu0 %vm4828_vm8, %v4770_v2  ;;  %5405 = vmatpush1.bf16.msra.mxu1 %v5364_v47 }
 0x47f   : > { %v5341_v16 = vpop.permute.xlu1 %5340  ;;  %v5339_v51 = vpop.permute.xlu0 %5338  ;;  %5463 = vmatprep.mubr.bf16.mxu0 %v11295_v54 }
 0x480   : > { %v5354_v50 = vsel %vm5350_vm13, %v5337_v57, %v5339_v51  ;;  %v5355_v43 = vsel %vm5350_vm13, %v5339_v51, %v5341_v16 }
 0x481   : > { %9988 = vmatprep.subr.msk.bf16.mxu0 %vm4832_vm11, %v5354_v50  ;;  %v5376_v23 = vsel %vm4832_vm11, %v5355_v43, 0 }
 0x482   : > { %9987 = vmatmul.mubr.msk.bf16.vlgmr.msra.gmra.mxu1 %vm4828_vm8, %v9985_v36  ;;  %5446 = vmatpush1.bf16.msra.mxu0 %v5370_v49  ;;  %v5930_v49 = vsel %vm4832_vm11, %v12613_v38, 0 }
 0x483   : > { %v5345_v17 = vpop.permute.xlu1 %5344  ;;  %v5343_v63 = vpop.permute.xlu0 %5342  ;;  %5504 = vmatprep.mubr.bf16.mxu1 %v11295_v54 }
 0x484   : > { %v5356_v55 = vsel %vm5350_vm13, %v5341_v16, %v5343_v63  ;;  %v5357_v4 = vsel %vm5350_vm13, %v5343_v63, %v5345_v17 }
 0x485   : > { %9990 = vmatprep.subr.msk.bf16.mxu1 %vm4832_vm11, %v5356_v55  ;;  %v5382_v42 = vsel %vm4832_vm11, %v5357_v4, 0 }
 0x486   : > { %9989 = vmatmul.mubr.msk.bf16.vlgmr.msra.gmra.mxu0 %vm4828_vm8, %v9985_v36  ;;  %5487 = vmatpush1.bf16.msra.mxu1 %v5376_v23 }
 0x487   : > { %v5349_v12 = vpop.permute.xlu1 %5348  ;;  %v5347_v34 = vpop.permute.xlu0 %5346  ;;  %10343 = vmatprep.subr.bf16.mxu1 %v10654_v22  ;;  %5545 = vmatprep.mubr.bf16.mxu0 %v11295_v54 }
 0x488   : > { %v5359_v45 = vsel %vm5350_vm13, %v5347_v34, %v5349_v12  ;;  %v5358_v7 = vsel %vm5350_vm13, %v5345_v17, %v5347_v34  ;;  %vm13735_vm13 = vmmov %vm13732_vm1 }
 0x489   : > { %9992 = vmatprep.subr.msk.bf16.mxu0 %vm4832_vm11, %v5358_v7  ;;  %v5388_v30 = vsel %vm4832_vm11, %v5359_v45, 0 }
 0x48a   : > { %9991 = vmatmul.mubr.msk.bf16.vlgmr.msra.gmra.mxu1 %vm4828_vm8, %v9985_v36  ;;  %5528 = vmatpush1.bf16.msra.mxu0 %v5382_v42 }
 0x48b   : > { %10344 = vmatpush3.bf16.msra.mxu1 %v5388_v30  ;;  %v5608_v52 = vpop.permute.xlu1 %5607  ;;  %v5606_v5 = vpop.permute.xlu0 %5605  ;;  %10345 = vmatprep.mubr.msk.bf16.mxu1 %vm10655_vm2, %v10654_v22 }
 0x48c   : > { %v5626_v40 = vsel %vm5625_vm4, %v5606_v5, %v5608_v52 }
 0x48d   : > { %v5639_v11 = vsel %vm4832_vm11, %v5626_v40, 0  ;;  %v10024_v40 = vld [vmem:[%s13595_s3 + $0x14] sm:$0xf] }
 0x48e   : > { %9993 = vmatmul.mubr.msk.bf16.vlgmr.msra.gmra.mxu0 %vm4828_vm8, %v9985_v36 }
 0x48f   : > { %v5612_v8 = vpop.permute.xlu1 %5611  ;;  %v5610_v3 = vpop.permute.xlu0 %5609  ;;  %5697 = vmatprep.mubr.bf16.mxu0 %v11295_v54 }
 0x490   : > { %v5627_v2 = vsel %vm5625_vm4, %v5608_v52, %v5610_v3  ;;  %v5628_v14 = vsel %vm5625_vm4, %v5610_v3, %v5612_v8 }
 0x491   : > { %9996 = vmatprep.subr.msk.bf16.mxu0 %vm4832_vm11, %v5627_v2  ;;  %v5645_v53 = vsel %vm4832_vm11, %v5628_v14, 0  ;;  %v10667_v14 = vmov 3  }
 0x492   : > { %10346 = vmatmul.mubr.msk.bf16.vlgmr.msra.gmra.mxu1 %vm4828_vm8, %v9985_v36  ;;  %5680 = vmatpush1.bf16.msra.mxu0 %v5639_v11 }
 0x493   : > { %v5616_v25 = vpop.permute.xlu1 %5615  ;;  %v5614_v32 = vpop.permute.xlu0 %5613  ;;  %5738 = vmatprep.mubr.bf16.mxu1 %v11295_v54  ;;  %10495 = vset.pattern.permute.xlu1 %v10667_v14 }
 0x494   : > { %v5629_v48 = vsel %vm5625_vm4, %v5612_v8, %v5614_v32  ;;  %v5630_v13 = vsel %vm5625_vm4, %v5614_v32, %v5616_v25 }
 0x495   : > { %9998 = vmatprep.subr.msk.bf16.mxu1 %vm4832_vm11, %v5629_v48  ;;  %v5651_v44 = vsel %vm4832_vm11, %v5630_v13, 0 }
 0x496   : > { %9997 = vmatmul.mubr.msk.bf16.vlgmr.msra.gmra.mxu0 %vm4828_vm8, %v9995_v62  ;;  %5721 = vmatpush1.bf16.msra.mxu1 %v5645_v53 }
 0x497   : > { %v5620_v33 = vpop.permute.xlu1 %5619  ;;  %v5618_v29 = vpop.permute.xlu0 %5617  ;;  %5779 = vmatprep.mubr.bf16.mxu0 %v11295_v54 }
 0x498   : > { %v5631_v19 = vsel %vm5625_vm4, %v5616_v25, %v5618_v29  ;;  %v5632_v39 = vsel %vm5625_vm4, %v5618_v29, %v5620_v33  ;;  %v7277_v25 = vld [vmem:[%s13599_s7] sm:$0xff] }
 0x499   : > { %10000 = vmatprep.subr.msk.bf16.mxu0 %vm4832_vm11, %v5631_v19  ;;  %v5657_v57 = vsel %vm4832_vm11, %v5632_v39, 0  ;;  %7280 = vperm.xlu1 %10495, %v7277_v25  }
 0x49a   : > { %9999 = vmatmul.mubr.msk.bf16.vlgmr.msra.gmra.mxu1 %vm4828_vm8, %v9995_v62  ;;  %5762 = vmatpush1.bf16.msra.mxu0 %v5651_v44 }
 0x49b   : > { %v5624_v24 = vpop.permute.xlu1 %5623  ;;  %v5622_v10 = vpop.permute.xlu0 %5621  ;;  %10349 = vmatprep.subr.bf16.mxu0 %v10654_v22  ;;  %5820 = vmatprep.mubr.bf16.mxu1 %v11295_v54 }
 0x49c   : > { %v5634_v60 = vsel %vm5625_vm4, %v5622_v10, %v5624_v24  ;;  %v5633_v0 = vsel %vm5625_vm4, %v5620_v33, %v5622_v10  ;;  %v10668_v33 = vmov 4   ;;  %v10669_v24 = vmov 5   ;;  %vm13736_vm4 = vmmov %vm13732_vm1 }
 0x49d   : > { %10002 = vmatprep.subr.msk.bf16.mxu1 %vm4832_vm11, %v5633_v0  ;;  %v5663_v27 = vsel %vm4832_vm11, %v5634_v60, 0  ;;  %10496 = vset.pattern.permute.xlu0 %v10668_v33 }
 0x49e   : > { %10001 = vmatmul.mubr.msk.bf16.vlgmr.msra.gmra.mxu0 %vm4828_vm8, %v9995_v62  ;;  %5803 = vmatpush1.bf16.msra.mxu1 %v5657_v57 }
 0x49f   : > { %10350 = vmatpush3.bf16.msra.mxu0 %v5663_v27  ;;  %v6156_v28 = vpop.permute.xlu1 %6155  ;;  %10015 = vmatprep.subr.msk.bf16.mxu1 %vm4832_vm11, %v12579_v59  ;;  %v6154_v47 = vpop.permute.xlu0 %6153  ;;  %v5918_v59 = vsel %vm4832_vm11, %v12593_v18, 0 }
 0x4a0   : > { %10017 = vmatprep.subr.msk.bf16.mxu0 %vm4832_vm11, %v12589_v46  ;;  %10351 = vmatprep.mubr.msk.bf16.mxu0 %vm10655_vm2, %v10654_v22  ;;  %v6172_v63 = vsel %vm6171_vm10, %v6154_v47, %v6156_v28 }
 0x4a1   : > { %v6184_v4 = vsel %vm4832_vm11, %v6172_v63, 0  ;;  %7320 = vperm.xlu0 %10496, %v7277_v25   ;;  %10497 = vset.pattern.permute.xlu1 %v10669_v24 }
 0x4a2   : > { %10003 = vmatmul.mubr.msk.bf16.vlgmr.msra.gmra.mxu1 %vm4828_vm8, %v9995_v62  ;;  %7333 = vperm.xlu1 %10497, %v7277_v25  }
 0x4a3   : > { %5953 = vmatpush1.bf16.msra.mxu1 %v5912_v20  ;;  %v6160_v16 = vpop.permute.xlu1 %6159  ;;  %v6158_v51 = vpop.permute.xlu0 %6157  ;;  %5970 = vmatprep.mubr.bf16.mxu1 %v11295_v54 }
 0x4a4   : > { %10019 = vmatprep.subr.msk.bf16.mxu1 %vm4832_vm11, %v12599_v37  ;;  %v5924_v37 = vsel %vm4832_vm11, %v12603_v6, 0  ;;  %v5936_v6 = vsel %vm4832_vm11, %v12617_v31, 0  ;;  %v6174_v12 = vsel %vm6171_vm10, %v6158_v51, %v6160_v16 }
 0x4a5   : > { %v6190_v7 = vsel %vm4832_vm11, %v6174_v12, 0 }
 0x4a6   : > { %10352 = vmatmul.mubr.msk.bf16.vlgmr.msra.gmra.mxu0 %vm4828_vm8, %v9995_v62 }
 0x4a7   : > { %5994 = vmatpush1.bf16.msra.mxu0 %v5918_v59  ;;  %v6164_v46 = vpop.permute.xlu1 %6163  ;;  %v6162_v36 = vpop.permute.xlu0 %6161  ;;  %6011 = vmatprep.mubr.bf16.mxu0 %v11295_v54 }
 0x4a8   : > { %10021 = vmatprep.subr.msk.bf16.mxu0 %vm4832_vm11, %v12609_v41  ;;  %v6173_v41 = vsel %vm6171_vm10, %v6156_v28, %v6158_v51  ;;  %v6175_v55 = vsel %vm6171_vm10, %v6160_v16, %v6162_v36  ;;  %v6176_v42 = vsel %vm6171_vm10, %v6162_v36, %v6164_v46  ;;  %v10034_v16 = vld [vmem:[%s13595_s3 + $0x18] sm:$0xf] }
 0x4a9   : > { %v6196_v8 = vsel %vm4832_vm11, %v6176_v42, 0 }
 0x4aa   : > { %10016 = vmatmul.mubr.msk.bf16.vlgmr.msra.gmra.mxu1 %vm4828_vm8, %v10005_v58 }
 0x4ab   : > { %6035 = vmatpush1.bf16.msra.mxu1 %v5924_v37  ;;  %v6168_v50 = vpop.permute.xlu1 %6167  ;;  %v6166_v18 = vpop.permute.xlu0 %6165  ;;  %6052 = vmatprep.mubr.bf16.mxu1 %v11295_v54 }
 0x4ac   : > { %10355 = vmatprep.subr.bf16.mxu1 %v10654_v22  ;;  %v6177_v31 = vsel %vm6171_vm10, %v6164_v46, %v6166_v18  ;;  %v6178_v3 = vsel %vm6171_vm10, %v6166_v18, %v6168_v50 }
 0x4ad   : > { %v6202_v32 = vsel %vm4832_vm11, %v6178_v3, 0 }
 0x4ae   : > { %10018 = vmatmul.mubr.msk.bf16.vlgmr.msra.gmra.mxu0 %vm4828_vm8, %v10005_v58 }
 0x4af   : > { %6076 = vmatpush1.bf16.msra.mxu0 %v5930_v49  ;;  %v6456_v43 = vpop.permute.xlu1 %6455  ;;  %v6170_v17 = vpop.permute.xlu0 %6169  ;;  %6093 = vmatprep.mubr.bf16.mxu0 %v11295_v54 }
 0x4b0   : > { %10025 = vmatprep.subr.msk.bf16.mxu0 %vm4832_vm11, %v6173_v41  ;;  %v6179_v30 = vsel %vm6171_vm10, %v6168_v50, %v6170_v17  ;;  %v6208_v13 = vsel %vm4832_vm11, %v6170_v17, 0  ;;  %vm13737_vm10 = vmmov %vm13732_vm1 }
 0x4b2   : > { %10020 = vmatmul.mubr.msk.bf16.vlgmr.msra.gmra.mxu1 %vm4828_vm8, %v10005_v58 }
 0x4b3   : > { %10356 = vmatpush3.bf16.msra.mxu1 %v5936_v6  ;;  %v6460_v38 = vpop.permute.xlu1 %6459  ;;  %v6458_v23 = vpop.permute.xlu0 %6457  ;;  %10357 = vmatprep.mubr.msk.bf16.mxu1 %vm10655_vm2, %v10654_v22 }
 0x4b4   : > { %10027 = vmatprep.subr.msk.bf16.mxu1 %vm4832_vm11, %v6175_v55  ;;  %v6477_v62 = vsel %vm6475_vm0, %v6458_v23, %v6460_v38  ;;  %v6476_v29 = vsel %vm6475_vm0, %v6456_v43, %v6458_v23 }
 0x4b5   : > { %v6489_v10 = vsel %vm4832_vm11, %v6476_v29, 0 }
 0x4b6   : > { %10022 = vmatmul.mubr.msk.bf16.vlgmr.msra.gmra.mxu0 %vm4828_vm8, %v10005_v58 }
 0x4b7   : > { %6225 = vmatpush1.bf16.msra.mxu0 %v6184_v4  ;;  %v6464_v34 = vpop.permute.xlu1 %6463  ;;  %v6462_v45 = vpop.permute.xlu0 %6461  ;;  %6242 = vmatprep.mubr.bf16.mxu0 %v11295_v54 }
 0x4b8   : > { %10029 = vmatprep.subr.msk.bf16.mxu0 %vm4832_vm11, %v6177_v31  ;;  %v6479_v19 = vsel %vm6475_vm0, %v6462_v45, %v6464_v34  ;;  %v6478_v60 = vsel %vm6475_vm0, %v6460_v38, %v6462_v45 }
 0x4b9   : > { %v6495_v28 = vsel %vm4832_vm11, %v6478_v60, 0 }
 0x4ba   : > { %10358 = vmatmul.mubr.msk.bf16.vlgmr.msra.gmra.mxu1 %vm4828_vm8, %v10005_v58 }
 0x4bb   : > { %6266 = vmatpush1.bf16.msra.mxu1 %v6190_v7  ;;  %v12850_v52 = vpop.permute.xlu1 %6467  ;;  %v6466_v5 = vpop.permute.xlu0 %6465  ;;  %6283 = vmatprep.mubr.bf16.mxu1 %v11295_v54  ;;  %v10054_v7 = vld [vmem:[%s13595_s3 + $0x1c] sm:$0xf] }
 0x4bc   : > { %10031 = vmatprep.subr.msk.bf16.mxu1 %vm4832_vm11, %v6179_v30  ;;  %v6481_v0 = vsel %vm6475_vm0, %v6466_v5, %v12850_v52  ;;  %v6480_v47 = vsel %vm6475_vm0, %v6464_v34, %v6466_v5 }
 0x4bd   : > { %v6501_v46 = vsel %vm4832_vm11, %v6480_v47, 0 }
 0x4be   : > { %10026 = vmatmul.mubr.msk.bf16.vlgmr.msra.gmra.mxu0 %vm4828_vm8, %v10024_v40 }
 0x4bf   : > { %6307 = vmatpush1.bf16.msra.mxu0 %v6196_v8  ;;  %v6472_v2 = vpop.permute.xlu1 %6471  ;;  %6324 = vmatprep.mubr.bf16.mxu0 %v11295_v54 }
 0x4c0   : > { %v6470_v11 = vpop.permute.xlu0 %6469  ;;  %10361 = vmatprep.subr.bf16.mxu0 %v10654_v22 }
 0x4c1   : > { %v6483_v20 = vsel %vm6475_vm0, %v6470_v11, %v6472_v2  ;;  %v6482_v36 = vsel %vm6475_vm0, %v12850_v52, %v6470_v11 }
 0x4c2   : > { %10028 = vmatmul.mubr.msk.bf16.vlgmr.msra.gmra.mxu1 %vm4828_vm8, %v10024_v40  ;;  %v6507_v50 = vsel %vm4832_vm11, %v6482_v36, 0 }
 0x4c3   : > { %6348 = vmatpush1.bf16.msra.mxu1 %v6202_v32  ;;  %v6731_v48 = vpop.permute.xlu1 %6730  ;;  %6365 = vmatprep.mubr.bf16.mxu1 %v11295_v54 }
 0x4c4   : > { %v6474_v53 = vpop.permute.xlu0 %6473  ;;  %10045 = vmatprep.subr.msk.bf16.mxu1 %vm4832_vm11, %v6477_v62 }
 0x4c5   : > { %v6484_v18 = vsel %vm6475_vm0, %v6472_v2, %v6474_v53  ;;  %vm13738_vm0 = vmmov %vm13732_vm1 }
 0x4c6   : > { %10030 = vmatmul.mubr.msk.bf16.vlgmr.msra.gmra.mxu0 %vm4828_vm8, %v10024_v40  ;;  %v6513_v41 = vsel %vm4832_vm11, %v6484_v18, 0 }
 0x4c7   : > { %10362 = vmatpush3.bf16.msra.mxu0 %v6208_v13  ;;  %v6735_v44 = vpop.permute.xlu1 %6734  ;;  %10363 = vmatprep.mubr.msk.bf16.mxu0 %vm10655_vm2, %v10654_v22 }
 0x4c8   : > { %v6733_v39 = vpop.permute.xlu0 %6732  ;;  %10047 = vmatprep.subr.msk.bf16.mxu0 %vm4832_vm11, %v6479_v19 }
 0x4c9   : > { %v6751_v49 = vsel %vm13732_vm1, %v6733_v39, %v6735_v44  ;;  %v6750_v43 = vsel %vm13733_vm15, %v6731_v48, %v6733_v39  ;;  %vm13739_vm1 = vmmov %vm13738_vm0  ;;  %vm7024_vm15 = vcmask 441344   ;;  %v10064_v39 = vld [vmem:[%s13595_s3 + $0x20] sm:$0xf] }
 0x4ca   : > { %10032 = vmatmul.mubr.msk.bf16.vlgmr.msra.gmra.mxu1 %vm4828_vm8, %v10024_v40  ;;  %v6763_v55 = vsel %vm4832_vm11, %v6750_v43, 0 }
 0x4cb   : > { %6530 = vmatpush1.bf16.msra.mxu1 %v6489_v10  ;;  %v6739_v57 = vpop.permute.xlu1 %6738  ;;  %6547 = vmatprep.mubr.bf16.mxu1 %v11295_v54 }
 0x4cc   : > { %v6737_v27 = vpop.permute.xlu0 %6736  ;;  %10049 = vmatprep.subr.msk.bf16.mxu1 %vm4832_vm11, %v6481_v0 }
 0x4cd   : > { %v6753_v17 = vsel %vm13734_vm12, %v6737_v27, %v6739_v57  ;;  %v6752_v38 = vsel %vm13735_vm13, %v6735_v44, %v6737_v27  ;;  %vm13740_vm12 = vmmov %vm13738_vm0 }
 0x4ce   : > { %10364 = vmatmul.mubr.msk.bf16.vlgmr.msra.gmra.mxu0 %vm4828_vm8, %v10024_v40  ;;  %v6769_v31 = vsel %vm4832_vm11, %v6752_v38, 0 }
 0x4cf   : > { %6571 = vmatpush1.bf16.msra.mxu0 %v6495_v28  ;;  %6588 = vmatprep.mubr.bf16.mxu0 %v11295_v54  ;;  %v6743_v51 = vpop.permute.xlu1 %6742 }
 0x4d0   : > { %10051 = vmatprep.subr.msk.bf16.mxu0 %vm4832_vm11, %v6483_v20  ;;  %v6741_v59 = vpop.permute.xlu0 %6740 }
 0x4d1   : > { %v6755_v23 = vsel %vm13736_vm4, %v6741_v59, %v6743_v51  ;;  %v6754_v34 = vsel %vm13737_vm10, %v6739_v57, %v6741_v59 }
 0x4d2   : > { %10046 = vmatmul.mubr.msk.bf16.vlgmr.msra.gmra.mxu1 %vm4828_vm8, %v10034_v16  ;;  %v6775_v42 = vsel %vm4832_vm11, %v6754_v34, 0 }
 0x4d3   : > { %6612 = vmatpush1.bf16.msra.mxu1 %v6501_v46  ;;  %6629 = vmatprep.mubr.bf16.mxu1 %v11295_v54  ;;  %v6747_v58 = vpop.permute.xlu1 %6746 }
 0x4d4   : > { %10367 = vmatprep.subr.bf16.mxu1 %v10654_v22  ;;  %v6745_v37 = vpop.permute.xlu0 %6744 }
 0x4d5   : > { %v6757_v45 = vsel %vm13738_vm0, %v6745_v37, %v6747_v58  ;;  %v6756_v30 = vsel %vm13739_vm1, %v6743_v51, %v6745_v37 }
 0x4d6   : > { %10048 = vmatmul.mubr.msk.bf16.vlgmr.msra.gmra.mxu0 %vm4828_vm8, %v10034_v16  ;;  %v6781_v40 = vsel %vm4832_vm11, %v6756_v30, 0 }
 0x4d7   : > { %6653 = vmatpush1.bf16.msra.mxu0 %v6507_v50  ;;  %6670 = vmatprep.mubr.bf16.mxu0 %v11295_v54  ;;  %v7005_v6 = vpop.permute.xlu1 %7004 }
 0x4d8   : > { %10055 = vmatprep.subr.msk.bf16.mxu0 %vm4832_vm11, %v6751_v49  ;;  %v6749_v63 = vpop.permute.xlu0 %6748 }
 0x4d9   : > { %v6758_v8 = vsel %vm13740_vm12, %v6747_v58, %v6749_v63 }
 0x4da   : > { %10050 = vmatmul.mubr.msk.bf16.vlgmr.msra.gmra.mxu1 %vm4828_vm8, %v10034_v16  ;;  %v6787_v2 = vsel %vm4832_vm11, %v6758_v8, 0 }
 0x4db   : > { %10368 = vmatpush3.bf16.msra.mxu1 %v6513_v41  ;;  %10369 = vmatprep.mubr.msk.bf16.mxu1 %vm10655_vm2, %v10654_v22  ;;  %v7009_v4 = vpop.permute.xlu1 %7008 }
 0x4dc   : > { %10057 = vmatprep.subr.msk.bf16.mxu1 %vm4832_vm11, %v6753_v17  ;;  %v7007_v12 = vpop.permute.xlu0 %7006 }
 0x4dd   : > { %v7026_v3 = vsel %vm7024_vm15, %v7007_v12, %v7009_v4  ;;  %v7025_v25 = vsel %vm7024_vm15, %v7005_v6, %v7007_v12 }
 0x4de   : > { %10052 = vmatmul.mubr.msk.bf16.vlgmr.msra.gmra.mxu0 %vm4828_vm8, %v10034_v16  ;;  %v7038_v62 = vsel %vm4832_vm11, %v7025_v25, 0 }
 0x4df   : > { %6804 = vmatpush1.bf16.msra.mxu0 %v6763_v55  ;;  %6821 = vmatprep.mubr.bf16.mxu0 %v11295_v54  ;;  %v7013_v52 = vpop.permute.xlu1 %7012 }
 0x4e0   : > { %10059 = vmatprep.subr.msk.bf16.mxu0 %vm4832_vm11, %v6755_v23  ;;  %v7011_v5 = vpop.permute.xlu0 %7010 }
 0x4e1   : > { %v7028_v32 = vsel %vm7024_vm15, %v7011_v5, %v7013_v52  ;;  %v7027_v48 = vsel %vm7024_vm15, %v7009_v4, %v7011_v5 }
 0x4e2   : > { %10370 = vmatmul.mubr.msk.bf16.vlgmr.msra.gmra.mxu1 %vm4828_vm8, %v10034_v16  ;;  %v7044_v29 = vsel %vm4832_vm11, %v7027_v48, 0 }
 0x4e3   : > { %6845 = vmatpush1.bf16.msra.mxu1 %v6769_v31  ;;  %6862 = vmatprep.mubr.bf16.mxu1 %v11295_v54  ;;  %v7017_v11 = vpop.permute.xlu1 %7016 }
 0x4e4   : > { %10061 = vmatprep.subr.msk.bf16.mxu1 %vm4832_vm11, %v6757_v45  ;;  %v7015_v14 = vpop.permute.xlu0 %7014 }
 0x4e5   : > { %v7030_v53 = vsel %vm7024_vm15, %v7015_v14, %v7017_v11  ;;  %v7029_v19 = vsel %vm7024_vm15, %v7013_v52, %v7015_v14 }
 0x4e6   : > { %10056 = vmatmul.mubr.msk.bf16.vlgmr.msra.gmra.mxu0 %vm4828_vm8, %v10054_v7  ;;  %v7050_v24 = vsel %vm4832_vm11, %v7029_v19, 0 }
 0x4e7   : > { %6886 = vmatpush1.bf16.msra.mxu0 %v6775_v42  ;;  %6903 = vmatprep.mubr.bf16.mxu0 %v11295_v54  ;;  %v7021_v13 = vpop.permute.xlu1 %7020 }
 0x4e8   : > { %10373 = vmatprep.subr.bf16.mxu0 %v10654_v22  ;;  %v7019_v33 = vpop.permute.xlu0 %7018 }
 0x4e9   : > { %v7032_v44 = vsel %vm7024_vm15, %v7019_v33, %v7021_v13  ;;  %v7031_v10 = vsel %vm7024_vm15, %v7017_v11, %v7019_v33 }
 0x4ea   : > { %10058 = vmatmul.mubr.msk.bf16.vlgmr.msra.gmra.mxu1 %vm4828_vm8, %v10054_v7  ;;  %v7056_v0 = vsel %vm4832_vm11, %v7031_v10, 0 }
 0x4eb   : > { %6927 = vmatpush1.bf16.msra.mxu1 %v6781_v40  ;;  %6944 = vmatprep.mubr.bf16.mxu1 %v11295_v54 }
 0x4ec   : > { %10065 = vmatprep.subr.msk.bf16.mxu1 %vm4832_vm11, %v7026_v3  ;;  %v7023_v60 = vpop.permute.xlu0 %7022 }
 0x4ed   : > { %v7033_v57 = vsel %vm7024_vm15, %v7021_v13, %v7023_v60 }
 0x4ee   : > { %10060 = vmatmul.mubr.msk.bf16.vlgmr.msra.gmra.mxu0 %vm4828_vm8, %v10054_v7  ;;  %v7062_v27 = vsel %vm4832_vm11, %v7033_v57, 0 }
 0x4ef   : > { %10374 = vmatpush3.bf16.msra.mxu0 %v6787_v2  ;;  %10375 = vmatprep.mubr.msk.bf16.mxu0 %vm10655_vm2, %v10654_v22 }
 0x4f0   : > { %10067 = vmatprep.subr.msk.bf16.mxu0 %vm4832_vm11, %v7028_v32 }
 0x4f2   : > { %10062 = vmatmul.mubr.msk.bf16.vlgmr.msra.gmra.mxu1 %vm4828_vm8, %v10054_v7 }
 0x4f3   : > { %7079 = vmatpush1.bf16.msra.mxu1 %v7038_v62  ;;  %7096 = vmatprep.mubr.bf16.mxu1 %v11295_v54 }
 0x4f4   : > { %10069 = vmatprep.subr.msk.bf16.mxu1 %vm4832_vm11, %v7030_v53 }
 0x4f6   : > { %10376 = vmatmul.mubr.msk.bf16.vlgmr.msra.gmra.mxu0 %vm4828_vm8, %v10054_v7 }
 0x4f7   : > { %7120 = vmatpush1.bf16.msra.mxu0 %v7044_v29  ;;  %7137 = vmatprep.mubr.bf16.mxu0 %v11295_v54 }
 0x4f8   : > { %10071 = vmatprep.subr.msk.bf16.mxu0 %vm4832_vm11, %v7032_v44 }
 0x4fa   : > { %10066 = vmatmul.mubr.msk.bf16.vlgmr.msra.gmra.mxu1 %vm4828_vm8, %v10064_v39 }
 0x4fb   : > { %7161 = vmatpush1.bf16.msra.mxu1 %v7050_v24  ;;  %7178 = vmatprep.mubr.bf16.mxu1 %v11295_v54 }
 0x4fc   : > { %10379 = vmatprep.subr.bf16.mxu1 %v10654_v22 }
 0x4fe   : > { %10068 = vmatmul.mubr.msk.bf16.vlgmr.msra.gmra.mxu0 %vm4828_vm8, %v10064_v39 }
 0x4ff   : > { %7202 = vmatpush1.bf16.msra.mxu0 %v7056_v0  ;;  %7219 = vmatprep.mubr.bf16.mxu0 %v11295_v54 }
 0x502   : > { %10070 = vmatmul.mubr.msk.bf16.vlgmr.msra.gmra.mxu1 %vm4828_vm8, %v10064_v39 }
 0x503   : > { %10380 = vmatpush3.bf16.msra.mxu1 %v7062_v27  ;;  %10381 = vmatprep.mubr.msk.bf16.mxu1 %vm10655_vm2, %v10654_v22 }
 0x506   : > { %10072 = vmatmul.mubr.msk.bf16.vlgmr.msra.gmra.mxu0 %vm4828_vm8, %v10064_v39 }
 0x507   : > { %7522 = vmatprep.mubr.bf16.mxu0 %v11295_v54 }
 0x50a   : > { %10382 = vmatmul.mubr.msk.bf16.vlgmr.msra.gmra.mxu1 %vm4828_vm8, %v10064_v39 }
 0x50b   : > { %7563 = vmatprep.mubr.bf16.mxu1 %v11295_v54 }
 0x511   : > { %v4894_v28 = vpop.f32.mrf.mxu1 }
 0x513   : > { %v4896_v47 = vpop.f32.mrf.mxu1 }
 0x515   : > { %v4898_v20 = vpop.f32.mrf.mxu1 }
 0x517   : > { %v4899_v16 = vpop.f32.mrf.mxu1 }
 0x51c   : > { %v4935_v51 = vpop.f32.mrf.mxu0 }
 0x51e   : > { %v4937_v59 = vpop.f32.mrf.mxu0 }
 0x520   : > { %v4939_v46 = vpop.f32.mrf.mxu0 }
 0x522   : > { %v4940_v36 = vpop.f32.mrf.mxu0  ;;  %v4976_v58 = vpop.f32.mrf.mxu1 }
 0x524   : > { %v4978_v37 = vpop.f32.mrf.mxu1 }
 0x526   : > { %v4980_v50 = vpop.f32.mrf.mxu1  ;;  %v5017_v18 = vpop.f32.mrf.mxu0 }
 0x528   : > { %v4981_v49 = vpop.f32.mrf.mxu1  ;;  %v5019_v41 = vpop.f32.mrf.mxu0 }
 0x52a   : > { %v5021_v43 = vpop.f32.mrf.mxu0  ;;  %v5058_v17 = vpop.f32.mrf.mxu1 }
 0x52c   : > { %v5022_v6 = vpop.f32.mrf.mxu0  ;;  %v10335_v63 = vpop.f32.mrf.mxu1 }
 0x52e   : > { %v5061_v55 = vpop.f32.mrf.mxu1  ;;  %v5158_v38 = vpop.f32.mrf.mxu0 }
 0x52f   : > { %v5159_v23 = vadd.f32 %v5158_v38, %v4894_v28 }
 0x530   : > { %v10336_v4 = vpop.f32.mrf.mxu1  ;;  %v5160_v12 = vpop.f32.mrf.mxu0 }
 0x531   : > { %v5161_v31 = vadd.f32 %v5160_v12, %v4896_v47 }
 0x532   : > { %v5162_v34 = vpop.f32.mrf.mxu0  ;;  %v5199_v45 = vpop.f32.mrf.mxu1 }
 0x533   : > { %v5200_v7 = vadd.f32 %v5199_v45, %v4935_v51 }
 0x534   : > { %v5163_v42 = vpop.f32.mrf.mxu0  ;;  %v5201_v30 = vpop.f32.mrf.mxu1 }
 0x535   : > { %v5202_v52 = vadd.f32 %v5201_v30, %v4937_v59 }
 0x536   : > { %v5203_v5 = vpop.f32.mrf.mxu1  ;;  %v5240_v40 = vpop.f32.mrf.mxu0 }
 0x537   : > { %v5241_v8 = vadd.f32 %v5240_v40, %v4976_v58 }
 0x538   : > { %v5204_v3 = vpop.f32.mrf.mxu1  ;;  %v5242_v2 = vpop.f32.mrf.mxu0 }
 0x539   : > { %v5243_v11 = vadd.f32 %v5242_v2, %v4978_v37 }
 0x53a   : > { %v5244_v14 = vpop.f32.mrf.mxu0  ;;  %v5281_v25 = vpop.f32.mrf.mxu1 }
 0x53b   : > { %v5282_v32 = vadd.f32 %v5281_v25, %v5017_v18 }
 0x53c   : > { %v5245_v62 = vpop.f32.mrf.mxu0  ;;  %v5283_v48 = vpop.f32.mrf.mxu1 }
 0x53d   : > { %v5284_v53 = vadd.f32 %v5283_v48, %v5019_v41 }
 0x53e   : > { %v5285_v13 = vpop.f32.mrf.mxu1  ;;  %v5322_v33 = vpop.f32.mrf.mxu0 }
 0x53f   : > { %v5323_v29 = vadd.f32 %v5322_v33, %v5058_v17 }
 0x540   : > { %v5286_v19 = vpop.f32.mrf.mxu1  ;;  %v10341_v44 = vpop.f32.mrf.mxu0 }
 0x542   : > { %v5325_v39 = vpop.f32.mrf.mxu0  ;;  %v5424_v24 = vpop.f32.mrf.mxu1 }
 0x543   : > { %v5594_v10 = vadd.f32 %v5424_v24, %v5159_v23 }
 0x544   : > { %v10342_v60 = vpop.f32.mrf.mxu0  ;;  %v5426_v0 = vpop.f32.mrf.mxu1 }
 0x545   : > { %v5595_v57 = vadd.f32 %v5426_v0, %v5161_v31 }
 0x546   : > { %v5428_v27 = vpop.f32.mrf.mxu1  ;;  %v5465_v28 = vpop.f32.mrf.mxu0 }
 0x547   : > { %v5596_v47 = vadd.f32 %v5465_v28, %v5200_v7 }
 0x548   : > { %v5429_v20 = vpop.f32.mrf.mxu1  ;;  %v5467_v16 = vpop.f32.mrf.mxu0 }
 0x549   : > { %v5597_v51 = vadd.f32 %v5467_v16, %v5202_v52 }
 0x54a   : > { %v5469_v59 = vpop.f32.mrf.mxu0  ;;  %v5506_v46 = vpop.f32.mrf.mxu1 }
 0x54b   : > { %v5598_v36 = vadd.f32 %v5506_v46, %v5241_v8 }
 0x54c   : > { %v5470_v58 = vpop.f32.mrf.mxu0  ;;  %v5508_v37 = vpop.f32.mrf.mxu1 }
 0x54d   : > { %v5599_v50 = vadd.f32 %v5508_v37, %v5243_v11 }
 0x54e   : > { %v5510_v18 = vpop.f32.mrf.mxu1  ;;  %v5547_v49 = vpop.f32.mrf.mxu0 }
 0x54f   : > { %v5600_v41 = vadd.f32 %v5547_v49, %v5282_v32 }
 0x550   : > { %v5511_v43 = vpop.f32.mrf.mxu1  ;;  %v5549_v17 = vpop.f32.mrf.mxu0 }
 0x551   : > { %v5601_v6 = vadd.f32 %v5549_v17, %v5284_v53 }
 0x552   : > { %v5551_v63 = vpop.f32.mrf.mxu0  ;;  %v5588_v55 = vpop.f32.mrf.mxu1 }
 0x553   : > { %v5602_v38 = vadd.f32 %v5588_v55, %v5323_v29 }
 0x554   : > { %v5552_v23 = vpop.f32.mrf.mxu0  ;;  %v10347_v4 = vpop.f32.mrf.mxu1 }
 0x556   : > { %v5591_v12 = vpop.f32.mrf.mxu1  ;;  %v5699_v31 = vpop.f32.mrf.mxu0 }
 0x557   : > { %v5869_v34 = vadd.f32 %v5699_v31, %v5594_v10 }
 0x558   : > { %v10348_v45 = vpop.f32.mrf.mxu1  ;;  %v5701_v7 = vpop.f32.mrf.mxu0 }
 0x559   : > { %v5870_v42 = vadd.f32 %v5701_v7, %v5595_v57 }
 0x55a   : > { %v5703_v30 = vpop.f32.mrf.mxu0  ;;  %v5740_v52 = vpop.f32.mrf.mxu1 }
 0x55b   : > { %v5871_v5 = vadd.f32 %v5740_v52, %v5596_v47 }
 0x55c   : > { %v5704_v40 = vpop.f32.mrf.mxu0  ;;  %v5742_v8 = vpop.f32.mrf.mxu1 }
 0x55d   : > { %v5872_v3 = vadd.f32 %v5742_v8, %v5597_v51 }
 0x55e   : > { %v5744_v2 = vpop.f32.mrf.mxu1  ;;  %v5781_v11 = vpop.f32.mrf.mxu0 }
 0x55f   : > { %v5873_v14 = vadd.f32 %v5781_v11, %v5598_v36 }
 0x560   : > { %v5745_v25 = vpop.f32.mrf.mxu1  ;;  %v5783_v32 = vpop.f32.mrf.mxu0 }
 0x561   : > { %v5874_v62 = vadd.f32 %v5783_v32, %v5599_v50 }
 0x562   : > { %v5785_v48 = vpop.f32.mrf.mxu0  ;;  %v5822_v53 = vpop.f32.mrf.mxu1 }
 0x563   : > { %v5875_v13 = vadd.f32 %v5822_v53, %v5600_v41 }
 0x564   : > { %v5786_v33 = vpop.f32.mrf.mxu0  ;;  %v5824_v29 = vpop.f32.mrf.mxu1 }
 0x565   : > { %v5876_v19 = vadd.f32 %v5824_v29, %v5601_v6 }
 0x566   : > { %v5826_v44 = vpop.f32.mrf.mxu1  ;;  %v5863_v39 = vpop.f32.mrf.mxu0 }
 0x567   : > { %v5877_v24 = vadd.f32 %v5863_v39, %v5602_v38 }
 0x568   : > { %v5827_v10 = vpop.f32.mrf.mxu1  ;;  %v10353_v60 = vpop.f32.mrf.mxu0 }
 0x56a   : > { %v5866_v0 = vpop.f32.mrf.mxu0  ;;  %v5972_v57 = vpop.f32.mrf.mxu1 }
 0x56b   : > { %v12977_v27 = vadd.f32 %v5972_v57, %v5869_v34 }
 0x56c   : > { %v10354_v28 = vpop.f32.mrf.mxu0  ;;  %v5974_v47 = vpop.f32.mrf.mxu1 }
 0x56d   : > { %v12979_v20 = vadd.f32 %v5974_v47, %v5870_v42 }
 0x56e   : > { %v5976_v16 = vpop.f32.mrf.mxu1  ;;  %v6013_v51 = vpop.f32.mrf.mxu0 }
 0x56f   : > { %v12981_v59 = vadd.f32 %v6013_v51, %v5871_v5 }
 0x570   : > { %v5977_v46 = vpop.f32.mrf.mxu1  ;;  %v6015_v36 = vpop.f32.mrf.mxu0 }
 0x571   : > { %v12983_v58 = vadd.f32 %v6015_v36, %v5872_v3 }
 0x572   : > { %v6017_v37 = vpop.f32.mrf.mxu0  ;;  %v6054_v50 = vpop.f32.mrf.mxu1 }
 0x573   : > { %v12985_v18 = vadd.f32 %v6054_v50, %v5873_v14 }
 0x574   : > { %v6018_v49 = vpop.f32.mrf.mxu0  ;;  %v6056_v41 = vpop.f32.mrf.mxu1 }
 0x575   : > { %v12987_v43 = vadd.f32 %v6056_v41, %v5874_v62 }
 0x576   : > { %v6058_v17 = vpop.f32.mrf.mxu1  ;;  %v6095_v6 = vpop.f32.mrf.mxu0 }
 0x577   : > { %v12989_v63 = vadd.f32 %v6095_v6, %v5875_v13 }
 0x578   : > { %v6059_v55 = vpop.f32.mrf.mxu1  ;;  %v6097_v38 = vpop.f32.mrf.mxu0 }
 0x579   : > { %v12991_v23 = vadd.f32 %v6097_v38, %v5876_v19 }
 0x57a   : > { %v6099_v4 = vpop.f32.mrf.mxu0  ;;  %v6136_v12 = vpop.f32.mrf.mxu1 }
 0x57b   : > { %v12993_v31 = vadd.f32 %v6136_v12, %v5877_v24 }
 0x57c   : > { %v6100_v34 = vpop.f32.mrf.mxu0  ;;  %v10359_v45 = vpop.f32.mrf.mxu1 }
 0x57e   : > { %v6139_v7 = vpop.f32.mrf.mxu1  ;;  %v6244_v42 = vpop.f32.mrf.mxu0 }
 0x580   : > { %v10360_v30 = vpop.f32.mrf.mxu1  ;;  %v6246_v52 = vpop.f32.mrf.mxu0 }
 0x582   : > { %v6248_v5 = vpop.f32.mrf.mxu0  ;;  %v6285_v40 = vpop.f32.mrf.mxu1 }
 0x584   : > { %v6249_v8 = vpop.f32.mrf.mxu0  ;;  %v6287_v3 = vpop.f32.mrf.mxu1 }
 0x586   : > { %v6289_v2 = vpop.f32.mrf.mxu1  ;;  %v12995_v11 = vpop.f32.mrf.mxu0 }
 0x588   : > { %v6290_v14 = vpop.f32.mrf.mxu1  ;;  %v12997_v25 = vpop.f32.mrf.mxu0 }
 0x58a   : > { %v6330_v32 = vpop.f32.mrf.mxu0  ;;  %v12999_v62 = vpop.f32.mrf.mxu1 }
 0x58c   : > { %v6331_v48 = vpop.f32.mrf.mxu0  ;;  %v13001_v53 = vpop.f32.mrf.mxu1 }
 0x58e   : > { %v6371_v13 = vpop.f32.mrf.mxu1  ;;  %v13003_v33 = vpop.f32.mrf.mxu0 }
 0x590   : > { %v6372_v29 = vpop.f32.mrf.mxu1  ;;  %v10365_v19 = vpop.f32.mrf.mxu0 }
 0x592   : > { %v6411_v44 = vpop.f32.mrf.mxu0  ;;  %v6549_v39 = vpop.f32.mrf.mxu1 }
 0x593   : > { %v6414_v44 = vadd.f32 %v6244_v42, %v12977_v27 }
 0x594   : > { %v10366_v24 = vpop.f32.mrf.mxu0  ;;  %v6551_v10 = vpop.f32.mrf.mxu1 }
 0x596   : > { %v6553_v60 = vpop.f32.mrf.mxu1  ;;  %v6590_v0 = vpop.f32.mrf.mxu0 }
 0x598   : > { %v6554_v57 = vpop.f32.mrf.mxu1  ;;  %v6592_v28 = vpop.f32.mrf.mxu0 }
 0x599   : > { %v6415_v57 = vadd.f32 %v6246_v52, %v12979_v20  ;;  %v6419_v20 = vadd.f32 %v12997_v25, %v12987_v43 }
 0x59a   : > { %v6594_v47 = vpop.f32.mrf.mxu0  ;;  %v6631_v16 = vpop.f32.mrf.mxu1 }
 0x59b   : > { %v6719_v47 = vadd.f32 %v6549_v39, %v6414_v44 }
 0x59c   : > { %v6595_v51 = vpop.f32.mrf.mxu0  ;;  %v6633_v46 = vpop.f32.mrf.mxu1 }
 0x59e   : > { %v6635_v36 = vpop.f32.mrf.mxu1  ;;  %v6672_v37 = vpop.f32.mrf.mxu0 }
 0x5a0   : > { %v6636_v50 = vpop.f32.mrf.mxu1  ;;  %v6674_v49 = vpop.f32.mrf.mxu0 }
 0x5a1   : > { %v6416_v50 = vadd.f32 %v6285_v40, %v12981_v59  ;;  %v6420_v40 = vadd.f32 %v12999_v62, %v12989_v63  ;;  %v6724_v63 = vadd.f32 %v6633_v46, %v6419_v20 }
 0x5a2   : > { %v6676_v41 = vpop.f32.mrf.mxu0  ;;  %v6713_v17 = vpop.f32.mrf.mxu1 }
 0x5a3   : > { %v6720_v41 = vadd.f32 %v6551_v10, %v6415_v57  ;;  %v6725_v62 = vadd.f32 %v6672_v37, %v6420_v40 }
 0x5a4   : > { %v6677_v6 = vpop.f32.mrf.mxu0  ;;  %v10371_v55 = vpop.f32.mrf.mxu1 }
 0x5a5   : > { %v13010_v55 = vpop.permute.xlu1 %7280 }
 0x5a6   : > { %v6716_v38 = vpop.f32.mrf.mxu1  ;;  %v6823_v4 = vpop.f32.mrf.mxu0 }
 0x5a7   : > { %v6993_v6 = vadd.f32 %v6823_v4, %v6719_v47  ;;  %v6417_v38 = vadd.f32 %v6287_v3, %v12983_v58  ;;  %v6422_v4 = vadd.f32 %v13003_v33, %v12993_v31  ;;  %v13026_v33 = vpop.permute.xlu0 %7320 }
 0x5a8   : > { %v10372_v12 = vpop.f32.mrf.mxu1  ;;  %v6825_v34 = vpop.f32.mrf.mxu0 }
 0x5a9   : > { %v6994_v27 = vadd.f32 %v6825_v34, %v6720_v41  ;;  %v6722_v52 = vadd.f32 %v6592_v28, %v6417_v38 }
 0x5aa   : > { %v6827_v45 = vpop.f32.mrf.mxu0  ;;  %v6864_v7 = vpop.f32.mrf.mxu1 }
 0x5ac   : > { %v6828_v30 = vpop.f32.mrf.mxu0  ;;  %v6866_v5 = vpop.f32.mrf.mxu1 }
 0x5ad   : > { %v6721_v30 = vadd.f32 %v6590_v0, %v6416_v50  ;;  %v6421_v0 = vadd.f32 %v13001_v53, %v12991_v23 }
 0x5ae   : > { %v6868_v8 = vpop.f32.mrf.mxu1  ;;  %v6905_v2 = vpop.f32.mrf.mxu0 }
 0x5af   : > { %v6418_v8 = vadd.f32 %v12995_v11, %v12985_v18  ;;  %v6995_v10 = vadd.f32 %v6864_v7, %v6721_v30  ;;  %v6996_v11 = vadd.f32 %v6866_v5, %v6722_v52  ;;  %v6726_v7 = vadd.f32 %v6674_v49, %v6421_v0  ;;  %v13029_v49 = vpop.permute.xlu1 %7333 }
 0x5b0   : > { %v6869_v14 = vpop.f32.mrf.mxu1  ;;  %v6907_v32 = vpop.f32.mrf.mxu0 }
 0x5b1   : > { %v6723_v18 = vadd.f32 %v6631_v16, %v6418_v8  ;;  %v6998_v5 = vadd.f32 %v6907_v32, %v6724_v63 }
 0x5b2   : > { %v6909_v48 = vpop.f32.mrf.mxu0  ;;  %v6946_v13 = vpop.f32.mrf.mxu1 }
 0x5b3   : > { %v6727_v48 = vadd.f32 %v6713_v17, %v6422_v4  ;;  %v6997_v16 = vadd.f32 %v6905_v2, %v6723_v18 }
 0x5b4   : > { %v6910_v29 = vpop.f32.mrf.mxu0  ;;  %v6948_v19 = vpop.f32.mrf.mxu1 }
 0x5b5   : > { %v7000_v17 = vadd.f32 %v6948_v19, %v6726_v7 }
 0x5b6   : > { %v6950_v24 = vpop.f32.mrf.mxu1  ;;  %v13006_v60 = vpop.f32.mrf.mxu0 }
 0x5b7   : > { %v6999_v24 = vadd.f32 %v6946_v13, %v6725_v62  ;;  %v7001_v20 = vadd.f32 %v13006_v60, %v6727_v48 }
 0x5b8   : > { %v6951_v51 = vpop.f32.mrf.mxu1  ;;  %v10377_v36 = vpop.f32.mrf.mxu0 }
 0x5ba   : > { %v6990_v12 = vpop.f32.mrf.mxu0  ;;  %v7098_v45 = vpop.f32.mrf.mxu1 }
 0x5bb   : > { %v7268_v42 = vadd.f32 %v7098_v45, %v6993_v6 }
 0x5bc   : > { %v10378_v39 = vpop.f32.mrf.mxu0  ;;  %v7100_v59 = vpop.f32.mrf.mxu1 }
 0x5bd   : > { %v7283_v58 = vadd.f32 %v13010_v55, %v7268_v42  ;;  %v7269_v3 = vadd.f32 %v7100_v59, %v6994_v27 }
 0x5be   : > { %v7102_v34 = vpop.f32.mrf.mxu1  ;;  %v7139_v43 = vpop.f32.mrf.mxu0 }
 0x5bf   : > { %v7301_v25 = vmul.f32 0.01, %v7283_v58  ;;  %v7284_v28 = vadd.f32 %v13010_v55, %v7269_v3  ;;  %v7270_v14 = vadd.f32 %v7139_v43, %v6995_v10  ;;  %vm7292_vm13 = vcmp.ge.f32.partialorder %v7283_v58, 0.0 }
 0x5c0   : > { %v7103_v29 = vpop.f32.mrf.mxu1  ;;  %v7141_v44 = vpop.f32.mrf.mxu0 }
 0x5c1   : > { %vm7293_vm4 = vcmp.ge.f32.partialorder %v7284_v28, 0.0  ;;  %v7302_v23 = vmul.f32 0.01, %v7284_v28  ;;  %v7285_v53 = vadd.f32 %v13010_v55, %v7270_v14  ;;  %v7271_v31 = vadd.f32 %v7141_v44, %v6996_v11 }
 0x5c2   : > { %v7310_v57 = vsel %vm7292_vm13, %v7283_v58, %v7301_v25  ;;  %v7143_v47 = vpop.f32.mrf.mxu0  ;;  %v7180_v51 = vpop.f32.mrf.mxu1 }
 0x5c3   : > { %v7311_v36 = vsel %vm7293_vm4, %v7284_v28, %v7302_v23  ;;  %vm7294_vm10 = vcmp.ge.f32.partialorder %v7285_v53, 0.0  ;;  %v7303_v46 = vmul.f32 0.01, %v7285_v53  ;;  %v7286_v37 = vadd.f32 %v13010_v55, %v7271_v31 }
 0x5c4   : > { %v7323_v50 = vmul.f32 %v13026_v33, %v7310_v57  ;;  %v7324_v41 = vmul.f32 %v13026_v33, %v7311_v36  ;;  %v7272_v6 = vadd.f32 %v7180_v51, %v6997_v16  ;;  %v7144_v38 = vpop.f32.mrf.mxu0  ;;  %v7182_v2 = vpop.f32.mrf.mxu1 }
 0x5c5   : > { %v7312_v32 = vsel %vm7294_vm10, %v7285_v53, %v7303_v46  ;;  %vm7295_vm0 = vcmp.ge.f32.partialorder %v7286_v37, 0.0  ;;  %v7304_v13 = vmul.f32 0.01, %v7286_v37  ;;  %v7273_v12 = vadd.f32 %v7182_v2, %v6998_v5 }
 0x5c6   : > { %v7325_v45 = vmul.f32 %v13026_v33, %v7312_v32  ;;  %v7287_v30 = vadd.f32 %v13010_v55, %v7272_v6  ;;  %v7336_v27 = vadd.f32 %v13029_v49, %v7323_v50  ;;  %v7337_v42 = vadd.f32 %v13029_v49, %v7324_v41  ;;  %v7184_v19 = vpop.f32.mrf.mxu1  ;;  %v7221_v8 = vpop.f32.mrf.mxu0 }
 0x5c7   : > { %v7313_v52 = vsel %vm7295_vm0, %v7286_v37, %v7304_v13  ;;  %v7288_v39 = vadd.f32 %v13010_v55, %v7273_v12  ;;  %v7274_v59 = vadd.f32 %v7221_v8, %v6999_v24 }
 0x5c8   : > { %v7326_v40 = vmul.f32 %v13026_v33, %v7313_v52  ;;  %vm7296_vm1 = vcmp.ge.f32.partialorder %v7287_v30, 0.0  ;;  %v7305_v10 = vmul.f32 0.01, %v7287_v30  ;;  %v7338_v58 = vadd.f32 %v13029_v49, %v7325_v45  ;;  %v7185_v3 = vpop.f32.mrf.mxu1  ;;  %v7223_v0 = vpop.f32.mrf.mxu0 }
 0x5c9   : > { %v13042_v4 = vmul.f32 %v7336_v27, %v12445_v1  ;;  %v13045_v18 = vmul.f32 %v7337_v42, %v12448_v21  ;;  %vm7297_vm15 = vcmp.ge.f32.partialorder %v7288_v39, 0.0  ;;  %v7306_v60 = vmul.f32 0.01, %v7288_v39 }
 0x5ca   : > { %v7314_v11 = vsel %vm7296_vm1, %v7287_v30, %v7305_v10  ;;  %v7339_v34 = vadd.f32 %v13029_v49, %v7326_v40  ;;  %v13049_v43 = vmul.f32 %v7338_v58, %v12466_v61  ;;  %v7289_v25 = vadd.f32 %v13010_v55, %v7274_v59  ;;  %v7225_v28 = vpop.f32.mrf.mxu0  ;;  %v7262_v14 = vpop.f32.mrf.mxu1 }
 0x5cb   : > { %v7327_v63 = vmul.f32 %v13026_v33, %v7314_v11  ;;  %v10195_v1 = vpack.c.bf16 %v13045_v18, %v13042_v4  ;;  %v7315_v62 = vsel %vm7297_vm15, %v7288_v39, %v7306_v60  ;;  %v7275_v21 = vadd.f32 %v7223_v0, %v7000_v17 }
 0x5cc   : > { %v13056_v7 = vmul.f32 %v7339_v34, %v12469_v15  ;;  %v7328_v48 = vmul.f32 %v13026_v33, %v7315_v62  ;;  %vm7298_vm12 = vcmp.ge.f32.partialorder %v7289_v25, 0.0  ;;  %v7307_v29 = vmul.f32 0.01, %v7289_v25  ;;  %v7226_v61 = vpop.f32.mrf.mxu0  ;;  %v10383_v44 = vpop.f32.mrf.mxu1 }
 0x5cd   : > { %7393 = vst [vmem:[#allocation4 + $0x4] sm:$0xff] %v10195_v1  ;;  %v7340_v23 = vadd.f32 %v13029_v49, %v7327_v63  ;;  %v7290_v53 = vadd.f32 %v13010_v55, %v7275_v21  ;;  %v7276_v31 = vadd.f32 %v7262_v14, %v7001_v20  ;;  %v13107_v0 = vpack.c.bf16 %v13045_v18, %v13045_v18  ;;  %v13172_v1 = vld [vmem:[%s13599_s7] sm:$0xff] }
 0x5ce   : > { %v10196_v16 = vpack.c.bf16 %v13056_v7, %v13049_v43  ;;  %v7341_v5 = vadd.f32 %v13029_v49, %v7328_v48  ;;  %v7316_v24 = vsel %vm7298_vm12, %v7289_v25, %v7307_v29  ;;  %v7265_v15 = vpop.f32.mrf.mxu1  ;;  %v13111_v60 = vpack.c.bf16 %v13042_v4, %v13042_v4 }
 0x5cf   : > { %v7329_v57 = vmul.f32 %v13026_v33, %v7316_v24  ;;  %vm7299_vm13 = vcmp.ge.f32.partialorder %v7290_v53, 0.0  ;;  %v7308_v47 = vmul.f32 0.01, %v7290_v53  ;;  %v13066_v51 = vmul.f32 %v7340_v23, %v12497_v26 }
 0x5d0   : > { %7394 = vst [vmem:[#allocation4 + $0xc] sm:$0xff] %v10196_v16  ;;  %v13069_v36 = vmul.f32 %v7341_v5, %v12502_v9  ;;  %v7291_v46 = vadd.f32 %v13010_v55, %v7276_v31  ;;  %v10384_v37 = vpop.f32.mrf.mxu1  ;;  %v13119_v11 = vpack.c.bf16 %v13056_v7, %v13056_v7  ;;  %v13123_v34 = vpack.c.bf16 %v13049_v43, %v13049_v43  ;;  %v10079_v5 = vld [vmem:[%s13596_s4 + $0x4] sm:$0xf] }
 0x5d1   : > { %v7342_v17 = vadd.f32 %v13029_v49, %v7329_v57  ;;  %v7317_v50 = vsel %vm7299_vm13, %v7290_v53, %v7308_v47  ;;  %v13135_v18 = vpack.c.bf16 %v13066_v51, %v13066_v51  ;;  %v10670_v62 = vmov 6  }
 0x5d2   : > { %v10197_v41 = vpack.c.bf16 %v13069_v36, %v13066_v51  ;;  %v7330_v6 = vmul.f32 %v13026_v33, %v7317_v50  ;;  %vm7300_vm4 = vcmp.ge.f32.partialorder %v7291_v46, 0.0  ;;  %v7309_v38 = vmul.f32 0.01, %v7291_v46  ;;  %10498 = vset.pattern.permute.xlu1 %v10670_v62 }
 0x5d3   : > { %v7351_v12 = vmul.f32 %v7342_v17, %v12531_v56  ;;  %v13131_v4 = vpack.c.bf16 %v13069_v36, %v13069_v36  ;;  %v10671_v21 = vmov 7   ;;  %v10672_v7 = vmov 8  }
 0x5d4   : > { %7395 = vst [vmem:[#allocation4 + $0x14] sm:$0xff] %v10197_v41  ;;  %v7343_v26 = vadd.f32 %v13029_v49, %v7330_v6  ;;  %v7318_v2 = vsel %vm7300_vm4, %v7291_v46, %v7309_v38  ;;  %v7398_v32 = vld [vmem:[#allocation4] sm:$0xff]  ;;  %10499 = vset.pattern.permute.xlu0 %v10671_v21  ;;  %vm9461_vm12 = vcmask 261120  }
 0x5d5   : > { %v7331_v9 = vmul.f32 %v13026_v33, %v7318_v2  ;;  %v10081_v13 = vcombine.high %v7398_v32, %v7398_v32  ;;  %v10080_v55 = vcombine.low %v7398_v32, %v7398_v32  ;;  %v10594_v33 = vld [vmem:[%s13598_s6 + $0x8] ss:$0 sm:$0xff]  ;;  %v13143_v25 = vpack.c.bf16 %v7351_v12, %v7351_v12 }
 0x5d6   : > { %v7352_v45 = vmul.f32 %v7343_v26, %v12534_v35 }
 0x5d7   : > { %v7344_v30 = vadd.f32 %v13029_v49, %v7331_v9  ;;  %7433 = vrot.lane.b32.xlu0 %v10081_v13, %s10652_s21  ;;  %7431 = vrot.lane.b32.xlu1 %v10080_v55, %s10652_s21  ;;  %v7399_v27 = vld [vmem:[#allocation4 + $0x8] sm:$0xff] }
 0x5d8   : > { %v10198_v42 = vpack.c.bf16 %v7352_v45, %v7351_v12  ;;  %v10083_v19 = vcombine.high %v7399_v27, %v7399_v27  ;;  %v10082_v8 = vcombine.low %v7399_v27, %v7399_v27  ;;  %v13141_v43 = vpack.c.bf16 %v7352_v45, %v7352_v45 }
 0x5d9   : > { %v7353_v20 = vmul.f32 %v10594_v33, %v7344_v30 }
 0x5da   : > { %7396 = vst [vmem:[#allocation4 + $0x1c] sm:$0xff] %v10198_v42 }
 0x5db   : > { %v10199_v52 = vpack.c.bf16 %v7353_v20, %v7353_v20  ;;  %7437 = vrot.lane.b32.xlu0 %v10083_v19, %s10652_s21  ;;  %7435 = vrot.lane.b32.xlu1 %v10082_v8, %s10652_s21  ;;  %v7400_v56 = vld [vmem:[#allocation4 + $0x10] sm:$0xff] }
 0x5dc   : > { %v10085_v35 = vcombine.high %v7400_v56, %v7400_v56  ;;  %v10084_v49 = vcombine.low %v7400_v56, %v7400_v56 }
 0x5dd   : > { %7397 = vst.msk [vmem:[#allocation4 + $0x24] sm:$0xf] %vm4763_vm9, %v10199_v52 }
 0x5df   : > { %7441 = vrot.lane.b32.xlu0 %v10085_v35, %s10652_s21  ;;  %7439 = vrot.lane.b32.xlu1 %v10084_v49, %s10652_s21 }
 0x5e1   : > { %v7401_v39 = vld [vmem:[#allocation4 + $0x18] sm:$0xff] }
 0x5e2   : > { %v10087_v59 = vcombine.high %v7401_v39, %v7401_v39  ;;  %v10086_v40 = vcombine.low %v7401_v39, %v7401_v39 }
 0x5e4   : > { %7445 = vrot.lane.b32.xlu0 %v10087_v59, %s10652_s21  ;;  %7443 = vrot.lane.b32.xlu1 %v10086_v40, %s10652_s21  ;;  %v7402_v10 = vld [vmem:[#allocation4 + $0x20] sm:$0xff] }
 0x5e5   : > { %v10089_v58 = vcombine.high %v7402_v10, %v7402_v10  ;;  %v10088_v3 = vcombine.low %v7402_v10, %v7402_v10  ;;  %v7961_v28 = vld [vmem:[#allocation4 + $0x24] sm:$0xff] }
 0x5e6   : > { %v10118_v14 = vcombine.high %v7961_v28, %v7961_v28  ;;  %v10117_v63 = vcombine.low %v7961_v28, %v7961_v28 }
 0x5e8   : > { %7449 = vrot.lane.b32.xlu0 %v10089_v58, %s10652_s21  ;;  %7447 = vrot.lane.b32.xlu1 %v10088_v3, %s10652_s21  ;;  %s13758_s21 = smov 4  }
 0x5ec   : > { %7696 = vrot.lane.b32.xlu0 %v10081_v13, %s10651_s14  ;;  %7694 = vrot.lane.b32.xlu1 %v10080_v55, %s10651_s14 }
 0x5f0   : > { %7700 = vrot.lane.b32.xlu0 %v10083_v19, %s10651_s14  ;;  %7698 = vrot.lane.b32.xlu1 %v10082_v8, %s10651_s14  ;;  %v7403_v19 = vld [vmem:[%s13596_s4] sm:$0xf] }
 0x5f4   : > { %7704 = vrot.lane.b32.xlu0 %v10085_v35, %s10651_s14  ;;  %7702 = vrot.lane.b32.xlu1 %v10084_v49, %s10651_s14 }
 0x5f8   : > { %7708 = vrot.lane.b32.xlu0 %v10087_v59, %s10651_s14  ;;  %7706 = vrot.lane.b32.xlu1 %v10086_v40, %s10651_s14 }
 0x5fc   : > { %7712 = vrot.lane.b32.xlu0 %v10089_v58, %s10651_s14  ;;  %7710 = vrot.lane.b32.xlu1 %v10088_v3, %s10651_s14  ;;  %s13756_s14 = smov 28  }
 0x600   : > { %7991 = vrot.lane.b32.xlu0 %v13107_v0, %s10657_s17  ;;  %7989 = vrot.lane.b32.xlu1 %v13111_v60, %s10657_s17 }
 0x604   : > { %7995 = vrot.lane.b32.xlu0 %v13119_v11, %s10657_s17  ;;  %7993 = vrot.lane.b32.xlu1 %v13123_v34, %s10657_s17 }
 0x608   : > { %7999 = vrot.lane.b32.xlu0 %v13131_v4, %s10657_s17  ;;  %7997 = vrot.lane.b32.xlu1 %v13135_v18, %s10657_s17 }
 0x60c   : > { %8003 = vrot.lane.b32.xlu0 %v13141_v43, %s10657_s17  ;;  %8001 = vrot.lane.b32.xlu1 %v13143_v25, %s10657_s17 }
 0x610   : > { %8007 = vrot.lane.b32.xlu0 %v10118_v14, %s10657_s17  ;;  %8005 = vrot.lane.b32.xlu1 %v10117_v63, %s10657_s17  ;;  %s13759_s17 = smov 20  }
 0x614   : > { %8265 = vrot.lane.b32.xlu0 %v13107_v0, %s10658_s10  ;;  %8263 = vrot.lane.b32.xlu1 %v13111_v60, %s10658_s10 }
 0x618   : > { %8269 = vrot.lane.b32.xlu0 %v13119_v11, %s10658_s10  ;;  %8267 = vrot.lane.b32.xlu1 %v13123_v34, %s10658_s10 }
 0x61c   : > { %8273 = vrot.lane.b32.xlu0 %v13131_v4, %s10658_s10  ;;  %8271 = vrot.lane.b32.xlu1 %v13135_v18, %s10658_s10 }
 0x620   : > { %8277 = vrot.lane.b32.xlu0 %v13141_v43, %s10658_s10  ;;  %8275 = vrot.lane.b32.xlu1 %v13143_v25, %s10658_s10 }
 0x624   : > { %8281 = vrot.lane.b32.xlu0 %v10118_v14, %s10658_s10  ;;  %8279 = vrot.lane.b32.xlu1 %v10117_v63, %s10658_s10 }
 0x628   : > { %8538 = vperm.xlu1 %10498, %v13172_v1   ;;  %8578 = vperm.xlu0 %10499, %v13172_v1  }
 0x62c   : > { %10500 = vset.pattern.permute.xlu1 %v10672_v7 }
 0x62d   : > { %8591 = vperm.xlu1 %10500, %v13172_v1  }
 0x649   : > { %v7434_v48 = vpop.permute.xlu0 %7433  ;;  %v7432_v29 = vpop.permute.xlu1 %7431 }
 0x64a   : > { %v7451_v61 = vsel %vm2355_vm5, %v7432_v29, %v7434_v48 }
 0x64b   : > { %v7464_v31 = vsel %vm4832_vm11, %v7451_v61, 0 }
 0x64d   : > { %v7438_v44 = vpop.permute.xlu0 %7437  ;;  %v7436_v23 = vpop.permute.xlu1 %7435 }
 0x64e   : > { %v7452_v53 = vsel %vm2355_vm5, %v7434_v48, %v7436_v23  ;;  %v7453_v16 = vsel %vm2355_vm5, %v7436_v23, %v7438_v44 }
 0x64f   : > { %10090 = vmatprep.subr.msk.bf16.mxu0 %vm4832_vm11, %v7452_v53  ;;  %v7470_v47 = vsel %vm4832_vm11, %v7453_v16, 0  ;;  %v10108_v53 = vld [vmem:[%s13596_s4 + $0x8] sm:$0xf] }
 0x650   : > { %7505 = vmatpush1.bf16.msra.mxu0 %v7464_v31 }
 0x651   : > { %v7442_v24 = vpop.permute.xlu0 %7441  ;;  %v7440_v15 = vpop.permute.xlu1 %7439 }
 0x652   : > { %v7454_v57 = vsel %vm2355_vm5, %v7438_v44, %v7440_v15  ;;  %v7455_v51 = vsel %vm2355_vm5, %v7440_v15, %v7442_v24 }
 0x653   : > { %10091 = vmatmul.mubr.msk.bf16.vlgmr.msra.gmra.mxu0 %vm4828_vm8, %v10079_v5  ;;  %10092 = vmatprep.subr.msk.bf16.mxu1 %vm4832_vm11, %v7454_v57  ;;  %v7476_v17 = vsel %vm4832_vm11, %v7455_v51, 0 }
 0x654   : > { %7546 = vmatpush1.bf16.msra.mxu1 %v7470_v47  ;;  %7604 = vmatprep.mubr.bf16.mxu0 %v11295_v54 }
 0x656   : > { %v7446_v36 = vpop.permute.xlu0 %7445  ;;  %v7444_v46 = vpop.permute.xlu1 %7443 }
 0x657   : > { %v7456_v37 = vsel %vm2355_vm5, %v7442_v24, %v7444_v46  ;;  %10093 = vmatmul.mubr.msk.bf16.vlgmr.msra.gmra.mxu1 %vm4828_vm8, %v10079_v5  ;;  %v7457_v50 = vsel %vm2355_vm5, %v7444_v46, %v7446_v36 }
 0x658   : > { %10094 = vmatprep.subr.msk.bf16.mxu0 %vm4832_vm11, %v7456_v37  ;;  %7645 = vmatprep.mubr.bf16.mxu1 %v11295_v54  ;;  %v7482_v2 = vsel %vm4832_vm11, %v7457_v50, 0 }
 0x659   : > { %7587 = vmatpush1.bf16.msra.mxu0 %v7476_v17 }
 0x65a   : > { %v7450_v41 = vpop.permute.xlu0 %7449  ;;  %v7448_v6 = vpop.permute.xlu1 %7447  ;;  %10385 = vmatprep.subr.bf16.mxu0 %v10654_v22 }
 0x65b   : > { %v7458_v38 = vsel %vm2355_vm5, %v7446_v36, %v7448_v6  ;;  %v7459_v26 = vsel %vm2355_vm5, %v7448_v6, %v7450_v41 }
 0x65c   : > { %v7488_v32 = vsel %vm4832_vm11, %v7459_v26, 0  ;;  %10095 = vmatmul.mubr.msk.bf16.vlgmr.msra.gmra.mxu0 %vm4828_vm8, %v10079_v5  ;;  %10096 = vmatprep.subr.msk.bf16.mxu1 %vm4832_vm11, %v7458_v38 }
 0x65d   : > { %7628 = vmatpush1.bf16.msra.mxu1 %v7482_v2  ;;  %10386 = vmatpush3.bf16.msra.mxu0 %v7488_v32 }
 0x65e   : > { %v7697_v9 = vpop.permute.xlu0 %7696  ;;  %v7695_v13 = vpop.permute.xlu1 %7694  ;;  %10387 = vmatprep.mubr.msk.bf16.mxu0 %vm10655_vm2, %v10654_v22 }
 0x65f   : > { %v7714_v55 = vsel %vm2051_vm7, %v7695_v13, %v7697_v9 }
 0x660   : > { %10097 = vmatmul.mubr.msk.bf16.vlgmr.msra.gmra.mxu1 %vm4828_vm8, %v10079_v5  ;;  %v7727_v27 = vsel %vm4832_vm11, %v7714_v55, 0 }
 0x661   : > { %7785 = vmatprep.mubr.bf16.mxu1 %v11295_v54 }
 0x662   : > { %v7701_v12 = vpop.permute.xlu0 %7700  ;;  %v7699_v45 = vpop.permute.xlu1 %7698 }
 0x663   : > { %v7715_v30 = vsel %vm2051_vm7, %v7697_v9, %v7699_v45  ;;  %v7716_v42 = vsel %vm2051_vm7, %v7699_v45, %v7701_v12 }
 0x664   : > { %10388 = vmatmul.mubr.msk.bf16.vlgmr.msra.gmra.mxu0 %vm4828_vm8, %v10079_v5  ;;  %10099 = vmatprep.subr.msk.bf16.mxu1 %vm4832_vm11, %v7715_v30  ;;  %v7733_v52 = vsel %vm4832_vm11, %v7716_v42, 0  ;;  %v10128_v30 = vld [vmem:[%s13596_s4 + $0xc] sm:$0xf] }
 0x665   : > { %7768 = vmatpush1.bf16.msra.mxu1 %v7727_v27  ;;  %7826 = vmatprep.mubr.bf16.mxu0 %v11295_v54 }
 0x666   : > { %v7705_v8 = vpop.permute.xlu0 %7704  ;;  %v7703_v33 = vpop.permute.xlu1 %7702 }
 0x667   : > { %v7717_v20 = vsel %vm2051_vm7, %v7701_v12, %v7703_v33  ;;  %v7718_v56 = vsel %vm2051_vm7, %v7703_v33, %v7705_v8 }
 0x668   : > { %10100 = vmatmul.mubr.msk.bf16.vlgmr.msra.gmra.mxu1 %vm4828_vm8, %v7403_v19  ;;  %10101 = vmatprep.subr.msk.bf16.mxu0 %vm4832_vm11, %v7717_v20  ;;  %v7739_v59 = vsel %vm4832_vm11, %v7718_v56, 0 }
 0x669   : > { %7809 = vmatpush1.bf16.msra.mxu0 %v7733_v52  ;;  %7867 = vmatprep.mubr.bf16.mxu1 %v11295_v54 }
 0x66a   : > { %v7709_v35 = vpop.permute.xlu0 %7708  ;;  %v7707_v49 = vpop.permute.xlu1 %7706 }
 0x66b   : > { %v7719_v39 = vsel %vm2051_vm7, %v7705_v8, %v7707_v49  ;;  %v7720_v40 = vsel %vm2051_vm7, %v7707_v49, %v7709_v35 }
 0x66c   : > { %10102 = vmatmul.mubr.msk.bf16.vlgmr.msra.gmra.mxu0 %vm4828_vm8, %v7403_v19  ;;  %10103 = vmatprep.subr.msk.bf16.mxu1 %vm4832_vm11, %v7719_v39  ;;  %v7745_v14 = vsel %vm4832_vm11, %v7720_v40, 0 }
 0x66d   : > { %7850 = vmatpush1.bf16.msra.mxu1 %v7739_v59  ;;  %7908 = vmatprep.mubr.bf16.mxu0 %v11295_v54 }
 0x66e   : > { %v7713_v10 = vpop.permute.xlu0 %7712  ;;  %v7711_v58 = vpop.permute.xlu1 %7710  ;;  %10391 = vmatprep.subr.bf16.mxu1 %v10654_v22 }
 0x66f   : > { %v7721_v3 = vsel %vm2051_vm7, %v7709_v35, %v7711_v58  ;;  %v7722_v28 = vsel %vm2051_vm7, %v7711_v58, %v7713_v10 }
 0x670   : > { %v7751_v63 = vsel %vm4832_vm11, %v7722_v28, 0  ;;  %10104 = vmatmul.mubr.msk.bf16.vlgmr.msra.gmra.mxu1 %vm4828_vm8, %v7403_v19  ;;  %10105 = vmatprep.subr.msk.bf16.mxu0 %vm4832_vm11, %v7721_v3  ;;  %v8643_v28 = vsel %vm4832_vm11, %v13111_v60, 0  ;;  %v8655_v60 = vsel %vm4832_vm11, %v13135_v18, 0 }
 0x671   : > { %7891 = vmatpush1.bf16.msra.mxu0 %v7745_v14  ;;  %10392 = vmatpush3.bf16.msra.mxu1 %v7751_v63  ;;  %v10584_v63 = vld [vmem:[#allocation4 + $0x24] ss:$0 sps:$4 sm:$0xff]  }
 0x672   : > { %v7992_v62 = vpop.permute.xlu0 %7991  ;;  %v7990_v21 = vpop.permute.xlu1 %7989  ;;  %10393 = vmatprep.mubr.msk.bf16.mxu1 %vm10655_vm2, %v10654_v22  ;;  %v8667_v18 = vsel %vm4832_vm11, %v10584_v63, 0 }
 0x673   : > { %v8009_v7 = vsel %vm3697_vm6, %v7990_v21, %v7992_v62 }
 0x674   : > { %10106 = vmatmul.mubr.msk.bf16.vlgmr.msra.gmra.mxu0 %vm4828_vm8, %v7403_v19  ;;  %v8022_v44 = vsel %vm4832_vm11, %v8009_v7, 0  ;;  %v8606_v7 = vld [vmem:[#allocation3 + $0x14] sm:$0xff] }
 0x675   : > { %8080 = vmatprep.mubr.bf16.mxu0 %v11295_v54 }
 0x676   : > { %v7996_v48 = vpop.permute.xlu0 %7995  ;;  %v7994_v29 = vpop.permute.xlu1 %7993 }
 0x677   : > { %v8010_v61 = vsel %vm3697_vm6, %v7992_v62, %v7994_v29  ;;  %v8011_v23 = vsel %vm3697_vm6, %v7994_v29, %v7996_v48 }
 0x678   : > { %10394 = vmatmul.mubr.msk.bf16.vlgmr.msra.gmra.mxu1 %vm4828_vm8, %v7403_v19  ;;  %10119 = vmatprep.subr.msk.bf16.mxu0 %vm4832_vm11, %v8010_v61  ;;  %v8028_v24 = vsel %vm4832_vm11, %v8011_v23, 0  ;;  %v8607_v61 = vld [vmem:[#allocation3 + $0x1c] sm:$0xff] }
 0x679   : > { %8063 = vmatpush1.bf16.msra.mxu0 %v8022_v44  ;;  %8121 = vmatprep.mubr.bf16.mxu1 %v11295_v54  ;;  %v10164_v23 = vcombine.high %v8607_v61, %v8607_v61 }
 0x67a   : > { %v8000_v31 = vpop.permute.xlu0 %7999  ;;  %v7998_v16 = vpop.permute.xlu1 %7997 }
 0x67b   : > { %v8012_v5 = vsel %vm3697_vm6, %v7996_v48, %v7998_v16  ;;  %v8013_v15 = vsel %vm3697_vm6, %v7998_v16, %v8000_v31  ;;  %v10162_v48 = vcombine.high %v8606_v7, %v8606_v7 }
 0x67c   : > { %10120 = vmatmul.mubr.msk.bf16.vlgmr.msra.gmra.mxu0 %vm4828_vm8, %v10108_v53  ;;  %10121 = vmatprep.subr.msk.bf16.mxu1 %vm4832_vm11, %v8012_v5  ;;  %v8034_v36 = vsel %vm4832_vm11, %v8013_v15, 0  ;;  %v10163_v5 = vcombine.low %v8607_v61, %v8607_v61  ;;  %v10592_v15 = vld [vmem:[#allocation3 + $0x24] ss:$0 sps:$4 sm:$0xff]  }
 0x67d   : > { %8104 = vmatpush1.bf16.msra.mxu1 %v8028_v24  ;;  %8162 = vmatprep.mubr.bf16.mxu0 %v11295_v54 }
 0x67e   : > { %v8004_v57 = vpop.permute.xlu0 %8003  ;;  %v8002_v47 = vpop.permute.xlu1 %8001  ;;  %v8918_v24 = vsel %vm4832_vm11, %v10163_v5, 0 }
 0x67f   : > { %v8014_v51 = vsel %vm3697_vm6, %v8000_v31, %v8002_v47  ;;  %v8015_v46 = vsel %vm3697_vm6, %v8002_v47, %v8004_v57  ;;  %v8603_v31 = vld [vmem:[%s13597_s5] sm:$0xf]  ;;  %v10673_v47 = vmov 9  }
 0x680   : > { %10122 = vmatmul.mubr.msk.bf16.vlgmr.msra.gmra.mxu1 %vm4828_vm8, %v10108_v53  ;;  %10123 = vmatprep.subr.msk.bf16.mxu0 %vm4832_vm11, %v8014_v51  ;;  %v8040_v6 = vsel %vm4832_vm11, %v8015_v46, 0  ;;  %v10674_v51 = vmov 10  }
 0x681   : > { %8145 = vmatpush1.bf16.msra.mxu0 %v8034_v36  ;;  %8203 = vmatprep.mubr.bf16.mxu1 %v11295_v54  ;;  %v10675_v36 = vmov 11  }
 0x682   : > { %v8008_v37 = vpop.permute.xlu0 %8007  ;;  %v8006_v17 = vpop.permute.xlu1 %8005  ;;  %10397 = vmatprep.subr.bf16.mxu0 %v10654_v22  ;;  %10501 = vset.pattern.permute.xlu1 %v10673_v47 }
 0x683   : > { %v8016_v50 = vsel %vm3697_vm6, %v8004_v57, %v8006_v17  ;;  %v8017_v41 = vsel %vm3697_vm6, %v8006_v17, %v8008_v37  ;;  %v8924_v57 = vsel %vm4832_vm11, %v10592_v15, 0  ;;  %10502 = vset.pattern.permute.xlu0 %v10674_v51  ;;  %9385 = vperm.xlu1 %10501, %v13172_v1  }
 0x684   : > { %v8046_v38 = vsel %vm4832_vm11, %v8017_v41, 0  ;;  %10124 = vmatmul.mubr.msk.bf16.vlgmr.msra.gmra.mxu0 %vm4828_vm8, %v10108_v53  ;;  %10125 = vmatprep.subr.msk.bf16.mxu1 %vm4832_vm11, %v8016_v50 }
 0x685   : > { %8186 = vmatpush1.bf16.msra.mxu1 %v8040_v6  ;;  %10398 = vmatpush3.bf16.msra.mxu0 %v8046_v38 }
 0x686   : > { %v8266_v26 = vpop.permute.xlu0 %8265  ;;  %v8264_v2 = vpop.permute.xlu1 %8263  ;;  %10399 = vmatprep.mubr.msk.bf16.mxu0 %vm10655_vm2, %v10654_v22  ;;  %9425 = vperm.xlu0 %10502, %v13172_v1  }
 0x687   : > { %v8283_v32 = vsel %vm4323_vm14, %v8264_v2, %v8266_v26  ;;  %10503 = vset.pattern.permute.xlu1 %v10675_v36 }
 0x688   : > { %10126 = vmatmul.mubr.msk.bf16.vlgmr.msra.gmra.mxu1 %vm4828_vm8, %v10108_v53  ;;  %v8296_v12 = vsel %vm4832_vm11, %v8283_v32, 0  ;;  %9438 = vperm.xlu1 %10503, %v13172_v1  }
 0x689   : > { %8354 = vmatprep.mubr.bf16.mxu1 %v11295_v54 }
 0x68a   : > { %v8270_v9 = vpop.permute.xlu0 %8269  ;;  %v8268_v13 = vpop.permute.xlu1 %8267  ;;  %10504 = vset.pattern.permute.xlu0 %v10675_v36 }
 0x68b   : > { %v8284_v55 = vsel %vm4323_vm14, %v8266_v26, %v8268_v13  ;;  %v8285_v45 = vsel %vm4323_vm14, %v8268_v13, %v8270_v9 }
 0x68c   : > { %10400 = vmatmul.mubr.msk.bf16.vlgmr.msra.gmra.mxu0 %vm4828_vm8, %v10108_v53  ;;  %10129 = vmatprep.subr.msk.bf16.mxu1 %vm4832_vm11, %v8284_v55  ;;  %v8302_v8 = vsel %vm4832_vm11, %v8285_v45, 0  ;;  %v10161_v53 = vcombine.low %v8606_v7, %v8606_v7 }
 0x68d   : > { %8337 = vmatpush1.bf16.msra.mxu1 %v8296_v12  ;;  %8395 = vmatprep.mubr.bf16.mxu0 %v11295_v54 }
 0x68e   : > { %v8274_v27 = vpop.permute.xlu0 %8273  ;;  %v8272_v42 = vpop.permute.xlu1 %8271  ;;  %v8912_v16 = vsel %vm4832_vm11, %v10161_v53, 0 }
 0x68f   : > { %v8286_v19 = vsel %vm4323_vm14, %v8270_v9, %v8272_v42  ;;  %v8287_v33 = vsel %vm4323_vm14, %v8272_v42, %v8274_v27 }
 0x690   : > { %10130 = vmatmul.mubr.msk.bf16.vlgmr.msra.gmra.mxu1 %vm4828_vm8, %v10128_v30  ;;  %10131 = vmatprep.subr.msk.bf16.mxu0 %vm4832_vm11, %v8286_v19  ;;  %v8308_v35 = vsel %vm4832_vm11, %v8287_v33, 0 }
 0x691   : > { %8378 = vmatpush1.bf16.msra.mxu0 %v8302_v8  ;;  %8436 = vmatprep.mubr.bf16.mxu1 %v11295_v54 }
 0x692   : > { %v8278_v20 = vpop.permute.xlu0 %8277  ;;  %v8276_v52 = vpop.permute.xlu1 %8275 }
 0x693   : > { %v8288_v56 = vsel %vm4323_vm14, %v8274_v27, %v8276_v52  ;;  %v8289_v49 = vsel %vm4323_vm14, %v8276_v52, %v8278_v20 }
 0x694   : > { %10132 = vmatmul.mubr.msk.bf16.vlgmr.msra.gmra.mxu0 %vm4828_vm8, %v10128_v30  ;;  %10133 = vmatprep.subr.msk.bf16.mxu1 %vm4832_vm11, %v8288_v56  ;;  %v8314_v58 = vsel %vm4832_vm11, %v8289_v49, 0 }
 0x695   : > { %8419 = vmatpush1.bf16.msra.mxu1 %v8308_v35  ;;  %8477 = vmatprep.mubr.bf16.mxu0 %v11295_v54 }
 0x696   : > { %v8282_v39 = vpop.permute.xlu0 %8281  ;;  %v8280_v59 = vpop.permute.xlu1 %8279  ;;  %10403 = vmatprep.subr.bf16.mxu1 %v10654_v22 }
 0x697   : > { %v8290_v40 = vsel %vm4323_vm14, %v8278_v20, %v8280_v59  ;;  %v8291_v10 = vsel %vm4323_vm14, %v8280_v59, %v8282_v39 }
 0x698   : > { %v8320_v3 = vsel %vm4832_vm11, %v8291_v10, 0  ;;  %10134 = vmatmul.mubr.msk.bf16.vlgmr.msra.gmra.mxu1 %vm4828_vm8, %v10128_v30  ;;  %10135 = vmatprep.subr.msk.bf16.mxu0 %vm4832_vm11, %v8290_v40 }
 0x699   : > { %8460 = vmatpush1.bf16.msra.mxu0 %v8314_v58  ;;  %10404 = vmatpush3.bf16.msra.mxu1 %v8320_v3 }
 0x69a   : > { %10148 = vmatprep.subr.msk.bf16.mxu0 %vm4832_vm11, %v13107_v0  ;;  %10150 = vmatprep.subr.msk.bf16.mxu1 %vm4832_vm11, %v13119_v11  ;;  %v8649_v0 = vsel %vm4832_vm11, %v13123_v34, 0  ;;  %v10138_v11 = vld [vmem:[%s13597_s5 + $0x4] sm:$0xf]  ;;  %v8661_v34 = vsel %vm4832_vm11, %v13143_v25, 0 }
 0x69b   : > { %10405 = vmatprep.mubr.msk.bf16.mxu1 %vm10655_vm2, %v10654_v22 }
 0x69c   : > { %10136 = vmatmul.mubr.msk.bf16.vlgmr.msra.gmra.mxu0 %vm4828_vm8, %v10128_v30 }
 0x69d   : > { %8684 = vmatpush1.bf16.msra.mxu0 %v8643_v28  ;;  %8701 = vmatprep.mubr.bf16.mxu0 %v11295_v54 }
 0x69e   : > { %10152 = vmatprep.subr.msk.bf16.mxu0 %vm4832_vm11, %v13131_v4  ;;  %v8604_v4 = vld [vmem:[#allocation3 + $0x4] sm:$0xff] }
 0x69f   : > { %v10158_v14 = vcombine.high %v8604_v4, %v8604_v4  ;;  %v10157_v21 = vcombine.low %v8604_v4, %v8604_v4 }
 0x6a0   : > { %10406 = vmatmul.mubr.msk.bf16.vlgmr.msra.gmra.mxu1 %vm4828_vm8, %v10128_v30 }
 0x6a1   : > { %8725 = vmatpush1.bf16.msra.mxu1 %v8649_v0  ;;  %8742 = vmatprep.mubr.bf16.mxu1 %v11295_v54  ;;  %v8900_v25 = vsel %vm4832_vm11, %v10157_v21, 0 }
 0x6a2   : > { %10154 = vmatprep.subr.msk.bf16.mxu1 %vm4832_vm11, %v13141_v43  ;;  %v8605_v43 = vld [vmem:[#allocation3 + $0xc] sm:$0xff] }
 0x6a3   : > { %v10160_v62 = vcombine.high %v8605_v43, %v8605_v43  ;;  %v10159_v29 = vcombine.low %v8605_v43, %v8605_v43  ;;  %v13378_v36 = vpop.permute.xlu1 %8538 }
 0x6a4   : > { %10149 = vmatmul.mubr.msk.bf16.vlgmr.msra.gmra.mxu0 %vm4828_vm8, %v10138_v11 }
 0x6a5   : > { %8766 = vmatpush1.bf16.msra.mxu0 %v8655_v60  ;;  %8783 = vmatprep.mubr.bf16.mxu0 %v11295_v54  ;;  %v8906_v44 = vsel %vm4832_vm11, %v10159_v29, 0 }
 0x6a6   : > { %10409 = vmatprep.subr.bf16.mxu0 %v10654_v22 }
 0x6a8   : > { %10151 = vmatmul.mubr.msk.bf16.vlgmr.msra.gmra.mxu1 %vm4828_vm8, %v10138_v11 }
 0x6a9   : > { %8807 = vmatpush1.bf16.msra.mxu1 %v8661_v34  ;;  %8824 = vmatprep.mubr.bf16.mxu1 %v11295_v54 }
 0x6aa   : > { %10166 = vmatprep.subr.msk.bf16.mxu1 %vm4832_vm11, %v10158_v14 }
 0x6ac   : > { %10153 = vmatmul.mubr.msk.bf16.vlgmr.msra.gmra.mxu0 %vm4828_vm8, %v10138_v11 }
 0x6ad   : > { %10410 = vmatpush3.bf16.msra.mxu0 %v8667_v18  ;;  %10411 = vmatprep.mubr.msk.bf16.mxu0 %vm10655_vm2, %v10654_v22 }
 0x6ae   : > { %10168 = vmatprep.subr.msk.bf16.mxu0 %vm4832_vm11, %v10160_v62 }
 0x6b0   : > { %10155 = vmatmul.mubr.msk.bf16.vlgmr.msra.gmra.mxu1 %vm4828_vm8, %v10138_v11 }
 0x6b1   : > { %8941 = vmatpush1.bf16.msra.mxu1 %v8900_v25  ;;  %8958 = vmatprep.mubr.bf16.mxu1 %v11295_v54 }
 0x6b2   : > { %10170 = vmatprep.subr.msk.bf16.mxu1 %vm4832_vm11, %v10162_v48 }
 0x6b4   : > { %10412 = vmatmul.mubr.msk.bf16.vlgmr.msra.gmra.mxu0 %vm4828_vm8, %v10138_v11 }
 0x6b5   : > { %8982 = vmatpush1.bf16.msra.mxu0 %v8906_v44  ;;  %8999 = vmatprep.mubr.bf16.mxu0 %v11295_v54 }
 0x6b6   : > { %10172 = vmatprep.subr.msk.bf16.mxu0 %vm4832_vm11, %v10164_v23 }
 0x6b8   : > { %10167 = vmatmul.mubr.msk.bf16.vlgmr.msra.gmra.mxu1 %vm4828_vm8, %v8603_v31 }
 0x6b9   : > { %9023 = vmatpush1.bf16.msra.mxu1 %v8912_v16  ;;  %9040 = vmatprep.mubr.bf16.mxu1 %v11295_v54 }
 0x6ba   : > { %10415 = vmatprep.subr.bf16.mxu1 %v10654_v22 }
 0x6bc   : > { %10169 = vmatmul.mubr.msk.bf16.vlgmr.msra.gmra.mxu0 %vm4828_vm8, %v8603_v31 }
 0x6bd   : > { %9064 = vmatpush1.bf16.msra.mxu0 %v8918_v24  ;;  %9081 = vmatprep.mubr.bf16.mxu0 %v11295_v54 }
 0x6c0   : > { %10171 = vmatmul.mubr.msk.bf16.vlgmr.msra.gmra.mxu1 %vm4828_vm8, %v8603_v31 }
 0x6c1   : > { %10416 = vmatpush3.bf16.msra.mxu1 %v8924_v57  ;;  %10417 = vmatprep.mubr.msk.bf16.mxu1 %vm10655_vm2, %v10654_v22 }
 0x6c4   : > { %10173 = vmatmul.mubr.msk.bf16.vlgmr.msra.gmra.mxu0 %vm4828_vm8, %v8603_v31 }
 0x6c5   : > { %9203 = vmatprep.mubr.bf16.mxu0 %v11295_v54 }
 0x6c8   : > { %10418 = vmatmul.mubr.msk.bf16.vlgmr.msra.gmra.mxu1 %vm4828_vm8, %v8603_v31 }
 0x6c9   : > { %9244 = vmatprep.mubr.bf16.mxu1 %v11295_v54 }
 0x713   : > { %v7524_v46 = vpop.f32.mrf.mxu0 }
 0x715   : > { %v7526_v37 = vpop.f32.mrf.mxu0 }
 0x717   : > { %v7528_v17 = vpop.f32.mrf.mxu0  ;;  %v7565_v50 = vpop.f32.mrf.mxu1 }
 0x719   : > { %v7529_v41 = vpop.f32.mrf.mxu0  ;;  %v7567_v6 = vpop.f32.mrf.mxu1 }
 0x71b   : > { %v7569_v38 = vpop.f32.mrf.mxu1 }
 0x71c   : > { %v13368_v26 = vpop.f32.mrf.mxu0 }
 0x71d   : > { %v7570_v2 = vpop.f32.mrf.mxu1 }
 0x71e   : > { %v13370_v32 = vpop.f32.mrf.mxu0 }
 0x720   : > { %v7610_v9 = vpop.f32.mrf.mxu0  ;;  %v13372_v13 = vpop.f32.mrf.mxu1 }
 0x722   : > { %v7611_v55 = vpop.f32.mrf.mxu0  ;;  %v13374_v12 = vpop.f32.mrf.mxu1 }
 0x724   : > { %v7651_v45 = vpop.f32.mrf.mxu1  ;;  %v13376_v1 = vpop.f32.mrf.mxu0 }
 0x726   : > { %v7652_v30 = vpop.f32.mrf.mxu1  ;;  %v10389_v27 = vpop.f32.mrf.mxu0 }
 0x728   : > { %v7691_v42 = vpop.f32.mrf.mxu0  ;;  %v7787_v19 = vpop.f32.mrf.mxu1 }
 0x729   : > { %v7788_v24 = vadd.f32 %v7787_v19, %v7524_v46 }
 0x72a   : > { %v10390_v8 = vpop.f32.mrf.mxu0  ;;  %v7789_v33 = vpop.f32.mrf.mxu1 }
 0x72b   : > { %v7790_v47 = vadd.f32 %v7789_v33, %v7526_v37 }
 0x72c   : > { %v7791_v20 = vpop.f32.mrf.mxu1  ;;  %v7828_v52 = vpop.f32.mrf.mxu0 }
 0x72d   : > { %v7829_v38 = vadd.f32 %v7828_v52, %v7565_v50 }
 0x72e   : > { %v7792_v56 = vpop.f32.mrf.mxu1  ;;  %v7830_v35 = vpop.f32.mrf.mxu0 }
 0x72f   : > { %v7831_v55 = vadd.f32 %v7830_v35, %v7567_v6 }
 0x730   : > { %v7832_v49 = vpop.f32.mrf.mxu0  ;;  %v7869_v39 = vpop.f32.mrf.mxu1 }
 0x731   : > { %v7870_v46 = vadd.f32 %v7869_v39, %v13368_v26  ;;  %v13387_v39 = vpop.permute.xlu0 %8578 }
 0x732   : > { %v7833_v59 = vpop.f32.mrf.mxu0  ;;  %v7871_v40 = vpop.f32.mrf.mxu1 }
 0x733   : > { %v7872_v50 = vadd.f32 %v7871_v40, %v13370_v32 }
 0x734   : > { %v7873_v10 = vpop.f32.mrf.mxu1  ;;  %v7910_v58 = vpop.f32.mrf.mxu0 }
 0x735   : > { %v7911_v6 = vadd.f32 %v7910_v58, %v13372_v13 }
 0x736   : > { %v7874_v3 = vpop.f32.mrf.mxu1  ;;  %v7912_v28 = vpop.f32.mrf.mxu0 }
 0x737   : > { %v7913_v52 = vadd.f32 %v7912_v28, %v13374_v12  ;;  %v13392_v28 = vpop.permute.xlu1 %8591 }
 0x738   : > { %v7914_v0 = vpop.f32.mrf.mxu0  ;;  %v7951_v11 = vpop.f32.mrf.mxu1 }
 0x73a   : > { %v7915_v60 = vpop.f32.mrf.mxu0  ;;  %v10395_v4 = vpop.f32.mrf.mxu1 }
 0x73b   : > { %v7952_v60 = vadd.f32 %v7951_v11, %v13376_v1 }
 0x73c   : > { %v7954_v34 = vpop.f32.mrf.mxu1  ;;  %v8082_v14 = vpop.f32.mrf.mxu0 }
 0x73d   : > { %v8252_v51 = vadd.f32 %v8082_v14, %v7788_v24 }
 0x73e   : > { %v10396_v63 = vpop.f32.mrf.mxu1  ;;  %v8084_v43 = vpop.f32.mrf.mxu0 }
 0x73f   : > { %v8253_v2 = vadd.f32 %v8084_v43, %v7790_v47 }
 0x740   : > { %v8086_v18 = vpop.f32.mrf.mxu0  ;;  %v8123_v62 = vpop.f32.mrf.mxu1 }
 0x741   : > { %v8254_v27 = vadd.f32 %v8123_v62, %v7829_v38 }
 0x742   : > { %v8087_v21 = vpop.f32.mrf.mxu0  ;;  %v8125_v7 = vpop.f32.mrf.mxu1 }
 0x743   : > { %v8255_v19 = vadd.f32 %v8125_v7, %v7831_v55 }
 0x744   : > { %v8127_v25 = vpop.f32.mrf.mxu1  ;;  %v8164_v48 = vpop.f32.mrf.mxu0 }
 0x745   : > { %v8256_v35 = vadd.f32 %v8164_v48, %v7870_v46 }
 0x746   : > { %v8128_v29 = vpop.f32.mrf.mxu1  ;;  %v8166_v61 = vpop.f32.mrf.mxu0 }
 0x747   : > { %v8257_v4 = vadd.f32 %v8166_v61, %v7872_v50 }
 0x748   : > { %v8168_v44 = vpop.f32.mrf.mxu0  ;;  %v8205_v23 = vpop.f32.mrf.mxu1 }
 0x749   : > { %v8258_v34 = vadd.f32 %v8205_v23, %v7911_v6 }
 0x74a   : > { %v8169_v53 = vpop.f32.mrf.mxu0  ;;  %v8207_v31 = vpop.f32.mrf.mxu1 }
 0x74b   : > { %v8259_v63 = vadd.f32 %v8207_v31, %v7913_v52 }
 0x74c   : > { %v8209_v16 = vpop.f32.mrf.mxu1  ;;  %v8246_v5 = vpop.f32.mrf.mxu0 }
 0x74d   : > { %v8260_v43 = vadd.f32 %v8246_v5, %v7952_v60 }
 0x74e   : > { %v8210_v15 = vpop.f32.mrf.mxu1  ;;  %v10401_v57 = vpop.f32.mrf.mxu0 }
 0x750   : > { %v8249_v17 = vpop.f32.mrf.mxu0  ;;  %v8356_v41 = vpop.f32.mrf.mxu1 }
 0x751   : > { %v8526_v9 = vadd.f32 %v8356_v41, %v8252_v51 }
 0x752   : > { %v10402_v45 = vpop.f32.mrf.mxu0  ;;  %v8358_v30 = vpop.f32.mrf.mxu1 }
 0x753   : > { %v8527_v42 = vadd.f32 %v8358_v30, %v8253_v2  ;;  %v8541_v8 = vadd.f32 %v13378_v36, %v8526_v9 }
 0x754   : > { %v8360_v20 = vpop.f32.mrf.mxu1  ;;  %v8397_v37 = vpop.f32.mrf.mxu0 }
 0x755   : > { %v8528_v33 = vadd.f32 %v8397_v37, %v8254_v27  ;;  %v8542_v56 = vadd.f32 %v13378_v36, %v8527_v42  ;;  %vm8550_vm7 = vcmp.ge.f32.partialorder %v8541_v8, 0.0  ;;  %v8559_v49 = vmul.f32 0.01, %v8541_v8 }
 0x756   : > { %v8361_v59 = vpop.f32.mrf.mxu1  ;;  %v8399_v10 = vpop.f32.mrf.mxu0 }
 0x757   : > { %v8543_v3 = vadd.f32 %v13378_v36, %v8528_v33  ;;  %v8529_v26 = vadd.f32 %v8399_v10, %v8255_v19  ;;  %vm8551_vm5 = vcmp.ge.f32.partialorder %v8542_v56, 0.0  ;;  %v8560_v0 = vmul.f32 0.01, %v8542_v56  ;;  %v10175_v59 = vld [vmem:[%s13597_s5 + $0x8] sm:$0xf] }
 0x758   : > { %v8401_v14 = vpop.f32.mrf.mxu0  ;;  %v8438_v32 = vpop.f32.mrf.mxu1  ;;  %v8568_v13 = vsel %vm8550_vm7, %v8541_v8, %v8559_v49 }
 0x759   : > { %vm8552_vm6 = vcmp.ge.f32.partialorder %v8543_v3, 0.0  ;;  %v8561_v12 = vmul.f32 0.01, %v8543_v3  ;;  %v8544_v40 = vadd.f32 %v13378_v36, %v8529_v26  ;;  %v8530_v58 = vadd.f32 %v8438_v32, %v8256_v35 }
 0x75a   : > { %v8402_v18 = vpop.f32.mrf.mxu0  ;;  %v8440_v62 = vpop.f32.mrf.mxu1  ;;  %v8569_v21 = vsel %vm8551_vm5, %v8542_v56, %v8560_v0  ;;  %v8581_v1 = vmul.f32 %v13387_v39, %v8568_v13 }
 0x75b   : > { %v8570_v11 = vsel %vm8552_vm6, %v8543_v3, %v8561_v12  ;;  %vm8553_vm14 = vcmp.ge.f32.partialorder %v8544_v40, 0.0  ;;  %v8562_v7 = vmul.f32 0.01, %v8544_v40  ;;  %v8545_v25 = vadd.f32 %v13378_v36, %v8530_v58 }
 0x75c   : > { %v8531_v48 = vadd.f32 %v8440_v62, %v8257_v4  ;;  %v8442_v29 = vpop.f32.mrf.mxu1  ;;  %v8479_v61 = vpop.f32.mrf.mxu0  ;;  %v8582_v44 = vmul.f32 %v13387_v39, %v8569_v21  ;;  %v8594_v23 = vadd.f32 %v13392_v28, %v8581_v1  ;;  %v8583_v53 = vmul.f32 %v13387_v39, %v8570_v11 }
 0x75d   : > { %v8571_v31 = vsel %vm8553_vm14, %v8544_v40, %v8562_v7  ;;  %vm8554_vm9 = vcmp.ge.f32.partialorder %v8545_v25, 0.0  ;;  %v8563_v16 = vmul.f32 0.01, %v8545_v25  ;;  %v8532_v5 = vadd.f32 %v8479_v61, %v8258_v34 }
 0x75e   : > { %v8546_v24 = vadd.f32 %v13378_v36, %v8531_v48  ;;  %v8443_v15 = vpop.f32.mrf.mxu1  ;;  %v8481_v57 = vpop.f32.mrf.mxu0  ;;  %v8595_v47 = vadd.f32 %v13392_v28, %v8582_v44  ;;  %v9132_v51 = vpack.c.bf16 %v8594_v23, %v8594_v23  ;;  %v8584_v17 = vmul.f32 %v13387_v39, %v8571_v31 }
 0x75f   : > { %v8572_v41 = vsel %vm8554_vm9, %v8545_v25, %v8563_v16  ;;  %v8547_v38 = vadd.f32 %v13378_v36, %v8532_v5  ;;  %v8533_v2 = vadd.f32 %v8481_v57, %v8259_v63  ;;  %v8596_v9 = vadd.f32 %v13392_v28, %v8583_v53 }
 0x760   : > { %vm8555_vm10 = vcmp.ge.f32.partialorder %v8546_v24, 0.0  ;;  %v8564_v55 = vmul.f32 0.01, %v8546_v24  ;;  %v8520_v45 = vpop.f32.mrf.mxu1  ;;  %v9133_v30 = vpack.c.bf16 %v8595_v47, %v8595_v47  ;;  %v9145_v27 = vsel %vm4832_vm11, %v9132_v51, 0  ;;  %v8483_v42 = vpop.f32.mrf.mxu0 }
 0x761   : > { %vm8556_vm0 = vcmp.ge.f32.partialorder %v8547_v38, 0.0  ;;  %v8565_v8 = vmul.f32 0.01, %v8547_v38  ;;  %v8548_v46 = vadd.f32 %v13378_v36, %v8533_v2  ;;  %v8534_v19 = vadd.f32 %v8520_v45, %v8260_v43 }
 0x762   : > { %v8573_v20 = vsel %vm8555_vm10, %v8546_v24, %v8564_v55  ;;  %10176 = vmatprep.subr.msk.bf16.mxu0 %vm4832_vm11, %v9133_v30  ;;  %v8597_v37 = vadd.f32 %v13392_v28, %v8584_v17  ;;  %v9134_v33 = vpack.c.bf16 %v8596_v9, %v8596_v9  ;;  %v8585_v56 = vmul.f32 %v13387_v39, %v8572_v41  ;;  %v8484_v49 = vpop.f32.mrf.mxu0  ;;  %v10407_v50 = vpop.f32.mrf.mxu1 }
 0x763   : > { %v8586_v6 = vmul.f32 %v13387_v39, %v8573_v20  ;;  %v8574_v52 = vsel %vm8556_vm0, %v8547_v38, %v8565_v8  ;;  %vm8557_vm1 = vcmp.ge.f32.partialorder %v8548_v46, 0.0  ;;  %v8566_v35 = vmul.f32 0.01, %v8548_v46  ;;  %9186 = vmatpush1.bf16.msra.mxu0 %v9145_v27 }
 0x764   : > { %v8549_v10 = vadd.f32 %v13378_v36, %v8534_v19  ;;  %v9135_v3 = vpack.c.bf16 %v8597_v37, %v8597_v37  ;;  %v8598_v26 = vadd.f32 %v13392_v28, %v8585_v56  ;;  %v8523_v0 = vpop.f32.mrf.mxu1  ;;  %v8703_v60 = vpop.f32.mrf.mxu0  ;;  %v9151_v34 = vsel %vm4832_vm11, %v9134_v33, 0 }
 0x765   : > { %v8575_v4 = vsel %vm8557_vm1, %v8548_v46, %v8566_v35  ;;  %v8599_v14 = vadd.f32 %v13392_v28, %v8586_v6  ;;  %v8587_v32 = vmul.f32 %v13387_v39, %v8574_v52  ;;  %vm9458_vm9 = vcmask 1014784  }
 0x766   : > { %v8588_v13 = vmul.f32 %v13387_v39, %v8575_v4  ;;  %vm8558_vm15 = vcmp.ge.f32.partialorder %v8549_v10, 0.0  ;;  %v8567_v12 = vmul.f32 0.01, %v8549_v10  ;;  %10177 = vmatmul.mubr.msk.bf16.vlgmr.msra.gmra.mxu0 %vm4828_vm8, %v10175_v59  ;;  %10178 = vmatprep.subr.msk.bf16.mxu1 %vm4832_vm11, %v9135_v3  ;;  %v9136_v36 = vpack.c.bf16 %v8598_v26, %v8598_v26  ;;  %v10408_v40 = vpop.f32.mrf.mxu1  ;;  %v8705_v58 = vpop.f32.mrf.mxu0 }
 0x767   : > { %9227 = vmatpush1.bf16.msra.mxu1 %v9151_v34  ;;  %v9137_v63 = vpack.c.bf16 %v8599_v14, %v8599_v14  ;;  %9285 = vmatprep.mubr.bf16.mxu0 %v11295_v54  ;;  %v8600_v43 = vadd.f32 %v13392_v28, %v8587_v32  ;;  %vm9468_vm10 = vcmask 523520   ;;  %vm9475_vm0 = vcmask 785920  }
 0x768   : > { %v8576_v18 = vsel %vm8558_vm15, %v8549_v10, %v8567_v12  ;;  %v8601_v62 = vadd.f32 %v13392_v28, %v8588_v13  ;;  %v8744_v21 = vpop.f32.mrf.mxu1  ;;  %v8707_v1 = vpop.f32.mrf.mxu0  ;;  %v9157_v11 = vsel %vm4832_vm11, %v9136_v36, 0  ;;  %vm9485_vm1 = vcmask 949248  }
 0x769   : > { %10180 = vmatprep.subr.msk.bf16.mxu0 %vm4832_vm11, %v9137_v63  ;;  %v9138_v7 = vpack.c.bf16 %v8600_v43, %v8600_v43  ;;  %v8589_v25 = vmul.f32 %v13387_v39, %v8576_v18  ;;  %v13444_v12 = vpop.permute.xlu1 %9385  ;;  %vm9488_vm15 = vcmask 1048320  }
 0x76a   : > { %10179 = vmatmul.mubr.msk.bf16.vlgmr.msra.gmra.mxu1 %vm4828_vm8, %v10175_v59  ;;  %9268 = vmatpush1.bf16.msra.mxu0 %v9157_v11  ;;  %v9139_v48 = vpack.c.bf16 %v8601_v62, %v8601_v62  ;;  %v8746_v29 = vpop.f32.mrf.mxu1  ;;  %v8708_v61 = vpop.f32.mrf.mxu0 }
 0x76b   : > { %10421 = vmatprep.subr.bf16.mxu0 %v10654_v22  ;;  %9326 = vmatprep.mubr.bf16.mxu1 %v11295_v54  ;;  %v8602_v44 = vadd.f32 %v13392_v28, %v8589_v25  ;;  %v9163_v23 = vsel %vm4832_vm11, %v9138_v7, 0  ;;  %v13449_v61 = vpop.permute.xlu0 %9425 }
 0x76c   : > { %10182 = vmatprep.subr.msk.bf16.mxu1 %vm4832_vm11, %v9139_v48  ;;  %v8748_v53 = vpop.f32.mrf.mxu1  ;;  %v8785_v31 = vpop.f32.mrf.mxu0 }
 0x76d   : > { %9309 = vmatpush1.bf16.msra.mxu1 %v9163_v23  ;;  %v9140_v39 = vpack.c.bf16 %v8602_v44, %v8602_v44 }
 0x76e   : > { %10181 = vmatmul.mubr.msk.bf16.vlgmr.msra.gmra.mxu0 %vm4828_vm8, %v10175_v59  ;;  %v8749_v16 = vpop.f32.mrf.mxu1  ;;  %v8787_v5 = vpop.f32.mrf.mxu0 }
 0x76f   : > { %v9169_v24 = vsel %vm4832_vm11, %v9140_v39, 0  ;;  %10423 = vmatprep.mubr.msk.bf16.mxu0 %vm10655_vm2, %v10654_v22 }
 0x770   : > { %10422 = vmatpush3.bf16.msra.mxu0 %v9169_v24  ;;  %v8826_v54 = vpop.f32.mrf.mxu1  ;;  %v8789_v28 = vpop.f32.mrf.mxu0 }
 0x772   : > { %10183 = vmatmul.mubr.msk.bf16.vlgmr.msra.gmra.mxu1 %vm4828_vm8, %v10175_v59  ;;  %v8828_v15 = vpop.f32.mrf.mxu1  ;;  %v8790_v57 = vpop.f32.mrf.mxu0 }
 0x774   : > { %v8830_v47 = vpop.f32.mrf.mxu1  ;;  %v8867_v51 = vpop.f32.mrf.mxu0 }
 0x776   : > { %10424 = vmatmul.mubr.msk.bf16.vlgmr.msra.gmra.mxu0 %vm4828_vm8, %v10175_v59  ;;  %v8831_v17 = vpop.f32.mrf.mxu1  ;;  %v10413_v41 = vpop.f32.mrf.mxu0 }
 0x778   : > { %v8960_v38 = vpop.f32.mrf.mxu1  ;;  %v8870_v2 = vpop.f32.mrf.mxu0 }
 0x779   : > { %v8961_v9 = vadd.f32 %v8960_v38, %v8703_v60 }
 0x77a   : > { %v8962_v55 = vpop.f32.mrf.mxu1  ;;  %v10414_v45 = vpop.f32.mrf.mxu0 }
 0x77b   : > { %v8963_v30 = vadd.f32 %v8962_v55, %v8705_v58 }
 0x77c   : > { %v8964_v22 = vpop.f32.mrf.mxu1  ;;  %v9001_v27 = vpop.f32.mrf.mxu0 }
 0x77d   : > { %v9002_v42 = vadd.f32 %v9001_v27, %v8744_v21 }
 0x77e   : > { %v8965_v8 = vpop.f32.mrf.mxu1  ;;  %v9003_v46 = vpop.f32.mrf.mxu0 }
 0x77f   : > { %v9004_v19 = vadd.f32 %v9003_v46, %v8746_v29 }
 0x780   : > { %v9042_v20 = vpop.f32.mrf.mxu1  ;;  %v9005_v37 = vpop.f32.mrf.mxu0 }
 0x781   : > { %v9043_v33 = vadd.f32 %v9042_v20, %v8785_v31 }
 0x782   : > { %v9044_v56 = vpop.f32.mrf.mxu1  ;;  %v9006_v49 = vpop.f32.mrf.mxu0 }
 0x783   : > { %v9045_v50 = vadd.f32 %v9044_v56, %v8787_v5  ;;  %v13452_v5 = vpop.permute.xlu1 %9438 }
 0x784   : > { %v9046_v6 = vpop.f32.mrf.mxu1  ;;  %v9083_v52 = vpop.f32.mrf.mxu0 }
 0x785   : > { %v9084_v35 = vadd.f32 %v9083_v52, %v8826_v54 }
 0x786   : > { %v9047_v59 = vpop.f32.mrf.mxu1  ;;  %v9085_v10 = vpop.f32.mrf.mxu0 }
 0x787   : > { %v13440_v3 = vadd.f32 %v9085_v10, %v8828_v15 }
 0x788   : > { %v9124_v26 = vpop.f32.mrf.mxu1  ;;  %v9087_v0 = vpop.f32.mrf.mxu0 }
 0x789   : > { %v13442_v60 = vadd.f32 %v9124_v26, %v8867_v51 }
 0x78a   : > { %v9088_v4 = vpop.f32.mrf.mxu0  ;;  %v10419_v34 = vpop.f32.mrf.mxu1 }
 0x78c   : > { %v9127_v14 = vpop.f32.mrf.mxu1 }
 0x78e   : > { %v10420_v32 = vpop.f32.mrf.mxu1 }
 0x826   : > { %v9205_v13 = vpop.f32.mrf.mxu0 }
 0x827   : > { %v9375_v36 = vadd.f32 %v9205_v13, %v8961_v9 }
 0x828   : > { %v9207_v40 = vpop.f32.mrf.mxu0 }
 0x829   : > { %v9376_v58 = vadd.f32 %v9207_v40, %v8963_v30  ;;  %v9388_v63 = vadd.f32 %v13444_v12, %v9375_v36 }
 0x82a   : > { %v9209_v43 = vpop.f32.mrf.mxu0  ;;  %v9246_v18 = vpop.f32.mrf.mxu1 }
 0x82b   : > { %v9389_v62 = vadd.f32 %v13444_v12, %v9376_v58  ;;  %v9406_v21 = vmul.f32 0.01, %v9388_v63  ;;  %v9377_v1 = vadd.f32 %v9246_v18, %v9002_v42  ;;  %vm9397_vm2 = vcmp.ge.f32.partialorder %v9388_v63, 0.0 }
 0x82c   : > { %v9210_v11 = vpop.f32.mrf.mxu0  ;;  %v9248_v7 = vpop.f32.mrf.mxu1 }
 0x82d   : > { %v9407_v25 = vmul.f32 0.01, %v9389_v62  ;;  %v9390_v48 = vadd.f32 %v13444_v12, %v9377_v1  ;;  %v9378_v29 = vadd.f32 %v9248_v7, %v9004_v19  ;;  %vm9398_vm11 = vcmp.ge.f32.partialorder %v9389_v62, 0.0 }
 0x82e   : > { %v9415_v44 = vsel %vm9397_vm2, %v9388_v63, %v9406_v21  ;;  %v9250_v23 = vpop.f32.mrf.mxu1  ;;  %v9287_v53 = vpop.f32.mrf.mxu0  ;;  %vm9516_vm2 = vcmask 818176  }
 0x82f   : > { %vm9399_vm8 = vcmp.ge.f32.partialorder %v9390_v48, 0.0  ;;  %v9408_v31 = vmul.f32 0.01, %v9390_v48  ;;  %v9391_v39 = vadd.f32 %v13444_v12, %v9378_v29  ;;  %v9416_v16 = vsel %vm9398_vm11, %v9389_v62, %v9407_v25 }
 0x830   : > { %v9428_v24 = vmul.f32 %v13449_v61, %v9415_v44  ;;  %v9429_v54 = vmul.f32 %v13449_v61, %v9416_v16  ;;  %v9379_v28 = vadd.f32 %v9287_v53, %v9043_v33  ;;  %v9251_v15 = vpop.f32.mrf.mxu1  ;;  %v9289_v57 = vpop.f32.mrf.mxu0  ;;  %vm9540_vm11 = vcmask 719872  }
 0x831   : > { %v9417_v47 = vsel %vm9399_vm8, %v9390_v48, %v9408_v31  ;;  %vm9400_vm13 = vcmp.ge.f32.partialorder %v9391_v39, 0.0  ;;  %v9409_v51 = vmul.f32 0.01, %v9391_v39  ;;  %v9380_v17 = vadd.f32 %v9289_v57, %v9045_v50 }
 0x832   : > { %v9430_v41 = vmul.f32 %v13449_v61, %v9417_v47  ;;  %v9392_v38 = vadd.f32 %v13444_v12, %v9379_v28  ;;  %v9441_v2 = vadd.f32 %v13452_v5, %v9428_v24  ;;  %v9442_v9 = vadd.f32 %v13452_v5, %v9429_v54  ;;  %v9291_v55 = vpop.f32.mrf.mxu0  ;;  %v9328_v45 = vpop.f32.mrf.mxu1 }
 0x833   : > { %v9418_v30 = vsel %vm9400_vm13, %v9391_v39, %v9409_v51  ;;  %v9393_v22 = vadd.f32 %v13444_v12, %v9380_v17  ;;  %v9381_v27 = vadd.f32 %v9328_v45, %v9084_v35  ;;  %vm9594_vm8 = vcmask 490496  }
 0x834   : > { %v9431_v42 = vmul.f32 %v13449_v61, %v9418_v30  ;;  %vm9401_vm4 = vcmp.ge.f32.partialorder %v9392_v38, 0.0  ;;  %v9410_v8 = vmul.f32 0.01, %v9392_v38  ;;  %v9443_v46 = vadd.f32 %v13452_v5, %v9430_v41  ;;  %v9292_v19 = vpop.f32.mrf.mxu0  ;;  %v9330_v20 = vpop.f32.mrf.mxu1  ;;  %9472 = vrot.lane.b32.xlu0 %v9441_v2, %s10649_s26  ;;  %9465 = vrot.lane.b32.xlu1 %v9441_v2, %s10650_s20  ;;  %9462 = vst.msk [vmem:[%s13461_s18] sm:$0xff] %vm9461_vm12, %v9441_v2  ;;  %s13745_s20 = smov 76   ;;  %s13749_s26 = smov 32  }
 0x835   : > { %vm9402_vm7 = vcmp.ge.f32.partialorder %v9393_v22, 0.0  ;;  %v9411_v37 = vmul.f32 0.01, %v9393_v22  ;;  %v9394_v33 = vadd.f32 %v13444_v12, %v9381_v27  ;;  %v9382_v56 = vadd.f32 %v9330_v20, %v13440_v3 }
 0x836   : > { %v9419_v49 = vsel %vm9401_vm4, %v9392_v38, %v9410_v8  ;;  %v9444_v50 = vadd.f32 %v13452_v5, %v9431_v42  ;;  %v9369_v6 = vpop.f32.mrf.mxu0  ;;  %v9332_v52 = vpop.f32.mrf.mxu1  ;;  %vm9672_vm13 = vcmask 130048  }
 0x837   : > { %v9432_v35 = vmul.f32 %v13449_v61, %v9419_v49  ;;  %v9420_v59 = vsel %vm9402_vm7, %v9393_v22, %v9411_v37  ;;  %vm9403_vm5 = vcmp.ge.f32.partialorder %v9394_v33, 0.0  ;;  %v9412_v10 = vmul.f32 0.01, %v9394_v33 }
 0x838   : > { %v9433_v26 = vmul.f32 %v13449_v61, %v9420_v59  ;;  %v9395_v0 = vadd.f32 %v13444_v12, %v9382_v56  ;;  %v9383_v4 = vadd.f32 %v9369_v6, %v13442_v60  ;;  %9483 = vrot.lane.b32.xlu0 %v9442_v9, %s10648_s11  ;;  %9481 = vrot.lane.b32.xlu1 %v9441_v2, %s10648_s11  ;;  %v9333_v3 = vpop.f32.mrf.mxu1  ;;  %v10425_v34 = vpop.f32.mrf.mxu0  ;;  %s13753_s11 = smov 12  }
 0x839   : > { %v9445_v14 = vadd.f32 %v13452_v5, %v9432_v35  ;;  %v9421_v32 = vsel %vm9403_vm5, %v9394_v33, %v9412_v10 }
 0x83a   : > { %v9446_v13 = vadd.f32 %v13452_v5, %v9433_v26  ;;  %v9434_v36 = vmul.f32 %v13449_v61, %v9421_v32  ;;  %vm9404_vm6 = vcmp.ge.f32.partialorder %v9395_v0, 0.0  ;;  %v9413_v40 = vmul.f32 0.01, %v9395_v0  ;;  %v9372_v58 = vpop.f32.mrf.mxu0 }
 0x83b   : > { %v9396_v63 = vadd.f32 %v13444_v12, %v9383_v4 }
 0x83c   : > { %v9447_v60 = vadd.f32 %v13452_v5, %v9434_v36  ;;  %v9422_v43 = vsel %vm9404_vm6, %v9395_v0, %v9413_v40  ;;  %9498 = vrot.lane.b32.xlu0 %v9442_v9, %s10645_s22  ;;  %9492 = vrot.lane.b32.xlu1 %v9442_v9, %s10641_s16  ;;  %v10426_v18 = vpop.f32.mrf.mxu0  ;;  %s13743_s16 = smov 80   ;;  %s13747_s22 = smov 44  }
 0x83d   : > { %v9435_v62 = vmul.f32 %v13449_v61, %v9422_v43  ;;  %vm9405_vm14 = vcmp.ge.f32.partialorder %v9396_v63, 0.0  ;;  %v9414_v21 = vmul.f32 0.01, %v9396_v63 }
 0x83f   : > { %v9448_v1 = vadd.f32 %v13452_v5, %v9435_v62  ;;  %v9423_v11 = vsel %vm9405_vm14, %v9396_v63, %v9414_v21 }
 0x840   : > { %v9436_v7 = vmul.f32 %v13449_v61, %v9423_v11  ;;  %9522 = vrot.lane.b32.xlu0 %v9443_v46, %s10647_s29  ;;  %9504 = vrot.lane.b32.xlu1 %v9442_v9, %s10643_s15  ;;  %s13744_s15 = smov 68   ;;  %s13750_s29 = smov 40  }
 0x842   : > { %v9449_v12 = vadd.f32 %v13452_v5, %v9436_v7 }
 0x844   : > { %9459 = vst.msk [vmem:[#allocation5 + $0x40] sm:$0xff] %vm9458_vm9, %v9449_v12  ;;  %9536 = vrot.lane.b32.xlu0 %v9443_v46, %s10644_s9  ;;  %9512 = vrot.lane.b32.xlu1 %v9442_v9, %s10642_s19 }
 0x848   : > { %9514 = vrot.lane.b32.xlu0 %v9443_v46, %s10642_s19  ;;  %9528 = vrot.lane.b32.xlu1 %v9443_v46, %s10646_s23  ;;  %s13746_s19 = smov 84   ;;  %s13748_s23 = smov 48  }
 0x84b   : > { %v9676_v25 = vld [vmem:[#allocation5 + $0x40] sm:$0xff] }
 0x84c   : > { %9582 = vrot.lane.b32.xlu0 %v9445_v14, %s10636_s13  ;;  %9590 = vrot.lane.b32.xlu1 %v9445_v14, %s13741_s28  ;;  %s13751_s13 = smov 52  }
 0x850   : > { %9568 = vrot.lane.b32.xlu0 %v9445_v14, %s13742_s30  ;;  %9552 = vrot.lane.b32.xlu1 %v9444_v50, %s13743_s16 }
 0x854   : > { %9576 = vrot.lane.b32.xlu0 %v9445_v14, %s13744_s15  ;;  %9538 = vrot.lane.b32.xlu1 %v9444_v50, %s10644_s9  ;;  %s13752_s9 = smov 36  }
 0x858   : > { %9558 = vrot.lane.b32.xlu0 %v9444_v50, %s13745_s20  ;;  %9566 = vrot.lane.b32.xlu1 %v9444_v50, %s13742_s30 }
 0x85c   : > { %9592 = vrot.lane.b32.xlu0 %v9446_v13, %s13741_s28  ;;  %9546 = vrot.lane.b32.xlu1 %v9444_v50, %s13746_s19 }
 0x860   : > { %9620 = vrot.lane.b32.xlu0 %v9446_v13, %s13747_s22  ;;  %9612 = vrot.lane.b32.xlu1 %v9446_v13, %s13748_s23 }
 0x864   : > { %9642 = vrot.lane.b32.xlu0 %v9447_v60, %s13749_s26  ;;  %9600 = vrot.lane.b32.xlu1 %v9446_v13, %s10630_s25  ;;  %s13757_s25 = smov 24  }
 0x868   : > { %9630 = vrot.lane.b32.xlu0 %v9447_v60, %s13750_s29  ;;  %9606 = vrot.lane.b32.xlu1 %v9446_v13, %s13751_s13 }
 0x86c   : > { %9636 = vrot.lane.b32.xlu0 %v9447_v60, %s13752_s9  ;;  %9622 = vrot.lane.b32.xlu1 %v9447_v60, %s13747_s22 }
 0x870   : > { %9678 = vrot.lane.b32.xlu0 %v9676_v25, %s13753_s11  ;;  %9670 = vrot.lane.b32.xlu1 %v9676_v25, %s13754_s24 }
 0x874   : > { %9684 = vrot.lane.b32.xlu0 %v9676_v25, %s13755_s12  ;;  %9648 = vrot.lane.b32.xlu1 %v9448_v1, %s13756_s14 }
 0x878   : > { %9668 = vrot.lane.b32.xlu0 %v9448_v1, %s13754_s24  ;;  %9654 = vrot.lane.b32.xlu1 %v9448_v1, %s13757_s25 }
 0x87c   : > { %9690 = vrot.lane.b32.xlu0 %v9676_v25, %s13758_s21  ;;  %9660 = vrot.lane.b32.xlu1 %v9448_v1, %s13759_s17 }
 0x8a6   : > { %v9473_v48 = vpop.permute.xlu0 %9472  ;;  %v9466_v29 = vpop.permute.xlu1 %9465 }
 0x8a7   : > { %9469 = vst.msk [vmem:[%s13461_s18] sm:$0xff] %vm9468_vm10, %v9466_v29 }
 0x8a8   : > { %9476 = vst.msk [vmem:[%s13461_s18] sm:$0xff] %vm9475_vm0, %v9473_v48 }
 0x8aa   : > { %v9484_v61 = vpop.permute.xlu0 %9483  ;;  %v9482_v44 = vpop.permute.xlu1 %9481 }
 0x8ab   : > { %v9486_v23 = vsel %vm9485_vm1, %v9482_v44, %v9484_v61 }
 0x8ac   : > { %9489 = vst.msk [vmem:[%s13461_s18] sm:$0xff] %vm9488_vm15, %v9486_v23 }
 0x8ae   : > { %v9499_v53 = vpop.permute.xlu0 %9498  ;;  %v9493_v31 = vpop.permute.xlu1 %9492 }
 0x8af   : > { %9495 = vst.msk [vmem:[%s13461_s18 + $0x8] sm:$0xff] %vm9461_vm12, %v9493_v31 }
 0x8b0   : > { %9501 = vst.msk [vmem:[%s13461_s18 + $0x8] sm:$0xff] %vm9468_vm10, %v9499_v53 }
 0x8b2   : > { %v9523_v39 = vpop.permute.xlu0 %9522  ;;  %v9505_v16 = vpop.permute.xlu1 %9504 }
 0x8b3   : > { %9525 = vst.msk [vmem:[%s13461_s18 + $0x10] sm:$0xff] %vm9461_vm12, %v9523_v39 }
 0x8b4   : > { %9507 = vst.msk [vmem:[%s13461_s18 + $0x8] sm:$0xff] %vm9475_vm0, %v9505_v16 }
 0x8b6   : > { %v9537_v5 = vpop.permute.xlu0 %9536  ;;  %v9513_v24 = vpop.permute.xlu1 %9512 }
 0x8ba   : > { %v9515_v54 = vpop.permute.xlu0 %9514  ;;  %v9529_v28 = vpop.permute.xlu1 %9528 }
 0x8bb   : > { %v9517_v15 = vsel %vm9516_vm2, %v9513_v24, %v9515_v54  ;;  %9531 = vst.msk [vmem:[%s13461_s18 + $0x10] sm:$0xff] %vm9468_vm10, %v9529_v28 }
 0x8bc   : > { %9519 = vst.msk [vmem:[%s13461_s18 + $0x8] sm:$0xff] %vm9488_vm15, %v9517_v15 }
 0x8be   : > { %v9583_v57 = vpop.permute.xlu0 %9582  ;;  %v9591_v47 = vpop.permute.xlu1 %9590 }
 0x8bf   : > { %9585 = vst.msk [vmem:[%s13461_s18 + $0x20] sm:$0xff] %vm9461_vm12, %v9583_v57 }
 0x8c2   : > { %v9569_v51 = vpop.permute.xlu0 %9568  ;;  %v9553_v17 = vpop.permute.xlu1 %9552 }
 0x8c3   : > { %9555 = vst.msk [vmem:[%s13461_s18 + $0x18] sm:$0xff] %vm9461_vm12, %v9553_v17 }
 0x8c6   : > { %v9577_v41 = vpop.permute.xlu0 %9576  ;;  %v9539_v38 = vpop.permute.xlu1 %9538 }
 0x8c7   : > { %v9541_v2 = vsel %vm9540_vm11, %v9537_v5, %v9539_v38 }
 0x8c8   : > { %9543 = vst.msk [vmem:[%s13461_s18 + $0x10] sm:$0xff] %vm9475_vm0, %v9541_v2 }
 0x8ca   : > { %v9559_v9 = vpop.permute.xlu0 %9558  ;;  %v9567_v55 = vpop.permute.xlu1 %9566 }
 0x8cb   : > { %9561 = vst.msk [vmem:[%s13461_s18 + $0x18] sm:$0xff] %vm9468_vm10, %v9559_v9  ;;  %v9571_v45 = vsel %vm4818_vm3, %v9567_v55, %v9569_v51  ;;  %vm9624_vm3 = vcmask 359424  }
 0x8cc   : > { %9573 = vst.msk [vmem:[%s13461_s18 + $0x18] sm:$0xff] %vm9475_vm0, %v9571_v45 }
 0x8cd   : > { %9579 = vst.msk [vmem:[%s13461_s18 + $0x18] sm:$0xff] %vm9488_vm15, %v9577_v41 }
 0x8ce   : > { %v9593_v30 = vpop.permute.xlu0 %9592  ;;  %v9547_v22 = vpop.permute.xlu1 %9546 }
 0x8cf   : > { %v9595_v27 = vsel %vm9594_vm8, %v9591_v47, %v9593_v30  ;;  %9549 = vst.msk [vmem:[%s13461_s18 + $0x10] sm:$0xff] %vm9488_vm15, %v9547_v22 }
 0x8d0   : > { %9597 = vst.msk [vmem:[%s13461_s18 + $0x20] sm:$0xff] %vm9468_vm10, %v9595_v27 }
 0x8d2   : > { %v9621_v42 = vpop.permute.xlu0 %9620  ;;  %v9613_v8 = vpop.permute.xlu1 %9612 }
 0x8d3   : > { %9615 = vst.msk [vmem:[%s13461_s18 + $0x28] sm:$0xff] %vm9461_vm12, %v9613_v8 }
 0x8d6   : > { %v9643_v46 = vpop.permute.xlu0 %9642  ;;  %v9601_v19 = vpop.permute.xlu1 %9600 }
 0x8d7   : > { %9645 = vst.msk [vmem:[%s13461_s18 + $0x30] sm:$0xff] %vm9461_vm12, %v9643_v46 }
 0x8d8   : > { %9603 = vst.msk [vmem:[%s13461_s18 + $0x20] sm:$0xff] %vm9475_vm0, %v9601_v19 }
 0x8da   : > { %v9631_v20 = vpop.permute.xlu0 %9630  ;;  %v9607_v37 = vpop.permute.xlu1 %9606 }
 0x8db   : > { %9609 = vst.msk [vmem:[%s13461_s18 + $0x20] sm:$0xff] %vm9488_vm15, %v9607_v37 }
 0x8de   : > { %v9637_v33 = vpop.permute.xlu0 %9636  ;;  %v9623_v56 = vpop.permute.xlu1 %9622 }
 0x8df   : > { %v9625_v49 = vsel %vm9624_vm3, %v9621_v42, %v9623_v56 }
 0x8e0   : > { %9627 = vst.msk [vmem:[%s13461_s18 + $0x28] sm:$0xff] %vm9468_vm10, %v9625_v49 }
 0x8e1   : > { %9633 = vst.msk [vmem:[%s13461_s18 + $0x28] sm:$0xff] %vm9475_vm0, %v9631_v20 }
 0x8e2   : > { %9639 = vst.msk [vmem:[%s13461_s18 + $0x28] sm:$0xff] %vm9488_vm15, %v9637_v33  ;;  %v9679_v50 = vpop.permute.xlu0 %9678  ;;  %v9671_v6 = vpop.permute.xlu1 %9670 }
 0x8e6   : > { %v9685_v52 = vpop.permute.xlu0 %9684  ;;  %v9649_v35 = vpop.permute.xlu1 %9648 }
 0x8e7   : > { %9651 = vst.msk [vmem:[%s13461_s18 + $0x30] sm:$0xff] %vm9468_vm10, %v9649_v35 }
 0x8ea   : > { %v9669_v59 = vpop.permute.xlu0 %9668  ;;  %v9655_v10 = vpop.permute.xlu1 %9654 }
 0x8eb   : > { %v9673_v26 = vsel %vm9672_vm13, %v9669_v59, %v9671_v6  ;;  %9657 = vst.msk [vmem:[%s13461_s18 + $0x30] sm:$0xff] %vm9475_vm0, %v9655_v10 }
 0x8ec   : > { %9675 = vst.msk [vmem:[%s13461_s18 + $0x38] sm:$0xff] %vm9461_vm12, %v9673_v26 }
 0x8ed   : > { %9681 = vst.msk [vmem:[%s13461_s18 + $0x38] sm:$0xff] %vm9468_vm10, %v9679_v50 }
 0x8ee   : > { %9687 = vst.msk [vmem:[%s13461_s18 + $0x38] sm:$0xff] %vm9475_vm0, %v9685_v52  ;;  %v9691_v0 = vpop.permute.xlu0 %9690  ;;  %v9661_v4 = vpop.permute.xlu1 %9660 }
 0x8ef   : > { %9693 = vst.msk [vmem:[%s13461_s18 + $0x38] sm:$0xff] %vm9488_vm15, %v9691_v0  ;;  %9663 = vst.msk [vmem:[%s13461_s18 + $0x30] sm:$0xff] %vm9488_vm15, %v9661_v4 }
 0x8f0 PF: > { %s18_s27 = sadd.s32 1, %s10617_s27  }
 0x8f1   : > { %p15_p4 = scmp.ge.s32.totalorder %s18_s27, 4  }
 0x8f3   :  { %17 = sbr.rel (!%p15_p4) target bundleno = 1 (0x1), region = 106 }

</bundles_post_ra>
